<compile_context>
chip_gen: v5e
topology: v5e:2x2
jax: 0.10.0
libtpu: 0.0.40
codegen_flags: <defaults>
</compile_context>

<pallas_src>
import functools

import jax
import jax.numpy as jnp
from jax.experimental import pallas as pl
from jax.experimental.pallas import tpu as pltpu


# ----------------------------------------------------------------------------
# Fused Pallas kernel: entire MyTempModel forward for one batch element.
# In-kernel layout: (C, H*W) — channels on sublanes, spatial on lanes.
# ----------------------------------------------------------------------------
def _shifted_taps(x, m_ref, H, W):
    """The 9 zero-padded 3x3-neighbourhood taps of x (C, H*W).

    Each tap is a lane rotation (XLU) of the flattened image plus a boundary
    mask implementing zero padding — no jnp.pad, no reshape copies.
    Assumes H*W is a multiple of 128 (true for the 16x16 test shapes).
    """
    HW = H * W
    taps = []
    for k in range(9):
        oy, ox = k // 3 - 1, k % 3 - 1
        d = oy * W + ox                      # flat-index offset of this tap
        if d == 0:
            taps.append(x)                   # centre tap: no shift, no mask
        else:
            shifted = pltpu.roll(x, shift=(-d) % HW, axis=1)
            taps.append(m_ref[k] * shifted)  # zero rows/cols that wrapped
    return taps


def _conv3x3(taps, wmat):
    """out[co, p] = sum_{k,ci} wmat[co, k*Cin+ci] * taps[k][ci, p].

    Pure-VPU broadcast MACs on lane-dense (C, H*W) data: ~36 outer-product
    accumulations per conv, each touching only 2 vregs.
    """
    cout = wmat.shape[0]
    cin, hw = taps[0].shape
    acc = jnp.zeros((cout, hw), jnp.float32)
    for k in range(9):
        t = taps[k]
        for ci in range(cin):
            j = k * cin + ci
            acc = acc + wmat[:, j:j + 1] * t[ci:ci + 1, :]
    return acc


def _fused_forward_kernel(xs_ref, xh_ref, bc_ref, bu_ref, m_ref,
                          wcs_ref, wch_ref, wu1_ref, wco_ref, bco_ref,
                          wu2_ref, bu2_ref, o_ref, *, H, W):
    K = wco_ref.shape[0]
    taps = lambda v: _shifted_taps(v, m_ref, H, W)

    xs = xs_ref[0]                      # sample, (C, H*W)
    xh = xh_ref[0]                      # hint,   (C, H*W)
    t_s = taps(xs)
    t_h = taps(xh)

    # ---- control_model(sample, hint, timestep, context) --------------------
    # bc already contains both conv biases + the timestep/context embedding.
    hc = _conv3x3(t_s, wcs_ref[...]) + _conv3x3(t_h, wch_ref[...]) + bc_ref[0]
    hc = jnp.maximum(hc, 0.0)
    t_c = taps(hc)

    # ---- unet_model(sample, timestep, context, control) --------------------
    hu = _conv3x3(t_s, wu1_ref[...]) + bu_ref[0]
    # `control = [c * scale for ...]`: the scales are pre-folded into wco/bco;
    # the scaled controls are summed straight into the UNet hidden in VMEM.
    for k in range(K):
        hu = hu + _conv3x3(t_c, wco_ref[k]) + bco_ref[k]
    hu = jnp.maximum(hu, 0.0)
    t_u = taps(hu)

    o_ref[0] = _conv3x3(t_u, wu2_ref[...]) + bu2_ref[...]


# ----------------------------------------------------------------------------
# Wrapper: layout plumbing + sub-vreg embedding prep (pure XLA), one launch.
# ----------------------------------------------------------------------------
def _conv_weight_matrix(w):
    """(3,3,Cin,Cout) -> (Cout, 9*Cin), column index j = tap*Cin + cin."""
    kh, kw, cin, cout = w.shape
    return w.reshape(kh * kw * cin, cout).T


def _tap_masks(H, W):
    """(9, 1, H*W) float masks implementing zero padding for each 3x3 tap."""
    yy = jnp.arange(H * W, dtype=jnp.int32) // W
    xx = jnp.arange(H * W, dtype=jnp.int32) % W
    rows = []
    for k in range(9):
        oy, ox = k // 3 - 1, k % 3 - 1
        valid = ((yy + oy >= 0) & (yy + oy < H)
                 & (xx + ox >= 0) & (xx + ox < W))
        rows.append(valid)
    return jnp.stack(rows).astype(jnp.float32)[:, None, :]


def _timestep_features(t):
    # (B,) -> (B, 4) simple deterministic time-embedding features
    return jnp.stack([t, jnp.sin(t), jnp.cos(t), jnp.ones_like(t)], axis=-1)


def my_temp_model_forward(params, sample, hint, timestep, context,
                          control_scales):
    """sample/hint are NCHW (PyTorch convention); returns latent in NCHW."""
    B, C, H, W = sample.shape
    HW = H * W
    K = len(params["c_out_w"])

    # --- tiny per-batch prep: embeddings folded into (B, C, 1) bias columns --
    # (a couple of sub-vreg dots; XLA fuses this — no pallas launches, and the
    # broadcast over H*W happens inside the fused kernel, not in HBM)
    t_feat = _timestep_features(timestep)                       # (B, 4)
    ctxm = jnp.mean(context, axis=1)                            # (B, ctx_dim)
    emb_c = (t_feat @ params["c_temb_w"] + params["c_temb_b"]
             + ctxm @ params["c_ctx_w"] + params["c_ctx_b"])    # (B, C)
    emb_u = (t_feat @ params["u_temb_w"] + params["u_temb_b"]
             + ctxm @ params["u_ctx_w"] + params["u_ctx_b"])    # (B, C)
    bias_c = (params["c_conv_s_b"] + params["c_conv_h_b"] + emb_c)[:, :, None]
    bias_u = (params["u_conv1_b"] + emb_u)[:, :, None]          # (B, C, 1)

    # --- conv weights as (Cout, 9*Cin); control scales folded into producers -
    w_cs = _conv_weight_matrix(params["c_conv_s_w"])
    w_ch = _conv_weight_matrix(params["c_conv_h_w"])
    w_u1 = _conv_weight_matrix(params["u_conv1_w"])
    w_u2 = _conv_weight_matrix(params["u_conv2_w"])
    b_u2 = params["u_conv2_b"][:, None]                         # (C, 1)
    scales = control_scales.reshape(K, 1, 1)
    w_co = scales * jnp.stack(
        [_conv_weight_matrix(w) for w in params["c_out_w"]], axis=0)  # (K,C,9C)
    b_co = scales * jnp.stack(params["c_out_b"], axis=0)[:, :, None]  # (K,C,1)
    # NOTE: at memory-bound sizes, cast activations/weights to bfloat16 here
    # (v6e/v7x); kept f32 at this toy size.

    masks = _tap_masks(H, W)                                    # (9, 1, HW)
    xs_flat = sample.reshape(B, C, HW)                          # lane-dense
    xh_flat = hint.reshape(B, C, HW)

    kernel = functools.partial(_fused_forward_kernel, H=H, W=W)

    def batch_block(shape):
        return pl.BlockSpec((1,) + shape, lambda b: (b,) + (0,) * len(shape))

    def full_block(shape):
        return pl.BlockSpec(shape, lambda b: (0,) * len(shape))

    flops = 2 * 9 * C * C * HW * (4 + K) * B          # 7 convs per batch elem
    bytes_accessed = 4 * (3 * B * C * HW + (4 + K) * 9 * C * C + 9 * HW)

    latent_flat = pl.pallas_call(
        kernel,
        out_shape=jax.ShapeDtypeStruct((B, C, HW), jnp.float32),
        grid=(B,),
        in_specs=[
            batch_block((C, HW)),        # sample (flattened spatial on lanes)
            batch_block((C, HW)),        # hint
            batch_block((C, 1)),         # bias_c (conv biases + t/ctx embed)
            batch_block((C, 1)),         # bias_u
            full_block((9, 1, HW)),      # zero-padding boundary masks
            full_block((C, 9 * C)),      # w_cs  (control conv on sample)
            full_block((C, 9 * C)),      # w_ch  (control conv on hint)
            full_block((C, 9 * C)),      # w_u1  (unet conv1)
            full_block((K, C, 9 * C)),   # w_co  (K control-out convs, scaled)
            full_block((K, C, 1)),       # b_co  (scaled)
            full_block((C, 9 * C)),      # w_u2  (unet conv2)
            full_block((C, 1)),          # b_u2
        ],
        out_specs=batch_block((C, HW)),  # last dim 256: lane-dense stores
        compiler_params=pltpu.CompilerParams(
            dimension_semantics=("parallel",),          # both v7x TCs busy
            vmem_limit_bytes=32 * 1024 * 1024),
        cost_estimate=pl.CostEstimate(flops=flops, transcendentals=0,
                                      bytes_accessed=bytes_accessed),
    )(xs_flat, xh_flat, bias_c, bias_u, masks,
      w_cs, w_ch, w_u1, w_co, b_co, w_u2, b_u2)

    return latent_flat.reshape(B, C, H, W)


# ----------------------------------------------------------------------------
# Deterministic parameter init (stand-in control / unet submodules)
# ----------------------------------------------------------------------------
def init_params(key, C=4, ctx_dim=32, num_controls=3):
    keys = iter(jax.random.split(key, 32))

    def w(shape, scale=0.1):
        return scale * jax.random.normal(next(keys), shape, jnp.float32)

    params = {
        # control model
        "c_conv_s_w": w((3, 3, C, C)), "c_conv_s_b": w((C,)),
        "c_conv_h_w": w((3, 3, C, C)), "c_conv_h_b": w((C,)),
        "c_temb_w": w((4, C)), "c_temb_b": w((C,)),
        "c_ctx_w": w((ctx_dim, C)), "c_ctx_b": w((C,)),
        "c_out_w": [w((3, 3, C, C)) for _ in range(num_controls)],
        "c_out_b": [w((C,)) for _ in range(num_controls)],
        # unet model
        "u_conv1_w": w((3, 3, C, C)), "u_conv1_b": w((C,)),
        "u_temb_w": w((4, C)), "u_temb_b": w((C,)),
        "u_ctx_w": w((ctx_dim, C)), "u_ctx_b": w((C,)),
        "u_conv2_w": w((3, 3, C, C)), "u_conv2_b": w((C,)),
    }
    return params


# ----------------------------------------------------------------------------
if __name__ == "__main__":
    B, C, H, W = 2, 4, 16, 16
    SEQ, CTX_DIM = 8, 32
    NUM_CONTROLS = 3

    root = jax.random.PRNGKey(0)
    k_p, k_s, k_h, k_t, k_c = jax.random.split(root, 5)

    params = init_params(k_p, C=C, ctx_dim=CTX_DIM, num_controls=NUM_CONTROLS)

    sample = jax.random.normal(k_s, (B, C, H, W), jnp.float32)        # NCHW
    hint = jax.random.normal(k_h, (B, C, H, W), jnp.float32)          # NCHW
    timestep = jax.random.uniform(k_t, (B,), jnp.float32, 0.0, 1000.0)
    context = jax.random.normal(k_c, (B, SEQ, CTX_DIM), jnp.float32)
    control_scales = jnp.array([1.0, 0.5, 0.25], jnp.float32)

    fwd = jax.jit(my_temp_model_forward)
    latent = fwd(params, sample, hint, timestep, context, control_scales)
    latent = jax.block_until_ready(latent)
    assert latent.shape == (B, C, H, W)
    assert jnp.all(jnp.isfinite(latent))
    print("KERNEL_OK")
</pallas_src>

<mosaic_0001>
module attributes {stable_mosaic.version = 11 : i64} {
  func.func @_fused_forward_kernel(%arg0: i32, %arg1: memref<1x4x256xf32, #tpu.memory_space<vmem>>, %arg2: memref<1x4x256xf32, #tpu.memory_space<vmem>>, %arg3: memref<1x4x1xf32, #tpu.memory_space<vmem>>, %arg4: memref<1x4x1xf32, #tpu.memory_space<vmem>>, %arg5: memref<9x1x256xf32, #tpu.memory_space<vmem>>, %arg6: memref<4x36xf32, #tpu.memory_space<vmem>>, %arg7: memref<4x36xf32, #tpu.memory_space<vmem>>, %arg8: memref<4x36xf32, #tpu.memory_space<vmem>>, %arg9: memref<3x4x36xf32, #tpu.memory_space<vmem>>, %arg10: memref<3x4x1xf32, #tpu.memory_space<vmem>>, %arg11: memref<4x36xf32, #tpu.memory_space<vmem>>, %arg12: memref<4x1xf32, #tpu.memory_space<vmem>>, %arg13: memref<1x4x256xf32, #tpu.memory_space<vmem>>) attributes {dimension_semantics = [#tpu.dimension_semantics<parallel>], iteration_bounds = array<i64: 2>, scalar_prefetch = 0 : i64, scratch_operands = 0 : i64, tpu.core_type = #tpu.core_type<tc>, window_params = [{transform_indices = @transform_0, window_bounds = array<i64: 1, 4, 256>}, {transform_indices = @transform_1, window_bounds = array<i64: 1, 4, 256>}, {transform_indices = @transform_2, window_bounds = array<i64: 1, 4, 1>}, {transform_indices = @transform_3, window_bounds = array<i64: 1, 4, 1>}, {pipeline_mode = #tpu.pipeline_mode<synchronous>, transform_indices = @transform_4, window_bounds = array<i64: 9, 1, 256>}, {pipeline_mode = #tpu.pipeline_mode<synchronous>, transform_indices = @transform_5, window_bounds = array<i64: 4, 36>}, {pipeline_mode = #tpu.pipeline_mode<synchronous>, transform_indices = @transform_6, window_bounds = array<i64: 4, 36>}, {pipeline_mode = #tpu.pipeline_mode<synchronous>, transform_indices = @transform_7, window_bounds = array<i64: 4, 36>}, {pipeline_mode = #tpu.pipeline_mode<synchronous>, transform_indices = @transform_8, window_bounds = array<i64: 3, 4, 36>}, {pipeline_mode = #tpu.pipeline_mode<synchronous>, transform_indices = @transform_9, window_bounds = array<i64: 3, 4, 1>}, {pipeline_mode = #tpu.pipeline_mode<synchronous>, transform_indices = @transform_10, window_bounds = array<i64: 4, 36>}, {pipeline_mode = #tpu.pipeline_mode<synchronous>, transform_indices = @transform_11, window_bounds = array<i64: 4, 1>}, {transform_indices = @transform_12, window_bounds = array<i64: 1, 4, 256>}]} {
    %c0 = arith.constant 0 : index
    %c0_0 = arith.constant 0 : index
    %c0_1 = arith.constant 0 : index
    %0 = vector.load %arg1[%c0, %c0_0, %c0_1] : memref<1x4x256xf32, #tpu.memory_space<vmem>>, vector<1x4x256xf32>
    %1 = vector.shape_cast %0 : vector<1x4x256xf32> to vector<4x256xf32>
    %c0_2 = arith.constant 0 : index
    %c0_3 = arith.constant 0 : index
    %c0_4 = arith.constant 0 : index
    %2 = vector.load %arg2[%c0_2, %c0_3, %c0_4] : memref<1x4x256xf32, #tpu.memory_space<vmem>>, vector<1x4x256xf32>
    %3 = vector.shape_cast %2 : vector<1x4x256xf32> to vector<4x256xf32>
    %c17_i32 = arith.constant 17 : i32
    %4 = tpu.dynamic_rotate %1 by %c17_i32 dim 1 : vector<4x256xf32>, i32 -> vector<4x256xf32>
    %c0_5 = arith.constant 0 : index
    %c0_6 = arith.constant 0 : index
    %c0_7 = arith.constant 0 : index
    %5 = vector.load %arg5[%c0_5, %c0_6, %c0_7] : memref<9x1x256xf32, #tpu.memory_space<vmem>>, vector<1x1x256xf32>
    %6 = vector.shape_cast %5 : vector<1x1x256xf32> to vector<1x256xf32>
    %7 = vector.broadcast %6 : vector<1x256xf32> to vector<4x256xf32>
    %8 = arith.mulf %7, %4 : vector<4x256xf32>
    %c16_i32 = arith.constant 16 : i32
    %9 = tpu.dynamic_rotate %1 by %c16_i32 dim 1 : vector<4x256xf32>, i32 -> vector<4x256xf32>
    %c1 = arith.constant 1 : index
    %c0_8 = arith.constant 0 : index
    %c0_9 = arith.constant 0 : index
    %10 = vector.load %arg5[%c1, %c0_8, %c0_9] : memref<9x1x256xf32, #tpu.memory_space<vmem>>, vector<1x1x256xf32>
    %11 = vector.shape_cast %10 : vector<1x1x256xf32> to vector<1x256xf32>
    %12 = vector.broadcast %11 : vector<1x256xf32> to vector<4x256xf32>
    %13 = arith.mulf %12, %9 : vector<4x256xf32>
    %c15_i32 = arith.constant 15 : i32
    %14 = tpu.dynamic_rotate %1 by %c15_i32 dim 1 : vector<4x256xf32>, i32 -> vector<4x256xf32>
    %c2 = arith.constant 2 : index
    %c0_10 = arith.constant 0 : index
    %c0_11 = arith.constant 0 : index
    %15 = vector.load %arg5[%c2, %c0_10, %c0_11] : memref<9x1x256xf32, #tpu.memory_space<vmem>>, vector<1x1x256xf32>
    %16 = vector.shape_cast %15 : vector<1x1x256xf32> to vector<1x256xf32>
    %17 = vector.broadcast %16 : vector<1x256xf32> to vector<4x256xf32>
    %18 = arith.mulf %17, %14 : vector<4x256xf32>
    %c1_i32 = arith.constant 1 : i32
    %19 = tpu.dynamic_rotate %1 by %c1_i32 dim 1 : vector<4x256xf32>, i32 -> vector<4x256xf32>
    %c3 = arith.constant 3 : index
    %c0_12 = arith.constant 0 : index
    %c0_13 = arith.constant 0 : index
    %20 = vector.load %arg5[%c3, %c0_12, %c0_13] : memref<9x1x256xf32, #tpu.memory_space<vmem>>, vector<1x1x256xf32>
    %21 = vector.shape_cast %20 : vector<1x1x256xf32> to vector<1x256xf32>
    %22 = vector.broadcast %21 : vector<1x256xf32> to vector<4x256xf32>
    %23 = arith.mulf %22, %19 : vector<4x256xf32>
    %c255_i32 = arith.constant 255 : i32
    %24 = tpu.dynamic_rotate %1 by %c255_i32 dim 1 : vector<4x256xf32>, i32 -> vector<4x256xf32>
    %c5 = arith.constant 5 : index
    %c0_14 = arith.constant 0 : index
    %c0_15 = arith.constant 0 : index
    %25 = vector.load %arg5[%c5, %c0_14, %c0_15] : memref<9x1x256xf32, #tpu.memory_space<vmem>>, vector<1x1x256xf32>
    %26 = vector.shape_cast %25 : vector<1x1x256xf32> to vector<1x256xf32>
    %27 = vector.broadcast %26 : vector<1x256xf32> to vector<4x256xf32>
    %28 = arith.mulf %27, %24 : vector<4x256xf32>
    %c241_i32 = arith.constant 241 : i32
    %29 = tpu.dynamic_rotate %1 by %c241_i32 dim 1 : vector<4x256xf32>, i32 -> vector<4x256xf32>
    %c6 = arith.constant 6 : index
    %c0_16 = arith.constant 0 : index
    %c0_17 = arith.constant 0 : index
    %30 = vector.load %arg5[%c6, %c0_16, %c0_17] : memref<9x1x256xf32, #tpu.memory_space<vmem>>, vector<1x1x256xf32>
    %31 = vector.shape_cast %30 : vector<1x1x256xf32> to vector<1x256xf32>
    %32 = vector.broadcast %31 : vector<1x256xf32> to vector<4x256xf32>
    %33 = arith.mulf %32, %29 : vector<4x256xf32>
    %c240_i32 = arith.constant 240 : i32
    %34 = tpu.dynamic_rotate %1 by %c240_i32 dim 1 : vector<4x256xf32>, i32 -> vector<4x256xf32>
    %c7 = arith.constant 7 : index
    %c0_18 = arith.constant 0 : index
    %c0_19 = arith.constant 0 : index
    %35 = vector.load %arg5[%c7, %c0_18, %c0_19] : memref<9x1x256xf32, #tpu.memory_space<vmem>>, vector<1x1x256xf32>
    %36 = vector.shape_cast %35 : vector<1x1x256xf32> to vector<1x256xf32>
    %37 = vector.broadcast %36 : vector<1x256xf32> to vector<4x256xf32>
    %38 = arith.mulf %37, %34 : vector<4x256xf32>
    %c239_i32 = arith.constant 239 : i32
    %39 = tpu.dynamic_rotate %1 by %c239_i32 dim 1 : vector<4x256xf32>, i32 -> vector<4x256xf32>
    %c8 = arith.constant 8 : index
    %c0_20 = arith.constant 0 : index
    %c0_21 = arith.constant 0 : index
    %40 = vector.load %arg5[%c8, %c0_20, %c0_21] : memref<9x1x256xf32, #tpu.memory_space<vmem>>, vector<1x1x256xf32>
    %41 = vector.shape_cast %40 : vector<1x1x256xf32> to vector<1x256xf32>
    %42 = vector.broadcast %41 : vector<1x256xf32> to vector<4x256xf32>
    %43 = arith.mulf %42, %39 : vector<4x256xf32>
    %c17_i32_22 = arith.constant 17 : i32
    %44 = tpu.dynamic_rotate %3 by %c17_i32_22 dim 1 : vector<4x256xf32>, i32 -> vector<4x256xf32>
    %c0_23 = arith.constant 0 : index
    %c0_24 = arith.constant 0 : index
    %c0_25 = arith.constant 0 : index
    %45 = vector.load %arg5[%c0_23, %c0_24, %c0_25] : memref<9x1x256xf32, #tpu.memory_space<vmem>>, vector<1x1x256xf32>
    %46 = vector.shape_cast %45 : vector<1x1x256xf32> to vector<1x256xf32>
    %47 = vector.broadcast %46 : vector<1x256xf32> to vector<4x256xf32>
    %48 = arith.mulf %47, %44 : vector<4x256xf32>
    %c16_i32_26 = arith.constant 16 : i32
    %49 = tpu.dynamic_rotate %3 by %c16_i32_26 dim 1 : vector<4x256xf32>, i32 -> vector<4x256xf32>
    %c1_27 = arith.constant 1 : index
    %c0_28 = arith.constant 0 : index
    %c0_29 = arith.constant 0 : index
    %50 = vector.load %arg5[%c1_27, %c0_28, %c0_29] : memref<9x1x256xf32, #tpu.memory_space<vmem>>, vector<1x1x256xf32>
    %51 = vector.shape_cast %50 : vector<1x1x256xf32> to vector<1x256xf32>
    %52 = vector.broadcast %51 : vector<1x256xf32> to vector<4x256xf32>
    %53 = arith.mulf %52, %49 : vector<4x256xf32>
    %c15_i32_30 = arith.constant 15 : i32
    %54 = tpu.dynamic_rotate %3 by %c15_i32_30 dim 1 : vector<4x256xf32>, i32 -> vector<4x256xf32>
    %c2_31 = arith.constant 2 : index
    %c0_32 = arith.constant 0 : index
    %c0_33 = arith.constant 0 : index
    %55 = vector.load %arg5[%c2_31, %c0_32, %c0_33] : memref<9x1x256xf32, #tpu.memory_space<vmem>>, vector<1x1x256xf32>
    %56 = vector.shape_cast %55 : vector<1x1x256xf32> to vector<1x256xf32>
    %57 = vector.broadcast %56 : vector<1x256xf32> to vector<4x256xf32>
    %58 = arith.mulf %57, %54 : vector<4x256xf32>
    %c1_i32_34 = arith.constant 1 : i32
    %59 = tpu.dynamic_rotate %3 by %c1_i32_34 dim 1 : vector<4x256xf32>, i32 -> vector<4x256xf32>
    %c3_35 = arith.constant 3 : index
    %c0_36 = arith.constant 0 : index
    %c0_37 = arith.constant 0 : index
    %60 = vector.load %arg5[%c3_35, %c0_36, %c0_37] : memref<9x1x256xf32, #tpu.memory_space<vmem>>, vector<1x1x256xf32>
    %61 = vector.shape_cast %60 : vector<1x1x256xf32> to vector<1x256xf32>
    %62 = vector.broadcast %61 : vector<1x256xf32> to vector<4x256xf32>
    %63 = arith.mulf %62, %59 : vector<4x256xf32>
    %c255_i32_38 = arith.constant 255 : i32
    %64 = tpu.dynamic_rotate %3 by %c255_i32_38 dim 1 : vector<4x256xf32>, i32 -> vector<4x256xf32>
    %c5_39 = arith.constant 5 : index
    %c0_40 = arith.constant 0 : index
    %c0_41 = arith.constant 0 : index
    %65 = vector.load %arg5[%c5_39, %c0_40, %c0_41] : memref<9x1x256xf32, #tpu.memory_space<vmem>>, vector<1x1x256xf32>
    %66 = vector.shape_cast %65 : vector<1x1x256xf32> to vector<1x256xf32>
    %67 = vector.broadcast %66 : vector<1x256xf32> to vector<4x256xf32>
    %68 = arith.mulf %67, %64 : vector<4x256xf32>
    %c241_i32_42 = arith.constant 241 : i32
    %69 = tpu.dynamic_rotate %3 by %c241_i32_42 dim 1 : vector<4x256xf32>, i32 -> vector<4x256xf32>
    %c6_43 = arith.constant 6 : index
    %c0_44 = arith.constant 0 : index
    %c0_45 = arith.constant 0 : index
    %70 = vector.load %arg5[%c6_43, %c0_44, %c0_45] : memref<9x1x256xf32, #tpu.memory_space<vmem>>, vector<1x1x256xf32>
    %71 = vector.shape_cast %70 : vector<1x1x256xf32> to vector<1x256xf32>
    %72 = vector.broadcast %71 : vector<1x256xf32> to vector<4x256xf32>
    %73 = arith.mulf %72, %69 : vector<4x256xf32>
    %c240_i32_46 = arith.constant 240 : i32
    %74 = tpu.dynamic_rotate %3 by %c240_i32_46 dim 1 : vector<4x256xf32>, i32 -> vector<4x256xf32>
    %c7_47 = arith.constant 7 : index
    %c0_48 = arith.constant 0 : index
    %c0_49 = arith.constant 0 : index
    %75 = vector.load %arg5[%c7_47, %c0_48, %c0_49] : memref<9x1x256xf32, #tpu.memory_space<vmem>>, vector<1x1x256xf32>
    %76 = vector.shape_cast %75 : vector<1x1x256xf32> to vector<1x256xf32>
    %77 = vector.broadcast %76 : vector<1x256xf32> to vector<4x256xf32>
    %78 = arith.mulf %77, %74 : vector<4x256xf32>
    %c239_i32_50 = arith.constant 239 : i32
    %79 = tpu.dynamic_rotate %3 by %c239_i32_50 dim 1 : vector<4x256xf32>, i32 -> vector<4x256xf32>
    %c8_51 = arith.constant 8 : index
    %c0_52 = arith.constant 0 : index
    %c0_53 = arith.constant 0 : index
    %80 = vector.load %arg5[%c8_51, %c0_52, %c0_53] : memref<9x1x256xf32, #tpu.memory_space<vmem>>, vector<1x1x256xf32>
    %81 = vector.shape_cast %80 : vector<1x1x256xf32> to vector<1x256xf32>
    %82 = vector.broadcast %81 : vector<1x256xf32> to vector<4x256xf32>
    %83 = arith.mulf %82, %79 : vector<4x256xf32>
    %c0_54 = arith.constant 0 : index
    %c0_55 = arith.constant 0 : index
    %84 = vector.load %arg6[%c0_54, %c0_55] : memref<4x36xf32, #tpu.memory_space<vmem>>, vector<4x36xf32>
    %cst = arith.constant 0.000000e+00 : f32
    %85 = vector.broadcast %cst : f32 to vector<4x256xf32>
    %86 = vector.extract_strided_slice %84 {offsets = [0, 0], sizes = [4, 1], strides = [1, 1]} : vector<4x36xf32> to vector<4x1xf32>
    %87 = vector.extract_strided_slice %8 {offsets = [0, 0], sizes = [1, 256], strides = [1, 1]} : vector<4x256xf32> to vector<1x256xf32>
    %88 = vector.broadcast %86 : vector<4x1xf32> to vector<4x256xf32>
    %89 = vector.broadcast %87 : vector<1x256xf32> to vector<4x256xf32>
    %90 = arith.mulf %88, %89 : vector<4x256xf32>
    %91 = arith.addf %85, %90 : vector<4x256xf32>
    %92 = vector.extract_strided_slice %84 {offsets = [0, 1], sizes = [4, 1], strides = [1, 1]} : vector<4x36xf32> to vector<4x1xf32>
    %93 = vector.extract_strided_slice %8 {offsets = [1, 0], sizes = [1, 256], strides = [1, 1]} : vector<4x256xf32> to vector<1x256xf32>
    %94 = vector.broadcast %92 : vector<4x1xf32> to vector<4x256xf32>
    %95 = vector.broadcast %93 : vector<1x256xf32> to vector<4x256xf32>
    %96 = arith.mulf %94, %95 : vector<4x256xf32>
    %97 = arith.addf %91, %96 : vector<4x256xf32>
    %98 = vector.extract_strided_slice %84 {offsets = [0, 2], sizes = [4, 1], strides = [1, 1]} : vector<4x36xf32> to vector<4x1xf32>
    %99 = vector.extract_strided_slice %8 {offsets = [2, 0], sizes = [1, 256], strides = [1, 1]} : vector<4x256xf32> to vector<1x256xf32>
    %100 = vector.broadcast %98 : vector<4x1xf32> to vector<4x256xf32>
    %101 = vector.broadcast %99 : vector<1x256xf32> to vector<4x256xf32>
    %102 = arith.mulf %100, %101 : vector<4x256xf32>
    %103 = arith.addf %97, %102 : vector<4x256xf32>
    %104 = vector.extract_strided_slice %84 {offsets = [0, 3], sizes = [4, 1], strides = [1, 1]} : vector<4x36xf32> to vector<4x1xf32>
    %105 = vector.extract_strided_slice %8 {offsets = [3, 0], sizes = [1, 256], strides = [1, 1]} : vector<4x256xf32> to vector<1x256xf32>
    %106 = vector.broadcast %104 : vector<4x1xf32> to vector<4x256xf32>
    %107 = vector.broadcast %105 : vector<1x256xf32> to vector<4x256xf32>
    %108 = arith.mulf %106, %107 : vector<4x256xf32>
    %109 = arith.addf %103, %108 : vector<4x256xf32>
    %110 = vector.extract_strided_slice %84 {offsets = [0, 4], sizes = [4, 1], strides = [1, 1]} : vector<4x36xf32> to vector<4x1xf32>
    %111 = vector.extract_strided_slice %13 {offsets = [0, 0], sizes = [1, 256], strides = [1, 1]} : vector<4x256xf32> to vector<1x256xf32>
    %112 = vector.broadcast %110 : vector<4x1xf32> to vector<4x256xf32>
    %113 = vector.broadcast %111 : vector<1x256xf32> to vector<4x256xf32>
    %114 = arith.mulf %112, %113 : vector<4x256xf32>
    %115 = arith.addf %109, %114 : vector<4x256xf32>
    %116 = vector.extract_strided_slice %84 {offsets = [0, 5], sizes = [4, 1], strides = [1, 1]} : vector<4x36xf32> to vector<4x1xf32>
    %117 = vector.extract_strided_slice %13 {offsets = [1, 0], sizes = [1, 256], strides = [1, 1]} : vector<4x256xf32> to vector<1x256xf32>
    %118 = vector.broadcast %116 : vector<4x1xf32> to vector<4x256xf32>
    %119 = vector.broadcast %117 : vector<1x256xf32> to vector<4x256xf32>
    %120 = arith.mulf %118, %119 : vector<4x256xf32>
    %121 = arith.addf %115, %120 : vector<4x256xf32>
    %122 = vector.extract_strided_slice %84 {offsets = [0, 6], sizes = [4, 1], strides = [1, 1]} : vector<4x36xf32> to vector<4x1xf32>
    %123 = vector.extract_strided_slice %13 {offsets = [2, 0], sizes = [1, 256], strides = [1, 1]} : vector<4x256xf32> to vector<1x256xf32>
    %124 = vector.broadcast %122 : vector<4x1xf32> to vector<4x256xf32>
    %125 = vector.broadcast %123 : vector<1x256xf32> to vector<4x256xf32>
    %126 = arith.mulf %124, %125 : vector<4x256xf32>
    %127 = arith.addf %121, %126 : vector<4x256xf32>
    %128 = vector.extract_strided_slice %84 {offsets = [0, 7], sizes = [4, 1], strides = [1, 1]} : vector<4x36xf32> to vector<4x1xf32>
    %129 = vector.extract_strided_slice %13 {offsets = [3, 0], sizes = [1, 256], strides = [1, 1]} : vector<4x256xf32> to vector<1x256xf32>
    %130 = vector.broadcast %128 : vector<4x1xf32> to vector<4x256xf32>
    %131 = vector.broadcast %129 : vector<1x256xf32> to vector<4x256xf32>
    %132 = arith.mulf %130, %131 : vector<4x256xf32>
    %133 = arith.addf %127, %132 : vector<4x256xf32>
    %134 = vector.extract_strided_slice %84 {offsets = [0, 8], sizes = [4, 1], strides = [1, 1]} : vector<4x36xf32> to vector<4x1xf32>
    %135 = vector.extract_strided_slice %18 {offsets = [0, 0], sizes = [1, 256], strides = [1, 1]} : vector<4x256xf32> to vector<1x256xf32>
    %136 = vector.broadcast %134 : vector<4x1xf32> to vector<4x256xf32>
    %137 = vector.broadcast %135 : vector<1x256xf32> to vector<4x256xf32>
    %138 = arith.mulf %136, %137 : vector<4x256xf32>
    %139 = arith.addf %133, %138 : vector<4x256xf32>
    %140 = vector.extract_strided_slice %84 {offsets = [0, 9], sizes = [4, 1], strides = [1, 1]} : vector<4x36xf32> to vector<4x1xf32>
    %141 = vector.extract_strided_slice %18 {offsets = [1, 0], sizes = [1, 256], strides = [1, 1]} : vector<4x256xf32> to vector<1x256xf32>
    %142 = vector.broadcast %140 : vector<4x1xf32> to vector<4x256xf32>
    %143 = vector.broadcast %141 : vector<1x256xf32> to vector<4x256xf32>
    %144 = arith.mulf %142, %143 : vector<4x256xf32>
    %145 = arith.addf %139, %144 : vector<4x256xf32>
    %146 = vector.extract_strided_slice %84 {offsets = [0, 10], sizes = [4, 1], strides = [1, 1]} : vector<4x36xf32> to vector<4x1xf32>
    %147 = vector.extract_strided_slice %18 {offsets = [2, 0], sizes = [1, 256], strides = [1, 1]} : vector<4x256xf32> to vector<1x256xf32>
    %148 = vector.broadcast %146 : vector<4x1xf32> to vector<4x256xf32>
    %149 = vector.broadcast %147 : vector<1x256xf32> to vector<4x256xf32>
    %150 = arith.mulf %148, %149 : vector<4x256xf32>
    %151 = arith.addf %145, %150 : vector<4x256xf32>
    %152 = vector.extract_strided_slice %84 {offsets = [0, 11], sizes = [4, 1], strides = [1, 1]} : vector<4x36xf32> to vector<4x1xf32>
    %153 = vector.extract_strided_slice %18 {offsets = [3, 0], sizes = [1, 256], strides = [1, 1]} : vector<4x256xf32> to vector<1x256xf32>
    %154 = vector.broadcast %152 : vector<4x1xf32> to vector<4x256xf32>
    %155 = vector.broadcast %153 : vector<1x256xf32> to vector<4x256xf32>
    %156 = arith.mulf %154, %155 : vector<4x256xf32>
    %157 = arith.addf %151, %156 : vector<4x256xf32>
    %158 = vector.extract_strided_slice %84 {offsets = [0, 12], sizes = [4, 1], strides = [1, 1]} : vector<4x36xf32> to vector<4x1xf32>
    %159 = vector.extract_strided_slice %23 {offsets = [0, 0], sizes = [1, 256], strides = [1, 1]} : vector<4x256xf32> to vector<1x256xf32>
    %160 = vector.broadcast %158 : vector<4x1xf32> to vector<4x256xf32>
    %161 = vector.broadcast %159 : vector<1x256xf32> to vector<4x256xf32>
    %162 = arith.mulf %160, %161 : vector<4x256xf32>
    %163 = arith.addf %157, %162 : vector<4x256xf32>
    %164 = vector.extract_strided_slice %84 {offsets = [0, 13], sizes = [4, 1], strides = [1, 1]} : vector<4x36xf32> to vector<4x1xf32>
    %165 = vector.extract_strided_slice %23 {offsets = [1, 0], sizes = [1, 256], strides = [1, 1]} : vector<4x256xf32> to vector<1x256xf32>
    %166 = vector.broadcast %164 : vector<4x1xf32> to vector<4x256xf32>
    %167 = vector.broadcast %165 : vector<1x256xf32> to vector<4x256xf32>
    %168 = arith.mulf %166, %167 : vector<4x256xf32>
    %169 = arith.addf %163, %168 : vector<4x256xf32>
    %170 = vector.extract_strided_slice %84 {offsets = [0, 14], sizes = [4, 1], strides = [1, 1]} : vector<4x36xf32> to vector<4x1xf32>
    %171 = vector.extract_strided_slice %23 {offsets = [2, 0], sizes = [1, 256], strides = [1, 1]} : vector<4x256xf32> to vector<1x256xf32>
    %172 = vector.broadcast %170 : vector<4x1xf32> to vector<4x256xf32>
    %173 = vector.broadcast %171 : vector<1x256xf32> to vector<4x256xf32>
    %174 = arith.mulf %172, %173 : vector<4x256xf32>
    %175 = arith.addf %169, %174 : vector<4x256xf32>
    %176 = vector.extract_strided_slice %84 {offsets = [0, 15], sizes = [4, 1], strides = [1, 1]} : vector<4x36xf32> to vector<4x1xf32>
    %177 = vector.extract_strided_slice %23 {offsets = [3, 0], sizes = [1, 256], strides = [1, 1]} : vector<4x256xf32> to vector<1x256xf32>
    %178 = vector.broadcast %176 : vector<4x1xf32> to vector<4x256xf32>
    %179 = vector.broadcast %177 : vector<1x256xf32> to vector<4x256xf32>
    %180 = arith.mulf %178, %179 : vector<4x256xf32>
    %181 = arith.addf %175, %180 : vector<4x256xf32>
    %182 = vector.extract_strided_slice %84 {offsets = [0, 16], sizes = [4, 1], strides = [1, 1]} : vector<4x36xf32> to vector<4x1xf32>
    %183 = vector.extract_strided_slice %1 {offsets = [0, 0], sizes = [1, 256], strides = [1, 1]} : vector<4x256xf32> to vector<1x256xf32>
    %184 = vector.broadcast %182 : vector<4x1xf32> to vector<4x256xf32>
    %185 = vector.broadcast %183 : vector<1x256xf32> to vector<4x256xf32>
    %186 = arith.mulf %184, %185 : vector<4x256xf32>
    %187 = arith.addf %181, %186 : vector<4x256xf32>
    %188 = vector.extract_strided_slice %84 {offsets = [0, 17], sizes = [4, 1], strides = [1, 1]} : vector<4x36xf32> to vector<4x1xf32>
    %189 = vector.extract_strided_slice %1 {offsets = [1, 0], sizes = [1, 256], strides = [1, 1]} : vector<4x256xf32> to vector<1x256xf32>
    %190 = vector.broadcast %188 : vector<4x1xf32> to vector<4x256xf32>
    %191 = vector.broadcast %189 : vector<1x256xf32> to vector<4x256xf32>
    %192 = arith.mulf %190, %191 : vector<4x256xf32>
    %193 = arith.addf %187, %192 : vector<4x256xf32>
    %194 = vector.extract_strided_slice %84 {offsets = [0, 18], sizes = [4, 1], strides = [1, 1]} : vector<4x36xf32> to vector<4x1xf32>
    %195 = vector.extract_strided_slice %1 {offsets = [2, 0], sizes = [1, 256], strides = [1, 1]} : vector<4x256xf32> to vector<1x256xf32>
    %196 = vector.broadcast %194 : vector<4x1xf32> to vector<4x256xf32>
    %197 = vector.broadcast %195 : vector<1x256xf32> to vector<4x256xf32>
    %198 = arith.mulf %196, %197 : vector<4x256xf32>
    %199 = arith.addf %193, %198 : vector<4x256xf32>
    %200 = vector.extract_strided_slice %84 {offsets = [0, 19], sizes = [4, 1], strides = [1, 1]} : vector<4x36xf32> to vector<4x1xf32>
    %201 = vector.extract_strided_slice %1 {offsets = [3, 0], sizes = [1, 256], strides = [1, 1]} : vector<4x256xf32> to vector<1x256xf32>
    %202 = vector.broadcast %200 : vector<4x1xf32> to vector<4x256xf32>
    %203 = vector.broadcast %201 : vector<1x256xf32> to vector<4x256xf32>
    %204 = arith.mulf %202, %203 : vector<4x256xf32>
    %205 = arith.addf %199, %204 : vector<4x256xf32>
    %206 = vector.extract_strided_slice %84 {offsets = [0, 20], sizes = [4, 1], strides = [1, 1]} : vector<4x36xf32> to vector<4x1xf32>
    %207 = vector.extract_strided_slice %28 {offsets = [0, 0], sizes = [1, 256], strides = [1, 1]} : vector<4x256xf32> to vector<1x256xf32>
    %208 = vector.broadcast %206 : vector<4x1xf32> to vector<4x256xf32>
    %209 = vector.broadcast %207 : vector<1x256xf32> to vector<4x256xf32>
    %210 = arith.mulf %208, %209 : vector<4x256xf32>
    %211 = arith.addf %205, %210 : vector<4x256xf32>
    %212 = vector.extract_strided_slice %84 {offsets = [0, 21], sizes = [4, 1], strides = [1, 1]} : vector<4x36xf32> to vector<4x1xf32>
    %213 = vector.extract_strided_slice %28 {offsets = [1, 0], sizes = [1, 256], strides = [1, 1]} : vector<4x256xf32> to vector<1x256xf32>
    %214 = vector.broadcast %212 : vector<4x1xf32> to vector<4x256xf32>
    %215 = vector.broadcast %213 : vector<1x256xf32> to vector<4x256xf32>
    %216 = arith.mulf %214, %215 : vector<4x256xf32>
    %217 = arith.addf %211, %216 : vector<4x256xf32>
    %218 = vector.extract_strided_slice %84 {offsets = [0, 22], sizes = [4, 1], strides = [1, 1]} : vector<4x36xf32> to vector<4x1xf32>
    %219 = vector.extract_strided_slice %28 {offsets = [2, 0], sizes = [1, 256], strides = [1, 1]} : vector<4x256xf32> to vector<1x256xf32>
    %220 = vector.broadcast %218 : vector<4x1xf32> to vector<4x256xf32>
    %221 = vector.broadcast %219 : vector<1x256xf32> to vector<4x256xf32>
    %222 = arith.mulf %220, %221 : vector<4x256xf32>
    %223 = arith.addf %217, %222 : vector<4x256xf32>
    %224 = vector.extract_strided_slice %84 {offsets = [0, 23], sizes = [4, 1], strides = [1, 1]} : vector<4x36xf32> to vector<4x1xf32>
    %225 = vector.extract_strided_slice %28 {offsets = [3, 0], sizes = [1, 256], strides = [1, 1]} : vector<4x256xf32> to vector<1x256xf32>
    %226 = vector.broadcast %224 : vector<4x1xf32> to vector<4x256xf32>
    %227 = vector.broadcast %225 : vector<1x256xf32> to vector<4x256xf32>
    %228 = arith.mulf %226, %227 : vector<4x256xf32>
    %229 = arith.addf %223, %228 : vector<4x256xf32>
    %230 = vector.extract_strided_slice %84 {offsets = [0, 24], sizes = [4, 1], strides = [1, 1]} : vector<4x36xf32> to vector<4x1xf32>
    %231 = vector.extract_strided_slice %33 {offsets = [0, 0], sizes = [1, 256], strides = [1, 1]} : vector<4x256xf32> to vector<1x256xf32>
    %232 = vector.broadcast %230 : vector<4x1xf32> to vector<4x256xf32>
    %233 = vector.broadcast %231 : vector<1x256xf32> to vector<4x256xf32>
    %234 = arith.mulf %232, %233 : vector<4x256xf32>
    %235 = arith.addf %229, %234 : vector<4x256xf32>
    %236 = vector.extract_strided_slice %84 {offsets = [0, 25], sizes = [4, 1], strides = [1, 1]} : vector<4x36xf32> to vector<4x1xf32>
    %237 = vector.extract_strided_slice %33 {offsets = [1, 0], sizes = [1, 256], strides = [1, 1]} : vector<4x256xf32> to vector<1x256xf32>
    %238 = vector.broadcast %236 : vector<4x1xf32> to vector<4x256xf32>
    %239 = vector.broadcast %237 : vector<1x256xf32> to vector<4x256xf32>
    %240 = arith.mulf %238, %239 : vector<4x256xf32>
    %241 = arith.addf %235, %240 : vector<4x256xf32>
    %242 = vector.extract_strided_slice %84 {offsets = [0, 26], sizes = [4, 1], strides = [1, 1]} : vector<4x36xf32> to vector<4x1xf32>
    %243 = vector.extract_strided_slice %33 {offsets = [2, 0], sizes = [1, 256], strides = [1, 1]} : vector<4x256xf32> to vector<1x256xf32>
    %244 = vector.broadcast %242 : vector<4x1xf32> to vector<4x256xf32>
    %245 = vector.broadcast %243 : vector<1x256xf32> to vector<4x256xf32>
    %246 = arith.mulf %244, %245 : vector<4x256xf32>
    %247 = arith.addf %241, %246 : vector<4x256xf32>
    %248 = vector.extract_strided_slice %84 {offsets = [0, 27], sizes = [4, 1], strides = [1, 1]} : vector<4x36xf32> to vector<4x1xf32>
    %249 = vector.extract_strided_slice %33 {offsets = [3, 0], sizes = [1, 256], strides = [1, 1]} : vector<4x256xf32> to vector<1x256xf32>
    %250 = vector.broadcast %248 : vector<4x1xf32> to vector<4x256xf32>
    %251 = vector.broadcast %249 : vector<1x256xf32> to vector<4x256xf32>
    %252 = arith.mulf %250, %251 : vector<4x256xf32>
    %253 = arith.addf %247, %252 : vector<4x256xf32>
    %254 = vector.extract_strided_slice %84 {offsets = [0, 28], sizes = [4, 1], strides = [1, 1]} : vector<4x36xf32> to vector<4x1xf32>
    %255 = vector.extract_strided_slice %38 {offsets = [0, 0], sizes = [1, 256], strides = [1, 1]} : vector<4x256xf32> to vector<1x256xf32>
    %256 = vector.broadcast %254 : vector<4x1xf32> to vector<4x256xf32>
    %257 = vector.broadcast %255 : vector<1x256xf32> to vector<4x256xf32>
    %258 = arith.mulf %256, %257 : vector<4x256xf32>
    %259 = arith.addf %253, %258 : vector<4x256xf32>
    %260 = vector.extract_strided_slice %84 {offsets = [0, 29], sizes = [4, 1], strides = [1, 1]} : vector<4x36xf32> to vector<4x1xf32>
    %261 = vector.extract_strided_slice %38 {offsets = [1, 0], sizes = [1, 256], strides = [1, 1]} : vector<4x256xf32> to vector<1x256xf32>
    %262 = vector.broadcast %260 : vector<4x1xf32> to vector<4x256xf32>
    %263 = vector.broadcast %261 : vector<1x256xf32> to vector<4x256xf32>
    %264 = arith.mulf %262, %263 : vector<4x256xf32>
    %265 = arith.addf %259, %264 : vector<4x256xf32>
    %266 = vector.extract_strided_slice %84 {offsets = [0, 30], sizes = [4, 1], strides = [1, 1]} : vector<4x36xf32> to vector<4x1xf32>
    %267 = vector.extract_strided_slice %38 {offsets = [2, 0], sizes = [1, 256], strides = [1, 1]} : vector<4x256xf32> to vector<1x256xf32>
    %268 = vector.broadcast %266 : vector<4x1xf32> to vector<4x256xf32>
    %269 = vector.broadcast %267 : vector<1x256xf32> to vector<4x256xf32>
    %270 = arith.mulf %268, %269 : vector<4x256xf32>
    %271 = arith.addf %265, %270 : vector<4x256xf32>
    %272 = vector.extract_strided_slice %84 {offsets = [0, 31], sizes = [4, 1], strides = [1, 1]} : vector<4x36xf32> to vector<4x1xf32>
    %273 = vector.extract_strided_slice %38 {offsets = [3, 0], sizes = [1, 256], strides = [1, 1]} : vector<4x256xf32> to vector<1x256xf32>
    %274 = vector.broadcast %272 : vector<4x1xf32> to vector<4x256xf32>
    %275 = vector.broadcast %273 : vector<1x256xf32> to vector<4x256xf32>
    %276 = arith.mulf %274, %275 : vector<4x256xf32>
    %277 = arith.addf %271, %276 : vector<4x256xf32>
    %278 = vector.extract_strided_slice %84 {offsets = [0, 32], sizes = [4, 1], strides = [1, 1]} : vector<4x36xf32> to vector<4x1xf32>
    %279 = vector.extract_strided_slice %43 {offsets = [0, 0], sizes = [1, 256], strides = [1, 1]} : vector<4x256xf32> to vector<1x256xf32>
    %280 = vector.broadcast %278 : vector<4x1xf32> to vector<4x256xf32>
    %281 = vector.broadcast %279 : vector<1x256xf32> to vector<4x256xf32>
    %282 = arith.mulf %280, %281 : vector<4x256xf32>
    %283 = arith.addf %277, %282 : vector<4x256xf32>
    %284 = vector.extract_strided_slice %84 {offsets = [0, 33], sizes = [4, 1], strides = [1, 1]} : vector<4x36xf32> to vector<4x1xf32>
    %285 = vector.extract_strided_slice %43 {offsets = [1, 0], sizes = [1, 256], strides = [1, 1]} : vector<4x256xf32> to vector<1x256xf32>
    %286 = vector.broadcast %284 : vector<4x1xf32> to vector<4x256xf32>
    %287 = vector.broadcast %285 : vector<1x256xf32> to vector<4x256xf32>
    %288 = arith.mulf %286, %287 : vector<4x256xf32>
    %289 = arith.addf %283, %288 : vector<4x256xf32>
    %290 = vector.extract_strided_slice %84 {offsets = [0, 34], sizes = [4, 1], strides = [1, 1]} : vector<4x36xf32> to vector<4x1xf32>
    %291 = vector.extract_strided_slice %43 {offsets = [2, 0], sizes = [1, 256], strides = [1, 1]} : vector<4x256xf32> to vector<1x256xf32>
    %292 = vector.broadcast %290 : vector<4x1xf32> to vector<4x256xf32>
    %293 = vector.broadcast %291 : vector<1x256xf32> to vector<4x256xf32>
    %294 = arith.mulf %292, %293 : vector<4x256xf32>
    %295 = arith.addf %289, %294 : vector<4x256xf32>
    %296 = vector.extract_strided_slice %84 {offsets = [0, 35], sizes = [4, 1], strides = [1, 1]} : vector<4x36xf32> to vector<4x1xf32>
    %297 = vector.extract_strided_slice %43 {offsets = [3, 0], sizes = [1, 256], strides = [1, 1]} : vector<4x256xf32> to vector<1x256xf32>
    %298 = vector.broadcast %296 : vector<4x1xf32> to vector<4x256xf32>
    %299 = vector.broadcast %297 : vector<1x256xf32> to vector<4x256xf32>
    %300 = arith.mulf %298, %299 : vector<4x256xf32>
    %301 = arith.addf %295, %300 : vector<4x256xf32>
    %c0_56 = arith.constant 0 : index
    %c0_57 = arith.constant 0 : index
    %302 = vector.load %arg7[%c0_56, %c0_57] : memref<4x36xf32, #tpu.memory_space<vmem>>, vector<4x36xf32>
    %cst_58 = arith.constant 0.000000e+00 : f32
    %303 = vector.broadcast %cst_58 : f32 to vector<4x256xf32>
    %304 = vector.extract_strided_slice %302 {offsets = [0, 0], sizes = [4, 1], strides = [1, 1]} : vector<4x36xf32> to vector<4x1xf32>
    %305 = vector.extract_strided_slice %48 {offsets = [0, 0], sizes = [1, 256], strides = [1, 1]} : vector<4x256xf32> to vector<1x256xf32>
    %306 = vector.broadcast %304 : vector<4x1xf32> to vector<4x256xf32>
    %307 = vector.broadcast %305 : vector<1x256xf32> to vector<4x256xf32>
    %308 = arith.mulf %306, %307 : vector<4x256xf32>
    %309 = arith.addf %303, %308 : vector<4x256xf32>
    %310 = vector.extract_strided_slice %302 {offsets = [0, 1], sizes = [4, 1], strides = [1, 1]} : vector<4x36xf32> to vector<4x1xf32>
    %311 = vector.extract_strided_slice %48 {offsets = [1, 0], sizes = [1, 256], strides = [1, 1]} : vector<4x256xf32> to vector<1x256xf32>
    %312 = vector.broadcast %310 : vector<4x1xf32> to vector<4x256xf32>
    %313 = vector.broadcast %311 : vector<1x256xf32> to vector<4x256xf32>
    %314 = arith.mulf %312, %313 : vector<4x256xf32>
    %315 = arith.addf %309, %314 : vector<4x256xf32>
    %316 = vector.extract_strided_slice %302 {offsets = [0, 2], sizes = [4, 1], strides = [1, 1]} : vector<4x36xf32> to vector<4x1xf32>
    %317 = vector.extract_strided_slice %48 {offsets = [2, 0], sizes = [1, 256], strides = [1, 1]} : vector<4x256xf32> to vector<1x256xf32>
    %318 = vector.broadcast %316 : vector<4x1xf32> to vector<4x256xf32>
    %319 = vector.broadcast %317 : vector<1x256xf32> to vector<4x256xf32>
    %320 = arith.mulf %318, %319 : vector<4x256xf32>
    %321 = arith.addf %315, %320 : vector<4x256xf32>
    %322 = vector.extract_strided_slice %302 {offsets = [0, 3], sizes = [4, 1], strides = [1, 1]} : vector<4x36xf32> to vector<4x1xf32>
    %323 = vector.extract_strided_slice %48 {offsets = [3, 0], sizes = [1, 256], strides = [1, 1]} : vector<4x256xf32> to vector<1x256xf32>
    %324 = vector.broadcast %322 : vector<4x1xf32> to vector<4x256xf32>
    %325 = vector.broadcast %323 : vector<1x256xf32> to vector<4x256xf32>
    %326 = arith.mulf %324, %325 : vector<4x256xf32>
    %327 = arith.addf %321, %326 : vector<4x256xf32>
    %328 = vector.extract_strided_slice %302 {offsets = [0, 4], sizes = [4, 1], strides = [1, 1]} : vector<4x36xf32> to vector<4x1xf32>
    %329 = vector.extract_strided_slice %53 {offsets = [0, 0], sizes = [1, 256], strides = [1, 1]} : vector<4x256xf32> to vector<1x256xf32>
    %330 = vector.broadcast %328 : vector<4x1xf32> to vector<4x256xf32>
    %331 = vector.broadcast %329 : vector<1x256xf32> to vector<4x256xf32>
    %332 = arith.mulf %330, %331 : vector<4x256xf32>
    %333 = arith.addf %327, %332 : vector<4x256xf32>
    %334 = vector.extract_strided_slice %302 {offsets = [0, 5], sizes = [4, 1], strides = [1, 1]} : vector<4x36xf32> to vector<4x1xf32>
    %335 = vector.extract_strided_slice %53 {offsets = [1, 0], sizes = [1, 256], strides = [1, 1]} : vector<4x256xf32> to vector<1x256xf32>
    %336 = vector.broadcast %334 : vector<4x1xf32> to vector<4x256xf32>
    %337 = vector.broadcast %335 : vector<1x256xf32> to vector<4x256xf32>
    %338 = arith.mulf %336, %337 : vector<4x256xf32>
    %339 = arith.addf %333, %338 : vector<4x256xf32>
    %340 = vector.extract_strided_slice %302 {offsets = [0, 6], sizes = [4, 1], strides = [1, 1]} : vector<4x36xf32> to vector<4x1xf32>
    %341 = vector.extract_strided_slice %53 {offsets = [2, 0], sizes = [1, 256], strides = [1, 1]} : vector<4x256xf32> to vector<1x256xf32>
    %342 = vector.broadcast %340 : vector<4x1xf32> to vector<4x256xf32>
    %343 = vector.broadcast %341 : vector<1x256xf32> to vector<4x256xf32>
    %344 = arith.mulf %342, %343 : vector<4x256xf32>
    %345 = arith.addf %339, %344 : vector<4x256xf32>
    %346 = vector.extract_strided_slice %302 {offsets = [0, 7], sizes = [4, 1], strides = [1, 1]} : vector<4x36xf32> to vector<4x1xf32>
    %347 = vector.extract_strided_slice %53 {offsets = [3, 0], sizes = [1, 256], strides = [1, 1]} : vector<4x256xf32> to vector<1x256xf32>
    %348 = vector.broadcast %346 : vector<4x1xf32> to vector<4x256xf32>
    %349 = vector.broadcast %347 : vector<1x256xf32> to vector<4x256xf32>
    %350 = arith.mulf %348, %349 : vector<4x256xf32>
    %351 = arith.addf %345, %350 : vector<4x256xf32>
    %352 = vector.extract_strided_slice %302 {offsets = [0, 8], sizes = [4, 1], strides = [1, 1]} : vector<4x36xf32> to vector<4x1xf32>
    %353 = vector.extract_strided_slice %58 {offsets = [0, 0], sizes = [1, 256], strides = [1, 1]} : vector<4x256xf32> to vector<1x256xf32>
    %354 = vector.broadcast %352 : vector<4x1xf32> to vector<4x256xf32>
    %355 = vector.broadcast %353 : vector<1x256xf32> to vector<4x256xf32>
    %356 = arith.mulf %354, %355 : vector<4x256xf32>
    %357 = arith.addf %351, %356 : vector<4x256xf32>
    %358 = vector.extract_strided_slice %302 {offsets = [0, 9], sizes = [4, 1], strides = [1, 1]} : vector<4x36xf32> to vector<4x1xf32>
    %359 = vector.extract_strided_slice %58 {offsets = [1, 0], sizes = [1, 256], strides = [1, 1]} : vector<4x256xf32> to vector<1x256xf32>
    %360 = vector.broadcast %358 : vector<4x1xf32> to vector<4x256xf32>
    %361 = vector.broadcast %359 : vector<1x256xf32> to vector<4x256xf32>
    %362 = arith.mulf %360, %361 : vector<4x256xf32>
    %363 = arith.addf %357, %362 : vector<4x256xf32>
    %364 = vector.extract_strided_slice %302 {offsets = [0, 10], sizes = [4, 1], strides = [1, 1]} : vector<4x36xf32> to vector<4x1xf32>
    %365 = vector.extract_strided_slice %58 {offsets = [2, 0], sizes = [1, 256], strides = [1, 1]} : vector<4x256xf32> to vector<1x256xf32>
    %366 = vector.broadcast %364 : vector<4x1xf32> to vector<4x256xf32>
    %367 = vector.broadcast %365 : vector<1x256xf32> to vector<4x256xf32>
    %368 = arith.mulf %366, %367 : vector<4x256xf32>
    %369 = arith.addf %363, %368 : vector<4x256xf32>
    %370 = vector.extract_strided_slice %302 {offsets = [0, 11], sizes = [4, 1], strides = [1, 1]} : vector<4x36xf32> to vector<4x1xf32>
    %371 = vector.extract_strided_slice %58 {offsets = [3, 0], sizes = [1, 256], strides = [1, 1]} : vector<4x256xf32> to vector<1x256xf32>
    %372 = vector.broadcast %370 : vector<4x1xf32> to vector<4x256xf32>
    %373 = vector.broadcast %371 : vector<1x256xf32> to vector<4x256xf32>
    %374 = arith.mulf %372, %373 : vector<4x256xf32>
    %375 = arith.addf %369, %374 : vector<4x256xf32>
    %376 = vector.extract_strided_slice %302 {offsets = [0, 12], sizes = [4, 1], strides = [1, 1]} : vector<4x36xf32> to vector<4x1xf32>
    %377 = vector.extract_strided_slice %63 {offsets = [0, 0], sizes = [1, 256], strides = [1, 1]} : vector<4x256xf32> to vector<1x256xf32>
    %378 = vector.broadcast %376 : vector<4x1xf32> to vector<4x256xf32>
    %379 = vector.broadcast %377 : vector<1x256xf32> to vector<4x256xf32>
    %380 = arith.mulf %378, %379 : vector<4x256xf32>
    %381 = arith.addf %375, %380 : vector<4x256xf32>
    %382 = vector.extract_strided_slice %302 {offsets = [0, 13], sizes = [4, 1], strides = [1, 1]} : vector<4x36xf32> to vector<4x1xf32>
    %383 = vector.extract_strided_slice %63 {offsets = [1, 0], sizes = [1, 256], strides = [1, 1]} : vector<4x256xf32> to vector<1x256xf32>
    %384 = vector.broadcast %382 : vector<4x1xf32> to vector<4x256xf32>
    %385 = vector.broadcast %383 : vector<1x256xf32> to vector<4x256xf32>
    %386 = arith.mulf %384, %385 : vector<4x256xf32>
    %387 = arith.addf %381, %386 : vector<4x256xf32>
    %388 = vector.extract_strided_slice %302 {offsets = [0, 14], sizes = [4, 1], strides = [1, 1]} : vector<4x36xf32> to vector<4x1xf32>
    %389 = vector.extract_strided_slice %63 {offsets = [2, 0], sizes = [1, 256], strides = [1, 1]} : vector<4x256xf32> to vector<1x256xf32>
    %390 = vector.broadcast %388 : vector<4x1xf32> to vector<4x256xf32>
    %391 = vector.broadcast %389 : vector<1x256xf32> to vector<4x256xf32>
    %392 = arith.mulf %390, %391 : vector<4x256xf32>
    %393 = arith.addf %387, %392 : vector<4x256xf32>
    %394 = vector.extract_strided_slice %302 {offsets = [0, 15], sizes = [4, 1], strides = [1, 1]} : vector<4x36xf32> to vector<4x1xf32>
    %395 = vector.extract_strided_slice %63 {offsets = [3, 0], sizes = [1, 256], strides = [1, 1]} : vector<4x256xf32> to vector<1x256xf32>
    %396 = vector.broadcast %394 : vector<4x1xf32> to vector<4x256xf32>
    %397 = vector.broadcast %395 : vector<1x256xf32> to vector<4x256xf32>
    %398 = arith.mulf %396, %397 : vector<4x256xf32>
    %399 = arith.addf %393, %398 : vector<4x256xf32>
    %400 = vector.extract_strided_slice %302 {offsets = [0, 16], sizes = [4, 1], strides = [1, 1]} : vector<4x36xf32> to vector<4x1xf32>
    %401 = vector.extract_strided_slice %3 {offsets = [0, 0], sizes = [1, 256], strides = [1, 1]} : vector<4x256xf32> to vector<1x256xf32>
    %402 = vector.broadcast %400 : vector<4x1xf32> to vector<4x256xf32>
    %403 = vector.broadcast %401 : vector<1x256xf32> to vector<4x256xf32>
    %404 = arith.mulf %402, %403 : vector<4x256xf32>
    %405 = arith.addf %399, %404 : vector<4x256xf32>
    %406 = vector.extract_strided_slice %302 {offsets = [0, 17], sizes = [4, 1], strides = [1, 1]} : vector<4x36xf32> to vector<4x1xf32>
    %407 = vector.extract_strided_slice %3 {offsets = [1, 0], sizes = [1, 256], strides = [1, 1]} : vector<4x256xf32> to vector<1x256xf32>
    %408 = vector.broadcast %406 : vector<4x1xf32> to vector<4x256xf32>
    %409 = vector.broadcast %407 : vector<1x256xf32> to vector<4x256xf32>
    %410 = arith.mulf %408, %409 : vector<4x256xf32>
    %411 = arith.addf %405, %410 : vector<4x256xf32>
    %412 = vector.extract_strided_slice %302 {offsets = [0, 18], sizes = [4, 1], strides = [1, 1]} : vector<4x36xf32> to vector<4x1xf32>
    %413 = vector.extract_strided_slice %3 {offsets = [2, 0], sizes = [1, 256], strides = [1, 1]} : vector<4x256xf32> to vector<1x256xf32>
    %414 = vector.broadcast %412 : vector<4x1xf32> to vector<4x256xf32>
    %415 = vector.broadcast %413 : vector<1x256xf32> to vector<4x256xf32>
    %416 = arith.mulf %414, %415 : vector<4x256xf32>
    %417 = arith.addf %411, %416 : vector<4x256xf32>
    %418 = vector.extract_strided_slice %302 {offsets = [0, 19], sizes = [4, 1], strides = [1, 1]} : vector<4x36xf32> to vector<4x1xf32>
    %419 = vector.extract_strided_slice %3 {offsets = [3, 0], sizes = [1, 256], strides = [1, 1]} : vector<4x256xf32> to vector<1x256xf32>
    %420 = vector.broadcast %418 : vector<4x1xf32> to vector<4x256xf32>
    %421 = vector.broadcast %419 : vector<1x256xf32> to vector<4x256xf32>
    %422 = arith.mulf %420, %421 : vector<4x256xf32>
    %423 = arith.addf %417, %422 : vector<4x256xf32>
    %424 = vector.extract_strided_slice %302 {offsets = [0, 20], sizes = [4, 1], strides = [1, 1]} : vector<4x36xf32> to vector<4x1xf32>
    %425 = vector.extract_strided_slice %68 {offsets = [0, 0], sizes = [1, 256], strides = [1, 1]} : vector<4x256xf32> to vector<1x256xf32>
    %426 = vector.broadcast %424 : vector<4x1xf32> to vector<4x256xf32>
    %427 = vector.broadcast %425 : vector<1x256xf32> to vector<4x256xf32>
    %428 = arith.mulf %426, %427 : vector<4x256xf32>
    %429 = arith.addf %423, %428 : vector<4x256xf32>
    %430 = vector.extract_strided_slice %302 {offsets = [0, 21], sizes = [4, 1], strides = [1, 1]} : vector<4x36xf32> to vector<4x1xf32>
    %431 = vector.extract_strided_slice %68 {offsets = [1, 0], sizes = [1, 256], strides = [1, 1]} : vector<4x256xf32> to vector<1x256xf32>
    %432 = vector.broadcast %430 : vector<4x1xf32> to vector<4x256xf32>
    %433 = vector.broadcast %431 : vector<1x256xf32> to vector<4x256xf32>
    %434 = arith.mulf %432, %433 : vector<4x256xf32>
    %435 = arith.addf %429, %434 : vector<4x256xf32>
    %436 = vector.extract_strided_slice %302 {offsets = [0, 22], sizes = [4, 1], strides = [1, 1]} : vector<4x36xf32> to vector<4x1xf32>
    %437 = vector.extract_strided_slice %68 {offsets = [2, 0], sizes = [1, 256], strides = [1, 1]} : vector<4x256xf32> to vector<1x256xf32>
    %438 = vector.broadcast %436 : vector<4x1xf32> to vector<4x256xf32>
    %439 = vector.broadcast %437 : vector<1x256xf32> to vector<4x256xf32>
    %440 = arith.mulf %438, %439 : vector<4x256xf32>
    %441 = arith.addf %435, %440 : vector<4x256xf32>
    %442 = vector.extract_strided_slice %302 {offsets = [0, 23], sizes = [4, 1], strides = [1, 1]} : vector<4x36xf32> to vector<4x1xf32>
    %443 = vector.extract_strided_slice %68 {offsets = [3, 0], sizes = [1, 256], strides = [1, 1]} : vector<4x256xf32> to vector<1x256xf32>
    %444 = vector.broadcast %442 : vector<4x1xf32> to vector<4x256xf32>
    %445 = vector.broadcast %443 : vector<1x256xf32> to vector<4x256xf32>
    %446 = arith.mulf %444, %445 : vector<4x256xf32>
    %447 = arith.addf %441, %446 : vector<4x256xf32>
    %448 = vector.extract_strided_slice %302 {offsets = [0, 24], sizes = [4, 1], strides = [1, 1]} : vector<4x36xf32> to vector<4x1xf32>
    %449 = vector.extract_strided_slice %73 {offsets = [0, 0], sizes = [1, 256], strides = [1, 1]} : vector<4x256xf32> to vector<1x256xf32>
    %450 = vector.broadcast %448 : vector<4x1xf32> to vector<4x256xf32>
    %451 = vector.broadcast %449 : vector<1x256xf32> to vector<4x256xf32>
    %452 = arith.mulf %450, %451 : vector<4x256xf32>
    %453 = arith.addf %447, %452 : vector<4x256xf32>
    %454 = vector.extract_strided_slice %302 {offsets = [0, 25], sizes = [4, 1], strides = [1, 1]} : vector<4x36xf32> to vector<4x1xf32>
    %455 = vector.extract_strided_slice %73 {offsets = [1, 0], sizes = [1, 256], strides = [1, 1]} : vector<4x256xf32> to vector<1x256xf32>
    %456 = vector.broadcast %454 : vector<4x1xf32> to vector<4x256xf32>
    %457 = vector.broadcast %455 : vector<1x256xf32> to vector<4x256xf32>
    %458 = arith.mulf %456, %457 : vector<4x256xf32>
    %459 = arith.addf %453, %458 : vector<4x256xf32>
    %460 = vector.extract_strided_slice %302 {offsets = [0, 26], sizes = [4, 1], strides = [1, 1]} : vector<4x36xf32> to vector<4x1xf32>
    %461 = vector.extract_strided_slice %73 {offsets = [2, 0], sizes = [1, 256], strides = [1, 1]} : vector<4x256xf32> to vector<1x256xf32>
    %462 = vector.broadcast %460 : vector<4x1xf32> to vector<4x256xf32>
    %463 = vector.broadcast %461 : vector<1x256xf32> to vector<4x256xf32>
    %464 = arith.mulf %462, %463 : vector<4x256xf32>
    %465 = arith.addf %459, %464 : vector<4x256xf32>
    %466 = vector.extract_strided_slice %302 {offsets = [0, 27], sizes = [4, 1], strides = [1, 1]} : vector<4x36xf32> to vector<4x1xf32>
    %467 = vector.extract_strided_slice %73 {offsets = [3, 0], sizes = [1, 256], strides = [1, 1]} : vector<4x256xf32> to vector<1x256xf32>
    %468 = vector.broadcast %466 : vector<4x1xf32> to vector<4x256xf32>
    %469 = vector.broadcast %467 : vector<1x256xf32> to vector<4x256xf32>
    %470 = arith.mulf %468, %469 : vector<4x256xf32>
    %471 = arith.addf %465, %470 : vector<4x256xf32>
    %472 = vector.extract_strided_slice %302 {offsets = [0, 28], sizes = [4, 1], strides = [1, 1]} : vector<4x36xf32> to vector<4x1xf32>
    %473 = vector.extract_strided_slice %78 {offsets = [0, 0], sizes = [1, 256], strides = [1, 1]} : vector<4x256xf32> to vector<1x256xf32>
    %474 = vector.broadcast %472 : vector<4x1xf32> to vector<4x256xf32>
    %475 = vector.broadcast %473 : vector<1x256xf32> to vector<4x256xf32>
    %476 = arith.mulf %474, %475 : vector<4x256xf32>
    %477 = arith.addf %471, %476 : vector<4x256xf32>
    %478 = vector.extract_strided_slice %302 {offsets = [0, 29], sizes = [4, 1], strides = [1, 1]} : vector<4x36xf32> to vector<4x1xf32>
    %479 = vector.extract_strided_slice %78 {offsets = [1, 0], sizes = [1, 256], strides = [1, 1]} : vector<4x256xf32> to vector<1x256xf32>
    %480 = vector.broadcast %478 : vector<4x1xf32> to vector<4x256xf32>
    %481 = vector.broadcast %479 : vector<1x256xf32> to vector<4x256xf32>
    %482 = arith.mulf %480, %481 : vector<4x256xf32>
    %483 = arith.addf %477, %482 : vector<4x256xf32>
    %484 = vector.extract_strided_slice %302 {offsets = [0, 30], sizes = [4, 1], strides = [1, 1]} : vector<4x36xf32> to vector<4x1xf32>
    %485 = vector.extract_strided_slice %78 {offsets = [2, 0], sizes = [1, 256], strides = [1, 1]} : vector<4x256xf32> to vector<1x256xf32>
    %486 = vector.broadcast %484 : vector<4x1xf32> to vector<4x256xf32>
    %487 = vector.broadcast %485 : vector<1x256xf32> to vector<4x256xf32>
    %488 = arith.mulf %486, %487 : vector<4x256xf32>
    %489 = arith.addf %483, %488 : vector<4x256xf32>
    %490 = vector.extract_strided_slice %302 {offsets = [0, 31], sizes = [4, 1], strides = [1, 1]} : vector<4x36xf32> to vector<4x1xf32>
    %491 = vector.extract_strided_slice %78 {offsets = [3, 0], sizes = [1, 256], strides = [1, 1]} : vector<4x256xf32> to vector<1x256xf32>
    %492 = vector.broadcast %490 : vector<4x1xf32> to vector<4x256xf32>
    %493 = vector.broadcast %491 : vector<1x256xf32> to vector<4x256xf32>
    %494 = arith.mulf %492, %493 : vector<4x256xf32>
    %495 = arith.addf %489, %494 : vector<4x256xf32>
    %496 = vector.extract_strided_slice %302 {offsets = [0, 32], sizes = [4, 1], strides = [1, 1]} : vector<4x36xf32> to vector<4x1xf32>
    %497 = vector.extract_strided_slice %83 {offsets = [0, 0], sizes = [1, 256], strides = [1, 1]} : vector<4x256xf32> to vector<1x256xf32>
    %498 = vector.broadcast %496 : vector<4x1xf32> to vector<4x256xf32>
    %499 = vector.broadcast %497 : vector<1x256xf32> to vector<4x256xf32>
    %500 = arith.mulf %498, %499 : vector<4x256xf32>
    %501 = arith.addf %495, %500 : vector<4x256xf32>
    %502 = vector.extract_strided_slice %302 {offsets = [0, 33], sizes = [4, 1], strides = [1, 1]} : vector<4x36xf32> to vector<4x1xf32>
    %503 = vector.extract_strided_slice %83 {offsets = [1, 0], sizes = [1, 256], strides = [1, 1]} : vector<4x256xf32> to vector<1x256xf32>
    %504 = vector.broadcast %502 : vector<4x1xf32> to vector<4x256xf32>
    %505 = vector.broadcast %503 : vector<1x256xf32> to vector<4x256xf32>
    %506 = arith.mulf %504, %505 : vector<4x256xf32>
    %507 = arith.addf %501, %506 : vector<4x256xf32>
    %508 = vector.extract_strided_slice %302 {offsets = [0, 34], sizes = [4, 1], strides = [1, 1]} : vector<4x36xf32> to vector<4x1xf32>
    %509 = vector.extract_strided_slice %83 {offsets = [2, 0], sizes = [1, 256], strides = [1, 1]} : vector<4x256xf32> to vector<1x256xf32>
    %510 = vector.broadcast %508 : vector<4x1xf32> to vector<4x256xf32>
    %511 = vector.broadcast %509 : vector<1x256xf32> to vector<4x256xf32>
    %512 = arith.mulf %510, %511 : vector<4x256xf32>
    %513 = arith.addf %507, %512 : vector<4x256xf32>
    %514 = vector.extract_strided_slice %302 {offsets = [0, 35], sizes = [4, 1], strides = [1, 1]} : vector<4x36xf32> to vector<4x1xf32>
    %515 = vector.extract_strided_slice %83 {offsets = [3, 0], sizes = [1, 256], strides = [1, 1]} : vector<4x256xf32> to vector<1x256xf32>
    %516 = vector.broadcast %514 : vector<4x1xf32> to vector<4x256xf32>
    %517 = vector.broadcast %515 : vector<1x256xf32> to vector<4x256xf32>
    %518 = arith.mulf %516, %517 : vector<4x256xf32>
    %519 = arith.addf %513, %518 : vector<4x256xf32>
    %520 = arith.addf %301, %519 : vector<4x256xf32>
    %c0_59 = arith.constant 0 : index
    %c0_60 = arith.constant 0 : index
    %c0_61 = arith.constant 0 : index
    %521 = vector.load %arg3[%c0_59, %c0_60, %c0_61] : memref<1x4x1xf32, #tpu.memory_space<vmem>>, vector<1x4x1xf32>
    %522 = vector.shape_cast %521 : vector<1x4x1xf32> to vector<4x1xf32>
    %523 = vector.broadcast %522 : vector<4x1xf32> to vector<4x256xf32>
    %524 = arith.addf %520, %523 : vector<4x256xf32>
    %cst_62 = arith.constant 0.000000e+00 : f32
    %525 = vector.broadcast %cst_62 : f32 to vector<4x256xf32>
    %526 = arith.maximumf %524, %525 : vector<4x256xf32>
    %c17_i32_63 = arith.constant 17 : i32
    %527 = tpu.dynamic_rotate %526 by %c17_i32_63 dim 1 : vector<4x256xf32>, i32 -> vector<4x256xf32>
    %c0_64 = arith.constant 0 : index
    %c0_65 = arith.constant 0 : index
    %c0_66 = arith.constant 0 : index
    %528 = vector.load %arg5[%c0_64, %c0_65, %c0_66] : memref<9x1x256xf32, #tpu.memory_space<vmem>>, vector<1x1x256xf32>
    %529 = vector.shape_cast %528 : vector<1x1x256xf32> to vector<1x256xf32>
    %530 = vector.broadcast %529 : vector<1x256xf32> to vector<4x256xf32>
    %531 = arith.mulf %530, %527 : vector<4x256xf32>
    %c16_i32_67 = arith.constant 16 : i32
    %532 = tpu.dynamic_rotate %526 by %c16_i32_67 dim 1 : vector<4x256xf32>, i32 -> vector<4x256xf32>
    %c1_68 = arith.constant 1 : index
    %c0_69 = arith.constant 0 : index
    %c0_70 = arith.constant 0 : index
    %533 = vector.load %arg5[%c1_68, %c0_69, %c0_70] : memref<9x1x256xf32, #tpu.memory_space<vmem>>, vector<1x1x256xf32>
    %534 = vector.shape_cast %533 : vector<1x1x256xf32> to vector<1x256xf32>
    %535 = vector.broadcast %534 : vector<1x256xf32> to vector<4x256xf32>
    %536 = arith.mulf %535, %532 : vector<4x256xf32>
    %c15_i32_71 = arith.constant 15 : i32
    %537 = tpu.dynamic_rotate %526 by %c15_i32_71 dim 1 : vector<4x256xf32>, i32 -> vector<4x256xf32>
    %c2_72 = arith.constant 2 : index
    %c0_73 = arith.constant 0 : index
    %c0_74 = arith.constant 0 : index
    %538 = vector.load %arg5[%c2_72, %c0_73, %c0_74] : memref<9x1x256xf32, #tpu.memory_space<vmem>>, vector<1x1x256xf32>
    %539 = vector.shape_cast %538 : vector<1x1x256xf32> to vector<1x256xf32>
    %540 = vector.broadcast %539 : vector<1x256xf32> to vector<4x256xf32>
    %541 = arith.mulf %540, %537 : vector<4x256xf32>
    %c1_i32_75 = arith.constant 1 : i32
    %542 = tpu.dynamic_rotate %526 by %c1_i32_75 dim 1 : vector<4x256xf32>, i32 -> vector<4x256xf32>
    %c3_76 = arith.constant 3 : index
    %c0_77 = arith.constant 0 : index
    %c0_78 = arith.constant 0 : index
    %543 = vector.load %arg5[%c3_76, %c0_77, %c0_78] : memref<9x1x256xf32, #tpu.memory_space<vmem>>, vector<1x1x256xf32>
    %544 = vector.shape_cast %543 : vector<1x1x256xf32> to vector<1x256xf32>
    %545 = vector.broadcast %544 : vector<1x256xf32> to vector<4x256xf32>
    %546 = arith.mulf %545, %542 : vector<4x256xf32>
    %c255_i32_79 = arith.constant 255 : i32
    %547 = tpu.dynamic_rotate %526 by %c255_i32_79 dim 1 : vector<4x256xf32>, i32 -> vector<4x256xf32>
    %c5_80 = arith.constant 5 : index
    %c0_81 = arith.constant 0 : index
    %c0_82 = arith.constant 0 : index
    %548 = vector.load %arg5[%c5_80, %c0_81, %c0_82] : memref<9x1x256xf32, #tpu.memory_space<vmem>>, vector<1x1x256xf32>
    %549 = vector.shape_cast %548 : vector<1x1x256xf32> to vector<1x256xf32>
    %550 = vector.broadcast %549 : vector<1x256xf32> to vector<4x256xf32>
    %551 = arith.mulf %550, %547 : vector<4x256xf32>
    %c241_i32_83 = arith.constant 241 : i32
    %552 = tpu.dynamic_rotate %526 by %c241_i32_83 dim 1 : vector<4x256xf32>, i32 -> vector<4x256xf32>
    %c6_84 = arith.constant 6 : index
    %c0_85 = arith.constant 0 : index
    %c0_86 = arith.constant 0 : index
    %553 = vector.load %arg5[%c6_84, %c0_85, %c0_86] : memref<9x1x256xf32, #tpu.memory_space<vmem>>, vector<1x1x256xf32>
    %554 = vector.shape_cast %553 : vector<1x1x256xf32> to vector<1x256xf32>
    %555 = vector.broadcast %554 : vector<1x256xf32> to vector<4x256xf32>
    %556 = arith.mulf %555, %552 : vector<4x256xf32>
    %c240_i32_87 = arith.constant 240 : i32
    %557 = tpu.dynamic_rotate %526 by %c240_i32_87 dim 1 : vector<4x256xf32>, i32 -> vector<4x256xf32>
    %c7_88 = arith.constant 7 : index
    %c0_89 = arith.constant 0 : index
    %c0_90 = arith.constant 0 : index
    %558 = vector.load %arg5[%c7_88, %c0_89, %c0_90] : memref<9x1x256xf32, #tpu.memory_space<vmem>>, vector<1x1x256xf32>
    %559 = vector.shape_cast %558 : vector<1x1x256xf32> to vector<1x256xf32>
    %560 = vector.broadcast %559 : vector<1x256xf32> to vector<4x256xf32>
    %561 = arith.mulf %560, %557 : vector<4x256xf32>
    %c239_i32_91 = arith.constant 239 : i32
    %562 = tpu.dynamic_rotate %526 by %c239_i32_91 dim 1 : vector<4x256xf32>, i32 -> vector<4x256xf32>
    %c8_92 = arith.constant 8 : index
    %c0_93 = arith.constant 0 : index
    %c0_94 = arith.constant 0 : index
    %563 = vector.load %arg5[%c8_92, %c0_93, %c0_94] : memref<9x1x256xf32, #tpu.memory_space<vmem>>, vector<1x1x256xf32>
    %564 = vector.shape_cast %563 : vector<1x1x256xf32> to vector<1x256xf32>
    %565 = vector.broadcast %564 : vector<1x256xf32> to vector<4x256xf32>
    %566 = arith.mulf %565, %562 : vector<4x256xf32>
    %c0_95 = arith.constant 0 : index
    %c0_96 = arith.constant 0 : index
    %567 = vector.load %arg8[%c0_95, %c0_96] : memref<4x36xf32, #tpu.memory_space<vmem>>, vector<4x36xf32>
    %cst_97 = arith.constant 0.000000e+00 : f32
    %568 = vector.broadcast %cst_97 : f32 to vector<4x256xf32>
    %569 = vector.extract_strided_slice %567 {offsets = [0, 0], sizes = [4, 1], strides = [1, 1]} : vector<4x36xf32> to vector<4x1xf32>
    %570 = vector.extract_strided_slice %8 {offsets = [0, 0], sizes = [1, 256], strides = [1, 1]} : vector<4x256xf32> to vector<1x256xf32>
    %571 = vector.broadcast %569 : vector<4x1xf32> to vector<4x256xf32>
    %572 = vector.broadcast %570 : vector<1x256xf32> to vector<4x256xf32>
    %573 = arith.mulf %571, %572 : vector<4x256xf32>
    %574 = arith.addf %568, %573 : vector<4x256xf32>
    %575 = vector.extract_strided_slice %567 {offsets = [0, 1], sizes = [4, 1], strides = [1, 1]} : vector<4x36xf32> to vector<4x1xf32>
    %576 = vector.extract_strided_slice %8 {offsets = [1, 0], sizes = [1, 256], strides = [1, 1]} : vector<4x256xf32> to vector<1x256xf32>
    %577 = vector.broadcast %575 : vector<4x1xf32> to vector<4x256xf32>
    %578 = vector.broadcast %576 : vector<1x256xf32> to vector<4x256xf32>
    %579 = arith.mulf %577, %578 : vector<4x256xf32>
    %580 = arith.addf %574, %579 : vector<4x256xf32>
    %581 = vector.extract_strided_slice %567 {offsets = [0, 2], sizes = [4, 1], strides = [1, 1]} : vector<4x36xf32> to vector<4x1xf32>
    %582 = vector.extract_strided_slice %8 {offsets = [2, 0], sizes = [1, 256], strides = [1, 1]} : vector<4x256xf32> to vector<1x256xf32>
    %583 = vector.broadcast %581 : vector<4x1xf32> to vector<4x256xf32>
    %584 = vector.broadcast %582 : vector<1x256xf32> to vector<4x256xf32>
    %585 = arith.mulf %583, %584 : vector<4x256xf32>
    %586 = arith.addf %580, %585 : vector<4x256xf32>
    %587 = vector.extract_strided_slice %567 {offsets = [0, 3], sizes = [4, 1], strides = [1, 1]} : vector<4x36xf32> to vector<4x1xf32>
    %588 = vector.extract_strided_slice %8 {offsets = [3, 0], sizes = [1, 256], strides = [1, 1]} : vector<4x256xf32> to vector<1x256xf32>
    %589 = vector.broadcast %587 : vector<4x1xf32> to vector<4x256xf32>
    %590 = vector.broadcast %588 : vector<1x256xf32> to vector<4x256xf32>
    %591 = arith.mulf %589, %590 : vector<4x256xf32>
    %592 = arith.addf %586, %591 : vector<4x256xf32>
    %593 = vector.extract_strided_slice %567 {offsets = [0, 4], sizes = [4, 1], strides = [1, 1]} : vector<4x36xf32> to vector<4x1xf32>
    %594 = vector.extract_strided_slice %13 {offsets = [0, 0], sizes = [1, 256], strides = [1, 1]} : vector<4x256xf32> to vector<1x256xf32>
    %595 = vector.broadcast %593 : vector<4x1xf32> to vector<4x256xf32>
    %596 = vector.broadcast %594 : vector<1x256xf32> to vector<4x256xf32>
    %597 = arith.mulf %595, %596 : vector<4x256xf32>
    %598 = arith.addf %592, %597 : vector<4x256xf32>
    %599 = vector.extract_strided_slice %567 {offsets = [0, 5], sizes = [4, 1], strides = [1, 1]} : vector<4x36xf32> to vector<4x1xf32>
    %600 = vector.extract_strided_slice %13 {offsets = [1, 0], sizes = [1, 256], strides = [1, 1]} : vector<4x256xf32> to vector<1x256xf32>
    %601 = vector.broadcast %599 : vector<4x1xf32> to vector<4x256xf32>
    %602 = vector.broadcast %600 : vector<1x256xf32> to vector<4x256xf32>
    %603 = arith.mulf %601, %602 : vector<4x256xf32>
    %604 = arith.addf %598, %603 : vector<4x256xf32>
    %605 = vector.extract_strided_slice %567 {offsets = [0, 6], sizes = [4, 1], strides = [1, 1]} : vector<4x36xf32> to vector<4x1xf32>
    %606 = vector.extract_strided_slice %13 {offsets = [2, 0], sizes = [1, 256], strides = [1, 1]} : vector<4x256xf32> to vector<1x256xf32>
    %607 = vector.broadcast %605 : vector<4x1xf32> to vector<4x256xf32>
    %608 = vector.broadcast %606 : vector<1x256xf32> to vector<4x256xf32>
    %609 = arith.mulf %607, %608 : vector<4x256xf32>
    %610 = arith.addf %604, %609 : vector<4x256xf32>
    %611 = vector.extract_strided_slice %567 {offsets = [0, 7], sizes = [4, 1], strides = [1, 1]} : vector<4x36xf32> to vector<4x1xf32>
    %612 = vector.extract_strided_slice %13 {offsets = [3, 0], sizes = [1, 256], strides = [1, 1]} : vector<4x256xf32> to vector<1x256xf32>
    %613 = vector.broadcast %611 : vector<4x1xf32> to vector<4x256xf32>
    %614 = vector.broadcast %612 : vector<1x256xf32> to vector<4x256xf32>
    %615 = arith.mulf %613, %614 : vector<4x256xf32>
    %616 = arith.addf %610, %615 : vector<4x256xf32>
    %617 = vector.extract_strided_slice %567 {offsets = [0, 8], sizes = [4, 1], strides = [1, 1]} : vector<4x36xf32> to vector<4x1xf32>
    %618 = vector.extract_strided_slice %18 {offsets = [0, 0], sizes = [1, 256], strides = [1, 1]} : vector<4x256xf32> to vector<1x256xf32>
    %619 = vector.broadcast %617 : vector<4x1xf32> to vector<4x256xf32>
    %620 = vector.broadcast %618 : vector<1x256xf32> to vector<4x256xf32>
    %621 = arith.mulf %619, %620 : vector<4x256xf32>
    %622 = arith.addf %616, %621 : vector<4x256xf32>
    %623 = vector.extract_strided_slice %567 {offsets = [0, 9], sizes = [4, 1], strides = [1, 1]} : vector<4x36xf32> to vector<4x1xf32>
    %624 = vector.extract_strided_slice %18 {offsets = [1, 0], sizes = [1, 256], strides = [1, 1]} : vector<4x256xf32> to vector<1x256xf32>
    %625 = vector.broadcast %623 : vector<4x1xf32> to vector<4x256xf32>
    %626 = vector.broadcast %624 : vector<1x256xf32> to vector<4x256xf32>
    %627 = arith.mulf %625, %626 : vector<4x256xf32>
    %628 = arith.addf %622, %627 : vector<4x256xf32>
    %629 = vector.extract_strided_slice %567 {offsets = [0, 10], sizes = [4, 1], strides = [1, 1]} : vector<4x36xf32> to vector<4x1xf32>
    %630 = vector.extract_strided_slice %18 {offsets = [2, 0], sizes = [1, 256], strides = [1, 1]} : vector<4x256xf32> to vector<1x256xf32>
    %631 = vector.broadcast %629 : vector<4x1xf32> to vector<4x256xf32>
    %632 = vector.broadcast %630 : vector<1x256xf32> to vector<4x256xf32>
    %633 = arith.mulf %631, %632 : vector<4x256xf32>
    %634 = arith.addf %628, %633 : vector<4x256xf32>
    %635 = vector.extract_strided_slice %567 {offsets = [0, 11], sizes = [4, 1], strides = [1, 1]} : vector<4x36xf32> to vector<4x1xf32>
    %636 = vector.extract_strided_slice %18 {offsets = [3, 0], sizes = [1, 256], strides = [1, 1]} : vector<4x256xf32> to vector<1x256xf32>
    %637 = vector.broadcast %635 : vector<4x1xf32> to vector<4x256xf32>
    %638 = vector.broadcast %636 : vector<1x256xf32> to vector<4x256xf32>
    %639 = arith.mulf %637, %638 : vector<4x256xf32>
    %640 = arith.addf %634, %639 : vector<4x256xf32>
    %641 = vector.extract_strided_slice %567 {offsets = [0, 12], sizes = [4, 1], strides = [1, 1]} : vector<4x36xf32> to vector<4x1xf32>
    %642 = vector.extract_strided_slice %23 {offsets = [0, 0], sizes = [1, 256], strides = [1, 1]} : vector<4x256xf32> to vector<1x256xf32>
    %643 = vector.broadcast %641 : vector<4x1xf32> to vector<4x256xf32>
    %644 = vector.broadcast %642 : vector<1x256xf32> to vector<4x256xf32>
    %645 = arith.mulf %643, %644 : vector<4x256xf32>
    %646 = arith.addf %640, %645 : vector<4x256xf32>
    %647 = vector.extract_strided_slice %567 {offsets = [0, 13], sizes = [4, 1], strides = [1, 1]} : vector<4x36xf32> to vector<4x1xf32>
    %648 = vector.extract_strided_slice %23 {offsets = [1, 0], sizes = [1, 256], strides = [1, 1]} : vector<4x256xf32> to vector<1x256xf32>
    %649 = vector.broadcast %647 : vector<4x1xf32> to vector<4x256xf32>
    %650 = vector.broadcast %648 : vector<1x256xf32> to vector<4x256xf32>
    %651 = arith.mulf %649, %650 : vector<4x256xf32>
    %652 = arith.addf %646, %651 : vector<4x256xf32>
    %653 = vector.extract_strided_slice %567 {offsets = [0, 14], sizes = [4, 1], strides = [1, 1]} : vector<4x36xf32> to vector<4x1xf32>
    %654 = vector.extract_strided_slice %23 {offsets = [2, 0], sizes = [1, 256], strides = [1, 1]} : vector<4x256xf32> to vector<1x256xf32>
    %655 = vector.broadcast %653 : vector<4x1xf32> to vector<4x256xf32>
    %656 = vector.broadcast %654 : vector<1x256xf32> to vector<4x256xf32>
    %657 = arith.mulf %655, %656 : vector<4x256xf32>
    %658 = arith.addf %652, %657 : vector<4x256xf32>
    %659 = vector.extract_strided_slice %567 {offsets = [0, 15], sizes = [4, 1], strides = [1, 1]} : vector<4x36xf32> to vector<4x1xf32>
    %660 = vector.extract_strided_slice %23 {offsets = [3, 0], sizes = [1, 256], strides = [1, 1]} : vector<4x256xf32> to vector<1x256xf32>
    %661 = vector.broadcast %659 : vector<4x1xf32> to vector<4x256xf32>
    %662 = vector.broadcast %660 : vector<1x256xf32> to vector<4x256xf32>
    %663 = arith.mulf %661, %662 : vector<4x256xf32>
    %664 = arith.addf %658, %663 : vector<4x256xf32>
    %665 = vector.extract_strided_slice %567 {offsets = [0, 16], sizes = [4, 1], strides = [1, 1]} : vector<4x36xf32> to vector<4x1xf32>
    %666 = vector.extract_strided_slice %1 {offsets = [0, 0], sizes = [1, 256], strides = [1, 1]} : vector<4x256xf32> to vector<1x256xf32>
    %667 = vector.broadcast %665 : vector<4x1xf32> to vector<4x256xf32>
    %668 = vector.broadcast %666 : vector<1x256xf32> to vector<4x256xf32>
    %669 = arith.mulf %667, %668 : vector<4x256xf32>
    %670 = arith.addf %664, %669 : vector<4x256xf32>
    %671 = vector.extract_strided_slice %567 {offsets = [0, 17], sizes = [4, 1], strides = [1, 1]} : vector<4x36xf32> to vector<4x1xf32>
    %672 = vector.extract_strided_slice %1 {offsets = [1, 0], sizes = [1, 256], strides = [1, 1]} : vector<4x256xf32> to vector<1x256xf32>
    %673 = vector.broadcast %671 : vector<4x1xf32> to vector<4x256xf32>
    %674 = vector.broadcast %672 : vector<1x256xf32> to vector<4x256xf32>
    %675 = arith.mulf %673, %674 : vector<4x256xf32>
    %676 = arith.addf %670, %675 : vector<4x256xf32>
    %677 = vector.extract_strided_slice %567 {offsets = [0, 18], sizes = [4, 1], strides = [1, 1]} : vector<4x36xf32> to vector<4x1xf32>
    %678 = vector.extract_strided_slice %1 {offsets = [2, 0], sizes = [1, 256], strides = [1, 1]} : vector<4x256xf32> to vector<1x256xf32>
    %679 = vector.broadcast %677 : vector<4x1xf32> to vector<4x256xf32>
    %680 = vector.broadcast %678 : vector<1x256xf32> to vector<4x256xf32>
    %681 = arith.mulf %679, %680 : vector<4x256xf32>
    %682 = arith.addf %676, %681 : vector<4x256xf32>
    %683 = vector.extract_strided_slice %567 {offsets = [0, 19], sizes = [4, 1], strides = [1, 1]} : vector<4x36xf32> to vector<4x1xf32>
    %684 = vector.extract_strided_slice %1 {offsets = [3, 0], sizes = [1, 256], strides = [1, 1]} : vector<4x256xf32> to vector<1x256xf32>
    %685 = vector.broadcast %683 : vector<4x1xf32> to vector<4x256xf32>
    %686 = vector.broadcast %684 : vector<1x256xf32> to vector<4x256xf32>
    %687 = arith.mulf %685, %686 : vector<4x256xf32>
    %688 = arith.addf %682, %687 : vector<4x256xf32>
    %689 = vector.extract_strided_slice %567 {offsets = [0, 20], sizes = [4, 1], strides = [1, 1]} : vector<4x36xf32> to vector<4x1xf32>
    %690 = vector.extract_strided_slice %28 {offsets = [0, 0], sizes = [1, 256], strides = [1, 1]} : vector<4x256xf32> to vector<1x256xf32>
    %691 = vector.broadcast %689 : vector<4x1xf32> to vector<4x256xf32>
    %692 = vector.broadcast %690 : vector<1x256xf32> to vector<4x256xf32>
    %693 = arith.mulf %691, %692 : vector<4x256xf32>
    %694 = arith.addf %688, %693 : vector<4x256xf32>
    %695 = vector.extract_strided_slice %567 {offsets = [0, 21], sizes = [4, 1], strides = [1, 1]} : vector<4x36xf32> to vector<4x1xf32>
    %696 = vector.extract_strided_slice %28 {offsets = [1, 0], sizes = [1, 256], strides = [1, 1]} : vector<4x256xf32> to vector<1x256xf32>
    %697 = vector.broadcast %695 : vector<4x1xf32> to vector<4x256xf32>
    %698 = vector.broadcast %696 : vector<1x256xf32> to vector<4x256xf32>
    %699 = arith.mulf %697, %698 : vector<4x256xf32>
    %700 = arith.addf %694, %699 : vector<4x256xf32>
    %701 = vector.extract_strided_slice %567 {offsets = [0, 22], sizes = [4, 1], strides = [1, 1]} : vector<4x36xf32> to vector<4x1xf32>
    %702 = vector.extract_strided_slice %28 {offsets = [2, 0], sizes = [1, 256], strides = [1, 1]} : vector<4x256xf32> to vector<1x256xf32>
    %703 = vector.broadcast %701 : vector<4x1xf32> to vector<4x256xf32>
    %704 = vector.broadcast %702 : vector<1x256xf32> to vector<4x256xf32>
    %705 = arith.mulf %703, %704 : vector<4x256xf32>
    %706 = arith.addf %700, %705 : vector<4x256xf32>
    %707 = vector.extract_strided_slice %567 {offsets = [0, 23], sizes = [4, 1], strides = [1, 1]} : vector<4x36xf32> to vector<4x1xf32>
    %708 = vector.extract_strided_slice %28 {offsets = [3, 0], sizes = [1, 256], strides = [1, 1]} : vector<4x256xf32> to vector<1x256xf32>
    %709 = vector.broadcast %707 : vector<4x1xf32> to vector<4x256xf32>
    %710 = vector.broadcast %708 : vector<1x256xf32> to vector<4x256xf32>
    %711 = arith.mulf %709, %710 : vector<4x256xf32>
    %712 = arith.addf %706, %711 : vector<4x256xf32>
    %713 = vector.extract_strided_slice %567 {offsets = [0, 24], sizes = [4, 1], strides = [1, 1]} : vector<4x36xf32> to vector<4x1xf32>
    %714 = vector.extract_strided_slice %33 {offsets = [0, 0], sizes = [1, 256], strides = [1, 1]} : vector<4x256xf32> to vector<1x256xf32>
    %715 = vector.broadcast %713 : vector<4x1xf32> to vector<4x256xf32>
    %716 = vector.broadcast %714 : vector<1x256xf32> to vector<4x256xf32>
    %717 = arith.mulf %715, %716 : vector<4x256xf32>
    %718 = arith.addf %712, %717 : vector<4x256xf32>
    %719 = vector.extract_strided_slice %567 {offsets = [0, 25], sizes = [4, 1], strides = [1, 1]} : vector<4x36xf32> to vector<4x1xf32>
    %720 = vector.extract_strided_slice %33 {offsets = [1, 0], sizes = [1, 256], strides = [1, 1]} : vector<4x256xf32> to vector<1x256xf32>
    %721 = vector.broadcast %719 : vector<4x1xf32> to vector<4x256xf32>
    %722 = vector.broadcast %720 : vector<1x256xf32> to vector<4x256xf32>
    %723 = arith.mulf %721, %722 : vector<4x256xf32>
    %724 = arith.addf %718, %723 : vector<4x256xf32>
    %725 = vector.extract_strided_slice %567 {offsets = [0, 26], sizes = [4, 1], strides = [1, 1]} : vector<4x36xf32> to vector<4x1xf32>
    %726 = vector.extract_strided_slice %33 {offsets = [2, 0], sizes = [1, 256], strides = [1, 1]} : vector<4x256xf32> to vector<1x256xf32>
    %727 = vector.broadcast %725 : vector<4x1xf32> to vector<4x256xf32>
    %728 = vector.broadcast %726 : vector<1x256xf32> to vector<4x256xf32>
    %729 = arith.mulf %727, %728 : vector<4x256xf32>
    %730 = arith.addf %724, %729 : vector<4x256xf32>
    %731 = vector.extract_strided_slice %567 {offsets = [0, 27], sizes = [4, 1], strides = [1, 1]} : vector<4x36xf32> to vector<4x1xf32>
    %732 = vector.extract_strided_slice %33 {offsets = [3, 0], sizes = [1, 256], strides = [1, 1]} : vector<4x256xf32> to vector<1x256xf32>
    %733 = vector.broadcast %731 : vector<4x1xf32> to vector<4x256xf32>
    %734 = vector.broadcast %732 : vector<1x256xf32> to vector<4x256xf32>
    %735 = arith.mulf %733, %734 : vector<4x256xf32>
    %736 = arith.addf %730, %735 : vector<4x256xf32>
    %737 = vector.extract_strided_slice %567 {offsets = [0, 28], sizes = [4, 1], strides = [1, 1]} : vector<4x36xf32> to vector<4x1xf32>
    %738 = vector.extract_strided_slice %38 {offsets = [0, 0], sizes = [1, 256], strides = [1, 1]} : vector<4x256xf32> to vector<1x256xf32>
    %739 = vector.broadcast %737 : vector<4x1xf32> to vector<4x256xf32>
    %740 = vector.broadcast %738 : vector<1x256xf32> to vector<4x256xf32>
    %741 = arith.mulf %739, %740 : vector<4x256xf32>
    %742 = arith.addf %736, %741 : vector<4x256xf32>
    %743 = vector.extract_strided_slice %567 {offsets = [0, 29], sizes = [4, 1], strides = [1, 1]} : vector<4x36xf32> to vector<4x1xf32>
    %744 = vector.extract_strided_slice %38 {offsets = [1, 0], sizes = [1, 256], strides = [1, 1]} : vector<4x256xf32> to vector<1x256xf32>
    %745 = vector.broadcast %743 : vector<4x1xf32> to vector<4x256xf32>
    %746 = vector.broadcast %744 : vector<1x256xf32> to vector<4x256xf32>
    %747 = arith.mulf %745, %746 : vector<4x256xf32>
    %748 = arith.addf %742, %747 : vector<4x256xf32>
    %749 = vector.extract_strided_slice %567 {offsets = [0, 30], sizes = [4, 1], strides = [1, 1]} : vector<4x36xf32> to vector<4x1xf32>
    %750 = vector.extract_strided_slice %38 {offsets = [2, 0], sizes = [1, 256], strides = [1, 1]} : vector<4x256xf32> to vector<1x256xf32>
    %751 = vector.broadcast %749 : vector<4x1xf32> to vector<4x256xf32>
    %752 = vector.broadcast %750 : vector<1x256xf32> to vector<4x256xf32>
    %753 = arith.mulf %751, %752 : vector<4x256xf32>
    %754 = arith.addf %748, %753 : vector<4x256xf32>
    %755 = vector.extract_strided_slice %567 {offsets = [0, 31], sizes = [4, 1], strides = [1, 1]} : vector<4x36xf32> to vector<4x1xf32>
    %756 = vector.extract_strided_slice %38 {offsets = [3, 0], sizes = [1, 256], strides = [1, 1]} : vector<4x256xf32> to vector<1x256xf32>
    %757 = vector.broadcast %755 : vector<4x1xf32> to vector<4x256xf32>
    %758 = vector.broadcast %756 : vector<1x256xf32> to vector<4x256xf32>
    %759 = arith.mulf %757, %758 : vector<4x256xf32>
    %760 = arith.addf %754, %759 : vector<4x256xf32>
    %761 = vector.extract_strided_slice %567 {offsets = [0, 32], sizes = [4, 1], strides = [1, 1]} : vector<4x36xf32> to vector<4x1xf32>
    %762 = vector.extract_strided_slice %43 {offsets = [0, 0], sizes = [1, 256], strides = [1, 1]} : vector<4x256xf32> to vector<1x256xf32>
    %763 = vector.broadcast %761 : vector<4x1xf32> to vector<4x256xf32>
    %764 = vector.broadcast %762 : vector<1x256xf32> to vector<4x256xf32>
    %765 = arith.mulf %763, %764 : vector<4x256xf32>
    %766 = arith.addf %760, %765 : vector<4x256xf32>
    %767 = vector.extract_strided_slice %567 {offsets = [0, 33], sizes = [4, 1], strides = [1, 1]} : vector<4x36xf32> to vector<4x1xf32>
    %768 = vector.extract_strided_slice %43 {offsets = [1, 0], sizes = [1, 256], strides = [1, 1]} : vector<4x256xf32> to vector<1x256xf32>
    %769 = vector.broadcast %767 : vector<4x1xf32> to vector<4x256xf32>
    %770 = vector.broadcast %768 : vector<1x256xf32> to vector<4x256xf32>
    %771 = arith.mulf %769, %770 : vector<4x256xf32>
    %772 = arith.addf %766, %771 : vector<4x256xf32>
    %773 = vector.extract_strided_slice %567 {offsets = [0, 34], sizes = [4, 1], strides = [1, 1]} : vector<4x36xf32> to vector<4x1xf32>
    %774 = vector.extract_strided_slice %43 {offsets = [2, 0], sizes = [1, 256], strides = [1, 1]} : vector<4x256xf32> to vector<1x256xf32>
    %775 = vector.broadcast %773 : vector<4x1xf32> to vector<4x256xf32>
    %776 = vector.broadcast %774 : vector<1x256xf32> to vector<4x256xf32>
    %777 = arith.mulf %775, %776 : vector<4x256xf32>
    %778 = arith.addf %772, %777 : vector<4x256xf32>
    %779 = vector.extract_strided_slice %567 {offsets = [0, 35], sizes = [4, 1], strides = [1, 1]} : vector<4x36xf32> to vector<4x1xf32>
    %780 = vector.extract_strided_slice %43 {offsets = [3, 0], sizes = [1, 256], strides = [1, 1]} : vector<4x256xf32> to vector<1x256xf32>
    %781 = vector.broadcast %779 : vector<4x1xf32> to vector<4x256xf32>
    %782 = vector.broadcast %780 : vector<1x256xf32> to vector<4x256xf32>
    %783 = arith.mulf %781, %782 : vector<4x256xf32>
    %784 = arith.addf %778, %783 : vector<4x256xf32>
    %c0_98 = arith.constant 0 : index
    %c0_99 = arith.constant 0 : index
    %c0_100 = arith.constant 0 : index
    %785 = vector.load %arg4[%c0_98, %c0_99, %c0_100] : memref<1x4x1xf32, #tpu.memory_space<vmem>>, vector<1x4x1xf32>
    %786 = vector.shape_cast %785 : vector<1x4x1xf32> to vector<4x1xf32>
    %787 = vector.broadcast %786 : vector<4x1xf32> to vector<4x256xf32>
    %788 = arith.addf %784, %787 : vector<4x256xf32>
    %c0_101 = arith.constant 0 : index
    %c0_102 = arith.constant 0 : index
    %c0_103 = arith.constant 0 : index
    %789 = vector.load %arg9[%c0_101, %c0_102, %c0_103] : memref<3x4x36xf32, #tpu.memory_space<vmem>>, vector<1x4x36xf32>
    %790 = vector.shape_cast %789 : vector<1x4x36xf32> to vector<4x36xf32>
    %cst_104 = arith.constant 0.000000e+00 : f32
    %791 = vector.broadcast %cst_104 : f32 to vector<4x256xf32>
    %792 = vector.extract_strided_slice %790 {offsets = [0, 0], sizes = [4, 1], strides = [1, 1]} : vector<4x36xf32> to vector<4x1xf32>
    %793 = vector.extract_strided_slice %531 {offsets = [0, 0], sizes = [1, 256], strides = [1, 1]} : vector<4x256xf32> to vector<1x256xf32>
    %794 = vector.broadcast %792 : vector<4x1xf32> to vector<4x256xf32>
    %795 = vector.broadcast %793 : vector<1x256xf32> to vector<4x256xf32>
    %796 = arith.mulf %794, %795 : vector<4x256xf32>
    %797 = arith.addf %791, %796 : vector<4x256xf32>
    %798 = vector.extract_strided_slice %790 {offsets = [0, 1], sizes = [4, 1], strides = [1, 1]} : vector<4x36xf32> to vector<4x1xf32>
    %799 = vector.extract_strided_slice %531 {offsets = [1, 0], sizes = [1, 256], strides = [1, 1]} : vector<4x256xf32> to vector<1x256xf32>
    %800 = vector.broadcast %798 : vector<4x1xf32> to vector<4x256xf32>
    %801 = vector.broadcast %799 : vector<1x256xf32> to vector<4x256xf32>
    %802 = arith.mulf %800, %801 : vector<4x256xf32>
    %803 = arith.addf %797, %802 : vector<4x256xf32>
    %804 = vector.extract_strided_slice %790 {offsets = [0, 2], sizes = [4, 1], strides = [1, 1]} : vector<4x36xf32> to vector<4x1xf32>
    %805 = vector.extract_strided_slice %531 {offsets = [2, 0], sizes = [1, 256], strides = [1, 1]} : vector<4x256xf32> to vector<1x256xf32>
    %806 = vector.broadcast %804 : vector<4x1xf32> to vector<4x256xf32>
    %807 = vector.broadcast %805 : vector<1x256xf32> to vector<4x256xf32>
    %808 = arith.mulf %806, %807 : vector<4x256xf32>
    %809 = arith.addf %803, %808 : vector<4x256xf32>
    %810 = vector.extract_strided_slice %790 {offsets = [0, 3], sizes = [4, 1], strides = [1, 1]} : vector<4x36xf32> to vector<4x1xf32>
    %811 = vector.extract_strided_slice %531 {offsets = [3, 0], sizes = [1, 256], strides = [1, 1]} : vector<4x256xf32> to vector<1x256xf32>
    %812 = vector.broadcast %810 : vector<4x1xf32> to vector<4x256xf32>
    %813 = vector.broadcast %811 : vector<1x256xf32> to vector<4x256xf32>
    %814 = arith.mulf %812, %813 : vector<4x256xf32>
    %815 = arith.addf %809, %814 : vector<4x256xf32>
    %816 = vector.extract_strided_slice %790 {offsets = [0, 4], sizes = [4, 1], strides = [1, 1]} : vector<4x36xf32> to vector<4x1xf32>
    %817 = vector.extract_strided_slice %536 {offsets = [0, 0], sizes = [1, 256], strides = [1, 1]} : vector<4x256xf32> to vector<1x256xf32>
    %818 = vector.broadcast %816 : vector<4x1xf32> to vector<4x256xf32>
    %819 = vector.broadcast %817 : vector<1x256xf32> to vector<4x256xf32>
    %820 = arith.mulf %818, %819 : vector<4x256xf32>
    %821 = arith.addf %815, %820 : vector<4x256xf32>
    %822 = vector.extract_strided_slice %790 {offsets = [0, 5], sizes = [4, 1], strides = [1, 1]} : vector<4x36xf32> to vector<4x1xf32>
    %823 = vector.extract_strided_slice %536 {offsets = [1, 0], sizes = [1, 256], strides = [1, 1]} : vector<4x256xf32> to vector<1x256xf32>
    %824 = vector.broadcast %822 : vector<4x1xf32> to vector<4x256xf32>
    %825 = vector.broadcast %823 : vector<1x256xf32> to vector<4x256xf32>
    %826 = arith.mulf %824, %825 : vector<4x256xf32>
    %827 = arith.addf %821, %826 : vector<4x256xf32>
    %828 = vector.extract_strided_slice %790 {offsets = [0, 6], sizes = [4, 1], strides = [1, 1]} : vector<4x36xf32> to vector<4x1xf32>
    %829 = vector.extract_strided_slice %536 {offsets = [2, 0], sizes = [1, 256], strides = [1, 1]} : vector<4x256xf32> to vector<1x256xf32>
    %830 = vector.broadcast %828 : vector<4x1xf32> to vector<4x256xf32>
    %831 = vector.broadcast %829 : vector<1x256xf32> to vector<4x256xf32>
    %832 = arith.mulf %830, %831 : vector<4x256xf32>
    %833 = arith.addf %827, %832 : vector<4x256xf32>
    %834 = vector.extract_strided_slice %790 {offsets = [0, 7], sizes = [4, 1], strides = [1, 1]} : vector<4x36xf32> to vector<4x1xf32>
    %835 = vector.extract_strided_slice %536 {offsets = [3, 0], sizes = [1, 256], strides = [1, 1]} : vector<4x256xf32> to vector<1x256xf32>
    %836 = vector.broadcast %834 : vector<4x1xf32> to vector<4x256xf32>
    %837 = vector.broadcast %835 : vector<1x256xf32> to vector<4x256xf32>
    %838 = arith.mulf %836, %837 : vector<4x256xf32>
    %839 = arith.addf %833, %838 : vector<4x256xf32>
    %840 = vector.extract_strided_slice %790 {offsets = [0, 8], sizes = [4, 1], strides = [1, 1]} : vector<4x36xf32> to vector<4x1xf32>
    %841 = vector.extract_strided_slice %541 {offsets = [0, 0], sizes = [1, 256], strides = [1, 1]} : vector<4x256xf32> to vector<1x256xf32>
    %842 = vector.broadcast %840 : vector<4x1xf32> to vector<4x256xf32>
    %843 = vector.broadcast %841 : vector<1x256xf32> to vector<4x256xf32>
    %844 = arith.mulf %842, %843 : vector<4x256xf32>
    %845 = arith.addf %839, %844 : vector<4x256xf32>
    %846 = vector.extract_strided_slice %790 {offsets = [0, 9], sizes = [4, 1], strides = [1, 1]} : vector<4x36xf32> to vector<4x1xf32>
    %847 = vector.extract_strided_slice %541 {offsets = [1, 0], sizes = [1, 256], strides = [1, 1]} : vector<4x256xf32> to vector<1x256xf32>
    %848 = vector.broadcast %846 : vector<4x1xf32> to vector<4x256xf32>
    %849 = vector.broadcast %847 : vector<1x256xf32> to vector<4x256xf32>
    %850 = arith.mulf %848, %849 : vector<4x256xf32>
    %851 = arith.addf %845, %850 : vector<4x256xf32>
    %852 = vector.extract_strided_slice %790 {offsets = [0, 10], sizes = [4, 1], strides = [1, 1]} : vector<4x36xf32> to vector<4x1xf32>
    %853 = vector.extract_strided_slice %541 {offsets = [2, 0], sizes = [1, 256], strides = [1, 1]} : vector<4x256xf32> to vector<1x256xf32>
    %854 = vector.broadcast %852 : vector<4x1xf32> to vector<4x256xf32>
    %855 = vector.broadcast %853 : vector<1x256xf32> to vector<4x256xf32>
    %856 = arith.mulf %854, %855 : vector<4x256xf32>
    %857 = arith.addf %851, %856 : vector<4x256xf32>
    %858 = vector.extract_strided_slice %790 {offsets = [0, 11], sizes = [4, 1], strides = [1, 1]} : vector<4x36xf32> to vector<4x1xf32>
    %859 = vector.extract_strided_slice %541 {offsets = [3, 0], sizes = [1, 256], strides = [1, 1]} : vector<4x256xf32> to vector<1x256xf32>
    %860 = vector.broadcast %858 : vector<4x1xf32> to vector<4x256xf32>
    %861 = vector.broadcast %859 : vector<1x256xf32> to vector<4x256xf32>
    %862 = arith.mulf %860, %861 : vector<4x256xf32>
    %863 = arith.addf %857, %862 : vector<4x256xf32>
    %864 = vector.extract_strided_slice %790 {offsets = [0, 12], sizes = [4, 1], strides = [1, 1]} : vector<4x36xf32> to vector<4x1xf32>
    %865 = vector.extract_strided_slice %546 {offsets = [0, 0], sizes = [1, 256], strides = [1, 1]} : vector<4x256xf32> to vector<1x256xf32>
    %866 = vector.broadcast %864 : vector<4x1xf32> to vector<4x256xf32>
    %867 = vector.broadcast %865 : vector<1x256xf32> to vector<4x256xf32>
    %868 = arith.mulf %866, %867 : vector<4x256xf32>
    %869 = arith.addf %863, %868 : vector<4x256xf32>
    %870 = vector.extract_strided_slice %790 {offsets = [0, 13], sizes = [4, 1], strides = [1, 1]} : vector<4x36xf32> to vector<4x1xf32>
    %871 = vector.extract_strided_slice %546 {offsets = [1, 0], sizes = [1, 256], strides = [1, 1]} : vector<4x256xf32> to vector<1x256xf32>
    %872 = vector.broadcast %870 : vector<4x1xf32> to vector<4x256xf32>
    %873 = vector.broadcast %871 : vector<1x256xf32> to vector<4x256xf32>
    %874 = arith.mulf %872, %873 : vector<4x256xf32>
    %875 = arith.addf %869, %874 : vector<4x256xf32>
    %876 = vector.extract_strided_slice %790 {offsets = [0, 14], sizes = [4, 1], strides = [1, 1]} : vector<4x36xf32> to vector<4x1xf32>
    %877 = vector.extract_strided_slice %546 {offsets = [2, 0], sizes = [1, 256], strides = [1, 1]} : vector<4x256xf32> to vector<1x256xf32>
    %878 = vector.broadcast %876 : vector<4x1xf32> to vector<4x256xf32>
    %879 = vector.broadcast %877 : vector<1x256xf32> to vector<4x256xf32>
    %880 = arith.mulf %878, %879 : vector<4x256xf32>
    %881 = arith.addf %875, %880 : vector<4x256xf32>
    %882 = vector.extract_strided_slice %790 {offsets = [0, 15], sizes = [4, 1], strides = [1, 1]} : vector<4x36xf32> to vector<4x1xf32>
    %883 = vector.extract_strided_slice %546 {offsets = [3, 0], sizes = [1, 256], strides = [1, 1]} : vector<4x256xf32> to vector<1x256xf32>
    %884 = vector.broadcast %882 : vector<4x1xf32> to vector<4x256xf32>
    %885 = vector.broadcast %883 : vector<1x256xf32> to vector<4x256xf32>
    %886 = arith.mulf %884, %885 : vector<4x256xf32>
    %887 = arith.addf %881, %886 : vector<4x256xf32>
    %888 = vector.extract_strided_slice %790 {offsets = [0, 16], sizes = [4, 1], strides = [1, 1]} : vector<4x36xf32> to vector<4x1xf32>
    %889 = vector.extract_strided_slice %526 {offsets = [0, 0], sizes = [1, 256], strides = [1, 1]} : vector<4x256xf32> to vector<1x256xf32>
    %890 = vector.broadcast %888 : vector<4x1xf32> to vector<4x256xf32>
    %891 = vector.broadcast %889 : vector<1x256xf32> to vector<4x256xf32>
    %892 = arith.mulf %890, %891 : vector<4x256xf32>
    %893 = arith.addf %887, %892 : vector<4x256xf32>
    %894 = vector.extract_strided_slice %790 {offsets = [0, 17], sizes = [4, 1], strides = [1, 1]} : vector<4x36xf32> to vector<4x1xf32>
    %895 = vector.extract_strided_slice %526 {offsets = [1, 0], sizes = [1, 256], strides = [1, 1]} : vector<4x256xf32> to vector<1x256xf32>
    %896 = vector.broadcast %894 : vector<4x1xf32> to vector<4x256xf32>
    %897 = vector.broadcast %895 : vector<1x256xf32> to vector<4x256xf32>
    %898 = arith.mulf %896, %897 : vector<4x256xf32>
    %899 = arith.addf %893, %898 : vector<4x256xf32>
    %900 = vector.extract_strided_slice %790 {offsets = [0, 18], sizes = [4, 1], strides = [1, 1]} : vector<4x36xf32> to vector<4x1xf32>
    %901 = vector.extract_strided_slice %526 {offsets = [2, 0], sizes = [1, 256], strides = [1, 1]} : vector<4x256xf32> to vector<1x256xf32>
    %902 = vector.broadcast %900 : vector<4x1xf32> to vector<4x256xf32>
    %903 = vector.broadcast %901 : vector<1x256xf32> to vector<4x256xf32>
    %904 = arith.mulf %902, %903 : vector<4x256xf32>
    %905 = arith.addf %899, %904 : vector<4x256xf32>
    %906 = vector.extract_strided_slice %790 {offsets = [0, 19], sizes = [4, 1], strides = [1, 1]} : vector<4x36xf32> to vector<4x1xf32>
    %907 = vector.extract_strided_slice %526 {offsets = [3, 0], sizes = [1, 256], strides = [1, 1]} : vector<4x256xf32> to vector<1x256xf32>
    %908 = vector.broadcast %906 : vector<4x1xf32> to vector<4x256xf32>
    %909 = vector.broadcast %907 : vector<1x256xf32> to vector<4x256xf32>
    %910 = arith.mulf %908, %909 : vector<4x256xf32>
    %911 = arith.addf %905, %910 : vector<4x256xf32>
    %912 = vector.extract_strided_slice %790 {offsets = [0, 20], sizes = [4, 1], strides = [1, 1]} : vector<4x36xf32> to vector<4x1xf32>
    %913 = vector.extract_strided_slice %551 {offsets = [0, 0], sizes = [1, 256], strides = [1, 1]} : vector<4x256xf32> to vector<1x256xf32>
    %914 = vector.broadcast %912 : vector<4x1xf32> to vector<4x256xf32>
    %915 = vector.broadcast %913 : vector<1x256xf32> to vector<4x256xf32>
    %916 = arith.mulf %914, %915 : vector<4x256xf32>
    %917 = arith.addf %911, %916 : vector<4x256xf32>
    %918 = vector.extract_strided_slice %790 {offsets = [0, 21], sizes = [4, 1], strides = [1, 1]} : vector<4x36xf32> to vector<4x1xf32>
    %919 = vector.extract_strided_slice %551 {offsets = [1, 0], sizes = [1, 256], strides = [1, 1]} : vector<4x256xf32> to vector<1x256xf32>
    %920 = vector.broadcast %918 : vector<4x1xf32> to vector<4x256xf32>
    %921 = vector.broadcast %919 : vector<1x256xf32> to vector<4x256xf32>
    %922 = arith.mulf %920, %921 : vector<4x256xf32>
    %923 = arith.addf %917, %922 : vector<4x256xf32>
    %924 = vector.extract_strided_slice %790 {offsets = [0, 22], sizes = [4, 1], strides = [1, 1]} : vector<4x36xf32> to vector<4x1xf32>
    %925 = vector.extract_strided_slice %551 {offsets = [2, 0], sizes = [1, 256], strides = [1, 1]} : vector<4x256xf32> to vector<1x256xf32>
    %926 = vector.broadcast %924 : vector<4x1xf32> to vector<4x256xf32>
    %927 = vector.broadcast %925 : vector<1x256xf32> to vector<4x256xf32>
    %928 = arith.mulf %926, %927 : vector<4x256xf32>
    %929 = arith.addf %923, %928 : vector<4x256xf32>
    %930 = vector.extract_strided_slice %790 {offsets = [0, 23], sizes = [4, 1], strides = [1, 1]} : vector<4x36xf32> to vector<4x1xf32>
    %931 = vector.extract_strided_slice %551 {offsets = [3, 0], sizes = [1, 256], strides = [1, 1]} : vector<4x256xf32> to vector<1x256xf32>
    %932 = vector.broadcast %930 : vector<4x1xf32> to vector<4x256xf32>
    %933 = vector.broadcast %931 : vector<1x256xf32> to vector<4x256xf32>
    %934 = arith.mulf %932, %933 : vector<4x256xf32>
    %935 = arith.addf %929, %934 : vector<4x256xf32>
    %936 = vector.extract_strided_slice %790 {offsets = [0, 24], sizes = [4, 1], strides = [1, 1]} : vector<4x36xf32> to vector<4x1xf32>
    %937 = vector.extract_strided_slice %556 {offsets = [0, 0], sizes = [1, 256], strides = [1, 1]} : vector<4x256xf32> to vector<1x256xf32>
    %938 = vector.broadcast %936 : vector<4x1xf32> to vector<4x256xf32>
    %939 = vector.broadcast %937 : vector<1x256xf32> to vector<4x256xf32>
    %940 = arith.mulf %938, %939 : vector<4x256xf32>
    %941 = arith.addf %935, %940 : vector<4x256xf32>
    %942 = vector.extract_strided_slice %790 {offsets = [0, 25], sizes = [4, 1], strides = [1, 1]} : vector<4x36xf32> to vector<4x1xf32>
    %943 = vector.extract_strided_slice %556 {offsets = [1, 0], sizes = [1, 256], strides = [1, 1]} : vector<4x256xf32> to vector<1x256xf32>
    %944 = vector.broadcast %942 : vector<4x1xf32> to vector<4x256xf32>
    %945 = vector.broadcast %943 : vector<1x256xf32> to vector<4x256xf32>
    %946 = arith.mulf %944, %945 : vector<4x256xf32>
    %947 = arith.addf %941, %946 : vector<4x256xf32>
    %948 = vector.extract_strided_slice %790 {offsets = [0, 26], sizes = [4, 1], strides = [1, 1]} : vector<4x36xf32> to vector<4x1xf32>
    %949 = vector.extract_strided_slice %556 {offsets = [2, 0], sizes = [1, 256], strides = [1, 1]} : vector<4x256xf32> to vector<1x256xf32>
    %950 = vector.broadcast %948 : vector<4x1xf32> to vector<4x256xf32>
    %951 = vector.broadcast %949 : vector<1x256xf32> to vector<4x256xf32>
    %952 = arith.mulf %950, %951 : vector<4x256xf32>
    %953 = arith.addf %947, %952 : vector<4x256xf32>
    %954 = vector.extract_strided_slice %790 {offsets = [0, 27], sizes = [4, 1], strides = [1, 1]} : vector<4x36xf32> to vector<4x1xf32>
    %955 = vector.extract_strided_slice %556 {offsets = [3, 0], sizes = [1, 256], strides = [1, 1]} : vector<4x256xf32> to vector<1x256xf32>
    %956 = vector.broadcast %954 : vector<4x1xf32> to vector<4x256xf32>
    %957 = vector.broadcast %955 : vector<1x256xf32> to vector<4x256xf32>
    %958 = arith.mulf %956, %957 : vector<4x256xf32>
    %959 = arith.addf %953, %958 : vector<4x256xf32>
    %960 = vector.extract_strided_slice %790 {offsets = [0, 28], sizes = [4, 1], strides = [1, 1]} : vector<4x36xf32> to vector<4x1xf32>
    %961 = vector.extract_strided_slice %561 {offsets = [0, 0], sizes = [1, 256], strides = [1, 1]} : vector<4x256xf32> to vector<1x256xf32>
    %962 = vector.broadcast %960 : vector<4x1xf32> to vector<4x256xf32>
    %963 = vector.broadcast %961 : vector<1x256xf32> to vector<4x256xf32>
    %964 = arith.mulf %962, %963 : vector<4x256xf32>
    %965 = arith.addf %959, %964 : vector<4x256xf32>
    %966 = vector.extract_strided_slice %790 {offsets = [0, 29], sizes = [4, 1], strides = [1, 1]} : vector<4x36xf32> to vector<4x1xf32>
    %967 = vector.extract_strided_slice %561 {offsets = [1, 0], sizes = [1, 256], strides = [1, 1]} : vector<4x256xf32> to vector<1x256xf32>
    %968 = vector.broadcast %966 : vector<4x1xf32> to vector<4x256xf32>
    %969 = vector.broadcast %967 : vector<1x256xf32> to vector<4x256xf32>
    %970 = arith.mulf %968, %969 : vector<4x256xf32>
    %971 = arith.addf %965, %970 : vector<4x256xf32>
    %972 = vector.extract_strided_slice %790 {offsets = [0, 30], sizes = [4, 1], strides = [1, 1]} : vector<4x36xf32> to vector<4x1xf32>
    %973 = vector.extract_strided_slice %561 {offsets = [2, 0], sizes = [1, 256], strides = [1, 1]} : vector<4x256xf32> to vector<1x256xf32>
    %974 = vector.broadcast %972 : vector<4x1xf32> to vector<4x256xf32>
    %975 = vector.broadcast %973 : vector<1x256xf32> to vector<4x256xf32>
    %976 = arith.mulf %974, %975 : vector<4x256xf32>
    %977 = arith.addf %971, %976 : vector<4x256xf32>
    %978 = vector.extract_strided_slice %790 {offsets = [0, 31], sizes = [4, 1], strides = [1, 1]} : vector<4x36xf32> to vector<4x1xf32>
    %979 = vector.extract_strided_slice %561 {offsets = [3, 0], sizes = [1, 256], strides = [1, 1]} : vector<4x256xf32> to vector<1x256xf32>
    %980 = vector.broadcast %978 : vector<4x1xf32> to vector<4x256xf32>
    %981 = vector.broadcast %979 : vector<1x256xf32> to vector<4x256xf32>
    %982 = arith.mulf %980, %981 : vector<4x256xf32>
    %983 = arith.addf %977, %982 : vector<4x256xf32>
    %984 = vector.extract_strided_slice %790 {offsets = [0, 32], sizes = [4, 1], strides = [1, 1]} : vector<4x36xf32> to vector<4x1xf32>
    %985 = vector.extract_strided_slice %566 {offsets = [0, 0], sizes = [1, 256], strides = [1, 1]} : vector<4x256xf32> to vector<1x256xf32>
    %986 = vector.broadcast %984 : vector<4x1xf32> to vector<4x256xf32>
    %987 = vector.broadcast %985 : vector<1x256xf32> to vector<4x256xf32>
    %988 = arith.mulf %986, %987 : vector<4x256xf32>
    %989 = arith.addf %983, %988 : vector<4x256xf32>
    %990 = vector.extract_strided_slice %790 {offsets = [0, 33], sizes = [4, 1], strides = [1, 1]} : vector<4x36xf32> to vector<4x1xf32>
    %991 = vector.extract_strided_slice %566 {offsets = [1, 0], sizes = [1, 256], strides = [1, 1]} : vector<4x256xf32> to vector<1x256xf32>
    %992 = vector.broadcast %990 : vector<4x1xf32> to vector<4x256xf32>
    %993 = vector.broadcast %991 : vector<1x256xf32> to vector<4x256xf32>
    %994 = arith.mulf %992, %993 : vector<4x256xf32>
    %995 = arith.addf %989, %994 : vector<4x256xf32>
    %996 = vector.extract_strided_slice %790 {offsets = [0, 34], sizes = [4, 1], strides = [1, 1]} : vector<4x36xf32> to vector<4x1xf32>
    %997 = vector.extract_strided_slice %566 {offsets = [2, 0], sizes = [1, 256], strides = [1, 1]} : vector<4x256xf32> to vector<1x256xf32>
    %998 = vector.broadcast %996 : vector<4x1xf32> to vector<4x256xf32>
    %999 = vector.broadcast %997 : vector<1x256xf32> to vector<4x256xf32>
    %1000 = arith.mulf %998, %999 : vector<4x256xf32>
    %1001 = arith.addf %995, %1000 : vector<4x256xf32>
    %1002 = vector.extract_strided_slice %790 {offsets = [0, 35], sizes = [4, 1], strides = [1, 1]} : vector<4x36xf32> to vector<4x1xf32>
    %1003 = vector.extract_strided_slice %566 {offsets = [3, 0], sizes = [1, 256], strides = [1, 1]} : vector<4x256xf32> to vector<1x256xf32>
    %1004 = vector.broadcast %1002 : vector<4x1xf32> to vector<4x256xf32>
    %1005 = vector.broadcast %1003 : vector<1x256xf32> to vector<4x256xf32>
    %1006 = arith.mulf %1004, %1005 : vector<4x256xf32>
    %1007 = arith.addf %1001, %1006 : vector<4x256xf32>
    %1008 = arith.addf %788, %1007 : vector<4x256xf32>
    %c0_105 = arith.constant 0 : index
    %c0_106 = arith.constant 0 : index
    %c0_107 = arith.constant 0 : index
    %1009 = vector.load %arg10[%c0_105, %c0_106, %c0_107] : memref<3x4x1xf32, #tpu.memory_space<vmem>>, vector<1x4x1xf32>
    %1010 = vector.shape_cast %1009 : vector<1x4x1xf32> to vector<4x1xf32>
    %1011 = vector.broadcast %1010 : vector<4x1xf32> to vector<4x256xf32>
    %1012 = arith.addf %1008, %1011 : vector<4x256xf32>
    %c1_108 = arith.constant 1 : index
    %c0_109 = arith.constant 0 : index
    %c0_110 = arith.constant 0 : index
    %1013 = vector.load %arg9[%c1_108, %c0_109, %c0_110] : memref<3x4x36xf32, #tpu.memory_space<vmem>>, vector<1x4x36xf32>
    %1014 = vector.shape_cast %1013 : vector<1x4x36xf32> to vector<4x36xf32>
    %cst_111 = arith.constant 0.000000e+00 : f32
    %1015 = vector.broadcast %cst_111 : f32 to vector<4x256xf32>
    %1016 = vector.extract_strided_slice %1014 {offsets = [0, 0], sizes = [4, 1], strides = [1, 1]} : vector<4x36xf32> to vector<4x1xf32>
    %1017 = vector.extract_strided_slice %531 {offsets = [0, 0], sizes = [1, 256], strides = [1, 1]} : vector<4x256xf32> to vector<1x256xf32>
    %1018 = vector.broadcast %1016 : vector<4x1xf32> to vector<4x256xf32>
    %1019 = vector.broadcast %1017 : vector<1x256xf32> to vector<4x256xf32>
    %1020 = arith.mulf %1018, %1019 : vector<4x256xf32>
    %1021 = arith.addf %1015, %1020 : vector<4x256xf32>
    %1022 = vector.extract_strided_slice %1014 {offsets = [0, 1], sizes = [4, 1], strides = [1, 1]} : vector<4x36xf32> to vector<4x1xf32>
    %1023 = vector.extract_strided_slice %531 {offsets = [1, 0], sizes = [1, 256], strides = [1, 1]} : vector<4x256xf32> to vector<1x256xf32>
    %1024 = vector.broadcast %1022 : vector<4x1xf32> to vector<4x256xf32>
    %1025 = vector.broadcast %1023 : vector<1x256xf32> to vector<4x256xf32>
    %1026 = arith.mulf %1024, %1025 : vector<4x256xf32>
    %1027 = arith.addf %1021, %1026 : vector<4x256xf32>
    %1028 = vector.extract_strided_slice %1014 {offsets = [0, 2], sizes = [4, 1], strides = [1, 1]} : vector<4x36xf32> to vector<4x1xf32>
    %1029 = vector.extract_strided_slice %531 {offsets = [2, 0], sizes = [1, 256], strides = [1, 1]} : vector<4x256xf32> to vector<1x256xf32>
    %1030 = vector.broadcast %1028 : vector<4x1xf32> to vector<4x256xf32>
    %1031 = vector.broadcast %1029 : vector<1x256xf32> to vector<4x256xf32>
    %1032 = arith.mulf %1030, %1031 : vector<4x256xf32>
    %1033 = arith.addf %1027, %1032 : vector<4x256xf32>
    %1034 = vector.extract_strided_slice %1014 {offsets = [0, 3], sizes = [4, 1], strides = [1, 1]} : vector<4x36xf32> to vector<4x1xf32>
    %1035 = vector.extract_strided_slice %531 {offsets = [3, 0], sizes = [1, 256], strides = [1, 1]} : vector<4x256xf32> to vector<1x256xf32>
    %1036 = vector.broadcast %1034 : vector<4x1xf32> to vector<4x256xf32>
    %1037 = vector.broadcast %1035 : vector<1x256xf32> to vector<4x256xf32>
    %1038 = arith.mulf %1036, %1037 : vector<4x256xf32>
    %1039 = arith.addf %1033, %1038 : vector<4x256xf32>
    %1040 = vector.extract_strided_slice %1014 {offsets = [0, 4], sizes = [4, 1], strides = [1, 1]} : vector<4x36xf32> to vector<4x1xf32>
    %1041 = vector.extract_strided_slice %536 {offsets = [0, 0], sizes = [1, 256], strides = [1, 1]} : vector<4x256xf32> to vector<1x256xf32>
    %1042 = vector.broadcast %1040 : vector<4x1xf32> to vector<4x256xf32>
    %1043 = vector.broadcast %1041 : vector<1x256xf32> to vector<4x256xf32>
    %1044 = arith.mulf %1042, %1043 : vector<4x256xf32>
    %1045 = arith.addf %1039, %1044 : vector<4x256xf32>
    %1046 = vector.extract_strided_slice %1014 {offsets = [0, 5], sizes = [4, 1], strides = [1, 1]} : vector<4x36xf32> to vector<4x1xf32>
    %1047 = vector.extract_strided_slice %536 {offsets = [1, 0], sizes = [1, 256], strides = [1, 1]} : vector<4x256xf32> to vector<1x256xf32>
    %1048 = vector.broadcast %1046 : vector<4x1xf32> to vector<4x256xf32>
    %1049 = vector.broadcast %1047 : vector<1x256xf32> to vector<4x256xf32>
    %1050 = arith.mulf %1048, %1049 : vector<4x256xf32>
    %1051 = arith.addf %1045, %1050 : vector<4x256xf32>
    %1052 = vector.extract_strided_slice %1014 {offsets = [0, 6], sizes = [4, 1], strides = [1, 1]} : vector<4x36xf32> to vector<4x1xf32>
    %1053 = vector.extract_strided_slice %536 {offsets = [2, 0], sizes = [1, 256], strides = [1, 1]} : vector<4x256xf32> to vector<1x256xf32>
    %1054 = vector.broadcast %1052 : vector<4x1xf32> to vector<4x256xf32>
    %1055 = vector.broadcast %1053 : vector<1x256xf32> to vector<4x256xf32>
    %1056 = arith.mulf %1054, %1055 : vector<4x256xf32>
    %1057 = arith.addf %1051, %1056 : vector<4x256xf32>
    %1058 = vector.extract_strided_slice %1014 {offsets = [0, 7], sizes = [4, 1], strides = [1, 1]} : vector<4x36xf32> to vector<4x1xf32>
    %1059 = vector.extract_strided_slice %536 {offsets = [3, 0], sizes = [1, 256], strides = [1, 1]} : vector<4x256xf32> to vector<1x256xf32>
    %1060 = vector.broadcast %1058 : vector<4x1xf32> to vector<4x256xf32>
    %1061 = vector.broadcast %1059 : vector<1x256xf32> to vector<4x256xf32>
    %1062 = arith.mulf %1060, %1061 : vector<4x256xf32>
    %1063 = arith.addf %1057, %1062 : vector<4x256xf32>
    %1064 = vector.extract_strided_slice %1014 {offsets = [0, 8], sizes = [4, 1], strides = [1, 1]} : vector<4x36xf32> to vector<4x1xf32>
    %1065 = vector.extract_strided_slice %541 {offsets = [0, 0], sizes = [1, 256], strides = [1, 1]} : vector<4x256xf32> to vector<1x256xf32>
    %1066 = vector.broadcast %1064 : vector<4x1xf32> to vector<4x256xf32>
    %1067 = vector.broadcast %1065 : vector<1x256xf32> to vector<4x256xf32>
    %1068 = arith.mulf %1066, %1067 : vector<4x256xf32>
    %1069 = arith.addf %1063, %1068 : vector<4x256xf32>
    %1070 = vector.extract_strided_slice %1014 {offsets = [0, 9], sizes = [4, 1], strides = [1, 1]} : vector<4x36xf32> to vector<4x1xf32>
    %1071 = vector.extract_strided_slice %541 {offsets = [1, 0], sizes = [1, 256], strides = [1, 1]} : vector<4x256xf32> to vector<1x256xf32>
    %1072 = vector.broadcast %1070 : vector<4x1xf32> to vector<4x256xf32>
    %1073 = vector.broadcast %1071 : vector<1x256xf32> to vector<4x256xf32>
    %1074 = arith.mulf %1072, %1073 : vector<4x256xf32>
    %1075 = arith.addf %1069, %1074 : vector<4x256xf32>
    %1076 = vector.extract_strided_slice %1014 {offsets = [0, 10], sizes = [4, 1], strides = [1, 1]} : vector<4x36xf32> to vector<4x1xf32>
    %1077 = vector.extract_strided_slice %541 {offsets = [2, 0], sizes = [1, 256], strides = [1, 1]} : vector<4x256xf32> to vector<1x256xf32>
    %1078 = vector.broadcast %1076 : vector<4x1xf32> to vector<4x256xf32>
    %1079 = vector.broadcast %1077 : vector<1x256xf32> to vector<4x256xf32>
    %1080 = arith.mulf %1078, %1079 : vector<4x256xf32>
    %1081 = arith.addf %1075, %1080 : vector<4x256xf32>
    %1082 = vector.extract_strided_slice %1014 {offsets = [0, 11], sizes = [4, 1], strides = [1, 1]} : vector<4x36xf32> to vector<4x1xf32>
    %1083 = vector.extract_strided_slice %541 {offsets = [3, 0], sizes = [1, 256], strides = [1, 1]} : vector<4x256xf32> to vector<1x256xf32>
    %1084 = vector.broadcast %1082 : vector<4x1xf32> to vector<4x256xf32>
    %1085 = vector.broadcast %1083 : vector<1x256xf32> to vector<4x256xf32>
    %1086 = arith.mulf %1084, %1085 : vector<4x256xf32>
    %1087 = arith.addf %1081, %1086 : vector<4x256xf32>
    %1088 = vector.extract_strided_slice %1014 {offsets = [0, 12], sizes = [4, 1], strides = [1, 1]} : vector<4x36xf32> to vector<4x1xf32>
    %1089 = vector.extract_strided_slice %546 {offsets = [0, 0], sizes = [1, 256], strides = [1, 1]} : vector<4x256xf32> to vector<1x256xf32>
    %1090 = vector.broadcast %1088 : vector<4x1xf32> to vector<4x256xf32>
    %1091 = vector.broadcast %1089 : vector<1x256xf32> to vector<4x256xf32>
    %1092 = arith.mulf %1090, %1091 : vector<4x256xf32>
    %1093 = arith.addf %1087, %1092 : vector<4x256xf32>
    %1094 = vector.extract_strided_slice %1014 {offsets = [0, 13], sizes = [4, 1], strides = [1, 1]} : vector<4x36xf32> to vector<4x1xf32>
    %1095 = vector.extract_strided_slice %546 {offsets = [1, 0], sizes = [1, 256], strides = [1, 1]} : vector<4x256xf32> to vector<1x256xf32>
    %1096 = vector.broadcast %1094 : vector<4x1xf32> to vector<4x256xf32>
    %1097 = vector.broadcast %1095 : vector<1x256xf32> to vector<4x256xf32>
    %1098 = arith.mulf %1096, %1097 : vector<4x256xf32>
    %1099 = arith.addf %1093, %1098 : vector<4x256xf32>
    %1100 = vector.extract_strided_slice %1014 {offsets = [0, 14], sizes = [4, 1], strides = [1, 1]} : vector<4x36xf32> to vector<4x1xf32>
    %1101 = vector.extract_strided_slice %546 {offsets = [2, 0], sizes = [1, 256], strides = [1, 1]} : vector<4x256xf32> to vector<1x256xf32>
    %1102 = vector.broadcast %1100 : vector<4x1xf32> to vector<4x256xf32>
    %1103 = vector.broadcast %1101 : vector<1x256xf32> to vector<4x256xf32>
    %1104 = arith.mulf %1102, %1103 : vector<4x256xf32>
    %1105 = arith.addf %1099, %1104 : vector<4x256xf32>
    %1106 = vector.extract_strided_slice %1014 {offsets = [0, 15], sizes = [4, 1], strides = [1, 1]} : vector<4x36xf32> to vector<4x1xf32>
    %1107 = vector.extract_strided_slice %546 {offsets = [3, 0], sizes = [1, 256], strides = [1, 1]} : vector<4x256xf32> to vector<1x256xf32>
    %1108 = vector.broadcast %1106 : vector<4x1xf32> to vector<4x256xf32>
    %1109 = vector.broadcast %1107 : vector<1x256xf32> to vector<4x256xf32>
    %1110 = arith.mulf %1108, %1109 : vector<4x256xf32>
    %1111 = arith.addf %1105, %1110 : vector<4x256xf32>
    %1112 = vector.extract_strided_slice %1014 {offsets = [0, 16], sizes = [4, 1], strides = [1, 1]} : vector<4x36xf32> to vector<4x1xf32>
    %1113 = vector.extract_strided_slice %526 {offsets = [0, 0], sizes = [1, 256], strides = [1, 1]} : vector<4x256xf32> to vector<1x256xf32>
    %1114 = vector.broadcast %1112 : vector<4x1xf32> to vector<4x256xf32>
    %1115 = vector.broadcast %1113 : vector<1x256xf32> to vector<4x256xf32>
    %1116 = arith.mulf %1114, %1115 : vector<4x256xf32>
    %1117 = arith.addf %1111, %1116 : vector<4x256xf32>
    %1118 = vector.extract_strided_slice %1014 {offsets = [0, 17], sizes = [4, 1], strides = [1, 1]} : vector<4x36xf32> to vector<4x1xf32>
    %1119 = vector.extract_strided_slice %526 {offsets = [1, 0], sizes = [1, 256], strides = [1, 1]} : vector<4x256xf32> to vector<1x256xf32>
    %1120 = vector.broadcast %1118 : vector<4x1xf32> to vector<4x256xf32>
    %1121 = vector.broadcast %1119 : vector<1x256xf32> to vector<4x256xf32>
    %1122 = arith.mulf %1120, %1121 : vector<4x256xf32>
    %1123 = arith.addf %1117, %1122 : vector<4x256xf32>
    %1124 = vector.extract_strided_slice %1014 {offsets = [0, 18], sizes = [4, 1], strides = [1, 1]} : vector<4x36xf32> to vector<4x1xf32>
    %1125 = vector.extract_strided_slice %526 {offsets = [2, 0], sizes = [1, 256], strides = [1, 1]} : vector<4x256xf32> to vector<1x256xf32>
    %1126 = vector.broadcast %1124 : vector<4x1xf32> to vector<4x256xf32>
    %1127 = vector.broadcast %1125 : vector<1x256xf32> to vector<4x256xf32>
    %1128 = arith.mulf %1126, %1127 : vector<4x256xf32>
    %1129 = arith.addf %1123, %1128 : vector<4x256xf32>
    %1130 = vector.extract_strided_slice %1014 {offsets = [0, 19], sizes = [4, 1], strides = [1, 1]} : vector<4x36xf32> to vector<4x1xf32>
    %1131 = vector.extract_strided_slice %526 {offsets = [3, 0], sizes = [1, 256], strides = [1, 1]} : vector<4x256xf32> to vector<1x256xf32>
    %1132 = vector.broadcast %1130 : vector<4x1xf32> to vector<4x256xf32>
    %1133 = vector.broadcast %1131 : vector<1x256xf32> to vector<4x256xf32>
    %1134 = arith.mulf %1132, %1133 : vector<4x256xf32>
    %1135 = arith.addf %1129, %1134 : vector<4x256xf32>
    %1136 = vector.extract_strided_slice %1014 {offsets = [0, 20], sizes = [4, 1], strides = [1, 1]} : vector<4x36xf32> to vector<4x1xf32>
    %1137 = vector.extract_strided_slice %551 {offsets = [0, 0], sizes = [1, 256], strides = [1, 1]} : vector<4x256xf32> to vector<1x256xf32>
    %1138 = vector.broadcast %1136 : vector<4x1xf32> to vector<4x256xf32>
    %1139 = vector.broadcast %1137 : vector<1x256xf32> to vector<4x256xf32>
    %1140 = arith.mulf %1138, %1139 : vector<4x256xf32>
    %1141 = arith.addf %1135, %1140 : vector<4x256xf32>
    %1142 = vector.extract_strided_slice %1014 {offsets = [0, 21], sizes = [4, 1], strides = [1, 1]} : vector<4x36xf32> to vector<4x1xf32>
    %1143 = vector.extract_strided_slice %551 {offsets = [1, 0], sizes = [1, 256], strides = [1, 1]} : vector<4x256xf32> to vector<1x256xf32>
    %1144 = vector.broadcast %1142 : vector<4x1xf32> to vector<4x256xf32>
    %1145 = vector.broadcast %1143 : vector<1x256xf32> to vector<4x256xf32>
    %1146 = arith.mulf %1144, %1145 : vector<4x256xf32>
    %1147 = arith.addf %1141, %1146 : vector<4x256xf32>
    %1148 = vector.extract_strided_slice %1014 {offsets = [0, 22], sizes = [4, 1], strides = [1, 1]} : vector<4x36xf32> to vector<4x1xf32>
    %1149 = vector.extract_strided_slice %551 {offsets = [2, 0], sizes = [1, 256], strides = [1, 1]} : vector<4x256xf32> to vector<1x256xf32>
    %1150 = vector.broadcast %1148 : vector<4x1xf32> to vector<4x256xf32>
    %1151 = vector.broadcast %1149 : vector<1x256xf32> to vector<4x256xf32>
    %1152 = arith.mulf %1150, %1151 : vector<4x256xf32>
    %1153 = arith.addf %1147, %1152 : vector<4x256xf32>
    %1154 = vector.extract_strided_slice %1014 {offsets = [0, 23], sizes = [4, 1], strides = [1, 1]} : vector<4x36xf32> to vector<4x1xf32>
    %1155 = vector.extract_strided_slice %551 {offsets = [3, 0], sizes = [1, 256], strides = [1, 1]} : vector<4x256xf32> to vector<1x256xf32>
    %1156 = vector.broadcast %1154 : vector<4x1xf32> to vector<4x256xf32>
    %1157 = vector.broadcast %1155 : vector<1x256xf32> to vector<4x256xf32>
    %1158 = arith.mulf %1156, %1157 : vector<4x256xf32>
    %1159 = arith.addf %1153, %1158 : vector<4x256xf32>
    %1160 = vector.extract_strided_slice %1014 {offsets = [0, 24], sizes = [4, 1], strides = [1, 1]} : vector<4x36xf32> to vector<4x1xf32>
    %1161 = vector.extract_strided_slice %556 {offsets = [0, 0], sizes = [1, 256], strides = [1, 1]} : vector<4x256xf32> to vector<1x256xf32>
    %1162 = vector.broadcast %1160 : vector<4x1xf32> to vector<4x256xf32>
    %1163 = vector.broadcast %1161 : vector<1x256xf32> to vector<4x256xf32>
    %1164 = arith.mulf %1162, %1163 : vector<4x256xf32>
    %1165 = arith.addf %1159, %1164 : vector<4x256xf32>
    %1166 = vector.extract_strided_slice %1014 {offsets = [0, 25], sizes = [4, 1], strides = [1, 1]} : vector<4x36xf32> to vector<4x1xf32>
    %1167 = vector.extract_strided_slice %556 {offsets = [1, 0], sizes = [1, 256], strides = [1, 1]} : vector<4x256xf32> to vector<1x256xf32>
    %1168 = vector.broadcast %1166 : vector<4x1xf32> to vector<4x256xf32>
    %1169 = vector.broadcast %1167 : vector<1x256xf32> to vector<4x256xf32>
    %1170 = arith.mulf %1168, %1169 : vector<4x256xf32>
    %1171 = arith.addf %1165, %1170 : vector<4x256xf32>
    %1172 = vector.extract_strided_slice %1014 {offsets = [0, 26], sizes = [4, 1], strides = [1, 1]} : vector<4x36xf32> to vector<4x1xf32>
    %1173 = vector.extract_strided_slice %556 {offsets = [2, 0], sizes = [1, 256], strides = [1, 1]} : vector<4x256xf32> to vector<1x256xf32>
    %1174 = vector.broadcast %1172 : vector<4x1xf32> to vector<4x256xf32>
    %1175 = vector.broadcast %1173 : vector<1x256xf32> to vector<4x256xf32>
    %1176 = arith.mulf %1174, %1175 : vector<4x256xf32>
    %1177 = arith.addf %1171, %1176 : vector<4x256xf32>
    %1178 = vector.extract_strided_slice %1014 {offsets = [0, 27], sizes = [4, 1], strides = [1, 1]} : vector<4x36xf32> to vector<4x1xf32>
    %1179 = vector.extract_strided_slice %556 {offsets = [3, 0], sizes = [1, 256], strides = [1, 1]} : vector<4x256xf32> to vector<1x256xf32>
    %1180 = vector.broadcast %1178 : vector<4x1xf32> to vector<4x256xf32>
    %1181 = vector.broadcast %1179 : vector<1x256xf32> to vector<4x256xf32>
    %1182 = arith.mulf %1180, %1181 : vector<4x256xf32>
    %1183 = arith.addf %1177, %1182 : vector<4x256xf32>
    %1184 = vector.extract_strided_slice %1014 {offsets = [0, 28], sizes = [4, 1], strides = [1, 1]} : vector<4x36xf32> to vector<4x1xf32>
    %1185 = vector.extract_strided_slice %561 {offsets = [0, 0], sizes = [1, 256], strides = [1, 1]} : vector<4x256xf32> to vector<1x256xf32>
    %1186 = vector.broadcast %1184 : vector<4x1xf32> to vector<4x256xf32>
    %1187 = vector.broadcast %1185 : vector<1x256xf32> to vector<4x256xf32>
    %1188 = arith.mulf %1186, %1187 : vector<4x256xf32>
    %1189 = arith.addf %1183, %1188 : vector<4x256xf32>
    %1190 = vector.extract_strided_slice %1014 {offsets = [0, 29], sizes = [4, 1], strides = [1, 1]} : vector<4x36xf32> to vector<4x1xf32>
    %1191 = vector.extract_strided_slice %561 {offsets = [1, 0], sizes = [1, 256], strides = [1, 1]} : vector<4x256xf32> to vector<1x256xf32>
    %1192 = vector.broadcast %1190 : vector<4x1xf32> to vector<4x256xf32>
    %1193 = vector.broadcast %1191 : vector<1x256xf32> to vector<4x256xf32>
    %1194 = arith.mulf %1192, %1193 : vector<4x256xf32>
    %1195 = arith.addf %1189, %1194 : vector<4x256xf32>
    %1196 = vector.extract_strided_slice %1014 {offsets = [0, 30], sizes = [4, 1], strides = [1, 1]} : vector<4x36xf32> to vector<4x1xf32>
    %1197 = vector.extract_strided_slice %561 {offsets = [2, 0], sizes = [1, 256], strides = [1, 1]} : vector<4x256xf32> to vector<1x256xf32>
    %1198 = vector.broadcast %1196 : vector<4x1xf32> to vector<4x256xf32>
    %1199 = vector.broadcast %1197 : vector<1x256xf32> to vector<4x256xf32>
    %1200 = arith.mulf %1198, %1199 : vector<4x256xf32>
    %1201 = arith.addf %1195, %1200 : vector<4x256xf32>
    %1202 = vector.extract_strided_slice %1014 {offsets = [0, 31], sizes = [4, 1], strides = [1, 1]} : vector<4x36xf32> to vector<4x1xf32>
    %1203 = vector.extract_strided_slice %561 {offsets = [3, 0], sizes = [1, 256], strides = [1, 1]} : vector<4x256xf32> to vector<1x256xf32>
    %1204 = vector.broadcast %1202 : vector<4x1xf32> to vector<4x256xf32>
    %1205 = vector.broadcast %1203 : vector<1x256xf32> to vector<4x256xf32>
    %1206 = arith.mulf %1204, %1205 : vector<4x256xf32>
    %1207 = arith.addf %1201, %1206 : vector<4x256xf32>
    %1208 = vector.extract_strided_slice %1014 {offsets = [0, 32], sizes = [4, 1], strides = [1, 1]} : vector<4x36xf32> to vector<4x1xf32>
    %1209 = vector.extract_strided_slice %566 {offsets = [0, 0], sizes = [1, 256], strides = [1, 1]} : vector<4x256xf32> to vector<1x256xf32>
    %1210 = vector.broadcast %1208 : vector<4x1xf32> to vector<4x256xf32>
    %1211 = vector.broadcast %1209 : vector<1x256xf32> to vector<4x256xf32>
    %1212 = arith.mulf %1210, %1211 : vector<4x256xf32>
    %1213 = arith.addf %1207, %1212 : vector<4x256xf32>
    %1214 = vector.extract_strided_slice %1014 {offsets = [0, 33], sizes = [4, 1], strides = [1, 1]} : vector<4x36xf32> to vector<4x1xf32>
    %1215 = vector.extract_strided_slice %566 {offsets = [1, 0], sizes = [1, 256], strides = [1, 1]} : vector<4x256xf32> to vector<1x256xf32>
    %1216 = vector.broadcast %1214 : vector<4x1xf32> to vector<4x256xf32>
    %1217 = vector.broadcast %1215 : vector<1x256xf32> to vector<4x256xf32>
    %1218 = arith.mulf %1216, %1217 : vector<4x256xf32>
    %1219 = arith.addf %1213, %1218 : vector<4x256xf32>
    %1220 = vector.extract_strided_slice %1014 {offsets = [0, 34], sizes = [4, 1], strides = [1, 1]} : vector<4x36xf32> to vector<4x1xf32>
    %1221 = vector.extract_strided_slice %566 {offsets = [2, 0], sizes = [1, 256], strides = [1, 1]} : vector<4x256xf32> to vector<1x256xf32>
    %1222 = vector.broadcast %1220 : vector<4x1xf32> to vector<4x256xf32>
    %1223 = vector.broadcast %1221 : vector<1x256xf32> to vector<4x256xf32>
    %1224 = arith.mulf %1222, %1223 : vector<4x256xf32>
    %1225 = arith.addf %1219, %1224 : vector<4x256xf32>
    %1226 = vector.extract_strided_slice %1014 {offsets = [0, 35], sizes = [4, 1], strides = [1, 1]} : vector<4x36xf32> to vector<4x1xf32>
    %1227 = vector.extract_strided_slice %566 {offsets = [3, 0], sizes = [1, 256], strides = [1, 1]} : vector<4x256xf32> to vector<1x256xf32>
    %1228 = vector.broadcast %1226 : vector<4x1xf32> to vector<4x256xf32>
    %1229 = vector.broadcast %1227 : vector<1x256xf32> to vector<4x256xf32>
    %1230 = arith.mulf %1228, %1229 : vector<4x256xf32>
    %1231 = arith.addf %1225, %1230 : vector<4x256xf32>
    %1232 = arith.addf %1012, %1231 : vector<4x256xf32>
    %c1_112 = arith.constant 1 : index
    %c0_113 = arith.constant 0 : index
    %c0_114 = arith.constant 0 : index
    %1233 = vector.load %arg10[%c1_112, %c0_113, %c0_114] : memref<3x4x1xf32, #tpu.memory_space<vmem>>, vector<1x4x1xf32>
    %1234 = vector.shape_cast %1233 : vector<1x4x1xf32> to vector<4x1xf32>
    %1235 = vector.broadcast %1234 : vector<4x1xf32> to vector<4x256xf32>
    %1236 = arith.addf %1232, %1235 : vector<4x256xf32>
    %c2_115 = arith.constant 2 : index
    %c0_116 = arith.constant 0 : index
    %c0_117 = arith.constant 0 : index
    %1237 = vector.load %arg9[%c2_115, %c0_116, %c0_117] : memref<3x4x36xf32, #tpu.memory_space<vmem>>, vector<1x4x36xf32>
    %1238 = vector.shape_cast %1237 : vector<1x4x36xf32> to vector<4x36xf32>
    %cst_118 = arith.constant 0.000000e+00 : f32
    %1239 = vector.broadcast %cst_118 : f32 to vector<4x256xf32>
    %1240 = vector.extract_strided_slice %1238 {offsets = [0, 0], sizes = [4, 1], strides = [1, 1]} : vector<4x36xf32> to vector<4x1xf32>
    %1241 = vector.extract_strided_slice %531 {offsets = [0, 0], sizes = [1, 256], strides = [1, 1]} : vector<4x256xf32> to vector<1x256xf32>
    %1242 = vector.broadcast %1240 : vector<4x1xf32> to vector<4x256xf32>
    %1243 = vector.broadcast %1241 : vector<1x256xf32> to vector<4x256xf32>
    %1244 = arith.mulf %1242, %1243 : vector<4x256xf32>
    %1245 = arith.addf %1239, %1244 : vector<4x256xf32>
    %1246 = vector.extract_strided_slice %1238 {offsets = [0, 1], sizes = [4, 1], strides = [1, 1]} : vector<4x36xf32> to vector<4x1xf32>
    %1247 = vector.extract_strided_slice %531 {offsets = [1, 0], sizes = [1, 256], strides = [1, 1]} : vector<4x256xf32> to vector<1x256xf32>
    %1248 = vector.broadcast %1246 : vector<4x1xf32> to vector<4x256xf32>
    %1249 = vector.broadcast %1247 : vector<1x256xf32> to vector<4x256xf32>
    %1250 = arith.mulf %1248, %1249 : vector<4x256xf32>
    %1251 = arith.addf %1245, %1250 : vector<4x256xf32>
    %1252 = vector.extract_strided_slice %1238 {offsets = [0, 2], sizes = [4, 1], strides = [1, 1]} : vector<4x36xf32> to vector<4x1xf32>
    %1253 = vector.extract_strided_slice %531 {offsets = [2, 0], sizes = [1, 256], strides = [1, 1]} : vector<4x256xf32> to vector<1x256xf32>
    %1254 = vector.broadcast %1252 : vector<4x1xf32> to vector<4x256xf32>
    %1255 = vector.broadcast %1253 : vector<1x256xf32> to vector<4x256xf32>
    %1256 = arith.mulf %1254, %1255 : vector<4x256xf32>
    %1257 = arith.addf %1251, %1256 : vector<4x256xf32>
    %1258 = vector.extract_strided_slice %1238 {offsets = [0, 3], sizes = [4, 1], strides = [1, 1]} : vector<4x36xf32> to vector<4x1xf32>
    %1259 = vector.extract_strided_slice %531 {offsets = [3, 0], sizes = [1, 256], strides = [1, 1]} : vector<4x256xf32> to vector<1x256xf32>
    %1260 = vector.broadcast %1258 : vector<4x1xf32> to vector<4x256xf32>
    %1261 = vector.broadcast %1259 : vector<1x256xf32> to vector<4x256xf32>
    %1262 = arith.mulf %1260, %1261 : vector<4x256xf32>
    %1263 = arith.addf %1257, %1262 : vector<4x256xf32>
    %1264 = vector.extract_strided_slice %1238 {offsets = [0, 4], sizes = [4, 1], strides = [1, 1]} : vector<4x36xf32> to vector<4x1xf32>
    %1265 = vector.extract_strided_slice %536 {offsets = [0, 0], sizes = [1, 256], strides = [1, 1]} : vector<4x256xf32> to vector<1x256xf32>
    %1266 = vector.broadcast %1264 : vector<4x1xf32> to vector<4x256xf32>
    %1267 = vector.broadcast %1265 : vector<1x256xf32> to vector<4x256xf32>
    %1268 = arith.mulf %1266, %1267 : vector<4x256xf32>
    %1269 = arith.addf %1263, %1268 : vector<4x256xf32>
    %1270 = vector.extract_strided_slice %1238 {offsets = [0, 5], sizes = [4, 1], strides = [1, 1]} : vector<4x36xf32> to vector<4x1xf32>
    %1271 = vector.extract_strided_slice %536 {offsets = [1, 0], sizes = [1, 256], strides = [1, 1]} : vector<4x256xf32> to vector<1x256xf32>
    %1272 = vector.broadcast %1270 : vector<4x1xf32> to vector<4x256xf32>
    %1273 = vector.broadcast %1271 : vector<1x256xf32> to vector<4x256xf32>
    %1274 = arith.mulf %1272, %1273 : vector<4x256xf32>
    %1275 = arith.addf %1269, %1274 : vector<4x256xf32>
    %1276 = vector.extract_strided_slice %1238 {offsets = [0, 6], sizes = [4, 1], strides = [1, 1]} : vector<4x36xf32> to vector<4x1xf32>
    %1277 = vector.extract_strided_slice %536 {offsets = [2, 0], sizes = [1, 256], strides = [1, 1]} : vector<4x256xf32> to vector<1x256xf32>
    %1278 = vector.broadcast %1276 : vector<4x1xf32> to vector<4x256xf32>
    %1279 = vector.broadcast %1277 : vector<1x256xf32> to vector<4x256xf32>
    %1280 = arith.mulf %1278, %1279 : vector<4x256xf32>
    %1281 = arith.addf %1275, %1280 : vector<4x256xf32>
    %1282 = vector.extract_strided_slice %1238 {offsets = [0, 7], sizes = [4, 1], strides = [1, 1]} : vector<4x36xf32> to vector<4x1xf32>
    %1283 = vector.extract_strided_slice %536 {offsets = [3, 0], sizes = [1, 256], strides = [1, 1]} : vector<4x256xf32> to vector<1x256xf32>
    %1284 = vector.broadcast %1282 : vector<4x1xf32> to vector<4x256xf32>
    %1285 = vector.broadcast %1283 : vector<1x256xf32> to vector<4x256xf32>
    %1286 = arith.mulf %1284, %1285 : vector<4x256xf32>
    %1287 = arith.addf %1281, %1286 : vector<4x256xf32>
    %1288 = vector.extract_strided_slice %1238 {offsets = [0, 8], sizes = [4, 1], strides = [1, 1]} : vector<4x36xf32> to vector<4x1xf32>
    %1289 = vector.extract_strided_slice %541 {offsets = [0, 0], sizes = [1, 256], strides = [1, 1]} : vector<4x256xf32> to vector<1x256xf32>
    %1290 = vector.broadcast %1288 : vector<4x1xf32> to vector<4x256xf32>
    %1291 = vector.broadcast %1289 : vector<1x256xf32> to vector<4x256xf32>
    %1292 = arith.mulf %1290, %1291 : vector<4x256xf32>
    %1293 = arith.addf %1287, %1292 : vector<4x256xf32>
    %1294 = vector.extract_strided_slice %1238 {offsets = [0, 9], sizes = [4, 1], strides = [1, 1]} : vector<4x36xf32> to vector<4x1xf32>
    %1295 = vector.extract_strided_slice %541 {offsets = [1, 0], sizes = [1, 256], strides = [1, 1]} : vector<4x256xf32> to vector<1x256xf32>
    %1296 = vector.broadcast %1294 : vector<4x1xf32> to vector<4x256xf32>
    %1297 = vector.broadcast %1295 : vector<1x256xf32> to vector<4x256xf32>
    %1298 = arith.mulf %1296, %1297 : vector<4x256xf32>
    %1299 = arith.addf %1293, %1298 : vector<4x256xf32>
    %1300 = vector.extract_strided_slice %1238 {offsets = [0, 10], sizes = [4, 1], strides = [1, 1]} : vector<4x36xf32> to vector<4x1xf32>
    %1301 = vector.extract_strided_slice %541 {offsets = [2, 0], sizes = [1, 256], strides = [1, 1]} : vector<4x256xf32> to vector<1x256xf32>
    %1302 = vector.broadcast %1300 : vector<4x1xf32> to vector<4x256xf32>
    %1303 = vector.broadcast %1301 : vector<1x256xf32> to vector<4x256xf32>
    %1304 = arith.mulf %1302, %1303 : vector<4x256xf32>
    %1305 = arith.addf %1299, %1304 : vector<4x256xf32>
    %1306 = vector.extract_strided_slice %1238 {offsets = [0, 11], sizes = [4, 1], strides = [1, 1]} : vector<4x36xf32> to vector<4x1xf32>
    %1307 = vector.extract_strided_slice %541 {offsets = [3, 0], sizes = [1, 256], strides = [1, 1]} : vector<4x256xf32> to vector<1x256xf32>
    %1308 = vector.broadcast %1306 : vector<4x1xf32> to vector<4x256xf32>
    %1309 = vector.broadcast %1307 : vector<1x256xf32> to vector<4x256xf32>
    %1310 = arith.mulf %1308, %1309 : vector<4x256xf32>
    %1311 = arith.addf %1305, %1310 : vector<4x256xf32>
    %1312 = vector.extract_strided_slice %1238 {offsets = [0, 12], sizes = [4, 1], strides = [1, 1]} : vector<4x36xf32> to vector<4x1xf32>
    %1313 = vector.extract_strided_slice %546 {offsets = [0, 0], sizes = [1, 256], strides = [1, 1]} : vector<4x256xf32> to vector<1x256xf32>
    %1314 = vector.broadcast %1312 : vector<4x1xf32> to vector<4x256xf32>
    %1315 = vector.broadcast %1313 : vector<1x256xf32> to vector<4x256xf32>
    %1316 = arith.mulf %1314, %1315 : vector<4x256xf32>
    %1317 = arith.addf %1311, %1316 : vector<4x256xf32>
    %1318 = vector.extract_strided_slice %1238 {offsets = [0, 13], sizes = [4, 1], strides = [1, 1]} : vector<4x36xf32> to vector<4x1xf32>
    %1319 = vector.extract_strided_slice %546 {offsets = [1, 0], sizes = [1, 256], strides = [1, 1]} : vector<4x256xf32> to vector<1x256xf32>
    %1320 = vector.broadcast %1318 : vector<4x1xf32> to vector<4x256xf32>
    %1321 = vector.broadcast %1319 : vector<1x256xf32> to vector<4x256xf32>
    %1322 = arith.mulf %1320, %1321 : vector<4x256xf32>
    %1323 = arith.addf %1317, %1322 : vector<4x256xf32>
    %1324 = vector.extract_strided_slice %1238 {offsets = [0, 14], sizes = [4, 1], strides = [1, 1]} : vector<4x36xf32> to vector<4x1xf32>
    %1325 = vector.extract_strided_slice %546 {offsets = [2, 0], sizes = [1, 256], strides = [1, 1]} : vector<4x256xf32> to vector<1x256xf32>
    %1326 = vector.broadcast %1324 : vector<4x1xf32> to vector<4x256xf32>
    %1327 = vector.broadcast %1325 : vector<1x256xf32> to vector<4x256xf32>
    %1328 = arith.mulf %1326, %1327 : vector<4x256xf32>
    %1329 = arith.addf %1323, %1328 : vector<4x256xf32>
    %1330 = vector.extract_strided_slice %1238 {offsets = [0, 15], sizes = [4, 1], strides = [1, 1]} : vector<4x36xf32> to vector<4x1xf32>
    %1331 = vector.extract_strided_slice %546 {offsets = [3, 0], sizes = [1, 256], strides = [1, 1]} : vector<4x256xf32> to vector<1x256xf32>
    %1332 = vector.broadcast %1330 : vector<4x1xf32> to vector<4x256xf32>
    %1333 = vector.broadcast %1331 : vector<1x256xf32> to vector<4x256xf32>
    %1334 = arith.mulf %1332, %1333 : vector<4x256xf32>
    %1335 = arith.addf %1329, %1334 : vector<4x256xf32>
    %1336 = vector.extract_strided_slice %1238 {offsets = [0, 16], sizes = [4, 1], strides = [1, 1]} : vector<4x36xf32> to vector<4x1xf32>
    %1337 = vector.extract_strided_slice %526 {offsets = [0, 0], sizes = [1, 256], strides = [1, 1]} : vector<4x256xf32> to vector<1x256xf32>
    %1338 = vector.broadcast %1336 : vector<4x1xf32> to vector<4x256xf32>
    %1339 = vector.broadcast %1337 : vector<1x256xf32> to vector<4x256xf32>
    %1340 = arith.mulf %1338, %1339 : vector<4x256xf32>
    %1341 = arith.addf %1335, %1340 : vector<4x256xf32>
    %1342 = vector.extract_strided_slice %1238 {offsets = [0, 17], sizes = [4, 1], strides = [1, 1]} : vector<4x36xf32> to vector<4x1xf32>
    %1343 = vector.extract_strided_slice %526 {offsets = [1, 0], sizes = [1, 256], strides = [1, 1]} : vector<4x256xf32> to vector<1x256xf32>
    %1344 = vector.broadcast %1342 : vector<4x1xf32> to vector<4x256xf32>
    %1345 = vector.broadcast %1343 : vector<1x256xf32> to vector<4x256xf32>
    %1346 = arith.mulf %1344, %1345 : vector<4x256xf32>
    %1347 = arith.addf %1341, %1346 : vector<4x256xf32>
    %1348 = vector.extract_strided_slice %1238 {offsets = [0, 18], sizes = [4, 1], strides = [1, 1]} : vector<4x36xf32> to vector<4x1xf32>
    %1349 = vector.extract_strided_slice %526 {offsets = [2, 0], sizes = [1, 256], strides = [1, 1]} : vector<4x256xf32> to vector<1x256xf32>
    %1350 = vector.broadcast %1348 : vector<4x1xf32> to vector<4x256xf32>
    %1351 = vector.broadcast %1349 : vector<1x256xf32> to vector<4x256xf32>
    %1352 = arith.mulf %1350, %1351 : vector<4x256xf32>
    %1353 = arith.addf %1347, %1352 : vector<4x256xf32>
    %1354 = vector.extract_strided_slice %1238 {offsets = [0, 19], sizes = [4, 1], strides = [1, 1]} : vector<4x36xf32> to vector<4x1xf32>
    %1355 = vector.extract_strided_slice %526 {offsets = [3, 0], sizes = [1, 256], strides = [1, 1]} : vector<4x256xf32> to vector<1x256xf32>
    %1356 = vector.broadcast %1354 : vector<4x1xf32> to vector<4x256xf32>
    %1357 = vector.broadcast %1355 : vector<1x256xf32> to vector<4x256xf32>
    %1358 = arith.mulf %1356, %1357 : vector<4x256xf32>
    %1359 = arith.addf %1353, %1358 : vector<4x256xf32>
    %1360 = vector.extract_strided_slice %1238 {offsets = [0, 20], sizes = [4, 1], strides = [1, 1]} : vector<4x36xf32> to vector<4x1xf32>
    %1361 = vector.extract_strided_slice %551 {offsets = [0, 0], sizes = [1, 256], strides = [1, 1]} : vector<4x256xf32> to vector<1x256xf32>
    %1362 = vector.broadcast %1360 : vector<4x1xf32> to vector<4x256xf32>
    %1363 = vector.broadcast %1361 : vector<1x256xf32> to vector<4x256xf32>
    %1364 = arith.mulf %1362, %1363 : vector<4x256xf32>
    %1365 = arith.addf %1359, %1364 : vector<4x256xf32>
    %1366 = vector.extract_strided_slice %1238 {offsets = [0, 21], sizes = [4, 1], strides = [1, 1]} : vector<4x36xf32> to vector<4x1xf32>
    %1367 = vector.extract_strided_slice %551 {offsets = [1, 0], sizes = [1, 256], strides = [1, 1]} : vector<4x256xf32> to vector<1x256xf32>
    %1368 = vector.broadcast %1366 : vector<4x1xf32> to vector<4x256xf32>
    %1369 = vector.broadcast %1367 : vector<1x256xf32> to vector<4x256xf32>
    %1370 = arith.mulf %1368, %1369 : vector<4x256xf32>
    %1371 = arith.addf %1365, %1370 : vector<4x256xf32>
    %1372 = vector.extract_strided_slice %1238 {offsets = [0, 22], sizes = [4, 1], strides = [1, 1]} : vector<4x36xf32> to vector<4x1xf32>
    %1373 = vector.extract_strided_slice %551 {offsets = [2, 0], sizes = [1, 256], strides = [1, 1]} : vector<4x256xf32> to vector<1x256xf32>
    %1374 = vector.broadcast %1372 : vector<4x1xf32> to vector<4x256xf32>
    %1375 = vector.broadcast %1373 : vector<1x256xf32> to vector<4x256xf32>
    %1376 = arith.mulf %1374, %1375 : vector<4x256xf32>
    %1377 = arith.addf %1371, %1376 : vector<4x256xf32>
    %1378 = vector.extract_strided_slice %1238 {offsets = [0, 23], sizes = [4, 1], strides = [1, 1]} : vector<4x36xf32> to vector<4x1xf32>
    %1379 = vector.extract_strided_slice %551 {offsets = [3, 0], sizes = [1, 256], strides = [1, 1]} : vector<4x256xf32> to vector<1x256xf32>
    %1380 = vector.broadcast %1378 : vector<4x1xf32> to vector<4x256xf32>
    %1381 = vector.broadcast %1379 : vector<1x256xf32> to vector<4x256xf32>
    %1382 = arith.mulf %1380, %1381 : vector<4x256xf32>
    %1383 = arith.addf %1377, %1382 : vector<4x256xf32>
    %1384 = vector.extract_strided_slice %1238 {offsets = [0, 24], sizes = [4, 1], strides = [1, 1]} : vector<4x36xf32> to vector<4x1xf32>
    %1385 = vector.extract_strided_slice %556 {offsets = [0, 0], sizes = [1, 256], strides = [1, 1]} : vector<4x256xf32> to vector<1x256xf32>
    %1386 = vector.broadcast %1384 : vector<4x1xf32> to vector<4x256xf32>
    %1387 = vector.broadcast %1385 : vector<1x256xf32> to vector<4x256xf32>
    %1388 = arith.mulf %1386, %1387 : vector<4x256xf32>
    %1389 = arith.addf %1383, %1388 : vector<4x256xf32>
    %1390 = vector.extract_strided_slice %1238 {offsets = [0, 25], sizes = [4, 1], strides = [1, 1]} : vector<4x36xf32> to vector<4x1xf32>
    %1391 = vector.extract_strided_slice %556 {offsets = [1, 0], sizes = [1, 256], strides = [1, 1]} : vector<4x256xf32> to vector<1x256xf32>
    %1392 = vector.broadcast %1390 : vector<4x1xf32> to vector<4x256xf32>
    %1393 = vector.broadcast %1391 : vector<1x256xf32> to vector<4x256xf32>
    %1394 = arith.mulf %1392, %1393 : vector<4x256xf32>
    %1395 = arith.addf %1389, %1394 : vector<4x256xf32>
    %1396 = vector.extract_strided_slice %1238 {offsets = [0, 26], sizes = [4, 1], strides = [1, 1]} : vector<4x36xf32> to vector<4x1xf32>
    %1397 = vector.extract_strided_slice %556 {offsets = [2, 0], sizes = [1, 256], strides = [1, 1]} : vector<4x256xf32> to vector<1x256xf32>
    %1398 = vector.broadcast %1396 : vector<4x1xf32> to vector<4x256xf32>
    %1399 = vector.broadcast %1397 : vector<1x256xf32> to vector<4x256xf32>
    %1400 = arith.mulf %1398, %1399 : vector<4x256xf32>
    %1401 = arith.addf %1395, %1400 : vector<4x256xf32>
    %1402 = vector.extract_strided_slice %1238 {offsets = [0, 27], sizes = [4, 1], strides = [1, 1]} : vector<4x36xf32> to vector<4x1xf32>
    %1403 = vector.extract_strided_slice %556 {offsets = [3, 0], sizes = [1, 256], strides = [1, 1]} : vector<4x256xf32> to vector<1x256xf32>
    %1404 = vector.broadcast %1402 : vector<4x1xf32> to vector<4x256xf32>
    %1405 = vector.broadcast %1403 : vector<1x256xf32> to vector<4x256xf32>
    %1406 = arith.mulf %1404, %1405 : vector<4x256xf32>
    %1407 = arith.addf %1401, %1406 : vector<4x256xf32>
    %1408 = vector.extract_strided_slice %1238 {offsets = [0, 28], sizes = [4, 1], strides = [1, 1]} : vector<4x36xf32> to vector<4x1xf32>
    %1409 = vector.extract_strided_slice %561 {offsets = [0, 0], sizes = [1, 256], strides = [1, 1]} : vector<4x256xf32> to vector<1x256xf32>
    %1410 = vector.broadcast %1408 : vector<4x1xf32> to vector<4x256xf32>
    %1411 = vector.broadcast %1409 : vector<1x256xf32> to vector<4x256xf32>
    %1412 = arith.mulf %1410, %1411 : vector<4x256xf32>
    %1413 = arith.addf %1407, %1412 : vector<4x256xf32>
    %1414 = vector.extract_strided_slice %1238 {offsets = [0, 29], sizes = [4, 1], strides = [1, 1]} : vector<4x36xf32> to vector<4x1xf32>
    %1415 = vector.extract_strided_slice %561 {offsets = [1, 0], sizes = [1, 256], strides = [1, 1]} : vector<4x256xf32> to vector<1x256xf32>
    %1416 = vector.broadcast %1414 : vector<4x1xf32> to vector<4x256xf32>
    %1417 = vector.broadcast %1415 : vector<1x256xf32> to vector<4x256xf32>
    %1418 = arith.mulf %1416, %1417 : vector<4x256xf32>
    %1419 = arith.addf %1413, %1418 : vector<4x256xf32>
    %1420 = vector.extract_strided_slice %1238 {offsets = [0, 30], sizes = [4, 1], strides = [1, 1]} : vector<4x36xf32> to vector<4x1xf32>
    %1421 = vector.extract_strided_slice %561 {offsets = [2, 0], sizes = [1, 256], strides = [1, 1]} : vector<4x256xf32> to vector<1x256xf32>
    %1422 = vector.broadcast %1420 : vector<4x1xf32> to vector<4x256xf32>
    %1423 = vector.broadcast %1421 : vector<1x256xf32> to vector<4x256xf32>
    %1424 = arith.mulf %1422, %1423 : vector<4x256xf32>
    %1425 = arith.addf %1419, %1424 : vector<4x256xf32>
    %1426 = vector.extract_strided_slice %1238 {offsets = [0, 31], sizes = [4, 1], strides = [1, 1]} : vector<4x36xf32> to vector<4x1xf32>
    %1427 = vector.extract_strided_slice %561 {offsets = [3, 0], sizes = [1, 256], strides = [1, 1]} : vector<4x256xf32> to vector<1x256xf32>
    %1428 = vector.broadcast %1426 : vector<4x1xf32> to vector<4x256xf32>
    %1429 = vector.broadcast %1427 : vector<1x256xf32> to vector<4x256xf32>
    %1430 = arith.mulf %1428, %1429 : vector<4x256xf32>
    %1431 = arith.addf %1425, %1430 : vector<4x256xf32>
    %1432 = vector.extract_strided_slice %1238 {offsets = [0, 32], sizes = [4, 1], strides = [1, 1]} : vector<4x36xf32> to vector<4x1xf32>
    %1433 = vector.extract_strided_slice %566 {offsets = [0, 0], sizes = [1, 256], strides = [1, 1]} : vector<4x256xf32> to vector<1x256xf32>
    %1434 = vector.broadcast %1432 : vector<4x1xf32> to vector<4x256xf32>
    %1435 = vector.broadcast %1433 : vector<1x256xf32> to vector<4x256xf32>
    %1436 = arith.mulf %1434, %1435 : vector<4x256xf32>
    %1437 = arith.addf %1431, %1436 : vector<4x256xf32>
    %1438 = vector.extract_strided_slice %1238 {offsets = [0, 33], sizes = [4, 1], strides = [1, 1]} : vector<4x36xf32> to vector<4x1xf32>
    %1439 = vector.extract_strided_slice %566 {offsets = [1, 0], sizes = [1, 256], strides = [1, 1]} : vector<4x256xf32> to vector<1x256xf32>
    %1440 = vector.broadcast %1438 : vector<4x1xf32> to vector<4x256xf32>
    %1441 = vector.broadcast %1439 : vector<1x256xf32> to vector<4x256xf32>
    %1442 = arith.mulf %1440, %1441 : vector<4x256xf32>
    %1443 = arith.addf %1437, %1442 : vector<4x256xf32>
    %1444 = vector.extract_strided_slice %1238 {offsets = [0, 34], sizes = [4, 1], strides = [1, 1]} : vector<4x36xf32> to vector<4x1xf32>
    %1445 = vector.extract_strided_slice %566 {offsets = [2, 0], sizes = [1, 256], strides = [1, 1]} : vector<4x256xf32> to vector<1x256xf32>
    %1446 = vector.broadcast %1444 : vector<4x1xf32> to vector<4x256xf32>
    %1447 = vector.broadcast %1445 : vector<1x256xf32> to vector<4x256xf32>
    %1448 = arith.mulf %1446, %1447 : vector<4x256xf32>
    %1449 = arith.addf %1443, %1448 : vector<4x256xf32>
    %1450 = vector.extract_strided_slice %1238 {offsets = [0, 35], sizes = [4, 1], strides = [1, 1]} : vector<4x36xf32> to vector<4x1xf32>
    %1451 = vector.extract_strided_slice %566 {offsets = [3, 0], sizes = [1, 256], strides = [1, 1]} : vector<4x256xf32> to vector<1x256xf32>
    %1452 = vector.broadcast %1450 : vector<4x1xf32> to vector<4x256xf32>
    %1453 = vector.broadcast %1451 : vector<1x256xf32> to vector<4x256xf32>
    %1454 = arith.mulf %1452, %1453 : vector<4x256xf32>
    %1455 = arith.addf %1449, %1454 : vector<4x256xf32>
    %1456 = arith.addf %1236, %1455 : vector<4x256xf32>
    %c2_119 = arith.constant 2 : index
    %c0_120 = arith.constant 0 : index
    %c0_121 = arith.constant 0 : index
    %1457 = vector.load %arg10[%c2_119, %c0_120, %c0_121] : memref<3x4x1xf32, #tpu.memory_space<vmem>>, vector<1x4x1xf32>
    %1458 = vector.shape_cast %1457 : vector<1x4x1xf32> to vector<4x1xf32>
    %1459 = vector.broadcast %1458 : vector<4x1xf32> to vector<4x256xf32>
    %1460 = arith.addf %1456, %1459 : vector<4x256xf32>
    %cst_122 = arith.constant 0.000000e+00 : f32
    %1461 = vector.broadcast %cst_122 : f32 to vector<4x256xf32>
    %1462 = arith.maximumf %1460, %1461 : vector<4x256xf32>
    %c17_i32_123 = arith.constant 17 : i32
    %1463 = tpu.dynamic_rotate %1462 by %c17_i32_123 dim 1 : vector<4x256xf32>, i32 -> vector<4x256xf32>
    %c0_124 = arith.constant 0 : index
    %c0_125 = arith.constant 0 : index
    %c0_126 = arith.constant 0 : index
    %1464 = vector.load %arg5[%c0_124, %c0_125, %c0_126] : memref<9x1x256xf32, #tpu.memory_space<vmem>>, vector<1x1x256xf32>
    %1465 = vector.shape_cast %1464 : vector<1x1x256xf32> to vector<1x256xf32>
    %1466 = vector.broadcast %1465 : vector<1x256xf32> to vector<4x256xf32>
    %1467 = arith.mulf %1466, %1463 : vector<4x256xf32>
    %c16_i32_127 = arith.constant 16 : i32
    %1468 = tpu.dynamic_rotate %1462 by %c16_i32_127 dim 1 : vector<4x256xf32>, i32 -> vector<4x256xf32>
    %c1_128 = arith.constant 1 : index
    %c0_129 = arith.constant 0 : index
    %c0_130 = arith.constant 0 : index
    %1469 = vector.load %arg5[%c1_128, %c0_129, %c0_130] : memref<9x1x256xf32, #tpu.memory_space<vmem>>, vector<1x1x256xf32>
    %1470 = vector.shape_cast %1469 : vector<1x1x256xf32> to vector<1x256xf32>
    %1471 = vector.broadcast %1470 : vector<1x256xf32> to vector<4x256xf32>
    %1472 = arith.mulf %1471, %1468 : vector<4x256xf32>
    %c15_i32_131 = arith.constant 15 : i32
    %1473 = tpu.dynamic_rotate %1462 by %c15_i32_131 dim 1 : vector<4x256xf32>, i32 -> vector<4x256xf32>
    %c2_132 = arith.constant 2 : index
    %c0_133 = arith.constant 0 : index
    %c0_134 = arith.constant 0 : index
    %1474 = vector.load %arg5[%c2_132, %c0_133, %c0_134] : memref<9x1x256xf32, #tpu.memory_space<vmem>>, vector<1x1x256xf32>
    %1475 = vector.shape_cast %1474 : vector<1x1x256xf32> to vector<1x256xf32>
    %1476 = vector.broadcast %1475 : vector<1x256xf32> to vector<4x256xf32>
    %1477 = arith.mulf %1476, %1473 : vector<4x256xf32>
    %c1_i32_135 = arith.constant 1 : i32
    %1478 = tpu.dynamic_rotate %1462 by %c1_i32_135 dim 1 : vector<4x256xf32>, i32 -> vector<4x256xf32>
    %c3_136 = arith.constant 3 : index
    %c0_137 = arith.constant 0 : index
    %c0_138 = arith.constant 0 : index
    %1479 = vector.load %arg5[%c3_136, %c0_137, %c0_138] : memref<9x1x256xf32, #tpu.memory_space<vmem>>, vector<1x1x256xf32>
    %1480 = vector.shape_cast %1479 : vector<1x1x256xf32> to vector<1x256xf32>
    %1481 = vector.broadcast %1480 : vector<1x256xf32> to vector<4x256xf32>
    %1482 = arith.mulf %1481, %1478 : vector<4x256xf32>
    %c255_i32_139 = arith.constant 255 : i32
    %1483 = tpu.dynamic_rotate %1462 by %c255_i32_139 dim 1 : vector<4x256xf32>, i32 -> vector<4x256xf32>
    %c5_140 = arith.constant 5 : index
    %c0_141 = arith.constant 0 : index
    %c0_142 = arith.constant 0 : index
    %1484 = vector.load %arg5[%c5_140, %c0_141, %c0_142] : memref<9x1x256xf32, #tpu.memory_space<vmem>>, vector<1x1x256xf32>
    %1485 = vector.shape_cast %1484 : vector<1x1x256xf32> to vector<1x256xf32>
    %1486 = vector.broadcast %1485 : vector<1x256xf32> to vector<4x256xf32>
    %1487 = arith.mulf %1486, %1483 : vector<4x256xf32>
    %c241_i32_143 = arith.constant 241 : i32
    %1488 = tpu.dynamic_rotate %1462 by %c241_i32_143 dim 1 : vector<4x256xf32>, i32 -> vector<4x256xf32>
    %c6_144 = arith.constant 6 : index
    %c0_145 = arith.constant 0 : index
    %c0_146 = arith.constant 0 : index
    %1489 = vector.load %arg5[%c6_144, %c0_145, %c0_146] : memref<9x1x256xf32, #tpu.memory_space<vmem>>, vector<1x1x256xf32>
    %1490 = vector.shape_cast %1489 : vector<1x1x256xf32> to vector<1x256xf32>
    %1491 = vector.broadcast %1490 : vector<1x256xf32> to vector<4x256xf32>
    %1492 = arith.mulf %1491, %1488 : vector<4x256xf32>
    %c240_i32_147 = arith.constant 240 : i32
    %1493 = tpu.dynamic_rotate %1462 by %c240_i32_147 dim 1 : vector<4x256xf32>, i32 -> vector<4x256xf32>
    %c7_148 = arith.constant 7 : index
    %c0_149 = arith.constant 0 : index
    %c0_150 = arith.constant 0 : index
    %1494 = vector.load %arg5[%c7_148, %c0_149, %c0_150] : memref<9x1x256xf32, #tpu.memory_space<vmem>>, vector<1x1x256xf32>
    %1495 = vector.shape_cast %1494 : vector<1x1x256xf32> to vector<1x256xf32>
    %1496 = vector.broadcast %1495 : vector<1x256xf32> to vector<4x256xf32>
    %1497 = arith.mulf %1496, %1493 : vector<4x256xf32>
    %c239_i32_151 = arith.constant 239 : i32
    %1498 = tpu.dynamic_rotate %1462 by %c239_i32_151 dim 1 : vector<4x256xf32>, i32 -> vector<4x256xf32>
    %c8_152 = arith.constant 8 : index
    %c0_153 = arith.constant 0 : index
    %c0_154 = arith.constant 0 : index
    %1499 = vector.load %arg5[%c8_152, %c0_153, %c0_154] : memref<9x1x256xf32, #tpu.memory_space<vmem>>, vector<1x1x256xf32>
    %1500 = vector.shape_cast %1499 : vector<1x1x256xf32> to vector<1x256xf32>
    %1501 = vector.broadcast %1500 : vector<1x256xf32> to vector<4x256xf32>
    %1502 = arith.mulf %1501, %1498 : vector<4x256xf32>
    %c0_155 = arith.constant 0 : index
    %c0_156 = arith.constant 0 : index
    %1503 = vector.load %arg11[%c0_155, %c0_156] : memref<4x36xf32, #tpu.memory_space<vmem>>, vector<4x36xf32>
    %cst_157 = arith.constant 0.000000e+00 : f32
    %1504 = vector.broadcast %cst_157 : f32 to vector<4x256xf32>
    %1505 = vector.extract_strided_slice %1503 {offsets = [0, 0], sizes = [4, 1], strides = [1, 1]} : vector<4x36xf32> to vector<4x1xf32>
    %1506 = vector.extract_strided_slice %1467 {offsets = [0, 0], sizes = [1, 256], strides = [1, 1]} : vector<4x256xf32> to vector<1x256xf32>
    %1507 = vector.broadcast %1505 : vector<4x1xf32> to vector<4x256xf32>
    %1508 = vector.broadcast %1506 : vector<1x256xf32> to vector<4x256xf32>
    %1509 = arith.mulf %1507, %1508 : vector<4x256xf32>
    %1510 = arith.addf %1504, %1509 : vector<4x256xf32>
    %1511 = vector.extract_strided_slice %1503 {offsets = [0, 1], sizes = [4, 1], strides = [1, 1]} : vector<4x36xf32> to vector<4x1xf32>
    %1512 = vector.extract_strided_slice %1467 {offsets = [1, 0], sizes = [1, 256], strides = [1, 1]} : vector<4x256xf32> to vector<1x256xf32>
    %1513 = vector.broadcast %1511 : vector<4x1xf32> to vector<4x256xf32>
    %1514 = vector.broadcast %1512 : vector<1x256xf32> to vector<4x256xf32>
    %1515 = arith.mulf %1513, %1514 : vector<4x256xf32>
    %1516 = arith.addf %1510, %1515 : vector<4x256xf32>
    %1517 = vector.extract_strided_slice %1503 {offsets = [0, 2], sizes = [4, 1], strides = [1, 1]} : vector<4x36xf32> to vector<4x1xf32>
    %1518 = vector.extract_strided_slice %1467 {offsets = [2, 0], sizes = [1, 256], strides = [1, 1]} : vector<4x256xf32> to vector<1x256xf32>
    %1519 = vector.broadcast %1517 : vector<4x1xf32> to vector<4x256xf32>
    %1520 = vector.broadcast %1518 : vector<1x256xf32> to vector<4x256xf32>
    %1521 = arith.mulf %1519, %1520 : vector<4x256xf32>
    %1522 = arith.addf %1516, %1521 : vector<4x256xf32>
    %1523 = vector.extract_strided_slice %1503 {offsets = [0, 3], sizes = [4, 1], strides = [1, 1]} : vector<4x36xf32> to vector<4x1xf32>
    %1524 = vector.extract_strided_slice %1467 {offsets = [3, 0], sizes = [1, 256], strides = [1, 1]} : vector<4x256xf32> to vector<1x256xf32>
    %1525 = vector.broadcast %1523 : vector<4x1xf32> to vector<4x256xf32>
    %1526 = vector.broadcast %1524 : vector<1x256xf32> to vector<4x256xf32>
    %1527 = arith.mulf %1525, %1526 : vector<4x256xf32>
    %1528 = arith.addf %1522, %1527 : vector<4x256xf32>
    %1529 = vector.extract_strided_slice %1503 {offsets = [0, 4], sizes = [4, 1], strides = [1, 1]} : vector<4x36xf32> to vector<4x1xf32>
    %1530 = vector.extract_strided_slice %1472 {offsets = [0, 0], sizes = [1, 256], strides = [1, 1]} : vector<4x256xf32> to vector<1x256xf32>
    %1531 = vector.broadcast %1529 : vector<4x1xf32> to vector<4x256xf32>
    %1532 = vector.broadcast %1530 : vector<1x256xf32> to vector<4x256xf32>
    %1533 = arith.mulf %1531, %1532 : vector<4x256xf32>
    %1534 = arith.addf %1528, %1533 : vector<4x256xf32>
    %1535 = vector.extract_strided_slice %1503 {offsets = [0, 5], sizes = [4, 1], strides = [1, 1]} : vector<4x36xf32> to vector<4x1xf32>
    %1536 = vector.extract_strided_slice %1472 {offsets = [1, 0], sizes = [1, 256], strides = [1, 1]} : vector<4x256xf32> to vector<1x256xf32>
    %1537 = vector.broadcast %1535 : vector<4x1xf32> to vector<4x256xf32>
    %1538 = vector.broadcast %1536 : vector<1x256xf32> to vector<4x256xf32>
    %1539 = arith.mulf %1537, %1538 : vector<4x256xf32>
    %1540 = arith.addf %1534, %1539 : vector<4x256xf32>
    %1541 = vector.extract_strided_slice %1503 {offsets = [0, 6], sizes = [4, 1], strides = [1, 1]} : vector<4x36xf32> to vector<4x1xf32>
    %1542 = vector.extract_strided_slice %1472 {offsets = [2, 0], sizes = [1, 256], strides = [1, 1]} : vector<4x256xf32> to vector<1x256xf32>
    %1543 = vector.broadcast %1541 : vector<4x1xf32> to vector<4x256xf32>
    %1544 = vector.broadcast %1542 : vector<1x256xf32> to vector<4x256xf32>
    %1545 = arith.mulf %1543, %1544 : vector<4x256xf32>
    %1546 = arith.addf %1540, %1545 : vector<4x256xf32>
    %1547 = vector.extract_strided_slice %1503 {offsets = [0, 7], sizes = [4, 1], strides = [1, 1]} : vector<4x36xf32> to vector<4x1xf32>
    %1548 = vector.extract_strided_slice %1472 {offsets = [3, 0], sizes = [1, 256], strides = [1, 1]} : vector<4x256xf32> to vector<1x256xf32>
    %1549 = vector.broadcast %1547 : vector<4x1xf32> to vector<4x256xf32>
    %1550 = vector.broadcast %1548 : vector<1x256xf32> to vector<4x256xf32>
    %1551 = arith.mulf %1549, %1550 : vector<4x256xf32>
    %1552 = arith.addf %1546, %1551 : vector<4x256xf32>
    %1553 = vector.extract_strided_slice %1503 {offsets = [0, 8], sizes = [4, 1], strides = [1, 1]} : vector<4x36xf32> to vector<4x1xf32>
    %1554 = vector.extract_strided_slice %1477 {offsets = [0, 0], sizes = [1, 256], strides = [1, 1]} : vector<4x256xf32> to vector<1x256xf32>
    %1555 = vector.broadcast %1553 : vector<4x1xf32> to vector<4x256xf32>
    %1556 = vector.broadcast %1554 : vector<1x256xf32> to vector<4x256xf32>
    %1557 = arith.mulf %1555, %1556 : vector<4x256xf32>
    %1558 = arith.addf %1552, %1557 : vector<4x256xf32>
    %1559 = vector.extract_strided_slice %1503 {offsets = [0, 9], sizes = [4, 1], strides = [1, 1]} : vector<4x36xf32> to vector<4x1xf32>
    %1560 = vector.extract_strided_slice %1477 {offsets = [1, 0], sizes = [1, 256], strides = [1, 1]} : vector<4x256xf32> to vector<1x256xf32>
    %1561 = vector.broadcast %1559 : vector<4x1xf32> to vector<4x256xf32>
    %1562 = vector.broadcast %1560 : vector<1x256xf32> to vector<4x256xf32>
    %1563 = arith.mulf %1561, %1562 : vector<4x256xf32>
    %1564 = arith.addf %1558, %1563 : vector<4x256xf32>
    %1565 = vector.extract_strided_slice %1503 {offsets = [0, 10], sizes = [4, 1], strides = [1, 1]} : vector<4x36xf32> to vector<4x1xf32>
    %1566 = vector.extract_strided_slice %1477 {offsets = [2, 0], sizes = [1, 256], strides = [1, 1]} : vector<4x256xf32> to vector<1x256xf32>
    %1567 = vector.broadcast %1565 : vector<4x1xf32> to vector<4x256xf32>
    %1568 = vector.broadcast %1566 : vector<1x256xf32> to vector<4x256xf32>
    %1569 = arith.mulf %1567, %1568 : vector<4x256xf32>
    %1570 = arith.addf %1564, %1569 : vector<4x256xf32>
    %1571 = vector.extract_strided_slice %1503 {offsets = [0, 11], sizes = [4, 1], strides = [1, 1]} : vector<4x36xf32> to vector<4x1xf32>
    %1572 = vector.extract_strided_slice %1477 {offsets = [3, 0], sizes = [1, 256], strides = [1, 1]} : vector<4x256xf32> to vector<1x256xf32>
    %1573 = vector.broadcast %1571 : vector<4x1xf32> to vector<4x256xf32>
    %1574 = vector.broadcast %1572 : vector<1x256xf32> to vector<4x256xf32>
    %1575 = arith.mulf %1573, %1574 : vector<4x256xf32>
    %1576 = arith.addf %1570, %1575 : vector<4x256xf32>
    %1577 = vector.extract_strided_slice %1503 {offsets = [0, 12], sizes = [4, 1], strides = [1, 1]} : vector<4x36xf32> to vector<4x1xf32>
    %1578 = vector.extract_strided_slice %1482 {offsets = [0, 0], sizes = [1, 256], strides = [1, 1]} : vector<4x256xf32> to vector<1x256xf32>
    %1579 = vector.broadcast %1577 : vector<4x1xf32> to vector<4x256xf32>
    %1580 = vector.broadcast %1578 : vector<1x256xf32> to vector<4x256xf32>
    %1581 = arith.mulf %1579, %1580 : vector<4x256xf32>
    %1582 = arith.addf %1576, %1581 : vector<4x256xf32>
    %1583 = vector.extract_strided_slice %1503 {offsets = [0, 13], sizes = [4, 1], strides = [1, 1]} : vector<4x36xf32> to vector<4x1xf32>
    %1584 = vector.extract_strided_slice %1482 {offsets = [1, 0], sizes = [1, 256], strides = [1, 1]} : vector<4x256xf32> to vector<1x256xf32>
    %1585 = vector.broadcast %1583 : vector<4x1xf32> to vector<4x256xf32>
    %1586 = vector.broadcast %1584 : vector<1x256xf32> to vector<4x256xf32>
    %1587 = arith.mulf %1585, %1586 : vector<4x256xf32>
    %1588 = arith.addf %1582, %1587 : vector<4x256xf32>
    %1589 = vector.extract_strided_slice %1503 {offsets = [0, 14], sizes = [4, 1], strides = [1, 1]} : vector<4x36xf32> to vector<4x1xf32>
    %1590 = vector.extract_strided_slice %1482 {offsets = [2, 0], sizes = [1, 256], strides = [1, 1]} : vector<4x256xf32> to vector<1x256xf32>
    %1591 = vector.broadcast %1589 : vector<4x1xf32> to vector<4x256xf32>
    %1592 = vector.broadcast %1590 : vector<1x256xf32> to vector<4x256xf32>
    %1593 = arith.mulf %1591, %1592 : vector<4x256xf32>
    %1594 = arith.addf %1588, %1593 : vector<4x256xf32>
    %1595 = vector.extract_strided_slice %1503 {offsets = [0, 15], sizes = [4, 1], strides = [1, 1]} : vector<4x36xf32> to vector<4x1xf32>
    %1596 = vector.extract_strided_slice %1482 {offsets = [3, 0], sizes = [1, 256], strides = [1, 1]} : vector<4x256xf32> to vector<1x256xf32>
    %1597 = vector.broadcast %1595 : vector<4x1xf32> to vector<4x256xf32>
    %1598 = vector.broadcast %1596 : vector<1x256xf32> to vector<4x256xf32>
    %1599 = arith.mulf %1597, %1598 : vector<4x256xf32>
    %1600 = arith.addf %1594, %1599 : vector<4x256xf32>
    %1601 = vector.extract_strided_slice %1503 {offsets = [0, 16], sizes = [4, 1], strides = [1, 1]} : vector<4x36xf32> to vector<4x1xf32>
    %1602 = vector.extract_strided_slice %1462 {offsets = [0, 0], sizes = [1, 256], strides = [1, 1]} : vector<4x256xf32> to vector<1x256xf32>
    %1603 = vector.broadcast %1601 : vector<4x1xf32> to vector<4x256xf32>
    %1604 = vector.broadcast %1602 : vector<1x256xf32> to vector<4x256xf32>
    %1605 = arith.mulf %1603, %1604 : vector<4x256xf32>
    %1606 = arith.addf %1600, %1605 : vector<4x256xf32>
    %1607 = vector.extract_strided_slice %1503 {offsets = [0, 17], sizes = [4, 1], strides = [1, 1]} : vector<4x36xf32> to vector<4x1xf32>
    %1608 = vector.extract_strided_slice %1462 {offsets = [1, 0], sizes = [1, 256], strides = [1, 1]} : vector<4x256xf32> to vector<1x256xf32>
    %1609 = vector.broadcast %1607 : vector<4x1xf32> to vector<4x256xf32>
    %1610 = vector.broadcast %1608 : vector<1x256xf32> to vector<4x256xf32>
    %1611 = arith.mulf %1609, %1610 : vector<4x256xf32>
    %1612 = arith.addf %1606, %1611 : vector<4x256xf32>
    %1613 = vector.extract_strided_slice %1503 {offsets = [0, 18], sizes = [4, 1], strides = [1, 1]} : vector<4x36xf32> to vector<4x1xf32>
    %1614 = vector.extract_strided_slice %1462 {offsets = [2, 0], sizes = [1, 256], strides = [1, 1]} : vector<4x256xf32> to vector<1x256xf32>
    %1615 = vector.broadcast %1613 : vector<4x1xf32> to vector<4x256xf32>
    %1616 = vector.broadcast %1614 : vector<1x256xf32> to vector<4x256xf32>
    %1617 = arith.mulf %1615, %1616 : vector<4x256xf32>
    %1618 = arith.addf %1612, %1617 : vector<4x256xf32>
    %1619 = vector.extract_strided_slice %1503 {offsets = [0, 19], sizes = [4, 1], strides = [1, 1]} : vector<4x36xf32> to vector<4x1xf32>
    %1620 = vector.extract_strided_slice %1462 {offsets = [3, 0], sizes = [1, 256], strides = [1, 1]} : vector<4x256xf32> to vector<1x256xf32>
    %1621 = vector.broadcast %1619 : vector<4x1xf32> to vector<4x256xf32>
    %1622 = vector.broadcast %1620 : vector<1x256xf32> to vector<4x256xf32>
    %1623 = arith.mulf %1621, %1622 : vector<4x256xf32>
    %1624 = arith.addf %1618, %1623 : vector<4x256xf32>
    %1625 = vector.extract_strided_slice %1503 {offsets = [0, 20], sizes = [4, 1], strides = [1, 1]} : vector<4x36xf32> to vector<4x1xf32>
    %1626 = vector.extract_strided_slice %1487 {offsets = [0, 0], sizes = [1, 256], strides = [1, 1]} : vector<4x256xf32> to vector<1x256xf32>
    %1627 = vector.broadcast %1625 : vector<4x1xf32> to vector<4x256xf32>
    %1628 = vector.broadcast %1626 : vector<1x256xf32> to vector<4x256xf32>
    %1629 = arith.mulf %1627, %1628 : vector<4x256xf32>
    %1630 = arith.addf %1624, %1629 : vector<4x256xf32>
    %1631 = vector.extract_strided_slice %1503 {offsets = [0, 21], sizes = [4, 1], strides = [1, 1]} : vector<4x36xf32> to vector<4x1xf32>
    %1632 = vector.extract_strided_slice %1487 {offsets = [1, 0], sizes = [1, 256], strides = [1, 1]} : vector<4x256xf32> to vector<1x256xf32>
    %1633 = vector.broadcast %1631 : vector<4x1xf32> to vector<4x256xf32>
    %1634 = vector.broadcast %1632 : vector<1x256xf32> to vector<4x256xf32>
    %1635 = arith.mulf %1633, %1634 : vector<4x256xf32>
    %1636 = arith.addf %1630, %1635 : vector<4x256xf32>
    %1637 = vector.extract_strided_slice %1503 {offsets = [0, 22], sizes = [4, 1], strides = [1, 1]} : vector<4x36xf32> to vector<4x1xf32>
    %1638 = vector.extract_strided_slice %1487 {offsets = [2, 0], sizes = [1, 256], strides = [1, 1]} : vector<4x256xf32> to vector<1x256xf32>
    %1639 = vector.broadcast %1637 : vector<4x1xf32> to vector<4x256xf32>
    %1640 = vector.broadcast %1638 : vector<1x256xf32> to vector<4x256xf32>
    %1641 = arith.mulf %1639, %1640 : vector<4x256xf32>
    %1642 = arith.addf %1636, %1641 : vector<4x256xf32>
    %1643 = vector.extract_strided_slice %1503 {offsets = [0, 23], sizes = [4, 1], strides = [1, 1]} : vector<4x36xf32> to vector<4x1xf32>
    %1644 = vector.extract_strided_slice %1487 {offsets = [3, 0], sizes = [1, 256], strides = [1, 1]} : vector<4x256xf32> to vector<1x256xf32>
    %1645 = vector.broadcast %1643 : vector<4x1xf32> to vector<4x256xf32>
    %1646 = vector.broadcast %1644 : vector<1x256xf32> to vector<4x256xf32>
    %1647 = arith.mulf %1645, %1646 : vector<4x256xf32>
    %1648 = arith.addf %1642, %1647 : vector<4x256xf32>
    %1649 = vector.extract_strided_slice %1503 {offsets = [0, 24], sizes = [4, 1], strides = [1, 1]} : vector<4x36xf32> to vector<4x1xf32>
    %1650 = vector.extract_strided_slice %1492 {offsets = [0, 0], sizes = [1, 256], strides = [1, 1]} : vector<4x256xf32> to vector<1x256xf32>
    %1651 = vector.broadcast %1649 : vector<4x1xf32> to vector<4x256xf32>
    %1652 = vector.broadcast %1650 : vector<1x256xf32> to vector<4x256xf32>
    %1653 = arith.mulf %1651, %1652 : vector<4x256xf32>
    %1654 = arith.addf %1648, %1653 : vector<4x256xf32>
    %1655 = vector.extract_strided_slice %1503 {offsets = [0, 25], sizes = [4, 1], strides = [1, 1]} : vector<4x36xf32> to vector<4x1xf32>
    %1656 = vector.extract_strided_slice %1492 {offsets = [1, 0], sizes = [1, 256], strides = [1, 1]} : vector<4x256xf32> to vector<1x256xf32>
    %1657 = vector.broadcast %1655 : vector<4x1xf32> to vector<4x256xf32>
    %1658 = vector.broadcast %1656 : vector<1x256xf32> to vector<4x256xf32>
    %1659 = arith.mulf %1657, %1658 : vector<4x256xf32>
    %1660 = arith.addf %1654, %1659 : vector<4x256xf32>
    %1661 = vector.extract_strided_slice %1503 {offsets = [0, 26], sizes = [4, 1], strides = [1, 1]} : vector<4x36xf32> to vector<4x1xf32>
    %1662 = vector.extract_strided_slice %1492 {offsets = [2, 0], sizes = [1, 256], strides = [1, 1]} : vector<4x256xf32> to vector<1x256xf32>
    %1663 = vector.broadcast %1661 : vector<4x1xf32> to vector<4x256xf32>
    %1664 = vector.broadcast %1662 : vector<1x256xf32> to vector<4x256xf32>
    %1665 = arith.mulf %1663, %1664 : vector<4x256xf32>
    %1666 = arith.addf %1660, %1665 : vector<4x256xf32>
    %1667 = vector.extract_strided_slice %1503 {offsets = [0, 27], sizes = [4, 1], strides = [1, 1]} : vector<4x36xf32> to vector<4x1xf32>
    %1668 = vector.extract_strided_slice %1492 {offsets = [3, 0], sizes = [1, 256], strides = [1, 1]} : vector<4x256xf32> to vector<1x256xf32>
    %1669 = vector.broadcast %1667 : vector<4x1xf32> to vector<4x256xf32>
    %1670 = vector.broadcast %1668 : vector<1x256xf32> to vector<4x256xf32>
    %1671 = arith.mulf %1669, %1670 : vector<4x256xf32>
    %1672 = arith.addf %1666, %1671 : vector<4x256xf32>
    %1673 = vector.extract_strided_slice %1503 {offsets = [0, 28], sizes = [4, 1], strides = [1, 1]} : vector<4x36xf32> to vector<4x1xf32>
    %1674 = vector.extract_strided_slice %1497 {offsets = [0, 0], sizes = [1, 256], strides = [1, 1]} : vector<4x256xf32> to vector<1x256xf32>
    %1675 = vector.broadcast %1673 : vector<4x1xf32> to vector<4x256xf32>
    %1676 = vector.broadcast %1674 : vector<1x256xf32> to vector<4x256xf32>
    %1677 = arith.mulf %1675, %1676 : vector<4x256xf32>
    %1678 = arith.addf %1672, %1677 : vector<4x256xf32>
    %1679 = vector.extract_strided_slice %1503 {offsets = [0, 29], sizes = [4, 1], strides = [1, 1]} : vector<4x36xf32> to vector<4x1xf32>
    %1680 = vector.extract_strided_slice %1497 {offsets = [1, 0], sizes = [1, 256], strides = [1, 1]} : vector<4x256xf32> to vector<1x256xf32>
    %1681 = vector.broadcast %1679 : vector<4x1xf32> to vector<4x256xf32>
    %1682 = vector.broadcast %1680 : vector<1x256xf32> to vector<4x256xf32>
    %1683 = arith.mulf %1681, %1682 : vector<4x256xf32>
    %1684 = arith.addf %1678, %1683 : vector<4x256xf32>
    %1685 = vector.extract_strided_slice %1503 {offsets = [0, 30], sizes = [4, 1], strides = [1, 1]} : vector<4x36xf32> to vector<4x1xf32>
    %1686 = vector.extract_strided_slice %1497 {offsets = [2, 0], sizes = [1, 256], strides = [1, 1]} : vector<4x256xf32> to vector<1x256xf32>
    %1687 = vector.broadcast %1685 : vector<4x1xf32> to vector<4x256xf32>
    %1688 = vector.broadcast %1686 : vector<1x256xf32> to vector<4x256xf32>
    %1689 = arith.mulf %1687, %1688 : vector<4x256xf32>
    %1690 = arith.addf %1684, %1689 : vector<4x256xf32>
    %1691 = vector.extract_strided_slice %1503 {offsets = [0, 31], sizes = [4, 1], strides = [1, 1]} : vector<4x36xf32> to vector<4x1xf32>
    %1692 = vector.extract_strided_slice %1497 {offsets = [3, 0], sizes = [1, 256], strides = [1, 1]} : vector<4x256xf32> to vector<1x256xf32>
    %1693 = vector.broadcast %1691 : vector<4x1xf32> to vector<4x256xf32>
    %1694 = vector.broadcast %1692 : vector<1x256xf32> to vector<4x256xf32>
    %1695 = arith.mulf %1693, %1694 : vector<4x256xf32>
    %1696 = arith.addf %1690, %1695 : vector<4x256xf32>
    %1697 = vector.extract_strided_slice %1503 {offsets = [0, 32], sizes = [4, 1], strides = [1, 1]} : vector<4x36xf32> to vector<4x1xf32>
    %1698 = vector.extract_strided_slice %1502 {offsets = [0, 0], sizes = [1, 256], strides = [1, 1]} : vector<4x256xf32> to vector<1x256xf32>
    %1699 = vector.broadcast %1697 : vector<4x1xf32> to vector<4x256xf32>
    %1700 = vector.broadcast %1698 : vector<1x256xf32> to vector<4x256xf32>
    %1701 = arith.mulf %1699, %1700 : vector<4x256xf32>
    %1702 = arith.addf %1696, %1701 : vector<4x256xf32>
    %1703 = vector.extract_strided_slice %1503 {offsets = [0, 33], sizes = [4, 1], strides = [1, 1]} : vector<4x36xf32> to vector<4x1xf32>
    %1704 = vector.extract_strided_slice %1502 {offsets = [1, 0], sizes = [1, 256], strides = [1, 1]} : vector<4x256xf32> to vector<1x256xf32>
    %1705 = vector.broadcast %1703 : vector<4x1xf32> to vector<4x256xf32>
    %1706 = vector.broadcast %1704 : vector<1x256xf32> to vector<4x256xf32>
    %1707 = arith.mulf %1705, %1706 : vector<4x256xf32>
    %1708 = arith.addf %1702, %1707 : vector<4x256xf32>
    %1709 = vector.extract_strided_slice %1503 {offsets = [0, 34], sizes = [4, 1], strides = [1, 1]} : vector<4x36xf32> to vector<4x1xf32>
    %1710 = vector.extract_strided_slice %1502 {offsets = [2, 0], sizes = [1, 256], strides = [1, 1]} : vector<4x256xf32> to vector<1x256xf32>
    %1711 = vector.broadcast %1709 : vector<4x1xf32> to vector<4x256xf32>
    %1712 = vector.broadcast %1710 : vector<1x256xf32> to vector<4x256xf32>
    %1713 = arith.mulf %1711, %1712 : vector<4x256xf32>
    %1714 = arith.addf %1708, %1713 : vector<4x256xf32>
    %1715 = vector.extract_strided_slice %1503 {offsets = [0, 35], sizes = [4, 1], strides = [1, 1]} : vector<4x36xf32> to vector<4x1xf32>
    %1716 = vector.extract_strided_slice %1502 {offsets = [3, 0], sizes = [1, 256], strides = [1, 1]} : vector<4x256xf32> to vector<1x256xf32>
    %1717 = vector.broadcast %1715 : vector<4x1xf32> to vector<4x256xf32>
    %1718 = vector.broadcast %1716 : vector<1x256xf32> to vector<4x256xf32>
    %1719 = arith.mulf %1717, %1718 : vector<4x256xf32>
    %1720 = arith.addf %1714, %1719 : vector<4x256xf32>
    %c0_158 = arith.constant 0 : index
    %c0_159 = arith.constant 0 : index
    %1721 = vector.load %arg12[%c0_158, %c0_159] : memref<4x1xf32, #tpu.memory_space<vmem>>, vector<4x1xf32>
    %1722 = vector.broadcast %1721 : vector<4x1xf32> to vector<4x256xf32>
    %1723 = arith.addf %1720, %1722 : vector<4x256xf32>
    %c0_160 = arith.constant 0 : index
    %c0_161 = arith.constant 0 : index
    %c0_162 = arith.constant 0 : index
    %1724 = vector.load %arg13[%c0_160, %c0_161, %c0_162] : memref<1x4x256xf32, #tpu.memory_space<vmem>>, vector<1x4x256xf32>
    %1725 = vector.shape_cast %1724 : vector<1x4x256xf32> to vector<4x256xf32>
    %1726 = vector.shape_cast %1723 : vector<4x256xf32> to vector<1x4x256xf32>
    tpu.vector_store %arg13[%c0_160, %c0_161, %c0_162], %1726 {strides = array<i32>} : memref<1x4x256xf32, #tpu.memory_space<vmem>>, vector<1x4x256xf32>,
    return
  }
  func.func @transform_0(%arg0: i32) -> (i32, i32, i32) {
    %c0_i32 = arith.constant 0 : i32
    %c0_i32_0 = arith.constant 0 : i32
    %c0_i32_1 = arith.constant 0 : i32
    return %arg0, %c0_i32, %c0_i32_0 : i32, i32, i32
  }
  func.func @transform_1(%arg0: i32) -> (i32, i32, i32) {
    %c0_i32 = arith.constant 0 : i32
    %c0_i32_0 = arith.constant 0 : i32
    %c0_i32_1 = arith.constant 0 : i32
    return %arg0, %c0_i32, %c0_i32_0 : i32, i32, i32
  }
  func.func @transform_2(%arg0: i32) -> (i32, i32, i32) {
    %c0_i32 = arith.constant 0 : i32
    %c0_i32_0 = arith.constant 0 : i32
    %c0_i32_1 = arith.constant 0 : i32
    return %arg0, %c0_i32, %c0_i32_0 : i32, i32, i32
  }
  func.func @transform_3(%arg0: i32) -> (i32, i32, i32) {
    %c0_i32 = arith.constant 0 : i32
    %c0_i32_0 = arith.constant 0 : i32
    %c0_i32_1 = arith.constant 0 : i32
    return %arg0, %c0_i32, %c0_i32_0 : i32, i32, i32
  }
  func.func @transform_4(%arg0: i32) -> (i32, i32, i32) {
    %c0_i32 = arith.constant 0 : i32
    %c0_i32_0 = arith.constant 0 : i32
    %c0_i32_1 = arith.constant 0 : i32
    %c0_i32_2 = arith.constant 0 : i32
    return %c0_i32, %c0_i32_0, %c0_i32_1 : i32, i32, i32
  }
  func.func @transform_5(%arg0: i32) -> (i32, i32) {
    %c0_i32 = arith.constant 0 : i32
    %c0_i32_0 = arith.constant 0 : i32
    %c0_i32_1 = arith.constant 0 : i32
    return %c0_i32, %c0_i32_0 : i32, i32
  }
  func.func @transform_6(%arg0: i32) -> (i32, i32) {
    %c0_i32 = arith.constant 0 : i32
    %c0_i32_0 = arith.constant 0 : i32
    %c0_i32_1 = arith.constant 0 : i32
    return %c0_i32, %c0_i32_0 : i32, i32
  }
  func.func @transform_7(%arg0: i32) -> (i32, i32) {
    %c0_i32 = arith.constant 0 : i32
    %c0_i32_0 = arith.constant 0 : i32
    %c0_i32_1 = arith.constant 0 : i32
    return %c0_i32, %c0_i32_0 : i32, i32
  }
  func.func @transform_8(%arg0: i32) -> (i32, i32, i32) {
    %c0_i32 = arith.constant 0 : i32
    %c0_i32_0 = arith.constant 0 : i32
    %c0_i32_1 = arith.constant 0 : i32
    %c0_i32_2 = arith.constant 0 : i32
    return %c0_i32, %c0_i32_0, %c0_i32_1 : i32, i32, i32
  }
  func.func @transform_9(%arg0: i32) -> (i32, i32, i32) {
    %c0_i32 = arith.constant 0 : i32
    %c0_i32_0 = arith.constant 0 : i32
    %c0_i32_1 = arith.constant 0 : i32
    %c0_i32_2 = arith.constant 0 : i32
    return %c0_i32, %c0_i32_0, %c0_i32_1 : i32, i32, i32
  }
  func.func @transform_10(%arg0: i32) -> (i32, i32) {
    %c0_i32 = arith.constant 0 : i32
    %c0_i32_0 = arith.constant 0 : i32
    %c0_i32_1 = arith.constant 0 : i32
    return %c0_i32, %c0_i32_0 : i32, i32
  }
  func.func @transform_11(%arg0: i32) -> (i32, i32) {
    %c0_i32 = arith.constant 0 : i32
    %c0_i32_0 = arith.constant 0 : i32
    %c0_i32_1 = arith.constant 0 : i32
    return %c0_i32, %c0_i32_0 : i32, i32
  }
  func.func @transform_12(%arg0: i32) -> (i32, i32, i32) {
    %c0_i32 = arith.constant 0 : i32
    %c0_i32_0 = arith.constant 0 : i32
    %c0_i32_1 = arith.constant 0 : i32
    return %arg0, %c0_i32, %c0_i32_0 : i32, i32, i32
  }
}

</mosaic_0001>

<bundles_post_ra>
// kernel: my_temp_model_forward.1
= control target key start
LH: loop header
LB: loop body
LE: loop exit
PB: predicated region body
PF: predicated region fallthrough
CT: control target
= control target key end

     0   :  { %s3842_s21 = smov 0   ;;  %s6271_s0 = inlined_call_operand.vmem [shape: f32[2,4,256], index: 0, kind: input, shape index: {}]   ;;  %s6272_s1 = inlined_call_operand.vmem [shape: f32[2,4,256], index: 1, kind: input, shape index: {}]   ;;  %s6273_s2 = inlined_call_operand.vmem [shape: f32[2,4,1], index: 2, kind: input, shape index: {}]   ;;  %s6274_s3 = inlined_call_operand.vmem [shape: f32[2,4,1], index: 3, kind: input, shape index: {}]   ;;  %s6275_s4 = inlined_call_operand.vmem [shape: f32[9,1,256], index: 4, kind: input, shape index: {}]   ;;  %s6276_s5 = inlined_call_operand.vmem [shape: f32[4,36], index: 5, kind: input, shape index: {}]   ;;  %s6277_s6 = inlined_call_operand.vmem [shape: f32[4,36], index: 6, kind: input, shape index: {}]   ;;  %s6278_s7 = inlined_call_operand.vmem [shape: f32[4,36], index: 7, kind: input, shape index: {}]   ;;  %s6279_s8 = inlined_call_operand.vmem [shape: f32[3,4,36], index: 8, kind: input, shape index: {}]   ;;  %s6280_s9 = inlined_call_operand.vmem [shape: f32[3,4,1], index: 9, kind: input, shape index: {}]   ;;  %s6281_s10 = inlined_call_operand.vmem [shape: f32[4,36], index: 10, kind: input, shape index: {}]   ;;  %s6282_s11 = inlined_call_operand.vmem [shape: f32[4,1], index: 11, kind: input, shape index: {}]   ;;  %s6283_s12 = inlined_call_operand.vmem [shape: f32[2,4,256], index: 12, kind: output, shape index: {}]  }
   0x1 LB: > { %s3385_s22 = sadd.s32 4294967295, %s3731_s21   ;;  %p3389_p0 = scmp.ge.s32.totalorder %s3731_s21, 1  ;;  %s3731_s21 = sphi %s3842_s21, %s22_s21  }
   0x2   : > { %p390_p1 = scmp.lt.s32.totalorder %s3731_s21, 3 }
   0x4   : > { %p391_p2 = pnand %p3389_p0, %p390_p1 }
   0x6   : > { %394 = sbr.rel (%p391_p2) target bundleno = 1482 (0x5ca), region = 68 }
   0xb   : > { %v3853_v0 = vld [vmem:[%s6276_s5] sm:$0xf]  ;;  %p445_p3 = scmp.lt.s32.totalorder %s3385_s22, 1  ;;  %v6288_v1 = vmov 0   ;;  %v6330_v2 = vmov 2   ;;  %v6308_v3 = vmov 1  }
   0xc   : > { %3466 = vset.pattern.permute.xlu2 %v6288_v1  ;;  %3468 = vset.pattern.permute.xlu1 %v6330_v2  ;;  %v6314_v5 = vmov 3   ;;  %v6310_v6 = vmov 4   ;;  %s3738_s29 = smov 17   ;;  %v6286_v9 = vmov 5   ;;  %s3740_s30 = smov 16   ;;  %v6322_v16 = vmov 6  }
   0xd   : > { %748 = vperm.xlu2 %3466, %v3853_v0   ;;  %768 = vperm.xlu1 %3468, %v3853_v0   ;;  %s7196_s22 = smov (!%p445_p3, %s3385_s22), 1  ;;  %s3741_s13 = smov 15   ;;  %v6318_v19 = vmov 7   ;;  %v6326_v22 = vmov 8   ;;  %v6324_v30 = vmov 9   ;;  %v6284_v33 = vmov 10  }
   0xe   : > { %3467 = vset.pattern.permute.xlu0 %v6308_v3  ;;  %s3863_s25 = sshll.u32 %s7196_s22, 3  ;;  %s3742_s14 = smov 1   ;;  %v6332_v34 = vmov 12   ;;  %v6334_v35 = vmov 11   ;;  %v6340_v41 = vmov 13   ;;  %v6336_v51 = vmov 14  }
   0xf   : > { %s449_s28 = scalar_lea.vmem %s6271_s0, %s3863_s25  ;;  %s3744_s15 = smov 127   ;;  %v6348_v54 = vmov 16   ;;  %v6294_v56 = vmov 15   ;;  %v6342_v58 = vmov 17   ;;  %v6357_v62 = vmov 21  }
  0x10   : > { %v3869_v4 = vld [vmem:[%s449_s28] sm:$0xff]  ;;  %s3746_s16 = smov 113   ;;  %s3748_s17 = smov 112   ;;  %v6350_v63 = vmov 18   ;;  %vm3290_vm8 = vcmask 1043456  }
  0x11   : > { %471 = vst [vmem:[#allocation1] ss:$2 sm:$0xff] %v3869_v4  ;;  %s454_s20 = scalar_lea.vmem %s6272_s1, %s3863_s25  ;;  %s3749_s23 = smov 111  }
  0x12   : > { %v3907_v25 = vld [vmem:[%s454_s20] sm:$0xff]  ;;  %s3394_s24 = sshll.u32 %s7196_s22, 2 }
  0x13   : > { %6623 = vst [vmem:[#allocation2_spill] sm:$0xff] %v3907_v25  ;;  %s458_s19 = scalar_lea.vmem %s6273_s2, %s3394_s24  ;;  %s462_s27 = scalar_lea.vmem %s6274_s3, %s3394_s24 }
  0x15   : > { %3469 = vset.pattern.permute.xlu2 %v6314_v5  ;;  %3470 = vset.pattern.permute.xlu1 %v6310_v6 }
  0x16   : > { %778 = vperm.xlu2 %3469, %v3853_v0  }
  0x18   : > { %v472_v7 = vld.sshfl [vmem:[#allocation1] sm:$0xff pattern:$0x75316420]  ;;  %v473_v8 = vld.sshfl [vmem:[#allocation1 + $0x8] sm:$0xff pattern:$0x75316420] }
  0x19   : > { %476 = vrot.lane.b32.xlu0 %v472_v7, %s3738_s29  ;;  %493 = vst [vmem:[#allocation1] ss:$2 sm:$0xff] %v3869_v4 }
  0x1e   : > { %3471 = vset.pattern.permute.xlu2 %v6286_v9 }
  0x20   : > { %v494_v10 = vld.sshfl [vmem:[#allocation1] sm:$0xff pattern:$0x75316420]  ;;  %v495_v11 = vld.sshfl [vmem:[#allocation1 + $0x8] sm:$0xff pattern:$0x75316420] }
  0x21   : > { %478 = vrot.lane.b32.xlu0 %v473_v8, %s3738_s29  ;;  %498 = vrot.lane.b32.xlu1 %v494_v10, %s3740_s30  ;;  %514 = vst [vmem:[#allocation1] ss:$2 sm:$0xff] %v3869_v4  ;;  %v6316_v10 = vmov 26  }
  0x28   : > { %v515_v12 = vld.sshfl [vmem:[#allocation1] sm:$0xff pattern:$0x75316420]  ;;  %v516_v13 = vld.sshfl [vmem:[#allocation1 + $0x8] sm:$0xff pattern:$0x75316420] }
  0x29   : > { %758 = vperm.xlu0 %3467, %v3853_v0   ;;  %500 = vrot.lane.b32.xlu1 %v495_v11, %s3740_s30  ;;  %535 = vst [vmem:[#allocation1] ss:$2 sm:$0xff] %v3869_v4  ;;  %v6300_v11 = vmov 20  }
  0x2a   : > { %519 = vrot.lane.b32.xlu2 %v515_v12, %s3741_s13 }
  0x30   : > { %v537_v14 = vld.sshfl [vmem:[#allocation1 + $0x8] sm:$0xff pattern:$0x75316420]  ;;  %v536_v15 = vld.sshfl [vmem:[#allocation1] sm:$0xff pattern:$0x75316420] }
  0x31   : > { %788 = vperm.xlu1 %3470, %v3853_v0   ;;  %540 = vrot.lane.b32.xlu0 %v536_v15, %s3742_s14  ;;  %556 = vst [vmem:[#allocation1] ss:$2 sm:$0xff] %v3869_v4 }
  0x32   : > { %521 = vrot.lane.b32.xlu2 %v516_v13, %s3741_s13  ;;  %3472 = vset.pattern.permute.xlu0 %v6322_v16  ;;  %v6346_v13 = vmov 19  }
  0x38   : > { %v558_v17 = vld.sshfl [vmem:[#allocation1 + $0x8] sm:$0xff pattern:$0x75316420]  ;;  %v557_v18 = vld.sshfl [vmem:[#allocation1] sm:$0xff pattern:$0x75316420] }
  0x39   : > { %542 = vrot.lane.b32.xlu1 %v537_v14, %s3742_s14  ;;  %563 = vrot.lane.b32.xlu0 %v558_v17, %s3744_s15  ;;  %577 = vst [vmem:[#allocation1] ss:$2 sm:$0xff] %v3869_v4 }
  0x3a   : > { %798 = vperm.xlu2 %3471, %v3853_v0   ;;  %3473 = vset.pattern.permute.xlu1 %v6318_v19 }
  0x40   : > { %v578_v20 = vld.sshfl [vmem:[#allocation1] sm:$0xff pattern:$0x75316420]  ;;  %v579_v21 = vld.sshfl [vmem:[#allocation1 + $0x8] sm:$0xff pattern:$0x75316420] }
  0x41   : > { %582 = vrot.lane.b32.xlu1 %v578_v20, %s3746_s16  ;;  %598 = vst [vmem:[#allocation1] ss:$2 sm:$0xff] %v3869_v4  ;;  %v6290_v20 = vmov 31  }
  0x42   : > { %561 = vrot.lane.b32.xlu2 %v557_v18, %s3744_s15  ;;  %v6338_v18 = vmov 23  }
  0x43   : > { %3474 = vset.pattern.permute.xlu2 %v6326_v22 }
  0x48   : > { %v600_v23 = vld.sshfl [vmem:[#allocation1 + $0x8] sm:$0xff pattern:$0x75316420]  ;;  %v599_v24 = vld.sshfl [vmem:[#allocation1] sm:$0xff pattern:$0x75316420] }
  0x49   : > { %605 = vrot.lane.b32.xlu1 %v600_v23, %s3748_s17  ;;  %603 = vrot.lane.b32.xlu0 %v599_v24, %s3748_s17  ;;  %619 = vst [vmem:[#allocation1] ss:$2 sm:$0xff] %v3869_v4 }
  0x4a   : > { %584 = vrot.lane.b32.xlu2 %v579_v21, %s3746_s16  ;;  %v6354_v21 = vmov 22  }
  0x50   : > { %v621_v26 = vld.sshfl [vmem:[#allocation1 + $0x8] sm:$0xff pattern:$0x75316420]  ;;  %v620_v27 = vld.sshfl [vmem:[#allocation1] sm:$0xff pattern:$0x75316420] }
  0x51   : > { %818 = vperm.xlu1 %3473, %v3853_v0   ;;  %626 = vrot.lane.b32.xlu0 %v621_v26, %s3749_s23  ;;  %641 = vst [vmem:[#allocation1] ss:$2 sm:$0xff] %v3907_v25 }
  0x52   : > { %624 = vrot.lane.b32.xlu2 %v620_v27, %s3749_s23  ;;  %v4011_v27 = vld [vmem:[%s6277_s6] sm:$0xf] }
  0x58   : > { %v643_v28 = vld.sshfl [vmem:[#allocation1 + $0x8] sm:$0xff pattern:$0x75316420]  ;;  %v642_v29 = vld.sshfl [vmem:[#allocation1] sm:$0xff pattern:$0x75316420] }
  0x59   : > { %3475 = vset.pattern.permute.xlu1 %v6324_v30  ;;  %808 = vperm.xlu0 %3472, %v3853_v0   ;;  %654 = vst [vmem:[#allocation1] ss:$2 sm:$0xff] %v3907_v25 }
  0x5a   : > { %828 = vperm.xlu2 %3474, %v3853_v0   ;;  %838 = vperm.xlu1 %3475, %v3853_v0  }
  0x60   : > { %v655_v31 = vld.sshfl [vmem:[#allocation1] sm:$0xff pattern:$0x75316420]  ;;  %v656_v32 = vld.sshfl [vmem:[#allocation1 + $0x8] sm:$0xff pattern:$0x75316420] }
  0x61   : > { %659 = vrot.lane.b32.xlu0 %v655_v31, %s3740_s30  ;;  %667 = vst [vmem:[#allocation1] ss:$2 sm:$0xff] %v3907_v25 }
  0x62   : > { %648 = vrot.lane.b32.xlu2 %v643_v28, %s3738_s29  ;;  %646 = vrot.lane.b32.xlu1 %v642_v29, %s3738_s29  ;;  %v6304_v28 = vmov 25   ;;  %v6344_v29 = vmov 24  }
  0x63   : > { %3476 = vset.pattern.permute.xlu2 %v6284_v33  ;;  %3478 = vset.pattern.permute.xlu1 %v6332_v34 }
  0x64   : > { %3477 = vset.pattern.permute.xlu0 %v6334_v35 }
  0x67   : > { %v3929_v39 = vpop.permute.xlu2 %748 }
  0x68   : > { %v669_v36 = vld.sshfl [vmem:[#allocation1 + $0x8] sm:$0xff pattern:$0x75316420]  ;;  %v668_v37 = vld.sshfl [vmem:[#allocation1] sm:$0xff pattern:$0x75316420] }
  0x69   : > { %674 = vrot.lane.b32.xlu0 %v669_v36, %s3741_s13  ;;  %680 = vst [vmem:[#allocation1] ss:$2 sm:$0xff] %v3907_v25 }
  0x6a   : > { %848 = vperm.xlu2 %3476, %v3853_v0   ;;  %661 = vrot.lane.b32.xlu1 %v656_v32, %s3740_s30 }
  0x70   : > { %v681_v38 = vld.sshfl [vmem:[#allocation1] sm:$0xff pattern:$0x75316420]  ;;  %v682_v40 = vld.sshfl [vmem:[#allocation1 + $0x8] sm:$0xff pattern:$0x75316420]  ;;  %v3939_v44 = vpop.permute.xlu2 %778 }
  0x71   : > { %693 = vst [vmem:[#allocation1] ss:$2 sm:$0xff] %v3907_v25 }
  0x72   : > { %672 = vrot.lane.b32.xlu2 %v668_v37, %s3741_s13  ;;  %685 = vrot.lane.b32.xlu1 %v681_v38, %s3742_s14  ;;  %v6292_v37 = vmov 28   ;;  %v6328_v38 = vmov 27  }
  0x73   : > { %3479 = vset.pattern.permute.xlu2 %v6340_v41 }
  0x78   : > { %v694_v42 = vld.sshfl [vmem:[#allocation1] sm:$0xff pattern:$0x75316420]  ;;  %v695_v43 = vld.sshfl [vmem:[#allocation1 + $0x8] sm:$0xff pattern:$0x75316420] }
  0x79   : > { %698 = vrot.lane.b32.xlu0 %v694_v42, %s3744_s15  ;;  %706 = vst [vmem:[#allocation1] ss:$2 sm:$0xff] %v3907_v25 }
  0x7a   : > { %687 = vrot.lane.b32.xlu2 %v682_v40, %s3742_s14  ;;  %700 = vrot.lane.b32.xlu1 %v695_v43, %s3744_s15  ;;  %v6312_v43 = vmov 30  }
  0x7f   : > { %v3948_v50 = vpop.permute.xlu1 %768 }
  0x80   : > { %v708_v45 = vld.sshfl [vmem:[#allocation1 + $0x8] sm:$0xff pattern:$0x75316420]  ;;  %v707_v46 = vld.sshfl [vmem:[#allocation1] sm:$0xff pattern:$0x75316420] }
  0x81   : > { %713 = vrot.lane.b32.xlu0 %v708_v45, %s3746_s16  ;;  %719 = vst [vmem:[#allocation1] ss:$2 sm:$0xff] %v3907_v25 }
  0x82   : > { %711 = vrot.lane.b32.xlu2 %v707_v46, %s3746_s16  ;;  %868 = vperm.xlu1 %3478, %v3853_v0   ;;  %v6306_v46 = vmov 29  }
  0x84   : > { %v3945_v47 = vpop.permute.xlu2 %519 }
  0x88   : > { %v721_v48 = vld.sshfl [vmem:[#allocation1 + $0x8] sm:$0xff pattern:$0x75316420]  ;;  %v720_v49 = vld.sshfl [vmem:[#allocation1] sm:$0xff pattern:$0x75316420] }
  0x89   : > { %858 = vperm.xlu0 %3477, %v3853_v0   ;;  %732 = vst [vmem:[#allocation1] ss:$2 sm:$0xff] %v3907_v25 }
  0x8a   : > { %878 = vperm.xlu2 %3479, %v3853_v0   ;;  %3480 = vset.pattern.permute.xlu1 %v6336_v51 }
  0x8b   : > { %888 = vperm.xlu1 %3480, %v3853_v0   ;;  %v4004_v24 = vpop.permute.xlu0 %476 }
  0x8c   : > { %v3954_v52 = vpop.permute.xlu2 %521 }
  0x90   : > { %v733_v53 = vld.sshfl [vmem:[#allocation1] sm:$0xff pattern:$0x75316420]  ;;  %v734_v59 = vld.sshfl [vmem:[#allocation1 + $0x8] sm:$0xff pattern:$0x75316420] }
  0x91   : > { %737 = vrot.lane.b32.xlu0 %v733_v53, %s3749_s23 }
  0x92   : > { %726 = vrot.lane.b32.xlu2 %v721_v48, %s3748_s17  ;;  %3482 = vset.pattern.permute.xlu0 %v6348_v54 }
  0x93   : > { %v3959_v55 = vpop.permute.xlu1 %498  ;;  %724 = vrot.lane.b32.xlu1 %v720_v49, %s3748_s17  ;;  %3481 = vset.pattern.permute.xlu2 %v6294_v56  ;;  %v4023_v36 = vpop.permute.xlu0 %478 }
  0x94   : > { %v3963_v57 = vpop.permute.xlu2 %798  ;;  %3483 = vset.pattern.permute.xlu1 %v6342_v58 }
  0x99   : > { %908 = vperm.xlu0 %3482, %v3853_v0  }
  0x9a   : > { %898 = vperm.xlu2 %3481, %v3853_v0  }
  0x9b   : > { %v3968_v60 = vpop.permute.xlu1 %500  ;;  %739 = vrot.lane.b32.xlu1 %v734_v59, %s3749_s23  ;;  %v4036_v45 = vpop.permute.xlu0 %758  ;;  %v6296_v59 = vmov 33  }
  0x9c   : > { %v3971_v61 = vpop.permute.xlu2 %561 }
  0xa1   : > { %3487 = vset.pattern.permute.xlu0 %v6357_v62 }
  0xa2   : > { %3484 = vset.pattern.permute.xlu2 %v6350_v63  ;;  %974 = vperm.xlu0 %3487, %v3853_v0  }
  0xa3   : > { %936 = vperm.xlu2 %3484, %v3853_v0   ;;  %v3977_v7 = vpop.permute.xlu1 %788  ;;  %922 = vperm.xlu1 %3483, %v3853_v0   ;;  %v4047_v53 = vpop.permute.xlu0 %540 }
  0xa4   : > { %v3980_v8 = vpop.permute.xlu2 %584 }
  0xaa   : > { %3492 = vset.pattern.permute.xlu0 %v6316_v10 }
  0xab   : > { %3486 = vset.pattern.permute.xlu2 %v6300_v11  ;;  %v3984_v12 = vpop.permute.xlu1 %542  ;;  %3485 = vset.pattern.permute.xlu1 %v6346_v13 }
  0xac   : > { %v3987_v14 = vpop.permute.xlu2 %624  ;;  %964 = vperm.xlu2 %3486, %v3853_v0   ;;  %1024 = vperm.xlu0 %3492, %v3853_v0  }
  0xad   : > { %6624 = vst [vmem:[#allocation3_spill] sm:$0xff] %v3987_v14  ;;  %950 = vperm.xlu1 %3485, %v3853_v0   ;;  %v3399_v14 = vld [vmem:[%s6275_s4 + $0x4] sm:$0x3] }
  0xb3   : > { %v3992_v15 = vpop.permute.xlu1 %582 }
  0xb4   : > { %v3994_v17 = vpop.permute.xlu2 %828  ;;  %3489 = vset.pattern.permute.xlu2 %v6338_v18  ;;  %3497 = vset.pattern.permute.xlu0 %v6290_v20  ;;  %v6320_v20 = vmov 35  }
  0xb5   : > { %994 = vperm.xlu2 %3489, %v3853_v0   ;;  %3488 = vset.pattern.permute.xlu1 %v6354_v21 }
  0xb6   : > { %1074 = vperm.xlu0 %3497, %v3853_v0   ;;  %984 = vperm.xlu1 %3488, %v3853_v0  }
  0xbb   : > { %v4002_v23 = vpop.permute.xlu1 %605 }
  0xbc   : > { %6625 = vst [vmem:[#allocation4_spill] sm:$0xff] %v4002_v23  ;;  %v4006_v26 = vpop.permute.xlu2 %648 }
  0xbd   : > { %3491 = vset.pattern.permute.xlu2 %v6304_v28 }
  0xbe   : > { %3502 = vset.pattern.permute.xlu0 %v6288_v1  ;;  %1014 = vperm.xlu2 %3491, %v3853_v0  }
  0xbf   : > { %3490 = vset.pattern.permute.xlu1 %v6344_v29  ;;  %1126 = vperm.xlu0 %3502, %v4011_v27  }
  0xc0   : > { %1004 = vperm.xlu1 %3490, %v3853_v0  }
  0xc3   : > { %v4019_v31 = vpop.permute.xlu1 %818 }
  0xc4   : > { %v4021_v32 = vpop.permute.xlu2 %848 }
  0xc6   : > { %3494 = vset.pattern.permute.xlu2 %v6292_v37  ;;  %v4060_v37 = vpop.permute.xlu0 %563 }
  0xc7   : > { %3507 = vset.pattern.permute.xlu0 %v6286_v9  ;;  %1044 = vperm.xlu2 %3494, %v3853_v0  }
  0xc8   : > { %3493 = vset.pattern.permute.xlu1 %v6328_v38  ;;  %1176 = vperm.xlu0 %3507, %v4011_v27  }
  0xc9   : > { %1034 = vperm.xlu1 %3493, %v3853_v0  }
  0xcc   : > { %v4031_v40 = vpop.permute.xlu2 %672  ;;  %v4033_v42 = vpop.permute.xlu1 %838 }
  0xcf   : > { %3496 = vset.pattern.permute.xlu2 %v6312_v43 }
  0xd0   : > { %3512 = vset.pattern.permute.xlu0 %v6284_v33  ;;  %1064 = vperm.xlu2 %3496, %v3853_v0   ;;  %v6298_v33 = vmov 32  }
  0xd1   : > { %3495 = vset.pattern.permute.xlu1 %v6306_v46  ;;  %1226 = vperm.xlu0 %3512, %v4011_v27  }
  0xd2   : > { %1054 = vperm.xlu1 %3495, %v3853_v0  }
  0xd4   : > { %v4043_v48 = vpop.permute.xlu2 %687  ;;  %v4045_v49 = vpop.permute.xlu1 %646 }
  0xd8   : > { %3499 = vset.pattern.permute.xlu2 %v6296_v59 }
  0xd9   : > { %3517 = vset.pattern.permute.xlu0 %v6294_v56  ;;  %1094 = vperm.xlu2 %3499, %v3853_v0   ;;  %v6302_v56 = vmov 34  }
  0xda   : > { %3498 = vset.pattern.permute.xlu1 %v6298_v33  ;;  %1276 = vperm.xlu0 %3517, %v4011_v27  }
  0xdb   : > { %1084 = vperm.xlu1 %3498, %v3853_v0  }
  0xdc   : > { %v4055_v9 = vpop.permute.xlu1 %661  ;;  %v4057_v1 = vpop.permute.xlu2 %711 }
  0xdd   : > { %6626 = vst [vmem:[#allocation5_spill] sm:$0xff] %v4057_v1  ;;  %v4237_v1 = vperm.slane %v3399_v14, 0 }
  0xdf   : > { %6669 = vst [vmem:[#allocation40_spill] sm:$0xff] %v4237_v1 }
  0xe1   : > { %3501 = vset.pattern.permute.xlu2 %v6320_v20 }
  0xe2   : > { %3522 = vset.pattern.permute.xlu0 %v6300_v11  ;;  %1114 = vperm.xlu2 %3501, %v3853_v0   ;;  %v4074_v11 = vpop.permute.xlu0 %603 }
  0xe3   : > { %3500 = vset.pattern.permute.xlu1 %v6302_v56  ;;  %1342 = vperm.xlu0 %3522, %v4011_v27   ;;  %6627 = vst [vmem:[#allocation6_spill] sm:$0xff] %v4074_v11  ;;  %v3400_v11 = vld [vmem:[%s6275_s4 + $0x6] sm:$0x3] }
  0xe4   : > { %1104 = vperm.xlu1 %3500, %v3853_v0   ;;  %v4067_v59 = vpop.permute.xlu1 %685  ;;  %v4069_v33 = vpop.permute.xlu2 %878 }
  0xea   : > { %3504 = vset.pattern.permute.xlu2 %v6330_v2  ;;  %v4089_v46 = vpop.permute.xlu0 %626 }
  0xeb   : > { %3527 = vset.pattern.permute.xlu0 %v6304_v28  ;;  %1146 = vperm.xlu2 %3504, %v4011_v27   ;;  %6630 = vst [vmem:[#allocation9_spill] sm:$0xff] %v4089_v46 }
  0xec   : > { %3503 = vset.pattern.permute.xlu1 %v6308_v3  ;;  %1392 = vperm.xlu0 %3527, %v4011_v27   ;;  %v4078_v56 = vpop.permute.xlu1 %700  ;;  %v4081_v0 = vpop.permute.xlu2 %726 }
  0xed   : > { %6628 = vst [vmem:[#allocation7_spill] sm:$0xff] %v4078_v56  ;;  %1136 = vperm.xlu1 %3503, %v4011_v27  }
  0xee   : > { %6629 = vst [vmem:[#allocation8_spill] sm:$0xff] %v4081_v0 }
  0xf3   : > { %3506 = vset.pattern.permute.xlu2 %v6310_v6 }
  0xf4   : > { %3532 = vset.pattern.permute.xlu0 %v6312_v43  ;;  %1166 = vperm.xlu2 %3506, %v4011_v27   ;;  %v4086_v28 = vpop.permute.xlu1 %868  ;;  %v4093_v3 = vpop.permute.xlu2 %898 }
  0xf5   : > { %3505 = vset.pattern.permute.xlu1 %v6314_v5  ;;  %1442 = vperm.xlu0 %3532, %v4011_v27   ;;  %6631 = vst [vmem:[#allocation10_spill] sm:$0xff] %v4093_v3  ;;  %v4103_v43 = vpop.permute.xlu0 %808 }
  0xf6   : > { %1156 = vperm.xlu1 %3505, %v4011_v27  }
  0xfc   : > { %3509 = vset.pattern.permute.xlu2 %v6318_v19 }
  0xfd   : > { %1196 = vperm.xlu2 %3509, %v4011_v27   ;;  %v4097_v6 = vpop.permute.xlu1 %888  ;;  %3537 = vset.pattern.permute.xlu0 %v6320_v20  ;;  %v4105_v5 = vpop.permute.xlu2 %936 }
  0xfe   : > { %3508 = vset.pattern.permute.xlu1 %v6322_v16  ;;  %1492 = vperm.xlu0 %3537, %v4011_v27   ;;  %6632 = vst [vmem:[#allocation11_spill] sm:$0xff] %v4105_v5  ;;  %v4112_v19 = vpop.permute.xlu0 %659 }
  0xff   : > { %1186 = vperm.xlu1 %3508, %v4011_v27  }
 0x105   : > { %3511 = vset.pattern.permute.xlu2 %v6324_v30  ;;  %v4108_v10 = vpop.permute.xlu1 %724 }
 0x106   : > { %6633 = vst [vmem:[#allocation12_spill] sm:$0xff] %v4108_v10  ;;  %1216 = vperm.xlu2 %3511, %v4011_v27   ;;  %3540 = vset.pattern.permute.xlu0 %v6330_v2  ;;  %v4118_v16 = vpop.permute.xlu2 %964  ;;  %v4124_v30 = vpop.permute.xlu0 %674  ;;  %v6653_v10 = vmov 27  }
 0x107   : > { %3510 = vset.pattern.permute.xlu1 %v6326_v22  ;;  %6635 = vst [vmem:[#allocation14_spill] sm:$0xff] %v4118_v16 }
 0x108   : > { %1206 = vperm.xlu1 %3510, %v4011_v27  }
 0x10d   : > { %v4116_v20 = vpop.permute.xlu1 %739 }
 0x10e   : > { %6634 = vst [vmem:[#allocation13_spill] sm:$0xff] %v4116_v20  ;;  %3514 = vset.pattern.permute.xlu2 %v6332_v34  ;;  %v4134_v2 = vpop.permute.xlu0 %698  ;;  %v6648_v20 = vmov 24  }
 0x10f   : > { %1246 = vperm.xlu2 %3514, %v4011_v27   ;;  %v4129_v38 = vpop.permute.xlu2 %994  ;;  %6638 = vst [vmem:[#allocation17_spill] sm:$0xff] %v4134_v2  ;;  %v4302_v2 = vperm.slane %v3400_v11, 0 }
 0x110   : > { %3513 = vset.pattern.permute.xlu1 %v6334_v35  ;;  %6637 = vst [vmem:[#allocation16_spill] sm:$0xff] %v4129_v38 }
 0x111   : > { %1236 = vperm.xlu1 %3513, %v4011_v27   ;;  %6677 = vst [vmem:[#allocation44_spill] sm:$0xff] %v4302_v2 }
 0x115   : > { %v4126_v22 = vpop.permute.xlu1 %922 }
 0x116   : > { %6636 = vst [vmem:[#allocation15_spill] sm:$0xff] %v4126_v22  ;;  %v6686_v22 = vmov 33  }
 0x117   : > { %3516 = vset.pattern.permute.xlu2 %v6336_v51  ;;  %v4144_v51 = vpop.permute.xlu0 %713 }
 0x118   : > { %1266 = vperm.xlu2 %3516, %v4011_v27   ;;  %v4140_v35 = vpop.permute.xlu2 %1014  ;;  %6641 = vst [vmem:[#allocation20_spill] sm:$0xff] %v4144_v51  ;;  %v4239_v51 = vperm.slane %v3399_v14, 1 }
 0x119   : > { %3515 = vset.pattern.permute.xlu1 %v6340_v41  ;;  %6640 = vst [vmem:[#allocation19_spill] sm:$0xff] %v4140_v35 }
 0x11a   : > { %1256 = vperm.xlu1 %3515, %v4011_v27   ;;  %6670 = vst [vmem:[#allocation41_spill] sm:$0xff] %v4239_v51 }
 0x11f   : > { %v4136_v34 = vpop.permute.xlu1 %950 }
 0x120   : > { %6639 = vst [vmem:[#allocation18_spill] sm:$0xff] %v4136_v34  ;;  %3519 = vset.pattern.permute.xlu2 %v6342_v58  ;;  %v4154_v58 = vpop.permute.xlu0 %858 }
 0x121   : > { %1300 = vperm.xlu2 %3519, %v4011_v27   ;;  %v4151_v41 = vpop.permute.xlu2 %1044 }
 0x122   : > { %3518 = vset.pattern.permute.xlu1 %v6348_v54  ;;  %6643 = vst [vmem:[#allocation22_spill] sm:$0xff] %v4151_v41  ;;  %v6649_v41 = vmov 23  }
 0x123   : > { %1286 = vperm.xlu1 %3518, %v4011_v27  }
 0x128   : > { %v4146_v18 = vpop.permute.xlu1 %984  ;;  %v4164_v54 = vpop.permute.xlu0 %737 }
 0x129   : > { %6642 = vst [vmem:[#allocation21_spill] sm:$0xff] %v4146_v18  ;;  %3521 = vset.pattern.permute.xlu2 %v6346_v13 }
 0x12a   : > { %1328 = vperm.xlu2 %3521, %v4011_v27   ;;  %v4162_v13 = vpop.permute.xlu2 %1064  ;;  %6646 = vst [vmem:[#allocation25_spill] sm:$0xff] %v4164_v54  ;;  %v6654_v54 = vmov 26  }
 0x12b   : > { %3520 = vset.pattern.permute.xlu1 %v6350_v63  ;;  %6645 = vst [vmem:[#allocation24_spill] sm:$0xff] %v4162_v13  ;;  %v480_v13 = vlaneseq }
 0x12c   : > { %1314 = vperm.xlu1 %3520, %v4011_v27  }
 0x130   : > { %v4174_v35 = vpop.permute.xlu0 %908 }
 0x131   : > { %6651 = vst [vmem:[#allocation28_spill] sm:$0xff] %v4174_v35 }
 0x132   : > { %v4156_v29 = vpop.permute.xlu1 %1004  ;;  %3524 = vset.pattern.permute.xlu2 %v6354_v21 }
 0x133   : > { %6644 = vst [vmem:[#allocation23_spill] sm:$0xff] %v4156_v29  ;;  %1362 = vperm.xlu2 %3524, %v4011_v27   ;;  %v4172_v21 = vpop.permute.xlu2 %1094  ;;  %v6668_v29 = vmov 31  }
 0x134   : > { %3523 = vset.pattern.permute.xlu1 %v6357_v62  ;;  %6650 = vst [vmem:[#allocation27_spill] sm:$0xff] %v4172_v21  ;;  %v485_v21 = vld [vmem:[%s6275_s4] sm:$0x3] }
 0x135   : > { %1352 = vperm.xlu1 %3523, %v4011_v27   ;;  %v4199_v0 = vperm.slane %v485_v21, 1 }
 0x137   : > { %6662 = vst [vmem:[#allocation35_spill] sm:$0xff] %v4199_v0 }
 0x13b   : > { %v4166_v63 = vpop.permute.xlu1 %1034  ;;  %3526 = vset.pattern.permute.xlu2 %v6648_v20  ;;  %v4182_v20 = vand.u32 127, %v480_v13  ;;  %v4197_v13 = vperm.slane %v485_v21, 0 }
 0x13c   : > { %6647 = vst [vmem:[#allocation26_spill] sm:$0xff] %v4166_v63  ;;  %1382 = vperm.xlu2 %3526, %v4011_v27  }
 0x13d   : > { %3525 = vset.pattern.permute.xlu1 %v6649_v41  ;;  %6655 = vst [vmem:[#allocation30_spill] sm:$0xff] %v4182_v20  ;;  %v4184_v41 = vpop.permute.xlu2 %1114  ;;  %vm482_vm0 = vcmp.lt.s32.totalorder %v4182_v20, 17  ;;  %vm523_vm1 = vcmp.lt.s32.totalorder %v4182_v20, 15  ;;  %vm502_vm2 = vcmp.lt.s32.totalorder %v4182_v20, 16  ;;  %vm544_vm3 = vcmp.lt.s32.totalorder %v4182_v20, 1 }
 0x13e   : > { %1372 = vperm.xlu1 %3525, %v4011_v27   ;;  %6656 = vst [vmem:[#allocation31_spill] sm:$0xff] %v4184_v41  ;;  %v483_v41 = vsel %vm482_vm0, %v4004_v24, %v4023_v36  ;;  %v524_v38 = vsel %vm523_vm1, %v3945_v47, %v3954_v52  ;;  %v503_v18 = vsel %vm502_vm2, %v3959_v55, %v3968_v60  ;;  %vm565_vm4 = vcmp.lt.s32.totalorder %v4182_v20, 127 }
 0x13f   : > { %6661 = vst [vmem:[#allocation34_spill] sm:$0xff] %v4197_v13  ;;  %vm586_vm5 = vcmp.lt.s32.totalorder %v4182_v20, 113  ;;  %vm607_vm6 = vcmp.lt.s32.totalorder %v4182_v20, 112  ;;  %vm628_vm7 = vcmp.lt.s32.totalorder %v4182_v20, 111 }
 0x144   : > { %v4176_v62 = vpop.permute.xlu1 %1054  ;;  %3529 = vset.pattern.permute.xlu2 %v6653_v10  ;;  %v4193_v10 = vpop.permute.xlu0 %974 }
 0x145   : > { %6652 = vst [vmem:[#allocation29_spill] sm:$0xff] %v4176_v62  ;;  %1412 = vperm.xlu2 %3529, %v4011_v27   ;;  %v6658_v62 = vmov 29   ;;  %v4216_v21 = vpop.permute.xlu2 %1146 }
 0x146   : > { %3528 = vset.pattern.permute.xlu1 %v6654_v54  ;;  %6659 = vst [vmem:[#allocation33_spill] sm:$0xff] %v4193_v10  ;;  %v6660_v54 = vmov 28   ;;  %v504_v10 = vsel %vm502_vm2, %v3968_v60, %v3959_v55  ;;  %v4283_v55 = vmul.f32 %v4239_v51, %v524_v38 }
 0x147   : > { %1402 = vperm.xlu1 %3528, %v4011_v27  }
 0x14c   : > { %v4234_v46 = vpop.permute.xlu0 %1024 }
 0x14d   : > { %v4189_v63 = vpop.permute.xlu1 %1084  ;;  %3531 = vset.pattern.permute.xlu2 %v6658_v62  ;;  %v484_v62 = vsel %vm482_vm0, %v4023_v36, %v4004_v24  ;;  %v3398_v24 = vld [vmem:[%s6275_s4 + $0x2] sm:$0x3]  ;;  %6667 = vst [vmem:[#allocation39_spill] sm:$0xff] %v4234_v46 }
 0x14e   : > { %6657 = vst [vmem:[#allocation32_spill] sm:$0xff] %v4189_v63  ;;  %1432 = vperm.xlu2 %3531, %v4011_v27   ;;  %v4211_v63 = vmul.f32 %v4197_v13, %v484_v62  ;;  %v6666_v62 = vmov 32   ;;  %v4298_v38 = vpop.permute.xlu2 %1166 }
 0x14f   : > { %3530 = vset.pattern.permute.xlu1 %v6660_v54  ;;  %v4214_v54 = vmul.f32 %v4199_v0, %v483_v41  ;;  %v525_v41 = vsel %vm523_vm1, %v3954_v52, %v3945_v47 }
 0x150   : > { %1422 = vperm.xlu1 %3530, %v4011_v27   ;;  %6663 = vst [vmem:[#allocation36_spill] sm:$0xff] %v4211_v63  ;;  %v6673_v14 = vperm.slane %v4211_v63, 1  ;;  %v6675_v47 = vperm.slane %v4211_v63, 0  ;;  %v4280_v23 = vmul.f32 %v4237_v1, %v525_v41  ;;  %v3402_v41 = vld [vmem:[%s6275_s4 + $0xc] sm:$0x3] }
 0x151   : > { %6664 = vst [vmem:[#allocation37_spill] sm:$0xff] %v4214_v54 }
 0x152   : > { %v753_v52 = vmul.f32 %v6675_v47, %v3929_v39 }
 0x156   : > { %v4226_v36 = vpop.permute.xlu1 %1104  ;;  %3534 = vset.pattern.permute.xlu2 %v6666_v62  ;;  %v4243_v62 = vperm.slane %v3398_v24, 1 }
 0x157   : > { %6665 = vst [vmem:[#allocation38_spill] sm:$0xff] %v4226_v36  ;;  %1462 = vperm.xlu2 %3534, %v4011_v27   ;;  %v4241_v36 = vperm.slane %v3398_v24, 0  ;;  %v6674_v24 = vperm.slane %v4214_v54, 1 }
 0x158   : > { %3533 = vset.pattern.permute.xlu1 %v6668_v29  ;;  %6672 = vst [vmem:[#allocation43_spill] sm:$0xff] %v4243_v62  ;;  %v763_v29 = vmul.f32 %v6673_v14, %v4036_v45  ;;  %v6676_v14 = vperm.slane %v4214_v54, 0 }
 0x159   : > { %6671 = vst [vmem:[#allocation42_spill] sm:$0xff] %v4241_v36  ;;  %1452 = vperm.xlu1 %3533, %v4011_v27   ;;  %v764_v46 = vmul.f32 %v6674_v24, %v4036_v45  ;;  %v4293_v24 = vmul.f32 %v4243_v62, %v503_v18  ;;  %v6680_v18 = vperm.slane %v4211_v63, 2 }
 0x15a   : > { %v754_v16 = vmul.f32 %v6676_v14, %v3929_v39  ;;  %v3401_v39 = vld [vmem:[%s6275_s4 + $0xa] sm:$0x3]  ;;  %v765_v60 = vadd.f32 %v763_v29, %v753_v52  ;;  %v4290_v14 = vmul.f32 %v4241_v36, %v504_v10  ;;  %v4304_v29 = vperm.slane %v3400_v11, 1 }
 0x15b   : > { %v6679_v10 = vmov 34   ;;  %v6681_v52 = vperm.slane %v4214_v54, 2  ;;  %v4316_v34 = vperm.slane %v3401_v39, 0  ;;  %v4318_v45 = vperm.slane %v3401_v39, 1  ;;  %v4330_v39 = vpop.permute.xlu0 %1074 }
 0x15c   : > { %v766_v47 = vadd.f32 %v764_v46, %v754_v16  ;;  %6678 = vst [vmem:[#allocation45_spill] sm:$0xff] %v4304_v29  ;;  %v773_v46 = vmul.f32 %v6680_v18, %v3948_v50  ;;  %v4321_v11 = vperm.slane %v3402_v41, 0  ;;  %v6388_v35 = vperm.slane %v4290_v14, 0 }
 0x15d   : > { %v774_v56 = vmul.f32 %v6681_v52, %v3948_v50  ;;  %6682 = vst [vmem:[#allocation46_spill] sm:$0xff] %v4316_v34  ;;  %v6389_v3 = vperm.slane %v4293_v24, 0  ;;  %v6689_v18 = vperm.slane %v4214_v54, 3  ;;  %v1503_v54 = vld [vmem:[%s458_s19] sm:$0xf] }
 0x15e   : > { %6683 = vst [vmem:[#allocation47_spill] sm:$0xff] %v4318_v45  ;;  %v775_v50 = vadd.f32 %v773_v46, %v765_v60  ;;  %v650_v46 = vsel %vm482_vm0, %v4045_v49, %v4006_v26 }
 0x15f   : > { %v4306_v16 = vpop.permute.xlu1 %1136  ;;  %3536 = vset.pattern.permute.xlu2 %v6679_v10  ;;  %6684 = vst [vmem:[#allocation48_spill] sm:$0xff] %v4321_v11  ;;  %v4323_v10 = vperm.slane %v3402_v41, 1  ;;  %v776_v52 = vadd.f32 %v774_v56, %v766_v47  ;;  %v6688_v41 = vperm.slane %v4211_v63, 3  ;;  %v793_v47 = vmul.f32 %v6388_v35, %v3977_v7 }
 0x160   : > { %1482 = vperm.xlu2 %3536, %v4011_v27   ;;  %6687 = vst [vmem:[#allocation50_spill] sm:$0xff] %v4330_v39  ;;  %v545_v35 = vsel %vm544_vm3, %v4047_v53, %v3984_v12  ;;  %v6692_v63 = vmov 1   ;;  %v6695_v39 = vmov 0  }
 0x161   : > { %6685 = vst [vmem:[#allocation49_spill] sm:$0xff] %v4323_v10  ;;  %3535 = vset.pattern.permute.xlu1 %v6686_v22  ;;  %v783_v5 = vmul.f32 %v6688_v41, %v3939_v44  ;;  %v784_v22 = vmul.f32 %v6689_v18, %v3939_v44  ;;  %v651_v44 = vsel %vm482_vm0, %v4006_v26, %v4045_v49  ;;  %v3403_v18 = vld [vmem:[%s6275_s4 + $0xe] sm:$0x3]  ;;  %v4384_v49 = vpop.permute.xlu2 %1196 }
 0x162   : > { %1472 = vperm.xlu1 %3535, %v4011_v27   ;;  %v794_v27 = vmul.f32 %v6389_v3, %v3977_v7  ;;  %v546_v3 = vsel %vm544_vm3, %v3984_v12, %v4047_v53  ;;  %v652_v7 = vmul.f32 %v651_v44, %v4197_v13  ;;  %v653_v41 = vmul.f32 %v650_v46, %v4199_v0  ;;  %v3404_v53 = vld [vmem:[%s6275_s4 + $0x10] sm:$0x3] }
 0x163   : > { %v785_v60 = vadd.f32 %v783_v5, %v775_v50  ;;  %v786_v56 = vadd.f32 %v784_v22, %v776_v52  ;;  %v4380_v50 = vperm.slane %v3403_v18, 0  ;;  %v4382_v52 = vperm.slane %v3403_v18, 1  ;;  %v1127_v13 = vpop.permute.xlu0 %1126 }
 0x164   : > { %v6693_v46 = vperm.slane %v4290_v14, 1  ;;  %v6694_v18 = vperm.slane %v4293_v24, 1  ;;  %v4417_v0 = vperm.slane %v3404_v53, 1 }
 0x165   : > { %v795_v5 = vadd.f32 %v793_v47, %v785_v60  ;;  %v796_v22 = vadd.f32 %v794_v27, %v786_v56  ;;  %6690 = vst [vmem:[#allocation51_spill] sm:$0xff] %v4380_v50  ;;  %v4395_v47 = vmul.f32 %v4302_v2, %v546_v3  ;;  %v4398_v27 = vmul.f32 %v4304_v29, %v545_v35 }
 0x166   : > { %6691 = vst [vmem:[#allocation52_spill] sm:$0xff] %v4382_v52  ;;  %v803_v44 = vmul.f32 %v6693_v46, %v3963_v57  ;;  %v804_v12 = vmul.f32 %v6694_v18, %v3963_v57  ;;  %v566_v60 = vsel %vm565_vm4, %v3971_v61, %v4060_v37  ;;  %v567_v3 = vsel %vm565_vm4, %v4060_v37, %v3971_v61 }
 0x167   : > { %v1139_v35 = vperm.slane %v652_v7, 1  ;;  %v1140_v56 = vperm.slane %v653_v41, 1  ;;  %v4415_v46 = vperm.slane %v3404_v53, 0  ;;  %6697 = vst [vmem:[#allocation54_spill] sm:$0xff] %v4417_v0  ;;  %v4422_v25 = vmul.f32 %v4316_v34, %v566_v60 }
 0x168   : > { %v1157_v26 = vpop.permute.xlu1 %1156  ;;  %3539 = vset.pattern.permute.xlu2 %v6692_v63  ;;  %v805_v57 = vadd.f32 %v803_v44, %v795_v5  ;;  %v806_v18 = vadd.f32 %v804_v12, %v796_v22  ;;  %v1129_v63 = vperm.slane %v652_v7, 0  ;;  %v4425_v61 = vmul.f32 %v4318_v45, %v567_v3 }
 0x169   : > { %6696 = vst [vmem:[#allocation53_spill] sm:$0xff] %v4415_v46  ;;  %v1141_v52 = vmul.f32 %v1139_v35, %v4306_v16  ;;  %v1142_v50 = vmul.f32 %v1140_v56, %v4306_v16  ;;  %v663_v5 = vsel %vm502_vm2, %v4112_v19, %v4055_v9  ;;  %v664_v16 = vsel %vm502_vm2, %v4055_v9, %v4112_v19 }
 0x16a   : > { %3538 = vset.pattern.permute.xlu1 %v6695_v39  ;;  %v1130_v39 = vperm.slane %v653_v41, 0  ;;  %v1131_v22 = vmul.f32 %v1129_v63, %v1127_v13  ;;  %v6698_v53 = vperm.slane %v4290_v14, 2  ;;  %v6699_v60 = vperm.slane %v4293_v24, 2 }
 0x16b   : > { %1506 = vperm.xlu1 %3538, %v1503_v54   ;;  %v1149_v3 = vperm.slane %v652_v7, 2  ;;  %v1150_v35 = vperm.slane %v653_v41, 2  ;;  %v1159_v0 = vperm.slane %v652_v7, 3  ;;  %v1160_v46 = vperm.slane %v653_v41, 3 }
 0x16c   : > { %v1132_v12 = vmul.f32 %v1130_v39, %v1127_v13  ;;  %v813_v56 = vmul.f32 %v6698_v53, %v4103_v43  ;;  %v814_v44 = vmul.f32 %v6699_v60, %v4103_v43  ;;  %v1143_v37 = vadd.f32 %v1141_v52, %v1131_v22  ;;  %v4451_v13 = vpop.permute.xlu2 %1216 }
 0x16d   : > { %v4444_v34 = vmul.f32 %v664_v16, %v4241_v36  ;;  %v4447_v9 = vmul.f32 %v663_v5, %v4243_v62  ;;  %v1151_v43 = vmul.f32 %v1149_v3, %v4216_v21  ;;  %v1152_v39 = vmul.f32 %v1150_v35, %v4216_v21 }
 0x16e   : > { %v1144_v54 = vadd.f32 %v1142_v50, %v1132_v12  ;;  %v1161_v50 = vmul.f32 %v1159_v0, %v1157_v26  ;;  %v1162_v7 = vmul.f32 %v1160_v46, %v1157_v26  ;;  %v815_v41 = vadd.f32 %v813_v56, %v805_v57 }
 0x16f   : > { %v816_v52 = vadd.f32 %v814_v44, %v806_v18  ;;  %v6412_v16 = vperm.slane %v4395_v47, 0  ;;  %v6409_v5 = vperm.slane %v4398_v27, 0  ;;  %v6411_v22 = vperm.slane %v4395_v47, 2 }
 0x170   : > { %v6410_v12 = vperm.slane %v4398_v27, 2  ;;  %v1153_v53 = vadd.f32 %v1151_v43, %v1143_v37  ;;  %v1154_v60 = vadd.f32 %v1152_v39, %v1144_v54  ;;  %v6700_v3 = vperm.slane %v4290_v14, 3 }
 0x171   : > { %v1187_v45 = vpop.permute.xlu1 %1186  ;;  %v6701_v0 = vperm.slane %v4293_v24, 3  ;;  %v1169_v18 = vperm.slane %v4444_v34, 0  ;;  %v1170_v56 = vperm.slane %v4447_v9, 0 }
 0x172   : > { %v823_v21 = vmul.f32 %v6700_v3, %v4019_v31  ;;  %v1163_v44 = vadd.f32 %v1161_v50, %v1153_v53  ;;  %v1164_v35 = vadd.f32 %v1162_v7, %v1154_v60  ;;  %v677_v3 = vsel %vm523_vm1, %v4124_v30, %v4031_v40 }
 0x173   : > { %v824_v26 = vmul.f32 %v6701_v0, %v4019_v31  ;;  %v676_v31 = vsel %vm523_vm1, %v4031_v40, %v4124_v30  ;;  %v1171_v0 = vmul.f32 %v1169_v18, %v4298_v38  ;;  %v1172_v50 = vmul.f32 %v1170_v56, %v4298_v38 }
 0x174   : > { %v825_v37 = vadd.f32 %v823_v21, %v815_v41  ;;  %v6702_v7 = vperm.slane %v4280_v23, 0  ;;  %v1179_v60 = vperm.slane %v4444_v34, 1  ;;  %v1180_v21 = vperm.slane %v4447_v9, 1 }
 0x175   : > { %v826_v54 = vadd.f32 %v824_v26, %v816_v52  ;;  %v6703_v52 = vperm.slane %v4283_v55, 0  ;;  %v1177_v26 = vpop.permute.xlu0 %1176  ;;  %v1173_v43 = vadd.f32 %v1171_v0, %v1163_v44  ;;  %v1174_v30 = vadd.f32 %v1172_v50, %v1164_v35 }
 0x176   : > { %v833_v41 = vmul.f32 %v6702_v7, %v3994_v17  ;;  %v1189_v40 = vperm.slane %v4444_v34, 2  ;;  %v1190_v38 = vperm.slane %v4447_v9, 2  ;;  %v4493_v7 = vmul.f32 %v677_v3, %v4237_v1 }
 0x177   : > { %v834_v53 = vmul.f32 %v6703_v52, %v3994_v17  ;;  %v4496_v57 = vmul.f32 %v676_v31, %v4239_v51  ;;  %v4498_v17 = vpop.permute.xlu2 %1246  ;;  %v1181_v52 = vmul.f32 %v1179_v60, %v1177_v26  ;;  %v1182_v46 = vmul.f32 %v1180_v21, %v1177_v26  ;;  %v6720_v51 = vld [vmem:[#allocation11_spill] sm:$0xff] }
 0x178   : > { %v835_v18 = vadd.f32 %v833_v41, %v825_v37  ;;  %v1191_v63 = vmul.f32 %v1189_v40, %v1187_v45  ;;  %v1192_v19 = vmul.f32 %v1190_v38, %v1187_v45  ;;  %v6704_v44 = vperm.slane %v4280_v23, 1 }
 0x179   : > { %v836_v56 = vadd.f32 %v834_v53, %v826_v54  ;;  %v6705_v37 = vperm.slane %v4283_v55, 1  ;;  %v587_v31 = vsel %vm586_vm5, %v3992_v15, %v3980_v8  ;;  %v588_v45 = vsel %vm586_vm5, %v3980_v8, %v3992_v15 }
 0x17a   : > { %v1207_v39 = vpop.permute.xlu1 %1206  ;;  %v843_v35 = vmul.f32 %v6704_v44, %v4033_v42  ;;  %v1183_v50 = vadd.f32 %v1181_v52, %v1173_v43  ;;  %v1184_v41 = vadd.f32 %v1182_v46, %v1174_v30  ;;  %v1200_v21 = vperm.slane %v4447_v9, 3 }
 0x17b   : > { %v844_v54 = vmul.f32 %v6705_v37, %v4033_v42  ;;  %v1199_v42 = vperm.slane %v4444_v34, 3  ;;  %v1209_v38 = vperm.slane %v4493_v7, 0  ;;  %v1210_v44 = vperm.slane %v4496_v57, 0 }
 0x17c   : > { %v845_v53 = vadd.f32 %v843_v35, %v835_v18  ;;  %v1193_v26 = vadd.f32 %v1191_v63, %v1183_v50  ;;  %v1194_v40 = vadd.f32 %v1192_v19, %v1184_v41  ;;  %v6706_v37 = vperm.slane %v4280_v23, 2 }
 0x17d   : > { %v846_v60 = vadd.f32 %v844_v54, %v836_v56  ;;  %v6707_v8 = vperm.slane %v4283_v55, 2  ;;  %v1201_v9 = vmul.f32 %v1199_v42, %v4384_v49  ;;  %v1202_v19 = vmul.f32 %v1200_v21, %v4384_v49 }
 0x17e   : > { %v853_v0 = vmul.f32 %v6706_v37, %v4021_v32  ;;  %v1211_v63 = vmul.f32 %v1209_v38, %v1207_v39  ;;  %v1212_v43 = vmul.f32 %v1210_v44, %v1207_v39  ;;  %v4531_v18 = vmul.f32 %v4321_v11, %v587_v31 }
 0x17f   : > { %v854_v15 = vmul.f32 %v6707_v8, %v4021_v32  ;;  %v4534_v56 = vmul.f32 %v4323_v10, %v588_v45  ;;  %v1219_v32 = vperm.slane %v4493_v7, 1  ;;  %v1220_v54 = vperm.slane %v4496_v57, 1 }
 0x180   : > { %6708 = vst [vmem:[#allocation55_spill] sm:$0xff] %v4531_v18  ;;  %v855_v52 = vadd.f32 %v853_v0, %v845_v53  ;;  %v1203_v50 = vadd.f32 %v1201_v9, %v1193_v26  ;;  %v1204_v41 = vadd.f32 %v1202_v19, %v1194_v40  ;;  %v6710_v49 = vperm.slane %v4280_v23, 3  ;;  %v4546_v0 = vpop.permute.xlu2 %1266 }
 0x181   : > { %6709 = vst [vmem:[#allocation56_spill] sm:$0xff] %v4534_v56  ;;  %v856_v35 = vadd.f32 %v854_v15, %v846_v60  ;;  %v6711_v39 = vperm.slane %v4283_v55, 3  ;;  %v939_v21 = vperm.slane %v3869_v4, 2  ;;  %v940_v45 = vperm.slane %v3869_v4, 6 }
 0x182   : > { %v863_v42 = vmul.f32 %v6710_v49, %v4154_v58  ;;  %v689_v53 = vsel %vm544_vm3, %v4067_v59, %v4043_v48  ;;  %v690_v60 = vsel %vm544_vm3, %v4043_v48, %v4067_v59  ;;  %v1213_v26 = vadd.f32 %v1211_v63, %v1203_v50  ;;  %v1227_v50 = vpop.permute.xlu0 %1226 }
 0x183   : > { %v1237_v30 = vpop.permute.xlu1 %1236  ;;  %v864_v31 = vmul.f32 %v6711_v39, %v4154_v58  ;;  %v1214_v40 = vadd.f32 %v1212_v43, %v1204_v41  ;;  %v1229_v58 = vperm.slane %v4493_v7, 2  ;;  %v1230_v38 = vperm.slane %v4496_v57, 2 }
 0x184   : > { %v1239_v44 = vperm.slane %v4493_v7, 3  ;;  %v1240_v37 = vperm.slane %v4496_v57, 3  ;;  %v6712_v8 = vperm.slane %v4395_v47, 1  ;;  %v6713_v9 = vperm.slane %v4398_v27, 1 }
 0x185   : > { %v1221_v48 = vmul.f32 %v1219_v32, %v4451_v13  ;;  %v1222_v59 = vmul.f32 %v1220_v54, %v4451_v13  ;;  %v4569_v63 = vmul.f32 %v690_v60, %v4302_v2  ;;  %v4572_v43 = vmul.f32 %v689_v53, %v4304_v29 }
 0x186   : > { %v883_v15 = vmul.f32 %v6712_v8, %v4069_v33  ;;  %v884_v19 = vmul.f32 %v6713_v9, %v4069_v33  ;;  %v865_v7 = vadd.f32 %v863_v42, %v855_v52  ;;  %v866_v57 = vadd.f32 %v864_v31, %v856_v35 }
 0x187   : > { %v4574_v41 = vperm.slane %v939_v21, 2  ;;  %v4576_v49 = vperm.slane %v940_v45, 2  ;;  %v1223_v39 = vadd.f32 %v1221_v48, %v1213_v26  ;;  %v1224_v8 = vadd.f32 %v1222_v59, %v1214_v40 }
 0x188   : > { %v873_v33 = vmul.f32 %v6412_v16, %v4086_v28  ;;  %v874_v13 = vmul.f32 %v6409_v5, %v4086_v28  ;;  %v911_v32 = vperm.slane %v3869_v4, 0  ;;  %v912_v52 = vperm.slane %v3869_v4, 4  ;;  %v4588_v40 = vpop.permute.xlu2 %1300 }
 0x189   : > { %v1231_v54 = vmul.f32 %v1229_v58, %v1227_v50  ;;  %v1232_v42 = vmul.f32 %v1230_v38, %v1227_v50  ;;  %v1241_v31 = vmul.f32 %v1239_v44, %v1237_v30  ;;  %v1242_v21 = vmul.f32 %v1240_v37, %v1237_v30 }
 0x18a   : > { %v875_v45 = vadd.f32 %v873_v33, %v865_v7  ;;  %v876_v53 = vadd.f32 %v874_v13, %v866_v57  ;;  %v1279_v60 = vperm.slane %v4569_v63, 3  ;;  %v1280_v26 = vperm.slane %v4572_v43, 3  ;;  %v1277_v16 = vpop.permute.xlu0 %1276 }
 0x18b   : > { %v1249_v9 = vperm.slane %v4569_v63, 0  ;;  %v1250_v28 = vperm.slane %v4572_v43, 0  ;;  %v1233_v48 = vadd.f32 %v1231_v54, %v1223_v39  ;;  %v1234_v59 = vadd.f32 %v1232_v42, %v1224_v8 }
 0x18c   : > { %v1257_v35 = vpop.permute.xlu1 %1256  ;;  %v4592_v5 = vperm.slane %v911_v32, 0  ;;  %v4594_v58 = vperm.slane %v912_v52, 0  ;;  %v1269_v30 = vperm.slane %v4569_v63, 2  ;;  %v1270_v38 = vperm.slane %v4572_v43, 2 }
 0x18d   : > { %v1243_v44 = vadd.f32 %v1241_v31, %v1233_v48  ;;  %v1244_v37 = vadd.f32 %v1242_v21, %v1234_v59  ;;  %v1259_v7 = vperm.slane %v4569_v63, 1  ;;  %v1260_v57 = vperm.slane %v4572_v43, 1  ;;  %v6714_v21 = vld [vmem:[#allocation2_spill] sm:$0xff] }
 0x18e   : > { %v885_v50 = vadd.f32 %v883_v15, %v875_v45  ;;  %v886_v33 = vadd.f32 %v884_v19, %v876_v53  ;;  %v925_v13 = vperm.slane %v3869_v4, 1  ;;  %v926_v39 = vperm.slane %v3869_v4, 5 }
 0x18f   : > { %v1251_v8 = vmul.f32 %v1249_v9, %v4498_v17  ;;  %v1252_v32 = vmul.f32 %v1250_v28, %v4498_v17  ;;  %v1261_v52 = vmul.f32 %v1259_v7, %v1257_v35  ;;  %v1262_v54 = vmul.f32 %v1260_v57, %v1257_v35  ;;  %v6715_v35 = vld [vmem:[#allocation10_spill] sm:$0xff] }
 0x190   : > { %v893_v42 = vmul.f32 %v6411_v22, %v4097_v6  ;;  %v894_v63 = vmul.f32 %v6410_v12, %v4097_v6  ;;  %v953_v15 = vperm.slane %v3869_v4, 3  ;;  %v954_v19 = vperm.slane %v3869_v4, 7  ;;  %v1329_v22 = vpop.permute.xlu2 %1328 }
 0x191   : > { %v1253_v43 = vadd.f32 %v1251_v8, %v1243_v44  ;;  %v1254_v31 = vadd.f32 %v1252_v32, %v1244_v37  ;;  %v1289_v45 = vperm.slane %v6714_v21, 0  ;;  %v1290_v17 = vperm.slane %v6714_v21, 4 }
 0x192   : > { %v6716_v9 = vperm.slane %v4395_v47, 3  ;;  %v6717_v48 = vperm.slane %v4398_v27, 3  ;;  %v895_v6 = vadd.f32 %v893_v42, %v885_v50  ;;  %v896_v7 = vadd.f32 %v894_v63, %v886_v33 }
 0x193   : > { %v4620_v57 = vperm.slane %v925_v13, 1  ;;  %v4622_v4 = vperm.slane %v926_v39, 1  ;;  %v1263_v44 = vadd.f32 %v1261_v52, %v1253_v43  ;;  %v1264_v37 = vadd.f32 %v1262_v54, %v1254_v31  ;;  %v6718_v54 = vld [vmem:[#allocation28_spill] sm:$0xff]  ;;  %v6719_v31 = vld [vmem:[#allocation15_spill] sm:$0xff] }
 0x194   : > { %v903_v28 = vmul.f32 %v6716_v9, %v6715_v35  ;;  %v904_v59 = vmul.f32 %v6717_v48, %v6715_v35  ;;  %v4624_v8 = vperm.slane %v953_v15, 3  ;;  %v4626_v32 = vperm.slane %v954_v19, 3 }
 0x195   : > { %v1287_v53 = vpop.permute.xlu1 %1286  ;;  %v1303_v12 = vperm.slane %v6714_v21, 1  ;;  %v1304_v9 = vperm.slane %v6714_v21, 5  ;;  %v1271_v35 = vmul.f32 %v1269_v30, %v4546_v0  ;;  %v1272_v50 = vmul.f32 %v1270_v38, %v4546_v0 }
 0x196   : > { %v1293_v33 = vperm.slane %v1289_v45, 0  ;;  %v1294_v13 = vperm.slane %v1290_v17, 0  ;;  %v905_v39 = vadd.f32 %v903_v28, %v895_v6  ;;  %v906_v52 = vadd.f32 %v904_v59, %v896_v7 }
 0x197   : > { %v917_v42 = vmul.f32 %v4592_v5, %v6718_v54  ;;  %v918_v63 = vmul.f32 %v4594_v58, %v6718_v54  ;;  %v1273_v15 = vadd.f32 %v1271_v35, %v1263_v44  ;;  %v1274_v19 = vadd.f32 %v1272_v50, %v1264_v37 }
 0x198   : > { %v1317_v43 = vperm.slane %v6714_v21, 2  ;;  %v1318_v30 = vperm.slane %v6714_v21, 6  ;;  %v931_v0 = vmul.f32 %v4620_v57, %v6719_v31  ;;  %v932_v38 = vmul.f32 %v4622_v4, %v6719_v31 }
 0x199   : > { %v1281_v45 = vmul.f32 %v1279_v60, %v1277_v16  ;;  %v1282_v17 = vmul.f32 %v1280_v26, %v1277_v16  ;;  %v1307_v28 = vperm.slane %v1303_v12, 1  ;;  %v1308_v48 = vperm.slane %v1304_v9, 1 }
 0x19a   : > { %v1295_v59 = vmul.f32 %v1293_v33, %v1287_v53  ;;  %v1296_v6 = vmul.f32 %v1294_v13, %v1287_v53  ;;  %v919_v7 = vadd.f32 %v917_v42, %v905_v39  ;;  %v920_v54 = vadd.f32 %v918_v63, %v906_v52  ;;  %v6722_v13 = vld [vmem:[#allocation17_spill] sm:$0xff]  ;;  %v6723_v42 = vld [vmem:[#allocation18_spill] sm:$0xff] }
 0x19b   : > { %v1331_v44 = vperm.slane %v6714_v21, 3  ;;  %v1332_v37 = vperm.slane %v6714_v21, 7  ;;  %v1283_v50 = vadd.f32 %v1281_v45, %v1273_v15  ;;  %v1284_v34 = vadd.f32 %v1282_v17, %v1274_v19  ;;  %v6721_v21 = vld [vmem:[#allocation7_spill] sm:$0xff]  ;;  %v4663_v15 = vpop.permute.xlu2 %1362  ;;  %v6724_v17 = vld [vmem:[#allocation4_spill] sm:$0xff] }
 0x19c   : > { %v1321_v46 = vperm.slane %v1317_v43, 2  ;;  %v1322_v3 = vperm.slane %v1318_v30, 2  ;;  %v945_v31 = vmul.f32 %v4574_v41, %v6720_v51  ;;  %v946_v16 = vmul.f32 %v4576_v49, %v6720_v51  ;;  %v6742_v30 = vld [vmem:[#allocation5_spill] sm:$0xff] }
 0x19d   : > { %v933_v12 = vadd.f32 %v931_v0, %v919_v7  ;;  %v934_v60 = vadd.f32 %v932_v38, %v920_v54  ;;  %v1309_v26 = vmul.f32 %v1307_v28, %v4588_v40  ;;  %v1310_v53 = vmul.f32 %v1308_v48, %v4588_v40  ;;  %v6725_v28 = vld [vmem:[#allocation6_spill] sm:$0xff]  ;;  %v6727_v54 = vld [vmem:[#allocation47_spill] sm:$0xff]  ;;  %v6741_v0 = vld [vmem:[#allocation20_spill] sm:$0xff] }
 0x19e   : > { %v1315_v35 = vpop.permute.xlu1 %1314  ;;  %v1297_v9 = vadd.f32 %v1295_v59, %v1283_v50  ;;  %v1298_v33 = vadd.f32 %v1296_v6, %v1284_v34  ;;  %v702_v39 = vsel %vm565_vm4, %v6722_v13, %v6721_v21  ;;  %v703_v52 = vsel %vm565_vm4, %v6721_v21, %v6722_v13  ;;  %v6728_v21 = vld [vmem:[#allocation14_spill] sm:$0xff] }
 0x19f   : > { %v959_v51 = vmul.f32 %v4624_v8, %v6723_v42  ;;  %v960_v63 = vmul.f32 %v4626_v32, %v6723_v42  ;;  %v1335_v40 = vperm.slane %v1331_v44, 3  ;;  %v1336_v34 = vperm.slane %v1332_v37, 3 }
 0x1a0   : > { %v1323_v19 = vmul.f32 %v1321_v46, %v1315_v35  ;;  %v1324_v43 = vmul.f32 %v1322_v3, %v1315_v35  ;;  %v947_v38 = vadd.f32 %v945_v31, %v933_v12  ;;  %v948_v45 = vadd.f32 %v946_v16, %v934_v60  ;;  %v6726_v46 = vld [vmem:[#allocation46_spill] sm:$0xff] }
 0x1a1   : > { %v608_v48 = vsel %vm607_vm6, %v6725_v28, %v6724_v17  ;;  %v609_v59 = vsel %vm607_vm6, %v6724_v17, %v6725_v28  ;;  %v1311_v6 = vadd.f32 %v1309_v26, %v1297_v9  ;;  %v1312_v7 = vadd.f32 %v1310_v53, %v1298_v33  ;;  %v6731_v33 = vld [vmem:[#allocation51_spill] sm:$0xff]  ;;  %v6738_v9 = vld [vmem:[#allocation21_spill] sm:$0xff] }
 0x1a2   : > { %v704_v3 = vmul.f32 %v702_v39, %v6726_v46  ;;  %v705_v44 = vmul.f32 %v703_v52, %v6727_v54  ;;  %v961_v37 = vadd.f32 %v959_v51, %v947_v38  ;;  %v962_v35 = vadd.f32 %v960_v63, %v948_v45  ;;  %v6733_v52 = vld [vmem:[#allocation52_spill] sm:$0xff]  ;;  %v1343_v38 = vpop.permute.xlu0 %1342 }
 0x1a3   : > { %v1337_v50 = vmul.f32 %v1335_v40, %v1329_v22  ;;  %v1338_v31 = vmul.f32 %v1336_v34, %v1329_v22  ;;  %v1325_v16 = vadd.f32 %v1323_v19, %v1311_v6  ;;  %v1326_v12 = vadd.f32 %v1324_v43, %v1312_v7 }
 0x1a4   : > { %v6729_v13 = vperm.slane %v4422_v25, 0  ;;  %v6730_v17 = vperm.slane %v4425_v61, 0  ;;  %v4686_v39 = vmul.f32 %v6731_v33, %v608_v48  ;;  %v4689_v22 = vmul.f32 %v6733_v52, %v609_v59  ;;  %v6735_v48 = vld [vmem:[#allocation33_spill] sm:$0xff] }
 0x1a5   : > { %v1345_v19 = vperm.slane %v704_v3, 0  ;;  %v1346_v43 = vperm.slane %v705_v44, 0  ;;  %v1339_v45 = vadd.f32 %v1337_v50, %v1325_v16  ;;  %v1340_v28 = vadd.f32 %v1338_v31, %v1326_v12  ;;  %v1383_v50 = vpop.permute.xlu2 %1382 }
 0x1a6   : > { %v969_v42 = vmul.f32 %v6729_v13, %v6728_v21  ;;  %v970_v26 = vmul.f32 %v6730_v17, %v6728_v21  ;;  %6732 = vst [vmem:[#allocation2_spill] sm:$0xff] %v4686_v39  ;;  %v1355_v6 = vperm.slane %v704_v3, 1  ;;  %v1356_v7 = vperm.slane %v705_v44, 1 }
 0x1a7   : > { %v1353_v60 = vpop.permute.xlu1 %1352  ;;  %6734 = vst [vmem:[#allocation10_spill] sm:$0xff] %v4689_v22  ;;  %v6736_v21 = vperm.slane %v4422_v25, 1  ;;  %v6737_v13 = vperm.slane %v4425_v61, 1  ;;  %v1347_v31 = vmul.f32 %v1345_v19, %v1343_v38  ;;  %v1348_v16 = vmul.f32 %v1346_v43, %v1343_v38 }
 0x1a8   : > { %v971_v40 = vadd.f32 %v969_v42, %v961_v37  ;;  %v972_v34 = vadd.f32 %v970_v26, %v962_v35  ;;  %v6739_v37 = vperm.slane %v4422_v25, 2  ;;  %v6740_v42 = vperm.slane %v4425_v61, 2 }
 0x1a9   : > { %v979_v59 = vmul.f32 %v6736_v21, %v6735_v48  ;;  %v980_v17 = vmul.f32 %v6737_v13, %v6735_v48  ;;  %v1357_v12 = vmul.f32 %v1355_v6, %v1353_v60  ;;  %v1358_v53 = vmul.f32 %v1356_v7, %v1353_v60 }
 0x1aa   : > { %v989_v35 = vmul.f32 %v6739_v37, %v6738_v9  ;;  %v990_v26 = vmul.f32 %v6740_v42, %v6738_v9  ;;  %v715_v21 = vsel %vm586_vm5, %v6742_v30, %v6741_v0  ;;  %v716_v48 = vsel %vm586_vm5, %v6741_v0, %v6742_v30  ;;  %v6743_v30 = vld [vmem:[#allocation16_spill] sm:$0xff] }
 0x1ab   : > { %v981_v13 = vadd.f32 %v979_v59, %v971_v40  ;;  %v982_v37 = vadd.f32 %v980_v17, %v972_v34  ;;  %v1365_v63 = vperm.slane %v704_v3, 2  ;;  %v1366_v51 = vperm.slane %v705_v44, 2 }
 0x1ac   : > { %v1349_v9 = vadd.f32 %v1347_v31, %v1339_v45  ;;  %v1350_v42 = vadd.f32 %v1348_v16, %v1340_v28  ;;  %v1375_v38 = vperm.slane %v704_v3, 3  ;;  %v1376_v60 = vperm.slane %v705_v44, 3  ;;  %v6746_v28 = vld [vmem:[#allocation23_spill] sm:$0xff] }
 0x1ad   : > { %v991_v19 = vadd.f32 %v989_v35, %v981_v13  ;;  %v992_v43 = vadd.f32 %v990_v26, %v982_v37  ;;  %v4715_v7 = vmul.f32 %v715_v21, %v4321_v11  ;;  %v4718_v1 = vmul.f32 %v716_v48, %v4323_v10  ;;  %v6760_v13 = vld [vmem:[#allocation53_spill] sm:$0xff] }
 0x1ae   : > { %v1359_v54 = vadd.f32 %v1357_v12, %v1349_v9  ;;  %v1360_v46 = vadd.f32 %v1358_v53, %v1350_v42  ;;  %v6744_v0 = vperm.slane %v4422_v25, 3  ;;  %v6745_v34 = vperm.slane %v4425_v61, 3 }
 0x1af   : > { %v6747_v3 = vperm.slane %v4531_v18, 0  ;;  %v6748_v59 = vperm.slane %v4534_v56, 0  ;;  %v1367_v35 = vmul.f32 %v1365_v63, %v4663_v15  ;;  %v1368_v53 = vmul.f32 %v1366_v51, %v4663_v15 }
 0x1b0   : > { %v1373_v6 = vpop.permute.xlu1 %1372  ;;  %v999_v40 = vmul.f32 %v6744_v0, %v6743_v30  ;;  %v1000_v45 = vmul.f32 %v6745_v34, %v6743_v30  ;;  %v6419_v21 = vperm.slane %v4531_v18, 3  ;;  %v6434_v48 = vperm.slane %v4534_v56, 3  ;;  %v6749_v30 = vld [vmem:[#allocation9_spill] sm:$0xff]  ;;  %v6750_v0 = vld [vmem:[#allocation3_spill] sm:$0xff] }
 0x1b1   : > { %v1009_v44 = vmul.f32 %v6747_v3, %v6746_v28  ;;  %v1010_v17 = vmul.f32 %v6748_v59, %v6746_v28  ;;  %v1377_v26 = vmul.f32 %v1375_v38, %v1373_v6  ;;  %v1378_v31 = vmul.f32 %v1376_v60, %v1373_v6  ;;  %v6753_v28 = vld [vmem:[#allocation19_spill] sm:$0xff] }
 0x1b2   : > { %v1001_v16 = vadd.f32 %v999_v40, %v991_v19  ;;  %v1002_v12 = vadd.f32 %v1000_v45, %v992_v43  ;;  %v1369_v9 = vadd.f32 %v1367_v35, %v1359_v54  ;;  %v1370_v42 = vadd.f32 %v1368_v53, %v1360_v46  ;;  %v1413_v43 = vpop.permute.xlu2 %1412  ;;  %v6751_v46 = vld [vmem:[#allocation8_spill] sm:$0xff] }
 0x1b3   : > { %v629_v63 = vsel %vm628_vm7, %v6750_v0, %v6749_v30  ;;  %v630_v15 = vsel %vm628_vm7, %v6749_v30, %v6750_v0  ;;  %v1385_v38 = vperm.slane %v4715_v7, 0  ;;  %v1386_v60 = vperm.slane %v4718_v1, 0  ;;  %v6752_v40 = vld [vmem:[#allocation12_spill] sm:$0xff] }
 0x1b4   : > { %v1011_v51 = vadd.f32 %v1009_v44, %v1001_v16  ;;  %v1012_v19 = vadd.f32 %v1010_v17, %v1002_v12  ;;  %v1379_v6 = vadd.f32 %v1377_v26, %v1369_v9  ;;  %v1380_v54 = vadd.f32 %v1378_v31, %v1370_v42  ;;  %v1393_v42 = vpop.permute.xlu0 %1392 }
 0x1b5   : > { %v728_v34 = vsel %vm607_vm6, %v6752_v40, %v6751_v46  ;;  %v729_v45 = vsel %vm607_vm6, %v6751_v46, %v6752_v40  ;;  %v6754_v3 = vperm.slane %v4531_v18, 1  ;;  %v6755_v59 = vperm.slane %v4534_v56, 1 }
 0x1b6   : > { %v1395_v35 = vperm.slane %v4715_v7, 1  ;;  %v1396_v53 = vperm.slane %v4718_v1, 1  ;;  %v1387_v26 = vmul.f32 %v1385_v38, %v1383_v50  ;;  %v1388_v31 = vmul.f32 %v1386_v60, %v1383_v50  ;;  %v6759_v60 = vld [vmem:[#allocation26_spill] sm:$0xff] }
 0x1b7   : > { %v1019_v44 = vmul.f32 %v6754_v3, %v6753_v28  ;;  %v1020_v17 = vmul.f32 %v6755_v59, %v6753_v28  ;;  %v1405_v30 = vperm.slane %v4715_v7, 2  ;;  %v1406_v0 = vperm.slane %v4718_v1, 2  ;;  %v6756_v59 = vld [vmem:[#allocation39_spill] sm:$0xff] }
 0x1b8   : > { %v4767_v46 = vmul.f32 %v728_v34, %v6731_v33  ;;  %v4770_v40 = vmul.f32 %v729_v45, %v6733_v52  ;;  %v1389_v28 = vadd.f32 %v1387_v26, %v1379_v6  ;;  %v1390_v3 = vadd.f32 %v1388_v31, %v1380_v54  ;;  %v6824_v33 = vld [vmem:[#allocation36_spill] sm:$0xff] }
 0x1b9   : > { %v1403_v16 = vpop.permute.xlu1 %1402  ;;  %v1021_v12 = vadd.f32 %v1019_v44, %v1011_v51  ;;  %v1022_v9 = vadd.f32 %v1020_v17, %v1012_v19  ;;  %v6757_v38 = vperm.slane %v4531_v18, 2  ;;  %v6758_v51 = vperm.slane %v4534_v56, 2 }
 0x1ba   : > { %v1039_v44 = vmul.f32 %v6419_v21, %v6759_v60  ;;  %v1040_v34 = vmul.f32 %v6434_v48, %v6759_v60  ;;  %v1397_v45 = vmul.f32 %v1395_v35, %v1393_v42  ;;  %v1398_v17 = vmul.f32 %v1396_v53, %v1393_v42 }
 0x1bb   : > { %v1029_v50 = vmul.f32 %v6757_v38, %v6756_v59  ;;  %v1030_v19 = vmul.f32 %v6758_v51, %v6756_v59  ;;  %v1407_v6 = vmul.f32 %v1405_v30, %v1403_v16  ;;  %v1408_v54 = vmul.f32 %v1406_v0, %v1403_v16  ;;  %v6762_v51 = vld [vmem:[#allocation54_spill] sm:$0xff]  ;;  %v1433_v16 = vpop.permute.xlu2 %1432 }
 0x1bc   : > { %v6423_v38 = vperm.slane %v4686_v39, 1  ;;  %v6426_v37 = vperm.slane %v4689_v22, 1  ;;  %v4787_v59 = vmul.f32 %v6760_v13, %v629_v63  ;;  %v4790_v10 = vmul.f32 %v6762_v51, %v630_v15  ;;  %v6764_v63 = vld [vmem:[#allocation22_spill] sm:$0xff] }
 0x1bd   : > { %v1031_v26 = vadd.f32 %v1029_v50, %v1021_v12  ;;  %v1032_v31 = vadd.f32 %v1030_v19, %v1022_v9  ;;  %v1399_v21 = vadd.f32 %v1397_v45, %v1389_v28  ;;  %v1400_v11 = vadd.f32 %v1398_v17, %v1390_v3  ;;  %v6767_v50 = vld [vmem:[#allocation29_spill] sm:$0xff] }
 0x1be   : > { %6761 = vst [vmem:[#allocation28_spill] sm:$0xff] %v4787_v59  ;;  %v1415_v35 = vperm.slane %v4715_v7, 3  ;;  %v1416_v53 = vperm.slane %v4718_v1, 3  ;;  %v1425_v42 = vperm.slane %v4767_v46, 0  ;;  %v1426_v30 = vperm.slane %v4770_v40, 0 }
 0x1bf   : > { %6763 = vst [vmem:[#allocation15_spill] sm:$0xff] %v4790_v10  ;;  %v1041_v52 = vadd.f32 %v1039_v44, %v1031_v26  ;;  %v1042_v60 = vadd.f32 %v1040_v34, %v1032_v31  ;;  %v1409_v12 = vadd.f32 %v1407_v6, %v1399_v21  ;;  %v1410_v9 = vadd.f32 %v1408_v54, %v1400_v11 }
 0x1c0   : > { %v6765_v0 = vperm.slane %v4686_v39, 0  ;;  %v6766_v28 = vperm.slane %v4689_v22, 0  ;;  %v1059_v7 = vmul.f32 %v6423_v38, %v6767_v50  ;;  %v1060_v1 = vmul.f32 %v6426_v37, %v6767_v50  ;;  %v6771_v37 = vld [vmem:[#allocation50_spill] sm:$0xff] }
 0x1c1   : > { %v1417_v21 = vmul.f32 %v1415_v35, %v1413_v43  ;;  %v1418_v19 = vmul.f32 %v1416_v53, %v1413_v43  ;;  %v6429_v45 = vperm.slane %v4686_v39, 3  ;;  %v6428_v17 = vperm.slane %v4689_v22, 3 }
 0x1c2   : > { %v1049_v15 = vmul.f32 %v6765_v0, %v6764_v63  ;;  %v1050_v3 = vmul.f32 %v6766_v28, %v6764_v63  ;;  %v1423_v11 = vpop.permute.xlu1 %1422  ;;  %v6424_v26 = vperm.slane %v4686_v39, 2  ;;  %v6425_v31 = vperm.slane %v4689_v22, 2 }
 0x1c3   : > { %v1427_v44 = vmul.f32 %v1425_v42, %v1423_v11  ;;  %v1428_v34 = vmul.f32 %v1426_v30, %v1423_v11  ;;  %v1419_v63 = vadd.f32 %v1417_v21, %v1409_v12  ;;  %v1420_v0 = vadd.f32 %v1418_v19, %v1410_v9  ;;  %v6770_v9 = vld [vmem:[#allocation24_spill] sm:$0xff] }
 0x1c4   : > { %v1051_v6 = vadd.f32 %v1049_v15, %v1041_v52  ;;  %v1052_v54 = vadd.f32 %v1050_v3, %v1042_v60  ;;  %v6427_v50 = vperm.slane %v4787_v59, 0  ;;  %v6432_v43 = vperm.slane %v4790_v10, 0  ;;  %v6768_v52 = vld [vmem:[#allocation13_spill] sm:$0xff] }
 0x1c5   : > { %v1435_v35 = vperm.slane %v4767_v46, 1  ;;  %v1436_v53 = vperm.slane %v4770_v40, 1  ;;  %v1429_v42 = vadd.f32 %v1427_v44, %v1419_v63  ;;  %v1430_v30 = vadd.f32 %v1428_v34, %v1420_v0  ;;  %v6769_v60 = vld [vmem:[#allocation25_spill] sm:$0xff] }
 0x1c6   : > { %v1061_v28 = vadd.f32 %v1059_v7, %v1051_v6  ;;  %v1062_v38 = vadd.f32 %v1060_v1, %v1052_v54  ;;  %v741_v15 = vsel %vm628_vm7, %v6769_v60, %v6768_v52  ;;  %v742_v12 = vsel %vm628_vm7, %v6768_v52, %v6769_v60  ;;  %v1443_v6 = vpop.permute.xlu0 %1442  ;;  %v1463_v54 = vpop.permute.xlu2 %1462 }
 0x1c7   : > { %v1069_v3 = vmul.f32 %v6424_v26, %v6770_v9  ;;  %v1070_v7 = vmul.f32 %v6425_v31, %v6770_v9  ;;  %v1445_v1 = vperm.slane %v4767_v46, 2  ;;  %v1446_v11 = vperm.slane %v4770_v40, 2 }
 0x1c8   : > { %v1437_v21 = vmul.f32 %v1435_v35, %v1433_v16  ;;  %v1438_v19 = vmul.f32 %v1436_v53, %v1433_v16  ;;  %v1455_v63 = vperm.slane %v4767_v46, 3  ;;  %v1456_v0 = vperm.slane %v4770_v40, 3  ;;  %v6772_v16 = vld [vmem:[#allocation32_spill] sm:$0xff] }
 0x1c9   : > { %v1071_v44 = vadd.f32 %v1069_v3, %v1061_v28  ;;  %v1072_v34 = vadd.f32 %v1070_v7, %v1062_v38  ;;  %v743_v52 = vmul.f32 %v741_v15, %v6760_v13  ;;  %v744_v60 = vmul.f32 %v742_v12, %v6762_v51 }
 0x1ca   : > { %v1439_v26 = vadd.f32 %v1437_v21, %v1429_v42  ;;  %v1440_v9 = vadd.f32 %v1438_v19, %v1430_v30  ;;  %v1079_v35 = vmul.f32 %v6429_v45, %v6771_v37  ;;  %v1080_v38 = vmul.f32 %v6428_v17, %v6771_v37 }
 0x1cb   : > { %v1453_v31 = vpop.permute.xlu1 %1452  ;;  %v1089_v46 = vmul.f32 %v6427_v50, %v6772_v16  ;;  %v1090_v40 = vmul.f32 %v6432_v43, %v6772_v16  ;;  %v1447_v28 = vmul.f32 %v1445_v1, %v1443_v6  ;;  %v1448_v53 = vmul.f32 %v1446_v11, %v1443_v6 }
 0x1cc   : > { %v1457_v42 = vmul.f32 %v1455_v63, %v1453_v31  ;;  %v1458_v30 = vmul.f32 %v1456_v0, %v1453_v31  ;;  %v6431_v15 = vperm.slane %v4787_v59, 1  ;;  %v6430_v12 = vperm.slane %v4790_v10, 1  ;;  %v6773_v0 = vld [vmem:[#allocation27_spill] sm:$0xff] }
 0x1cd   : > { %v1081_v3 = vadd.f32 %v1079_v35, %v1071_v44  ;;  %v1082_v7 = vadd.f32 %v1080_v38, %v1072_v34  ;;  %v1449_v19 = vadd.f32 %v1447_v28, %v1439_v26  ;;  %v1450_v50 = vadd.f32 %v1448_v53, %v1440_v9  ;;  %v6774_v26 = vld [vmem:[#allocation38_spill] sm:$0xff] }
 0x1ce   : > { %v6433_v16 = vperm.slane %v4787_v59, 2  ;;  %v6435_v1 = vperm.slane %v4790_v10, 2  ;;  %v1465_v11 = vperm.slane %v743_v52, 0  ;;  %v1466_v31 = vperm.slane %v744_v60, 0  ;;  %v1493_v37 = vpop.permute.xlu0 %1492 }
 0x1cf   : > { %v1091_v17 = vadd.f32 %v1089_v46, %v1081_v3  ;;  %v1092_v45 = vadd.f32 %v1090_v40, %v1082_v7  ;;  %v1459_v6 = vadd.f32 %v1457_v42, %v1449_v19  ;;  %v1460_v63 = vadd.f32 %v1458_v30, %v1450_v50  ;;  %v1483_v42 = vpop.permute.xlu2 %1482 }
 0x1d0   : > { %v1099_v44 = vmul.f32 %v6431_v15, %v6773_v0  ;;  %v1100_v34 = vmul.f32 %v6430_v12, %v6773_v0  ;;  %v1109_v9 = vmul.f32 %v6433_v16, %v6774_v26  ;;  %v1110_v35 = vmul.f32 %v6435_v1, %v6774_v26  ;;  %v6775_v1 = vld [vmem:[#allocation31_spill] sm:$0xff] }
 0x1d1   : > { %v1467_v38 = vmul.f32 %v1465_v11, %v1463_v54  ;;  %v1468_v46 = vmul.f32 %v1466_v31, %v1463_v54  ;;  %v1475_v40 = vperm.slane %v743_v52, 1  ;;  %v1476_v50 = vperm.slane %v744_v60, 1 }
 0x1d2   : > { %v1101_v28 = vadd.f32 %v1099_v44, %v1091_v17  ;;  %v1102_v53 = vadd.f32 %v1100_v34, %v1092_v45  ;;  %v1485_v30 = vperm.slane %v743_v52, 2  ;;  %v1486_v3 = vperm.slane %v744_v60, 2 }
 0x1d3   : > { %v1469_v19 = vadd.f32 %v1467_v38, %v1459_v6  ;;  %v1470_v0 = vadd.f32 %v1468_v46, %v1460_v63  ;;  %v1495_v48 = vperm.slane %v743_v52, 3  ;;  %v1496_v21 = vperm.slane %v744_v60, 3 }
 0x1d4   : > { %v1473_v7 = vpop.permute.xlu1 %1472  ;;  %v1111_v43 = vadd.f32 %v1109_v9, %v1101_v28  ;;  %v1112_v16 = vadd.f32 %v1110_v35, %v1102_v53  ;;  %v1487_v26 = vmul.f32 %v1485_v30, %v1483_v42  ;;  %v1488_v11 = vmul.f32 %v1486_v3, %v1483_v42 }
 0x1d5   : > { %v1477_v12 = vmul.f32 %v1475_v40, %v1473_v7  ;;  %v1478_v15 = vmul.f32 %v1476_v50, %v1473_v7  ;;  %v6776_v45 = vperm.slane %v4787_v59, 3  ;;  %v6777_v44 = vperm.slane %v4790_v10, 3 }
 0x1d6   : > { %v1497_v63 = vmul.f32 %v1495_v48, %v1493_v37  ;;  %v1498_v34 = vmul.f32 %v1496_v21, %v1493_v37  ;;  %v4909_v48 = vld [vmem:[%s6278_s7] sm:$0xf]  ;;  %v6781_v37 = vmov 3   ;;  %v6782_v21 = vmov 4  }
 0x1d7   : > { %v1479_v54 = vadd.f32 %v1477_v12, %v1469_v19  ;;  %v1480_v31 = vadd.f32 %v1478_v15, %v1470_v0  ;;  %v1119_v17 = vmul.f32 %v6776_v45, %v6775_v1  ;;  %v1120_v6 = vmul.f32 %v6777_v44, %v6775_v1 }
 0x1d8   : > { %v6784_v1 = vmov 5   ;;  %v6785_v30 = vmov 6   ;;  %v6786_v3 = vmov 17   ;;  %v6787_v7 = vmov 8  }
 0x1d9   : > { %v1489_v38 = vadd.f32 %v1487_v26, %v1479_v54  ;;  %v1490_v9 = vadd.f32 %v1488_v11, %v1480_v31  ;;  %v1121_v35 = vadd.f32 %v1119_v17, %v1111_v43  ;;  %v1122_v52 = vadd.f32 %v1120_v6, %v1112_v16 }
 0x1da   : > { %v6780_v43 = vmov 7   ;;  %v6783_v16 = vmov 12   ;;  %v6788_v19 = vmov 9   ;;  %v6789_v0 = vmov 22  }
 0x1db   : > { %v1499_v60 = vadd.f32 %v1497_v63, %v1489_v38  ;;  %v1500_v46 = vadd.f32 %v1498_v34, %v1490_v9  ;;  %v6790_v26 = vmov 10   ;;  %v6791_v11 = vmov 11   ;;  %v4957_v34 = vld [vmem:[%s6279_s8] sm:$0xf] }
 0x1dc   : > { %v6792_v54 = vmov 27   ;;  %v6793_v31 = vmov 13   ;;  %v6795_v17 = vmov 14   ;;  %v6796_v44 = vmov 32  }
 0x1dd   : > { %v1507_v40 = vpop.permute.xlu1 %1506  ;;  %v1501_v50 = vadd.f32 %v1499_v60, %v1121_v35  ;;  %v1502_v12 = vadd.f32 %v1500_v46, %v1122_v52  ;;  %v6797_v6 = vmov 15   ;;  %v6798_v38 = vmov 16  }
 0x1de   : > { %v6799_v9 = vmov 0   ;;  %v6800_v35 = vmov 18   ;;  %v6802_v60 = vmov 19   ;;  %v6818_v51 = vmov 26  }
 0x1df   : > { %v1509_v15 = vadd.f32 %v1507_v40, %v1501_v50  ;;  %v1510_v28 = vadd.f32 %v1507_v40, %v1502_v12  ;;  %v6804_v50 = vmov 20   ;;  %v6819_v13 = vmov 28  }
 0x1e0   : > { %v6822_v10 = vmov 29  }
 0x1e1   : > { %v4872_v53 = vmax.f32 %v1509_v15, 0.0  ;;  %v4874_v42 = vmax.f32 %v1510_v28, 0.0 }
 0x1e3   : > { %6778 = vst [vmem:[#allocation11_spill] sm:$0xff] %v4872_v53  ;;  %1523 = vrot.lane.b32.xlu0 %v4874_v42, %s3740_s30  ;;  %1515 = vrot.lane.b32.xlu1 %v4874_v42, %s3738_s29 }
 0x1e4   : > { %6779 = vst [vmem:[#allocation7_spill] sm:$0xff] %v4874_v42  ;;  %1513 = vrot.lane.b32.xlu2 %v4872_v53, %s3738_s29 }
 0x1eb   : > { %1537 = vrot.lane.b32.xlu0 %v4872_v53, %s3742_s14  ;;  %1529 = vrot.lane.b32.xlu1 %v4872_v53, %s3741_s13 }
 0x1ec   : > { %1521 = vrot.lane.b32.xlu2 %v4872_v53, %s3740_s30 }
 0x1f3   : > { %1547 = vrot.lane.b32.xlu0 %v4874_v42, %s3744_s15  ;;  %1539 = vrot.lane.b32.xlu1 %v4874_v42, %s3742_s14 }
 0x1f4   : > { %1531 = vrot.lane.b32.xlu2 %v4874_v42, %s3741_s13 }
 0x1fb   : > { %1561 = vrot.lane.b32.xlu0 %v4872_v53, %s3748_s17  ;;  %1553 = vrot.lane.b32.xlu1 %v4872_v53, %s3746_s16 }
 0x1fc   : > { %1545 = vrot.lane.b32.xlu2 %v4872_v53, %s3744_s15 }
 0x203   : > { %1571 = vrot.lane.b32.xlu0 %v4874_v42, %s3749_s23  ;;  %1563 = vrot.lane.b32.xlu1 %v4874_v42, %s3748_s17 }
 0x204   : > { %1555 = vrot.lane.b32.xlu2 %v4874_v42, %s3746_s16 }
 0x20b   : > { %1596 = vperm.xlu0 %3540, %v4909_v48   ;;  %1580 = vperm.xlu1 %3538, %v4909_v48  }
 0x20c   : > { %1569 = vrot.lane.b32.xlu2 %v4872_v53, %s3749_s23  ;;  %v6808_v53 = vmov 21  }
 0x213   : > { %3545 = vset.pattern.permute.xlu0 %v6780_v43  ;;  %3541 = vset.pattern.permute.xlu1 %v6781_v37 }
 0x214   : > { %1588 = vperm.xlu2 %3539, %v4909_v48   ;;  %1636 = vperm.xlu0 %3545, %v4909_v48  }
 0x215   : > { %1604 = vperm.xlu1 %3541, %v4909_v48  }
 0x21c   : > { %3542 = vset.pattern.permute.xlu2 %v6782_v21  ;;  %3550 = vset.pattern.permute.xlu0 %v6783_v16 }
 0x21d   : > { %3543 = vset.pattern.permute.xlu1 %v6784_v1  ;;  %1612 = vperm.xlu2 %3542, %v4909_v48  }
 0x21e   : > { %1676 = vperm.xlu0 %3550, %v4909_v48   ;;  %1620 = vperm.xlu1 %3543, %v4909_v48  }
 0x225   : > { %3544 = vset.pattern.permute.xlu2 %v6785_v30 }
 0x226   : > { %3555 = vset.pattern.permute.xlu0 %v6786_v3  ;;  %3546 = vset.pattern.permute.xlu1 %v6787_v7 }
 0x227   : > { %1628 = vperm.xlu2 %3544, %v4909_v48   ;;  %1716 = vperm.xlu0 %3555, %v4909_v48  }
 0x228   : > { %1644 = vperm.xlu1 %3546, %v4909_v48  }
 0x22f   : > { %3547 = vset.pattern.permute.xlu2 %v6788_v19  ;;  %3560 = vset.pattern.permute.xlu0 %v6789_v0 }
 0x230   : > { %3548 = vset.pattern.permute.xlu1 %v6790_v26  ;;  %1652 = vperm.xlu2 %3547, %v4909_v48  }
 0x231   : > { %1756 = vperm.xlu0 %3560, %v4909_v48   ;;  %1660 = vperm.xlu1 %3548, %v4909_v48  }
 0x238   : > { %3549 = vset.pattern.permute.xlu2 %v6791_v11 }
 0x239   : > { %3565 = vset.pattern.permute.xlu0 %v6792_v54  ;;  %3551 = vset.pattern.permute.xlu1 %v6793_v31 }
 0x23a   : > { %1668 = vperm.xlu2 %3549, %v4909_v48   ;;  %1796 = vperm.xlu0 %3565, %v4909_v48  }
 0x23b   : > { %1684 = vperm.xlu1 %3551, %v4909_v48  }
 0x23e   : > { %v4944_v45 = vpop.permute.xlu2 %1513 }
 0x23f   : > { %6794 = vst [vmem:[#allocation17_spill] sm:$0xff] %v4944_v45 }
 0x242   : > { %3552 = vset.pattern.permute.xlu2 %v6795_v17  ;;  %3570 = vset.pattern.permute.xlu0 %v6796_v44 }
 0x243   : > { %3553 = vset.pattern.permute.xlu1 %v6797_v6  ;;  %1692 = vperm.xlu2 %3552, %v4909_v48  }
 0x244   : > { %1836 = vperm.xlu0 %3570, %v4909_v48   ;;  %1700 = vperm.xlu1 %3553, %v4909_v48  }
 0x246   : > { %v4952_v63 = vpop.permute.xlu2 %1521 }
 0x24b   : > { %3554 = vset.pattern.permute.xlu2 %v6798_v38 }
 0x24c   : > { %3575 = vset.pattern.permute.xlu0 %v6799_v9  ;;  %3556 = vset.pattern.permute.xlu1 %v6800_v35 }
 0x24d   : > { %1708 = vperm.xlu2 %3554, %v4909_v48   ;;  %1878 = vperm.xlu0 %3575, %v4957_v34  }
 0x24e   : > { %1724 = vperm.xlu1 %3556, %v4909_v48   ;;  %v4965_v52 = vpop.permute.xlu2 %1531 }
 0x24f   : > { %6801 = vst [vmem:[#allocation18_spill] sm:$0xff] %v4965_v52 }
 0x255   : > { %3557 = vset.pattern.permute.xlu2 %v6802_v60  ;;  %3580 = vset.pattern.permute.xlu0 %v6784_v1  ;;  %v4969_v46 = vpop.permute.xlu0 %1523  ;;  %v4971_v40 = vpop.permute.xlu1 %1515  ;;  %v6810_v1 = vmov 23  }
 0x256   : > { %6803 = vst [vmem:[#allocation4_spill] sm:$0xff] %v4971_v40  ;;  %3558 = vset.pattern.permute.xlu1 %v6804_v50  ;;  %1732 = vperm.xlu2 %3557, %v4909_v48   ;;  %v4975_v12 = vpop.permute.xlu2 %1545 }
 0x257   : > { %6805 = vst [vmem:[#allocation6_spill] sm:$0xff] %v4975_v12  ;;  %1928 = vperm.xlu0 %3580, %v4957_v34   ;;  %1740 = vperm.xlu1 %3558, %v4909_v48   ;;  %v6831_v12 = vmov 33  }
 0x25d   : > { %v4979_v15 = vpop.permute.xlu0 %1537  ;;  %v4981_v28 = vpop.permute.xlu1 %1529 }
 0x25e   : > { %6806 = vst [vmem:[#allocation14_spill] sm:$0xff] %v4979_v15  ;;  %3559 = vset.pattern.permute.xlu2 %v6808_v53  ;;  %v4984_v42 = vpop.permute.xlu2 %1555  ;;  %v6837_v15 = vmov 35  }
 0x25f   : > { %6807 = vst [vmem:[#allocation33_spill] sm:$0xff] %v4981_v28  ;;  %3585 = vset.pattern.permute.xlu0 %v6790_v26  ;;  %3561 = vset.pattern.permute.xlu1 %v6810_v1  ;;  %v6814_v28 = vmov 24  }
 0x260   : > { %6809 = vst [vmem:[#allocation21_spill] sm:$0xff] %v4984_v42  ;;  %1748 = vperm.xlu2 %3559, %v4909_v48   ;;  %1978 = vperm.xlu0 %3585, %v4957_v34   ;;  %v6815_v42 = vmov 25  }
 0x261   : > { %1764 = vperm.xlu1 %3561, %v4909_v48  }
 0x265   : > { %v4991_v52 = vpop.permute.xlu0 %1547  ;;  %v4993_v44 = vpop.permute.xlu1 %1539 }
 0x266   : > { %6811 = vst [vmem:[#allocation20_spill] sm:$0xff] %v4991_v52  ;;  %v4995_v45 = vpop.permute.xlu2 %1569 }
 0x267   : > { %6812 = vst [vmem:[#allocation5_spill] sm:$0xff] %v4993_v44 }
 0x268   : > { %6813 = vst [vmem:[#allocation16_spill] sm:$0xff] %v4995_v45  ;;  %3562 = vset.pattern.permute.xlu2 %v6814_v28  ;;  %3590 = vset.pattern.permute.xlu0 %v6797_v6 }
 0x269   : > { %3563 = vset.pattern.permute.xlu1 %v6815_v42  ;;  %1772 = vperm.xlu2 %3562, %v4909_v48  }
 0x26a   : > { %2028 = vperm.xlu0 %3590, %v4957_v34   ;;  %1780 = vperm.xlu1 %3563, %v4909_v48  }
 0x26d   : > { %v5003_v26 = vpop.permute.xlu0 %1561  ;;  %v5005_v40 = vpop.permute.xlu1 %1553 }
 0x26e   : > { %6816 = vst [vmem:[#allocation23_spill] sm:$0xff] %v5003_v26  ;;  %v1589_v54 = vpop.permute.xlu2 %1588 }
 0x26f   : > { %6817 = vst [vmem:[#allocation9_spill] sm:$0xff] %v5005_v40  ;;  %v6823_v40 = vmov 30  }
 0x271   : > { %3564 = vset.pattern.permute.xlu2 %v6818_v51 }
 0x272   : > { %3595 = vset.pattern.permute.xlu0 %v6804_v50  ;;  %3566 = vset.pattern.permute.xlu1 %v6819_v13 }
 0x273   : > { %1788 = vperm.xlu2 %3564, %v4909_v48   ;;  %2078 = vperm.xlu0 %3595, %v4957_v34  }
 0x274   : > { %1804 = vperm.xlu1 %3566, %v4909_v48  }
 0x275   : > { %v5013_v6 = vpop.permute.xlu0 %1571  ;;  %v5015_v45 = vpop.permute.xlu1 %1563 }
 0x276   : > { %6820 = vst [vmem:[#allocation3_spill] sm:$0xff] %v5013_v6  ;;  %v6825_v6 = vperm.slane %v6824_v33, 0 }
 0x277   : > { %6821 = vst [vmem:[#allocation8_spill] sm:$0xff] %v5015_v45  ;;  %v1613_v28 = vpop.permute.xlu2 %1612  ;;  %v6826_v45 = vld [vmem:[#allocation37_spill] sm:$0xff] }
 0x278   : > { %v6827_v0 = vperm.slane %v6826_v45, 0  ;;  %v6830_v53 = vperm.slane %v6826_v45, 1  ;;  %v6833_v3 = vperm.slane %v6826_v45, 2  ;;  %v6835_v56 = vperm.slane %v6826_v45, 3 }
 0x279   : > { %v6840_v45 = vperm.slane %v4290_v14, 1 }
 0x27a   : > { %v1592_v60 = vmul.f32 %v1589_v54, %v6830_v53 }
 0x27b   : > { %3567 = vset.pattern.permute.xlu2 %v6822_v10  ;;  %3600 = vset.pattern.permute.xlu0 %v6815_v42  ;;  %v6828_v10 = vmov 31   ;;  %v6829_v42 = vperm.slane %v6824_v33, 1 }
 0x27c   : > { %3568 = vset.pattern.permute.xlu1 %v6823_v40  ;;  %1812 = vperm.xlu2 %3567, %v4909_v48  }
 0x27d   : > { %2128 = vperm.xlu0 %3600, %v4957_v34   ;;  %1820 = vperm.xlu1 %3568, %v4909_v48   ;;  %v1597_v50 = vpop.permute.xlu0 %1596  ;;  %v1581_v51 = vpop.permute.xlu1 %1580  ;;  %v1591_v39 = vmul.f32 %v1589_v54, %v6829_v42  ;;  %v6834_v54 = vperm.slane %v6824_v33, 3 }
 0x27e   : > { %v1583_v26 = vmul.f32 %v1581_v51, %v6825_v6  ;;  %v1584_v22 = vmul.f32 %v1581_v51, %v6827_v0  ;;  %v1600_v53 = vmul.f32 %v1597_v50, %v6833_v3  ;;  %v6839_v3 = vperm.slane %v4293_v24, 0 }
 0x280   : > { %v1593_v6 = vadd.f32 %v1591_v39, %v1583_v26  ;;  %v1594_v52 = vadd.f32 %v1592_v60, %v1584_v22  ;;  %v6836_v60 = vmov 34  }
 0x281   : > { %v1629_v59 = vpop.permute.xlu2 %1628 }
 0x282   : > { %v1602_v2 = vadd.f32 %v1600_v53, %v1594_v52 }
 0x284   : > { %3569 = vset.pattern.permute.xlu2 %v6828_v10  ;;  %v6832_v10 = vperm.slane %v6824_v33, 2  ;;  %v1616_v33 = vmul.f32 %v1613_v28, %v6839_v3 }
 0x285   : > { %3605 = vset.pattern.permute.xlu0 %v6823_v40  ;;  %3571 = vset.pattern.permute.xlu1 %v6831_v12 }
 0x286   : > { %1828 = vperm.xlu2 %3569, %v4909_v48   ;;  %2178 = vperm.xlu0 %3605, %v4957_v34   ;;  %v1637_v51 = vpop.permute.xlu0 %1636  ;;  %v1599_v42 = vmul.f32 %v1597_v50, %v6832_v10  ;;  %v6838_v10 = vperm.slane %v4290_v14, 0 }
 0x287   : > { %1844 = vperm.xlu1 %3571, %v4909_v48   ;;  %v1605_v0 = vpop.permute.xlu1 %1604 }
 0x288   : > { %v1607_v40 = vmul.f32 %v1605_v0, %v6834_v54  ;;  %v1608_v18 = vmul.f32 %v1605_v0, %v6835_v56  ;;  %v1601_v29 = vadd.f32 %v1599_v42, %v1593_v6  ;;  %v1615_v44 = vmul.f32 %v1613_v28, %v6838_v10 }
 0x289   : > { %v6842_v28 = vperm.slane %v4290_v14, 2  ;;  %v6843_v0 = vperm.slane %v4293_v24, 2 }
 0x28a   : > { %v1653_v39 = vpop.permute.xlu2 %1652  ;;  %v1609_v22 = vadd.f32 %v1607_v40, %v1601_v29  ;;  %v1610_v26 = vadd.f32 %v1608_v18, %v1602_v2  ;;  %v6841_v40 = vperm.slane %v4293_v24, 1 }
 0x28b   : > { %v1631_v6 = vmul.f32 %v1629_v59, %v6842_v28  ;;  %v1632_v42 = vmul.f32 %v1629_v59, %v6843_v0  ;;  %v5075_v59 = vld [vmem:[%s6279_s8 + $0x4] sm:$0xf] }
 0x28c   : > { %v1617_v18 = vadd.f32 %v1615_v44, %v1609_v22  ;;  %v1618_v56 = vadd.f32 %v1616_v33, %v1610_v26  ;;  %v6845_v22 = vperm.slane %v4293_v24, 3 }
 0x28e   : > { %3572 = vset.pattern.permute.xlu2 %v6836_v60  ;;  %3610 = vset.pattern.permute.xlu0 %v6837_v15  ;;  %v1640_v26 = vmul.f32 %v1637_v51, %v6845_v22 }
 0x28f   : > { %3573 = vset.pattern.permute.xlu1 %v6837_v15  ;;  %1852 = vperm.xlu2 %3572, %v4909_v48  }
 0x290   : > { %2228 = vperm.xlu0 %3610, %v4957_v34   ;;  %1860 = vperm.xlu1 %3573, %v4909_v48   ;;  %v1621_v2 = vpop.permute.xlu1 %1620  ;;  %v1677_v29 = vpop.permute.xlu0 %1676  ;;  %v6844_v48 = vperm.slane %v4290_v14, 3  ;;  %v6846_v14 = vmov 1  }
 0x291   : > { %v1623_v52 = vmul.f32 %v1621_v2, %v6840_v45  ;;  %v1624_v50 = vmul.f32 %v1621_v2, %v6841_v40  ;;  %v1867_v2 = vld [vmem:[%s462_s27] sm:$0xf]  ;;  %v6847_v45 = vperm.slane %v4280_v23, 0  ;;  %v6848_v40 = vperm.slane %v4283_v55, 0 }
 0x292   : > { %v1639_v44 = vmul.f32 %v1637_v51, %v6844_v48  ;;  %v6851_v48 = vperm.slane %v4283_v55, 1 }
 0x293   : > { %v1625_v53 = vadd.f32 %v1623_v52, %v1617_v18  ;;  %v1626_v54 = vadd.f32 %v1624_v50, %v1618_v56 }
 0x294   : > { %v1669_v33 = vpop.permute.xlu2 %1668 }
 0x295   : > { %v1633_v10 = vadd.f32 %v1631_v6, %v1625_v53  ;;  %v1634_v3 = vadd.f32 %v1632_v42, %v1626_v54  ;;  %v6849_v42 = vmov 2   ;;  %v6850_v53 = vperm.slane %v4280_v23, 1 }
 0x297   : > { %3574 = vset.pattern.permute.xlu2 %v6799_v9  ;;  %v1641_v18 = vadd.f32 %v1639_v44, %v1633_v10  ;;  %v1642_v56 = vadd.f32 %v1640_v26, %v1634_v3  ;;  %v1655_v54 = vmul.f32 %v1653_v39, %v6850_v53  ;;  %v1656_v44 = vmul.f32 %v1653_v39, %v6851_v48 }
 0x298   : > { %3615 = vset.pattern.permute.xlu0 %v6781_v37  ;;  %3576 = vset.pattern.permute.xlu1 %v6846_v14  ;;  %v6854_v39 = vperm.slane %v4280_v23, 3 }
 0x299   : > { %1870 = vperm.xlu2 %3574, %v1867_v2   ;;  %2275 = vperm.xlu0 %3615, %v5075_v59   ;;  %v5081_v24 = vpop.permute.xlu0 %1716  ;;  %v6852_v2 = vperm.slane %v4280_v23, 2 }
 0x29a   : > { %1888 = vperm.xlu1 %3576, %v4957_v34   ;;  %v1645_v51 = vpop.permute.xlu1 %1644 }
 0x29b   : > { %v1647_v52 = vmul.f32 %v1645_v51, %v6847_v45  ;;  %v1648_v50 = vmul.f32 %v1645_v51, %v6848_v40  ;;  %v1671_v45 = vmul.f32 %v1669_v33, %v6854_v39  ;;  %v6861_v39 = vperm.slane %v4398_v27, 2 }
 0x29d   : > { %v1693_v28 = vpop.permute.xlu2 %1692  ;;  %v1649_v6 = vadd.f32 %v1647_v52, %v1641_v18  ;;  %v1650_v0 = vadd.f32 %v1648_v50, %v1642_v56  ;;  %v6853_v56 = vperm.slane %v4283_v55, 2  ;;  %v6855_v52 = vperm.slane %v4283_v55, 3 }
 0x29f   : > { %v1657_v10 = vadd.f32 %v1655_v54, %v1649_v6  ;;  %v1658_v3 = vadd.f32 %v1656_v44, %v1650_v0  ;;  %v1672_v40 = vmul.f32 %v1669_v33, %v6855_v52  ;;  %v6857_v6 = vperm.slane %v4398_v27, 0 }
 0x2a0   : > { %v6859_v33 = vperm.slane %v4398_v27, 1 }
 0x2a1   : > { %3577 = vset.pattern.permute.xlu2 %v6849_v42  ;;  %3620 = vset.pattern.permute.xlu0 %v6787_v7  ;;  %v1680_v0 = vmul.f32 %v1677_v29, %v6857_v6 }
 0x2a2   : > { %3578 = vset.pattern.permute.xlu1 %v6781_v37  ;;  %1898 = vperm.xlu2 %3577, %v4957_v34   ;;  %v6856_v37 = vperm.slane %v4395_v47, 0 }
 0x2a3   : > { %2315 = vperm.xlu0 %3620, %v5075_v59   ;;  %1908 = vperm.xlu1 %3578, %v4957_v34   ;;  %v5098_v22 = vpop.permute.xlu0 %1756  ;;  %v1661_v26 = vpop.permute.xlu1 %1660 }
 0x2a4   : > { %v1663_v18 = vmul.f32 %v1661_v26, %v6852_v2  ;;  %v1664_v51 = vmul.f32 %v1661_v26, %v6853_v56  ;;  %v1679_v15 = vmul.f32 %v1677_v29, %v6856_v37  ;;  %v6858_v37 = vperm.slane %v4395_v47, 1 }
 0x2a5   : > { %v6860_v56 = vperm.slane %v4395_v47, 2 }
 0x2a6   : > { %v1665_v50 = vadd.f32 %v1663_v18, %v1657_v10  ;;  %v1666_v53 = vadd.f32 %v1664_v51, %v1658_v3 }
 0x2a7   : > { %v1709_v48 = vpop.permute.xlu2 %1708  ;;  %v1695_v51 = vmul.f32 %v1693_v28, %v6860_v56 }
 0x2a8   : > { %v1673_v54 = vadd.f32 %v1671_v45, %v1665_v50  ;;  %v1674_v44 = vadd.f32 %v1672_v40, %v1666_v53  ;;  %v1696_v45 = vmul.f32 %v1693_v28, %v6861_v39  ;;  %v1711_v52 = vmul.f32 %v1709_v48, %v4592_v5 }
 0x2a9   : > { %v1712_v40 = vmul.f32 %v1709_v48, %v4594_v58  ;;  %v1719_v5 = vmul.f32 %v5081_v24, %v4620_v57  ;;  %v1720_v58 = vmul.f32 %v5081_v24, %v4622_v4  ;;  %v1525_v57 = vsel %vm502_vm2, %v4952_v63, %v4969_v46 }
 0x2aa   : > { %3579 = vset.pattern.permute.xlu2 %v6782_v21  ;;  %v1681_v26 = vadd.f32 %v1679_v15, %v1673_v54  ;;  %v1682_v2 = vadd.f32 %v1680_v0, %v1674_v44  ;;  %v6862_v54 = vperm.slane %v4395_v47, 3  ;;  %v6863_v44 = vperm.slane %v4398_v27, 3 }
 0x2ab   : > { %3625 = vset.pattern.permute.xlu0 %v6793_v31  ;;  %3581 = vset.pattern.permute.xlu1 %v6785_v30  ;;  %v1526_v4 = vsel %vm502_vm2, %v4969_v46, %v4952_v63 }
 0x2ac   : > { %1918 = vperm.xlu2 %3579, %v4957_v34   ;;  %2355 = vperm.xlu0 %3625, %v5075_v59   ;;  %v5117_v23 = vpop.permute.xlu0 %1796  ;;  %v5165_v56 = vmul.f32 %v1526_v4, %v4241_v36 }
 0x2ad   : > { %1938 = vperm.xlu1 %3581, %v4957_v34   ;;  %v1685_v55 = vpop.permute.xlu1 %1684 }
 0x2ae   : > { %v1687_v29 = vmul.f32 %v1685_v55, %v6858_v37  ;;  %v1688_v15 = vmul.f32 %v1685_v55, %v6859_v33 }
 0x2b0   : > { %v1733_v10 = vpop.permute.xlu2 %1732  ;;  %v1689_v3 = vadd.f32 %v1687_v29, %v1681_v26  ;;  %v1690_v18 = vadd.f32 %v1688_v15, %v1682_v2 }
 0x2b1   : > { %v1735_v39 = vmul.f32 %v1733_v10, %v4624_v8 }
 0x2b2   : > { %v1697_v6 = vadd.f32 %v1695_v51, %v1689_v3  ;;  %v1698_v0 = vadd.f32 %v1696_v45, %v1690_v18  ;;  %v5168_v51 = vmul.f32 %v1525_v57, %v4243_v62  ;;  %v1736_v45 = vmul.f32 %v1733_v10, %v4626_v32 }
 0x2b4   : > { %3582 = vset.pattern.permute.xlu2 %v6780_v43  ;;  %3630 = vset.pattern.permute.xlu0 %v6800_v35 }
 0x2b5   : > { %3583 = vset.pattern.permute.xlu1 %v6787_v7  ;;  %1948 = vperm.xlu2 %3582, %v4957_v34  }
 0x2b6   : > { %2395 = vperm.xlu0 %3630, %v5075_v59   ;;  %1958 = vperm.xlu1 %3583, %v4957_v34   ;;  %v5136_v50 = vpop.permute.xlu0 %1836  ;;  %v1701_v53 = vpop.permute.xlu1 %1700 }
 0x2b7   : > { %v1703_v28 = vmul.f32 %v1701_v53, %v6862_v54  ;;  %v1704_v26 = vmul.f32 %v1701_v53, %v6863_v44  ;;  %v6867_v54 = vperm.slane %v4425_v61, 0  ;;  %v6868_v44 = vperm.slane %v4422_v25, 1 }
 0x2b9   : > { %v1705_v48 = vadd.f32 %v1703_v28, %v1697_v6  ;;  %v1706_v2 = vadd.f32 %v1704_v26, %v1698_v0  ;;  %v6866_v6 = vperm.slane %v4422_v25, 0 }
 0x2ba   : > { %v1749_v55 = vpop.permute.xlu2 %1748 }
 0x2bb   : > { %v1713_v37 = vadd.f32 %v1711_v52, %v1705_v48  ;;  %v1714_v29 = vadd.f32 %v1712_v40, %v1706_v2  ;;  %v1751_v26 = vmul.f32 %v1749_v55, %v6868_v44 }
 0x2bd   : > { %3584 = vset.pattern.permute.xlu2 %v6788_v19  ;;  %v1721_v33 = vadd.f32 %v1719_v5, %v1713_v37  ;;  %v1722_v15 = vadd.f32 %v1720_v58, %v1714_v29  ;;  %v6869_v5 = vperm.slane %v4425_v61, 1  ;;  %v6870_v29 = vperm.slane %v4422_v25, 2 }
 0x2be   : > { %3635 = vset.pattern.permute.xlu0 %v6810_v1  ;;  %3586 = vset.pattern.permute.xlu1 %v6791_v11 }
 0x2bf   : > { %1968 = vperm.xlu2 %3584, %v4957_v34   ;;  %2435 = vperm.xlu0 %3635, %v5075_v59   ;;  %v5151_v47 = vpop.permute.xlu0 %1878  ;;  %v1752_v58 = vmul.f32 %v1749_v55, %v6869_v5 }
 0x2c0   : > { %1988 = vperm.xlu1 %3586, %v4957_v34   ;;  %v1725_v27 = vpop.permute.xlu1 %1724 }
 0x2c1   : > { %v1727_v24 = vmul.f32 %v1725_v27, %v4574_v41  ;;  %v1728_v3 = vmul.f32 %v1725_v27, %v4576_v49  ;;  %v5177_v41 = vperm.slane %v5165_v56, 1  ;;  %v5180_v49 = vperm.slane %v5168_v51, 1 }
 0x2c3   : > { %v1773_v18 = vpop.permute.xlu2 %1772  ;;  %v1729_v52 = vadd.f32 %v1727_v24, %v1721_v33  ;;  %v1730_v40 = vadd.f32 %v1728_v3, %v1722_v15  ;;  %6864 = vst [vmem:[#allocation12_spill] sm:$0xff] %v5177_v41  ;;  %v1759_v33 = vmul.f32 %v5098_v22, %v6870_v29  ;;  %v6871_v15 = vperm.slane %v4425_v61, 2  ;;  %v6881_v29 = vld [vmem:[#allocation56_spill] sm:$0xff] }
 0x2c4   : > { %6865 = vst [vmem:[#allocation19_spill] sm:$0xff] %v5180_v49 }
 0x2c5   : > { %v1737_v63 = vadd.f32 %v1735_v39, %v1729_v52  ;;  %v1738_v46 = vadd.f32 %v1736_v45, %v1730_v40  ;;  %v1760_v27 = vmul.f32 %v5098_v22, %v6871_v15  ;;  %v6872_v22 = vld [vmem:[#allocation5_spill] sm:$0xff]  ;;  %v6873_v45 = vld [vmem:[#allocation14_spill] sm:$0xff]  ;;  %v6883_v15 = vmov 17  }
 0x2c6   : > { %v1541_v52 = vsel %vm544_vm3, %v6873_v45, %v6872_v22  ;;  %v1542_v40 = vsel %vm544_vm3, %v6872_v22, %v6873_v45 }
 0x2c7   : > { %3587 = vset.pattern.permute.xlu2 %v6783_v16  ;;  %3640 = vset.pattern.permute.xlu0 %v6819_v13 }
 0x2c8   : > { %3588 = vset.pattern.permute.xlu1 %v6793_v31  ;;  %1998 = vperm.xlu2 %3587, %v4957_v34  }
 0x2c9   : > { %2475 = vperm.xlu0 %3640, %v5075_v59   ;;  %2008 = vperm.xlu1 %3588, %v4957_v34   ;;  %v1929_v8 = vpop.permute.xlu0 %1928  ;;  %v1741_v32 = vpop.permute.xlu1 %1740 }
 0x2ca   : > { %v5185_v10 = vmul.f32 %v5177_v41, %v1929_v8  ;;  %v5188_v53 = vmul.f32 %v5180_v49, %v1929_v8  ;;  %v1743_v0 = vmul.f32 %v1741_v32, %v6866_v6  ;;  %v1744_v28 = vmul.f32 %v1741_v32, %v6867_v54  ;;  %v6876_v6 = vld [vmem:[#allocation44_spill] sm:$0xff]  ;;  %v6877_v54 = vld [vmem:[#allocation45_spill] sm:$0xff] }
 0x2cb   : > { %v6874_v8 = vperm.slane %v4422_v25, 3  ;;  %v6915_v41 = vld [vmem:[#allocation52_spill] sm:$0xff] }
 0x2cc   : > { %v1745_v48 = vadd.f32 %v1743_v0, %v1737_v63  ;;  %v1746_v2 = vadd.f32 %v1744_v28, %v1738_v46  ;;  %v6875_v63 = vperm.slane %v4425_v61, 3  ;;  %v5225_v0 = vmul.f32 %v1542_v40, %v6876_v6  ;;  %v6893_v6 = vld [vmem:[#allocation47_spill] sm:$0xff] }
 0x2cd   : > { %v1789_v37 = vpop.permute.xlu2 %1788  ;;  %v5228_v28 = vmul.f32 %v1541_v52, %v6877_v54  ;;  %v6882_v61 = vperm.slane %v6881_v29, 0 }
 0x2ce   : > { %v1753_v57 = vadd.f32 %v1751_v26, %v1745_v48  ;;  %v1754_v4 = vadd.f32 %v1752_v58, %v1746_v2  ;;  %v5233_v58 = vld [vmem:[%s6279_s8 + $0x8] sm:$0xf]  ;;  %v6879_v48 = vld [vmem:[#allocation55_spill] sm:$0xff] }
 0x2cf   : > { %6878 = vst [vmem:[#allocation39_spill] sm:$0xff] %v5233_v58  ;;  %v6880_v25 = vperm.slane %v6879_v48, 0  ;;  %v6894_v62 = vperm.slane %v6879_v48, 3 }
 0x2d0   : > { %3589 = vset.pattern.permute.xlu2 %v6795_v17  ;;  %v1761_v24 = vadd.f32 %v1759_v33, %v1753_v57  ;;  %v1762_v3 = vadd.f32 %v1760_v27, %v1754_v4  ;;  %v1776_v33 = vmul.f32 %v1773_v18, %v6882_v61  ;;  %v6884_v27 = vld [vmem:[#allocation20_spill] sm:$0xff]  ;;  %v6885_v57 = vld [vmem:[#allocation6_spill] sm:$0xff]  ;;  %v6890_v61 = vperm.slane %v6879_v48, 2 }
 0x2d1   : > { %3645 = vset.pattern.permute.xlu0 %v6831_v12  ;;  %3591 = vset.pattern.permute.xlu1 %v6798_v38  ;;  %v1775_v2 = vmul.f32 %v1773_v18, %v6880_v25  ;;  %v1549_v4 = vsel %vm565_vm4, %v6885_v57, %v6884_v27  ;;  %v1550_v18 = vsel %vm565_vm4, %v6884_v27, %v6885_v57  ;;  %v6891_v57 = vperm.slane %v6881_v29, 2 }
 0x2d2   : > { %2018 = vperm.xlu2 %3589, %v4957_v34   ;;  %2515 = vperm.xlu0 %3645, %v5075_v59   ;;  %v5209_v55 = vpop.permute.xlu0 %1978  ;;  %v1791_v27 = vmul.f32 %v1789_v37, %v6890_v61 }
 0x2d3   : > { %2038 = vperm.xlu1 %3591, %v4957_v34   ;;  %v1765_v39 = vpop.permute.xlu1 %1764  ;;  %v1792_v54 = vmul.f32 %v1789_v37, %v6891_v57  ;;  %v6896_v37 = vmov 19  }
 0x2d4   : > { %v1767_v32 = vmul.f32 %v1765_v39, %v6874_v8  ;;  %v1768_v46 = vmul.f32 %v1765_v39, %v6875_v63 }
 0x2d6   : > { %v1813_v44 = vpop.permute.xlu2 %1812  ;;  %v1769_v26 = vadd.f32 %v1767_v32, %v1761_v24  ;;  %v1770_v5 = vadd.f32 %v1768_v46, %v1762_v3  ;;  %v5248_v24 = vperm.slane %v5225_v0, 3  ;;  %v5251_v3 = vperm.slane %v5228_v28, 3 }
 0x2d7   : > { %v6888_v32 = vperm.slane %v6879_v48, 1  ;;  %v6889_v46 = vperm.slane %v6881_v29, 1 }
 0x2d8   : > { %6886 = vst [vmem:[#allocation26_spill] sm:$0xff] %v5248_v24  ;;  %v1777_v45 = vadd.f32 %v1775_v2, %v1769_v26  ;;  %v1778_v52 = vadd.f32 %v1776_v33, %v1770_v5  ;;  %v6892_v2 = vld [vmem:[#allocation46_spill] sm:$0xff] }
 0x2d9   : > { %6887 = vst [vmem:[#allocation22_spill] sm:$0xff] %v5251_v3  ;;  %v5274_v33 = vmul.f32 %v1549_v4, %v6892_v2  ;;  %v6897_v4 = vmov 21  }
 0x2da   : > { %3592 = vset.pattern.permute.xlu2 %v6883_v15  ;;  %3650 = vset.pattern.permute.xlu0 %v6846_v14 }
 0x2db   : > { %3593 = vset.pattern.permute.xlu1 %v6800_v35  ;;  %2048 = vperm.xlu2 %3592, %v4957_v34  }
 0x2dc   : > { %2561 = vperm.xlu0 %3650, %v5233_v58   ;;  %2058 = vperm.xlu1 %3593, %v4957_v34   ;;  %v2029_v39 = vpop.permute.xlu0 %2028  ;;  %v1781_v22 = vpop.permute.xlu1 %1780 }
 0x2dd   : > { %v5260_v40 = vmul.f32 %v5248_v24, %v2029_v39  ;;  %v5263_v8 = vmul.f32 %v5251_v3, %v2029_v39  ;;  %v1783_v63 = vmul.f32 %v1781_v22, %v6888_v32  ;;  %v1784_v25 = vmul.f32 %v1781_v22, %v6889_v46  ;;  %v6914_v24 = vld [vmem:[#allocation51_spill] sm:$0xff] }
 0x2de   : > { %v5277_v39 = vmul.f32 %v1550_v18, %v6893_v6  ;;  %v1799_v32 = vmul.f32 %v5117_v23, %v6894_v62  ;;  %v6895_v22 = vperm.slane %v6881_v29, 3  ;;  %v5289_v18 = vperm.slane %v5274_v33, 0  ;;  %v6900_v29 = vld [vmem:[#allocation2_spill] sm:$0xff] }
 0x2df   : > { %v1785_v26 = vadd.f32 %v1783_v63, %v1777_v45  ;;  %v1786_v5 = vadd.f32 %v1784_v25, %v1778_v52  ;;  %v6901_v63 = vperm.slane %v6900_v29, 0 }
 0x2e0   : > { %v1800_v46 = vmul.f32 %v5117_v23, %v6895_v22  ;;  %v1829_v35 = vpop.permute.xlu2 %1828  ;;  %6898 = vst [vmem:[#allocation29_spill] sm:$0xff] %v5289_v18  ;;  %v5292_v62 = vperm.slane %v5277_v39, 0 }
 0x2e1   : > { %v1793_v61 = vadd.f32 %v1791_v27, %v1785_v26  ;;  %v1794_v36 = vadd.f32 %v1792_v54, %v1786_v5  ;;  %v6902_v27 = vld [vmem:[#allocation10_spill] sm:$0xff] }
 0x2e2   : > { %6899 = vst [vmem:[#allocation13_spill] sm:$0xff] %v5292_v62  ;;  %v6903_v57 = vperm.slane %v6902_v27, 0 }
 0x2e3   : > { %3594 = vset.pattern.permute.xlu2 %v6896_v37  ;;  %v1801_v45 = vadd.f32 %v1799_v32, %v1793_v61  ;;  %v1802_v52 = vadd.f32 %v1800_v46, %v1794_v36  ;;  %v6905_v46 = vmov 22   ;;  %v6906_v61 = vperm.slane %v6900_v29, 1 }
 0x2e4   : > { %3655 = vset.pattern.permute.xlu0 %v6785_v30  ;;  %3596 = vset.pattern.permute.xlu1 %v6897_v4 }
 0x2e5   : > { %2068 = vperm.xlu2 %3594, %v4957_v34   ;;  %2601 = vperm.xlu0 %3655, %v5233_v58   ;;  %v2079_v23 = vpop.permute.xlu0 %2078  ;;  %v1815_v6 = vmul.f32 %v1813_v44, %v6906_v61  ;;  %v6910_v61 = vperm.slane %v6900_v29, 2 }
 0x2e6   : > { %2088 = vperm.xlu1 %3596, %v4957_v34   ;;  %v5298_v54 = vmul.f32 %v5289_v18, %v2079_v23  ;;  %v5301_v36 = vmul.f32 %v5292_v62, %v2079_v23  ;;  %v1805_v48 = vpop.permute.xlu1 %1804  ;;  %v6907_v23 = vperm.slane %v6902_v27, 1  ;;  %v6912_v62 = vperm.slane %v6900_v29, 3 }
 0x2e7   : > { %v1807_v25 = vmul.f32 %v1805_v48, %v6901_v63  ;;  %v1808_v26 = vmul.f32 %v1805_v48, %v6903_v57  ;;  %v6908_v63 = vld [vmem:[#allocation8_spill] sm:$0xff]  ;;  %v6909_v48 = vld [vmem:[#allocation23_spill] sm:$0xff] }
 0x2e8   : > { %v1816_v2 = vmul.f32 %v1813_v44, %v6907_v23  ;;  %v1831_v18 = vmul.f32 %v1829_v35, %v6912_v62 }
 0x2e9   : > { %v5307_v5 = vpop.permute.xlu2 %1852  ;;  %v1809_v32 = vadd.f32 %v1807_v25, %v1801_v45  ;;  %v1810_v22 = vadd.f32 %v1808_v26, %v1802_v52  ;;  %v1565_v45 = vsel %vm607_vm6, %v6909_v48, %v6908_v63  ;;  %v1566_v52 = vsel %vm607_vm6, %v6908_v63, %v6909_v48 }
 0x2ea   : > { %6904 = vst [vmem:[#allocation25_spill] sm:$0xff] %v5307_v5  ;;  %v6913_v63 = vperm.slane %v6902_v27, 3  ;;  %v5338_v49 = vmul.f32 %v1565_v45, %v6914_v24  ;;  %v6939_v24 = vld [vmem:[#allocation17_spill] sm:$0xff] }
 0x2eb   : > { %v1817_v57 = vadd.f32 %v1815_v6, %v1809_v32  ;;  %v1818_v26 = vadd.f32 %v1816_v2, %v1810_v22  ;;  %v5341_v6 = vmul.f32 %v1566_v52, %v6915_v41  ;;  %v6917_v32 = vld [vmem:[#allocation28_spill] sm:$0xff]  ;;  %v6924_v52 = vmov 26  }
 0x2ec   : > { %v1832_v48 = vmul.f32 %v1829_v35, %v6913_v63  ;;  %v6918_v22 = vperm.slane %v6917_v32, 0  ;;  %v6929_v63 = vld [vmem:[#allocation16_spill] sm:$0xff] }
 0x2ed   : > { %3597 = vset.pattern.permute.xlu2 %v6905_v46  ;;  %3660 = vset.pattern.permute.xlu0 %v6791_v11 }
 0x2ee   : > { %3598 = vset.pattern.permute.xlu1 %v6810_v1  ;;  %2098 = vperm.xlu2 %3597, %v4957_v34   ;;  %v6911_v1 = vperm.slane %v6902_v27, 2 }
 0x2ef   : > { %2641 = vperm.xlu0 %3660, %v5233_v58   ;;  %2108 = vperm.xlu1 %3598, %v4957_v34   ;;  %v5327_v25 = vpop.permute.xlu0 %2128  ;;  %v1821_v44 = vpop.permute.xlu1 %1820 }
 0x2f0   : > { %v1823_v23 = vmul.f32 %v1821_v44, %v6910_v61  ;;  %v1824_v31 = vmul.f32 %v1821_v44, %v6911_v1  ;;  %v1839_v1 = vmul.f32 %v5136_v50, %v6918_v22  ;;  %v6919_v44 = vld [vmem:[#allocation15_spill] sm:$0xff]  ;;  %v5362_v61 = vperm.slane %v5341_v6, 2 }
 0x2f1   : > { %v6920_v29 = vperm.slane %v6919_v44, 0 }
 0x2f2   : > { %v1825_v7 = vadd.f32 %v1823_v23, %v1817_v57  ;;  %v1826_v3 = vadd.f32 %v1824_v31, %v1818_v26  ;;  %v6921_v57 = vmov 24   ;;  %v5359_v26 = vperm.slane %v5338_v49, 2  ;;  %6926 = vst [vmem:[#allocation38_spill] sm:$0xff] %v5362_v61  ;;  %v6928_v23 = vld [vmem:[#allocation3_spill] sm:$0xff] }
 0x2f3   : > { %v5343_v2 = vpop.permute.xlu2 %1870  ;;  %v1840_v62 = vmul.f32 %v5136_v50, %v6920_v29  ;;  %v1574_v22 = vsel %vm628_vm7, %v6928_v23, %v6929_v63  ;;  %v6930_v29 = vld [vmem:[#allocation53_spill] sm:$0xff] }
 0x2f4   : > { %6916 = vst [vmem:[#allocation24_spill] sm:$0xff] %v5343_v2  ;;  %v1833_v27 = vadd.f32 %v1831_v18, %v1825_v7  ;;  %v1834_v35 = vadd.f32 %v1832_v48, %v1826_v3  ;;  %v1573_v48 = vsel %vm628_vm7, %v6929_v63, %v6928_v23  ;;  %v6940_v2 = vld [vmem:[#allocation34_spill] sm:$0xff] }
 0x2f5   : > { %6925 = vst [vmem:[#allocation27_spill] sm:$0xff] %v5359_v26 }
 0x2f6   : > { %3599 = vset.pattern.permute.xlu2 %v6921_v57  ;;  %v5352_v31 = vadd.f32 %v1839_v1, %v1833_v27  ;;  %v5354_v45 = vadd.f32 %v1840_v62, %v1834_v35  ;;  %v5384_v62 = vmul.f32 %v1573_v48, %v6930_v29  ;;  %v6931_v27 = vld [vmem:[#allocation54_spill] sm:$0xff]  ;;  %v6938_v29 = vld [vmem:[#allocation4_spill] sm:$0xff] }
 0x2f7   : > { %3665 = vset.pattern.permute.xlu0 %v6798_v38  ;;  %3601 = vset.pattern.permute.xlu1 %v6924_v52  ;;  %v5387_v35 = vmul.f32 %v1574_v22, %v6931_v27 }
 0x2f8   : > { %6922 = vst [vmem:[#allocation50_spill] sm:$0xff] %v5352_v31  ;;  %2118 = vperm.xlu2 %3599, %v4957_v34   ;;  %2681 = vperm.xlu0 %3665, %v5233_v58   ;;  %v2179_v7 = vpop.permute.xlu0 %2178  ;;  %v5394_v41 = vperm.slane %v5384_v62, 3 }
 0x2f9   : > { %6923 = vst [vmem:[#allocation32_spill] sm:$0xff] %v5354_v45  ;;  %2138 = vperm.xlu1 %3601, %v4957_v34   ;;  %v5368_v50 = vmul.f32 %v5359_v26, %v2179_v7  ;;  %v5371_v3 = vmul.f32 %v5362_v61, %v2179_v7  ;;  %v5373_v18 = vpop.permute.xlu1 %1844  ;;  %v6932_v7 = vmov 27   ;;  %v5397_v23 = vperm.slane %v5387_v35, 3 }
 0x2fa   : > { %6927 = vst [vmem:[#allocation31_spill] sm:$0xff] %v5373_v18  ;;  %v1518_v61 = vsel %vm482_vm0, %v6938_v29, %v6939_v24  ;;  %v6951_v18 = vmov 32  }
 0x2fb   : > { %6933 = vst [vmem:[#allocation36_spill] sm:$0xff] %v5394_v41 }
 0x2fc   : > { %v1899_v1 = vpop.permute.xlu2 %1898  ;;  %6934 = vst [vmem:[#allocation37_spill] sm:$0xff] %v5397_v23 }
 0x300   : > { %3602 = vset.pattern.permute.xlu2 %v6932_v7  ;;  %3670 = vset.pattern.permute.xlu0 %v6897_v4  ;;  %v1519_v7 = vmul.f32 %v1518_v61, %v6940_v2 }
 0x301   : > { %3603 = vset.pattern.permute.xlu1 %v6819_v13  ;;  %2148 = vperm.xlu2 %3602, %v4957_v34   ;;  %v1517_v13 = vsel %vm482_vm0, %v6939_v24, %v6938_v29 }
 0x302   : > { %2721 = vperm.xlu0 %3670, %v5233_v58   ;;  %2158 = vperm.xlu1 %3603, %v4957_v34   ;;  %v2229_v63 = vpop.permute.xlu0 %2228  ;;  %v5401_v48 = vpop.permute.xlu1 %1860  ;;  %v5427_v29 = vperm.slane %v1519_v7, 1  ;;  %v5441_v45 = vperm.slane %v1519_v7, 2 }
 0x303   : > { %6935 = vst [vmem:[#allocation5_spill] sm:$0xff] %v5401_v48  ;;  %v5404_v22 = vmul.f32 %v5394_v41, %v2229_v63  ;;  %v5407_v27 = vmul.f32 %v5397_v23, %v2229_v63  ;;  %v6941_v48 = vld [vmem:[#allocation35_spill] sm:$0xff]  ;;  %v6942_v41 = vmov 29   ;;  %v6943_v63 = vmov 31  }
 0x304   : > { %v1520_v5 = vmul.f32 %v1517_v13, %v6941_v48  ;;  %6945 = vst [vmem:[#allocation20_spill] sm:$0xff] %v5427_v29  ;;  %v5431_v13 = vperm.slane %v1519_v7, 0 }
 0x305   : > { %6936 = vst [vmem:[#allocation14_spill] sm:$0xff] %v5404_v22 }
 0x306   : > { %6937 = vst [vmem:[#allocation55_spill] sm:$0xff] %v5407_v27  ;;  %v1919_v26 = vpop.permute.xlu2 %1918  ;;  %v5429_v61 = vperm.slane %v1520_v5, 1  ;;  %v5433_v48 = vperm.slane %v1520_v5, 0  ;;  %v5443_v31 = vperm.slane %v1520_v5, 2 }
 0x307   : > { %6947 = vst [vmem:[#allocation2_spill] sm:$0xff] %v5431_v13 }
 0x308   : > { %6946 = vst [vmem:[#allocation6_spill] sm:$0xff] %v5429_v61 }
 0x309   : > { %3604 = vset.pattern.permute.xlu2 %v6942_v41  ;;  %6948 = vst [vmem:[#allocation10_spill] sm:$0xff] %v5433_v48  ;;  %v1883_v41 = vmul.f32 %v5431_v13, %v5151_v47  ;;  %v5451_v13 = vperm.slane %v1520_v5, 3 }
 0x30a   : > { %3675 = vset.pattern.permute.xlu0 %v6924_v52  ;;  %3606 = vset.pattern.permute.xlu1 %v6943_v63  ;;  %6949 = vst [vmem:[#allocation8_spill] sm:$0xff] %v5441_v45 }
 0x30b   : > { %2168 = vperm.xlu2 %3604, %v4957_v34   ;;  %2761 = vperm.xlu0 %3675, %v5233_v58   ;;  %v5424_v23 = vpop.permute.xlu0 %2275  ;;  %6950 = vst [vmem:[#allocation23_spill] sm:$0xff] %v5443_v31 }
 0x30c   : > { %6944 = vst [vmem:[#allocation56_spill] sm:$0xff] %v5424_v23  ;;  %2188 = vperm.xlu1 %3606, %v4957_v34   ;;  %v1889_v24 = vpop.permute.xlu1 %1888  ;;  %v1884_v23 = vmul.f32 %v5433_v48, %v5151_v47  ;;  %v5456_v47 = vperm.slane %v5165_v56, 0 }
 0x30d   : > { %v1893_v2 = vmul.f32 %v5427_v29, %v1889_v24  ;;  %v1894_v27 = vmul.f32 %v5429_v61, %v1889_v24  ;;  %v1903_v29 = vmul.f32 %v5441_v45, %v1899_v1  ;;  %v1904_v24 = vmul.f32 %v5443_v31, %v1899_v1  ;;  %6952 = vst [vmem:[#allocation28_spill] sm:$0xff] %v5451_v13 }
 0x30e   : > { %v5449_v61 = vperm.slane %v1519_v7, 3  ;;  %6953 = vst [vmem:[#allocation3_spill] sm:$0xff] %v5456_v47 }
 0x30f   : > { %v1949_v22 = vpop.permute.xlu2 %1948  ;;  %v1895_v52 = vadd.f32 %v1893_v2, %v1883_v41  ;;  %v1896_v44 = vadd.f32 %v1894_v27, %v1884_v23  ;;  %v5459_v41 = vperm.slane %v5168_v51, 0 }
 0x311   : > { %6954 = vst [vmem:[#allocation16_spill] sm:$0xff] %v5459_v41  ;;  %v1905_v27 = vadd.f32 %v1903_v29, %v1895_v52  ;;  %v1906_v5 = vadd.f32 %v1904_v24, %v1896_v44  ;;  %v1924_v31 = vmul.f32 %v5459_v41, %v1919_v26 }
 0x313   : > { %3607 = vset.pattern.permute.xlu2 %v6951_v18  ;;  %3680 = vset.pattern.permute.xlu0 %v6943_v63 }
 0x314   : > { %3608 = vset.pattern.permute.xlu1 %v6831_v12  ;;  %2198 = vperm.xlu2 %3607, %v4957_v34   ;;  %v1923_v12 = vmul.f32 %v5456_v47, %v1919_v26 }
 0x315   : > { %2801 = vperm.xlu0 %3680, %v5233_v58   ;;  %2208 = vperm.xlu1 %3608, %v4957_v34   ;;  %v5463_v2 = vpop.permute.xlu0 %2315  ;;  %v1909_v1 = vpop.permute.xlu1 %1908 }
 0x316   : > { %6955 = vst [vmem:[#allocation4_spill] sm:$0xff] %v5463_v2  ;;  %v1913_v7 = vmul.f32 %v5449_v61, %v1909_v1  ;;  %v1914_v23 = vmul.f32 %v5451_v13, %v1909_v1  ;;  %v2239_v2 = vld [vmem:[%s6280_s9] sm:$0xf] }
 0x318   : > { %v1915_v45 = vadd.f32 %v1913_v7, %v1905_v27  ;;  %v1916_v18 = vadd.f32 %v1914_v23, %v1906_v5  ;;  %v6962_v5 = vld [vmem:[#allocation40_spill] sm:$0xff]  ;;  %v6963_v23 = vld [vmem:[#allocation41_spill] sm:$0xff] }
 0x319   : > { %v1969_v48 = vpop.permute.xlu2 %1968 }
 0x31a   : > { %v1925_v63 = vadd.f32 %v1923_v12, %v1915_v45  ;;  %v1926_v58 = vadd.f32 %v1924_v31, %v1916_v18  ;;  %v5480_v12 = vperm.slane %v5165_v56, 2  ;;  %v5483_v31 = vperm.slane %v5168_v51, 2 }
 0x31b   : > { %v5487_v45 = vperm.slane %v5165_v56, 3 }
 0x31c   : > { %3609 = vset.pattern.permute.xlu2 %v6836_v60  ;;  %v1935_v44 = vadd.f32 %v5185_v10, %v1925_v63  ;;  %v1936_v52 = vadd.f32 %v5188_v53, %v1926_v58  ;;  %6957 = vst [vmem:[#allocation57_spill] sm:$0xff] %v5483_v31  ;;  %v5490_v10 = vperm.slane %v5168_v51, 3  ;;  %v6960_v58 = vld [vmem:[#allocation18_spill] sm:$0xff] }
 0x31d   : > { %3611 = vset.pattern.permute.xlu1 %v6799_v9  ;;  %2218 = vperm.xlu2 %3609, %v4957_v34   ;;  %6958 = vst [vmem:[#allocation58_spill] sm:$0xff] %v5487_v45  ;;  %v6961_v34 = vld [vmem:[#allocation33_spill] sm:$0xff]  ;;  %v1953_v56 = vmul.f32 %v5487_v45, %v1949_v22 }
 0x31e   : > { %2242 = vperm.xlu1 %3611, %v2239_v2   ;;  %v5477_v26 = vpop.permute.xlu0 %2355  ;;  %3685 = vset.pattern.permute.xlu0 %v6799_v9  ;;  %6959 = vst [vmem:[#allocation59_spill] sm:$0xff] %v5490_v10  ;;  %v1533_v18 = vsel %vm523_vm1, %v6961_v34, %v6960_v58  ;;  %v1534_v63 = vsel %vm523_vm1, %v6960_v58, %v6961_v34 }
 0x31f   : > { %6956 = vst [vmem:[#allocation17_spill] sm:$0xff] %v5477_v26  ;;  %v1939_v53 = vpop.permute.xlu1 %1938  ;;  %v1954_v51 = vmul.f32 %v5490_v10, %v1949_v22  ;;  %v1535_v7 = vmul.f32 %v1534_v63, %v6962_v5  ;;  %v1536_v26 = vmul.f32 %v1533_v18, %v6963_v23 }
 0x320   : > { %v1943_v29 = vmul.f32 %v5480_v12, %v1939_v53  ;;  %v1944_v24 = vmul.f32 %v5483_v31, %v1939_v53 }
 0x321   : > { %v5509_v53 = vperm.slane %v1535_v7, 0  ;;  %v5511_v58 = vperm.slane %v1536_v26, 0  ;;  %v5518_v34 = vperm.slane %v1536_v26, 1 }
 0x322   : > { %v1945_v2 = vadd.f32 %v1943_v29, %v1935_v44  ;;  %v1946_v1 = vadd.f32 %v1944_v24, %v1936_v52  ;;  %v1999_v27 = vpop.permute.xlu2 %1998  ;;  %v5516_v52 = vperm.slane %v1535_v7, 1  ;;  %v5522_v29 = vperm.slane %v1535_v7, 2 }
 0x323   : > { %6964 = vst [vmem:[#allocation18_spill] sm:$0xff] %v5509_v53  ;;  %v5524_v24 = vperm.slane %v1536_v26, 2 }
 0x324   : > { %v1955_v41 = vadd.f32 %v1953_v56, %v1945_v2  ;;  %v1956_v47 = vadd.f32 %v1954_v51, %v1946_v1  ;;  %6965 = vst [vmem:[#allocation33_spill] sm:$0xff] %v5511_v58  ;;  %v1973_v56 = vmul.f32 %v5516_v52, %v1969_v48  ;;  %v1974_v51 = vmul.f32 %v5518_v34, %v1969_v48 }
 0x325   : > { %3612 = vset.pattern.permute.xlu2 %v6799_v9  ;;  %6967 = vst [vmem:[#allocation61_spill] sm:$0xff] %v5516_v52  ;;  %v1983_v5 = vmul.f32 %v5522_v29, %v5209_v55  ;;  %v5537_v48 = vperm.slane %v5274_v33, 3 }
 0x326   : > { %3613 = vset.pattern.permute.xlu1 %v6846_v14  ;;  %2251 = vperm.xlu2 %3612, %v5075_v59   ;;  %6968 = vst [vmem:[#allocation62_spill] sm:$0xff] %v5518_v34  ;;  %v1984_v14 = vmul.f32 %v5524_v24, %v5209_v55  ;;  %v5542_v55 = vperm.slane %v1535_v7, 3 }
 0x327   : > { %2259 = vperm.xlu1 %3613, %v5075_v59   ;;  %6969 = vst [vmem:[#allocation63_spill] sm:$0xff] %v5522_v29 }
 0x328   : > { %v5514_v22 = vpop.permute.xlu0 %2395  ;;  %v1959_v44 = vpop.permute.xlu1 %1958  ;;  %6970 = vst [vmem:[#allocation64_spill] sm:$0xff] %v5524_v24 }
 0x329   : > { %6966 = vst [vmem:[#allocation60_spill] sm:$0xff] %v5514_v22  ;;  %v1963_v18 = vmul.f32 %v5509_v53, %v1959_v44  ;;  %v1964_v63 = vmul.f32 %v5511_v58, %v1959_v44 }
 0x32a   : > { %6971 = vst [vmem:[#allocation65_spill] sm:$0xff] %v5537_v48 }
 0x32b   : > { %v1965_v2 = vadd.f32 %v1963_v18, %v1955_v41  ;;  %v1966_v1 = vadd.f32 %v1964_v63, %v1956_v47  ;;  %v5540_v47 = vperm.slane %v5277_v39, 3  ;;  %6973 = vst [vmem:[#allocation67_spill] sm:$0xff] %v5542_v55  ;;  %v5544_v18 = vperm.slane %v1536_v26, 3 }
 0x32c   : > { %v2019_v23 = vpop.permute.xlu2 %2018 }
 0x32d   : > { %v1975_v22 = vadd.f32 %v1973_v56, %v1965_v2  ;;  %v1976_v53 = vadd.f32 %v1974_v51, %v1966_v1  ;;  %6972 = vst [vmem:[#allocation66_spill] sm:$0xff] %v5540_v47 }
 0x32e   : > { %3614 = vset.pattern.permute.xlu2 %v6849_v42  ;;  %6974 = vst [vmem:[#allocation68_spill] sm:$0xff] %v5544_v18 }
 0x32f   : > { %3616 = vset.pattern.permute.xlu1 %v6782_v21  ;;  %2267 = vperm.xlu2 %3614, %v5075_v59   ;;  %v1985_v44 = vadd.f32 %v1983_v5, %v1975_v22  ;;  %v1986_v52 = vadd.f32 %v1984_v14, %v1976_v53  ;;  %v5553_v5 = vperm.slane %v5225_v0, 0  ;;  %v5556_v53 = vperm.slane %v5228_v28, 0 }
 0x330   : > { %2283 = vperm.xlu1 %3616, %v5075_v59  }
 0x331   : > { %v2436_v41 = vpop.permute.xlu0 %2435  ;;  %6977 = vst [vmem:[#allocation71_spill] sm:$0xff] %v5553_v5  ;;  %v2003_v26 = vmul.f32 %v5553_v5, %v1999_v27  ;;  %v2004_v51 = vmul.f32 %v5556_v53, %v1999_v27  ;;  %v5573_v27 = vperm.slane %v5338_v49, 0 }
 0x332   : > { %v5547_v63 = vmul.f32 %v2436_v41, %v5537_v48  ;;  %v5550_v56 = vmul.f32 %v2436_v41, %v5540_v47  ;;  %v1989_v14 = vpop.permute.xlu1 %1988  ;;  %6978 = vst [vmem:[#allocation72_spill] sm:$0xff] %v5556_v53  ;;  %v6979_v41 = vmov 5  }
 0x333   : > { %v1993_v22 = vmul.f32 %v5542_v55, %v1989_v14  ;;  %v1994_v7 = vmul.f32 %v5544_v18, %v1989_v14  ;;  %v5567_v55 = vperm.slane %v5225_v0, 1  ;;  %v5570_v14 = vperm.slane %v5228_v28, 1  ;;  %6982 = vst [vmem:[#allocation75_spill] sm:$0xff] %v5573_v27 }
 0x334   : > { %6975 = vst [vmem:[#allocation69_spill] sm:$0xff] %v5547_v63 }
 0x335   : > { %6976 = vst [vmem:[#allocation70_spill] sm:$0xff] %v5550_v56  ;;  %v1995_v2 = vadd.f32 %v1993_v22, %v1985_v44  ;;  %v1996_v1 = vadd.f32 %v1994_v7, %v1986_v52  ;;  %v2049_v63 = vpop.permute.xlu2 %2048  ;;  %v5576_v52 = vperm.slane %v5341_v6, 0  ;;  %v5579_v44 = vperm.slane %v5225_v0, 2 }
 0x336   : > { %6980 = vst [vmem:[#allocation73_spill] sm:$0xff] %v5567_v55  ;;  %v5582_v22 = vperm.slane %v5228_v28, 2 }
 0x337   : > { %3617 = vset.pattern.permute.xlu2 %v6979_v41  ;;  %v2005_v56 = vadd.f32 %v2003_v26, %v1995_v2  ;;  %v2006_v21 = vadd.f32 %v2004_v51, %v1996_v1  ;;  %6981 = vst [vmem:[#allocation74_spill] sm:$0xff] %v5570_v14  ;;  %v2023_v41 = vmul.f32 %v5579_v44, %v2019_v23 }
 0x338   : > { %3618 = vset.pattern.permute.xlu1 %v6785_v30  ;;  %2291 = vperm.xlu2 %3617, %v5075_v59   ;;  %6983 = vst [vmem:[#allocation76_spill] sm:$0xff] %v5576_v52  ;;  %v2024_v0 = vmul.f32 %v5582_v22, %v2019_v23  ;;  %v6990_v23 = vld [vmem:[#allocation7_spill] sm:$0xff] }
 0x339   : > { %2299 = vperm.xlu1 %3618, %v5075_v59   ;;  %6984 = vst [vmem:[#allocation77_spill] sm:$0xff] %v5579_v44 }
 0x33a   : > { %6985 = vst [vmem:[#allocation78_spill] sm:$0xff] %v5582_v22 }
 0x33b   : > { %v2476_v7 = vpop.permute.xlu0 %2475  ;;  %v2009_v26 = vpop.permute.xlu1 %2008 }
 0x33c   : > { %v5585_v51 = vmul.f32 %v2476_v7, %v5573_v27  ;;  %v5588_v2 = vmul.f32 %v2476_v7, %v5576_v52  ;;  %v2013_v1 = vmul.f32 %v5567_v55, %v2009_v26  ;;  %v2014_v30 = vmul.f32 %v5570_v14, %v2009_v26 }
 0x33e   : > { %6986 = vst [vmem:[#allocation79_spill] sm:$0xff] %v5585_v51  ;;  %v2015_v18 = vadd.f32 %v2013_v1, %v2005_v56  ;;  %v2016_v24 = vadd.f32 %v2014_v30, %v2006_v21  ;;  %v5604_v21 = vperm.slane %v5387_v35, 1 }
 0x33f   : > { %6987 = vst [vmem:[#allocation80_spill] sm:$0xff] %v5588_v2  ;;  %v2069_v28 = vpop.permute.xlu2 %2068  ;;  %v5601_v2 = vperm.slane %v5384_v62, 1 }
 0x340   : > { %v2025_v29 = vadd.f32 %v2023_v41, %v2015_v18  ;;  %v2026_v34 = vadd.f32 %v2024_v0, %v2016_v24  ;;  %3619 = vset.pattern.permute.xlu2 %v6780_v43  ;;  %6989 = vst [vmem:[#allocation82_spill] sm:$0xff] %v5604_v21  ;;  %v5607_v24 = vperm.slane %v6990_v23, 0  ;;  %v6992_v18 = vld [vmem:[#allocation11_spill] sm:$0xff] }
 0x341   : > { %3621 = vset.pattern.permute.xlu1 %v6788_v19  ;;  %2307 = vperm.xlu2 %3619, %v5075_v59   ;;  %6988 = vst [vmem:[#allocation81_spill] sm:$0xff] %v5601_v2  ;;  %v5610_v56 = vperm.slane %v6992_v18, 0 }
 0x342   : > { %2323 = vperm.xlu1 %3621, %v5075_v59   ;;  %v2035_v7 = vadd.f32 %v5260_v40, %v2025_v29  ;;  %v2036_v26 = vadd.f32 %v5263_v8, %v2026_v34  ;;  %6991 = vst [vmem:[#allocation7_spill] sm:$0xff] %v5607_v24  ;;  %v5619_v34 = vperm.slane %v6990_v23, 1  ;;  %v5622_v29 = vperm.slane %v6992_v18, 1 }
 0x343   : > { %6993 = vst [vmem:[#allocation11_spill] sm:$0xff] %v5610_v56 }
 0x344   : > { %v2516_v30 = vpop.permute.xlu0 %2515  ;;  %6996 = vst [vmem:[#allocation85_spill] sm:$0xff] %v5619_v34  ;;  %v2053_v51 = vmul.f32 %v5622_v29, %v2049_v63  ;;  %v2054_v19 = vmul.f32 %v5619_v34, %v2049_v63 }
 0x345   : > { %v5613_v41 = vmul.f32 %v2516_v30, %v5601_v2  ;;  %v5616_v40 = vmul.f32 %v2516_v30, %v5604_v21  ;;  %v2039_v8 = vpop.permute.xlu1 %2038  ;;  %6997 = vst [vmem:[#allocation86_spill] sm:$0xff] %v5622_v29  ;;  %v6998_v30 = vmov 10  }
 0x346   : > { %v2043_v1 = vmul.f32 %v5610_v56, %v2039_v8  ;;  %v2044_v0 = vmul.f32 %v5607_v24, %v2039_v8  ;;  %v5633_v56 = vperm.slane %v6990_v23, 2  ;;  %v5636_v8 = vperm.slane %v6992_v18, 2 }
 0x347   : > { %6994 = vst [vmem:[#allocation83_spill] sm:$0xff] %v5613_v41 }
 0x348   : > { %6995 = vst [vmem:[#allocation84_spill] sm:$0xff] %v5616_v40  ;;  %v2045_v22 = vadd.f32 %v2043_v1, %v2035_v7  ;;  %v2046_v41 = vadd.f32 %v2044_v0, %v2036_v26  ;;  %v2099_v44 = vpop.permute.xlu2 %2098  ;;  %v5639_v7 = vperm.slane %v6990_v23, 3  ;;  %v5642_v26 = vperm.slane %v6992_v18, 3 }
 0x349   : > { %3622 = vset.pattern.permute.xlu2 %v6998_v30 }
 0x34a   : > { %3623 = vset.pattern.permute.xlu1 %v6791_v11  ;;  %2331 = vperm.xlu2 %3622, %v5075_v59   ;;  %v2055_v40 = vadd.f32 %v2053_v51, %v2045_v22  ;;  %v2056_v14 = vadd.f32 %v2054_v19, %v2046_v41  ;;  %6999 = vst [vmem:[#allocation87_spill] sm:$0xff] %v5639_v7 }
 0x34b   : > { %2339 = vperm.xlu1 %3623, %v5075_v59   ;;  %7000 = vst [vmem:[#allocation88_spill] sm:$0xff] %v5642_v26  ;;  %v2073_v19 = vmul.f32 %v5642_v26, %v2069_v28  ;;  %v2074_v51 = vmul.f32 %v5639_v7, %v2069_v28 }
 0x34e   : > { %v2059_v63 = vpop.permute.xlu1 %2058 }
 0x34f   : > { %v2063_v1 = vmul.f32 %v5636_v8, %v2059_v63  ;;  %v2064_v22 = vmul.f32 %v5633_v56, %v2059_v63  ;;  %v5655_v63 = vperm.slane %v5274_v33, 1 }
 0x351   : > { %v2065_v41 = vadd.f32 %v2063_v1, %v2055_v40  ;;  %v2066_v0 = vadd.f32 %v2064_v22, %v2056_v14  ;;  %7001 = vst [vmem:[#allocation89_spill] sm:$0xff] %v5655_v63  ;;  %v5658_v14 = vperm.slane %v5277_v39, 1  ;;  %v5661_v40 = vperm.slane %v5274_v33, 2 }
 0x352   : > { %3624 = vset.pattern.permute.xlu2 %v6783_v16  ;;  %v2119_v11 = vpop.permute.xlu2 %2118  ;;  %v5664_v1 = vperm.slane %v5277_v39, 2 }
 0x353   : > { %v2075_v30 = vadd.f32 %v2073_v19, %v2065_v41  ;;  %v2076_v24 = vadd.f32 %v2074_v51, %v2066_v0  ;;  %3626 = vset.pattern.permute.xlu1 %v6795_v17  ;;  %2347 = vperm.xlu2 %3624, %v5075_v59   ;;  %7002 = vst [vmem:[#allocation90_spill] sm:$0xff] %v5658_v14  ;;  %v7007_v0 = vmov 15   ;;  %v7008_v17 = vld [vmem:[#allocation48_spill] sm:$0xff] }
 0x354   : > { %2363 = vperm.xlu1 %3626, %v5075_v59   ;;  %7003 = vst [vmem:[#allocation91_spill] sm:$0xff] %v5661_v40  ;;  %v2103_v33 = vmul.f32 %v5661_v40, %v2099_v44  ;;  %v2104_v51 = vmul.f32 %v5664_v1, %v2099_v44 }
 0x355   : > { %v2085_v23 = vadd.f32 %v5298_v54, %v2075_v30  ;;  %v2086_v18 = vadd.f32 %v5301_v36, %v2076_v24  ;;  %7004 = vst [vmem:[#allocation92_spill] sm:$0xff] %v5664_v1  ;;  %v7005_v54 = vld [vmem:[#allocation21_spill] sm:$0xff] }
 0x356   : > { %v7006_v30 = vld [vmem:[#allocation9_spill] sm:$0xff] }
 0x357   : > { %v1557_v36 = vsel %vm586_vm5, %v7006_v30, %v7005_v54  ;;  %v1558_v24 = vsel %vm586_vm5, %v7005_v54, %v7006_v30  ;;  %v7009_v54 = vld [vmem:[#allocation49_spill] sm:$0xff] }
 0x358   : > { %v2089_v28 = vpop.permute.xlu1 %2088  ;;  %v1559_v20 = vmul.f32 %v1557_v36, %v7008_v17  ;;  %v1560_v30 = vmul.f32 %v1558_v24, %v7009_v54 }
 0x359   : > { %v2093_v22 = vmul.f32 %v5655_v63, %v2089_v28  ;;  %v2094_v19 = vmul.f32 %v5658_v14, %v2089_v28 }
 0x35a   : > { %v5684_v26 = vperm.slane %v1559_v20, 0  ;;  %v5686_v44 = vperm.slane %v1560_v30, 0 }
 0x35b   : > { %v2095_v39 = vadd.f32 %v2093_v22, %v2085_v23  ;;  %v2096_v41 = vadd.f32 %v2094_v19, %v2086_v18  ;;  %3627 = vset.pattern.permute.xlu2 %v7007_v0  ;;  %v2149_v63 = vpop.permute.xlu2 %2148  ;;  %v5690_v22 = vperm.slane %v1559_v20, 1  ;;  %v5692_v19 = vperm.slane %v1560_v30, 1 }
 0x35c   : > { %3628 = vset.pattern.permute.xlu1 %v6798_v38  ;;  %2371 = vperm.xlu2 %3627, %v5075_v59  }
 0x35d   : > { %2379 = vperm.xlu1 %3628, %v5075_v59   ;;  %v2105_v28 = vadd.f32 %v2103_v33, %v2095_v39  ;;  %v2106_v14 = vadd.f32 %v2104_v51, %v2096_v41  ;;  %v2123_v33 = vmul.f32 %v5684_v26, %v2119_v11  ;;  %v2124_v51 = vmul.f32 %v5686_v44, %v2119_v11 }
 0x35e   : > { %v2134_v41 = vmul.f32 %v5692_v19, %v5327_v25 }
 0x361   : > { %v2109_v7 = vpop.permute.xlu1 %2108 }
 0x362   : > { %v2113_v23 = vmul.f32 %v5537_v48, %v2109_v7  ;;  %v2114_v18 = vmul.f32 %v5540_v47, %v2109_v7  ;;  %v2133_v7 = vmul.f32 %v5690_v22, %v5327_v25  ;;  %v7010_v48 = vmov 20  }
 0x364   : > { %v2115_v36 = vadd.f32 %v2113_v23, %v2105_v28  ;;  %v2116_v39 = vadd.f32 %v2114_v18, %v2106_v14  ;;  %3629 = vset.pattern.permute.xlu2 %v6883_v15  ;;  %v5704_v23 = vperm.slane %v1559_v20, 2  ;;  %v5706_v18 = vperm.slane %v1560_v30, 2 }
 0x365   : > { %3631 = vset.pattern.permute.xlu1 %v6896_v37  ;;  %2387 = vperm.xlu2 %3629, %v5075_v59   ;;  %v2169_v24 = vpop.permute.xlu2 %2168 }
 0x366   : > { %v2125_v54 = vadd.f32 %v2123_v33, %v2115_v36  ;;  %v2126_v17 = vadd.f32 %v2124_v51, %v2116_v39  ;;  %2403 = vperm.xlu1 %3631, %v5075_v59  }
 0x368   : > { %v2135_v11 = vadd.f32 %v2133_v7, %v2125_v54  ;;  %v2136_v28 = vadd.f32 %v2134_v41, %v2126_v17  ;;  %v5714_v54 = vperm.slane %v1559_v20, 3  ;;  %v5716_v17 = vperm.slane %v1560_v30, 3 }
 0x369   : > { %v5721_v7 = vperm.slane %v5338_v49, 1  ;;  %v5724_v41 = vperm.slane %v5341_v6, 1 }
 0x36a   : > { %7011 = vst [vmem:[#allocation21_spill] sm:$0xff] %v5714_v54  ;;  %v2153_v36 = vmul.f32 %v5714_v54, %v2149_v63  ;;  %v2154_v39 = vmul.f32 %v5716_v17, %v2149_v63 }
 0x36b   : > { %v2139_v14 = vpop.permute.xlu1 %2138  ;;  %7012 = vst [vmem:[#allocation9_spill] sm:$0xff] %v5716_v17 }
 0x36c   : > { %v2143_v38 = vmul.f32 %v5704_v23, %v2139_v14  ;;  %v2144_v47 = vmul.f32 %v5706_v18, %v2139_v14  ;;  %7013 = vst [vmem:[#allocation93_spill] sm:$0xff] %v5721_v7 }
 0x36d   : > { %3632 = vset.pattern.permute.xlu2 %v7010_v48  ;;  %7014 = vst [vmem:[#allocation94_spill] sm:$0xff] %v5724_v41 }
 0x36e   : > { %3633 = vset.pattern.permute.xlu1 %v6897_v4  ;;  %2411 = vperm.xlu2 %3632, %v5075_v59   ;;  %v2199_v25 = vpop.permute.xlu2 %2198  ;;  %v2145_v33 = vadd.f32 %v2143_v38, %v2135_v11  ;;  %v2146_v51 = vadd.f32 %v2144_v47, %v2136_v28  ;;  %v2173_v38 = vmul.f32 %v5721_v7, %v2169_v24  ;;  %v5735_v11 = vld [vmem:[%s6279_s8 + $0x4] sm:$0xf] }
 0x36f   : > { %2419 = vperm.xlu1 %3633, %v5075_v59   ;;  %v2174_v47 = vmul.f32 %v5724_v41, %v2169_v24 }
 0x370   : > { %v2155_v4 = vadd.f32 %v2153_v36, %v2145_v33  ;;  %v2156_v48 = vadd.f32 %v2154_v39, %v2146_v51  ;;  %v5748_v39 = vperm.slane %v5384_v62, 0 }
 0x372   : > { %7017 = vst [vmem:[#allocation97_spill] sm:$0xff] %v5748_v39 }
 0x374   : > { %v2159_v14 = vpop.permute.xlu1 %2158 }
 0x375   : > { %v2163_v20 = vmul.f32 %v5573_v27, %v2159_v14  ;;  %v2164_v59 = vmul.f32 %v5576_v52, %v2159_v14  ;;  %v5751_v14 = vperm.slane %v5387_v35, 0  ;;  %v2203_v52 = vmul.f32 %v5748_v39, %v2199_v25 }
 0x376   : > { %3634 = vset.pattern.permute.xlu2 %v6905_v46 }
 0x377   : > { %v2165_v63 = vadd.f32 %v2163_v20, %v2155_v4  ;;  %v2166_v30 = vadd.f32 %v2164_v59, %v2156_v48  ;;  %3636 = vset.pattern.permute.xlu1 %v6921_v57  ;;  %2427 = vperm.xlu2 %3634, %v5735_v11   ;;  %v2219_v28 = vpop.permute.xlu2 %2218  ;;  %v5742_v4 = vperm.slane %v5338_v49, 3  ;;  %v5745_v48 = vperm.slane %v5341_v6, 3  ;;  %7018 = vst [vmem:[#allocation98_spill] sm:$0xff] %v5751_v14 }
 0x378   : > { %2443 = vperm.xlu1 %3636, %v5735_v11   ;;  %v7019_v59 = vperm.slane %v6917_v32, 1  ;;  %v2204_v27 = vmul.f32 %v5751_v14, %v2199_v25  ;;  %v7030_v25 = vperm.slane %v6917_v32, 3 }
 0x379   : > { %v2175_v33 = vadd.f32 %v2173_v38, %v2165_v63  ;;  %v2176_v51 = vadd.f32 %v2174_v47, %v2166_v30  ;;  %7015 = vst [vmem:[#allocation95_spill] sm:$0xff] %v5742_v4  ;;  %v7020_v38 = vld [vmem:[#allocation31_spill] sm:$0xff]  ;;  %v7023_v30 = vmov 25  }
 0x37a   : > { %7016 = vst [vmem:[#allocation96_spill] sm:$0xff] %v5745_v48  ;;  %v1847_v47 = vmul.f32 %v7020_v38, %v7019_v59 }
 0x37b   : > { %v2185_v36 = vadd.f32 %v5368_v50, %v2175_v33  ;;  %v2186_v24 = vadd.f32 %v5371_v3, %v2176_v51  ;;  %v7021_v50 = vld [vmem:[#allocation15_spill] sm:$0xff]  ;;  %v7024_v33 = vmov 26  }
 0x37c   : > { %v7022_v63 = vperm.slane %v7021_v50, 1  ;;  %v7029_v46 = vperm.slane %v7021_v50, 2 }
 0x37e   : > { %v2189_v20 = vpop.permute.xlu1 %2188  ;;  %v1848_v3 = vmul.f32 %v7020_v38, %v7022_v63  ;;  %v7025_v38 = vld [vmem:[#allocation50_spill] sm:$0xff] }
 0x37f   : > { %v2193_v49 = vmul.f32 %v5742_v4, %v2189_v20  ;;  %v2194_v6 = vmul.f32 %v5745_v48, %v2189_v20  ;;  %3637 = vset.pattern.permute.xlu2 %v7023_v30  ;;  %v1849_v63 = vadd.f32 %v1847_v47, %v7025_v38  ;;  %v7026_v4 = vld [vmem:[#allocation32_spill] sm:$0xff]  ;;  %v7027_v30 = vperm.slane %v6917_v32, 2 }
 0x380   : > { %3638 = vset.pattern.permute.xlu1 %v7024_v33  ;;  %2451 = vperm.xlu2 %3637, %v5735_v11   ;;  %v2252_v51 = vpop.permute.xlu2 %2251  ;;  %v1850_v41 = vadd.f32 %v1848_v3, %v7026_v4  ;;  %v7028_v33 = vld [vmem:[#allocation25_spill] sm:$0xff]  ;;  %v7033_v32 = vmov 27  }
 0x381   : > { %v2195_v59 = vadd.f32 %v2193_v49, %v2185_v36  ;;  %v2196_v57 = vadd.f32 %v2194_v6, %v2186_v24  ;;  %2459 = vperm.xlu1 %3638, %v5735_v11   ;;  %v1855_v7 = vmul.f32 %v7028_v33, %v7027_v30  ;;  %v1856_v39 = vmul.f32 %v7028_v33, %v7029_v46  ;;  %v7031_v36 = vld [vmem:[#allocation5_spill] sm:$0xff] }
 0x382   : > { %v1863_v24 = vmul.f32 %v7031_v36, %v7030_v25  ;;  %v7032_v49 = vperm.slane %v7021_v50, 3  ;;  %v7034_v50 = vmov 29  }
 0x383   : > { %v2205_v20 = vadd.f32 %v2203_v52, %v2195_v59  ;;  %v2206_v48 = vadd.f32 %v2204_v27, %v2196_v57  ;;  %v1857_v6 = vadd.f32 %v1855_v7, %v1849_v63  ;;  %v1858_v4 = vadd.f32 %v1856_v39, %v1850_v41  ;;  %v7035_v63 = vld [vmem:[#allocation24_spill] sm:$0xff] }
 0x384   : > { %v1864_v47 = vmul.f32 %v7031_v36, %v7032_v49  ;;  %v5782_v57 = vperm.slane %v5384_v62, 2  ;;  %v5785_v27 = vperm.slane %v5387_v35, 2 }
 0x385   : > { %v1865_v30 = vadd.f32 %v1863_v24, %v1857_v6  ;;  %v7036_v24 = vld [vmem:[#allocation14_spill] sm:$0xff] }
 0x386   : > { %v1866_v33 = vadd.f32 %v1864_v47, %v1858_v4  ;;  %v2223_v41 = vmul.f32 %v5782_v57, %v2219_v28  ;;  %v2224_v62 = vmul.f32 %v5785_v27, %v2219_v28  ;;  %v7037_v47 = vld [vmem:[#allocation55_spill] sm:$0xff]  ;;  %v7038_v28 = vmov 30  }
 0x387   : > { %v2209_v52 = vpop.permute.xlu1 %2208  ;;  %v1873_v25 = vadd.f32 %v7035_v63, %v1865_v30  ;;  %v7041_v30 = vld [vmem:[#allocation19_spill] sm:$0xff] }
 0x388   : > { %v2213_v3 = vmul.f32 %v5601_v2, %v2209_v52  ;;  %v2214_v46 = vmul.f32 %v5604_v21, %v2209_v52  ;;  %3639 = vset.pattern.permute.xlu2 %v7033_v32  ;;  %v1874_v36 = vadd.f32 %v7035_v63, %v1866_v33 }
 0x389   : > { %3641 = vset.pattern.permute.xlu1 %v7034_v50  ;;  %2467 = vperm.xlu2 %3639, %v5735_v11   ;;  %v2268_v7 = vpop.permute.xlu2 %2267 }
 0x38a   : > { %v2215_v39 = vadd.f32 %v2213_v3, %v2205_v20  ;;  %v2216_v35 = vadd.f32 %v2214_v46, %v2206_v48  ;;  %2483 = vperm.xlu1 %3641, %v5735_v11   ;;  %v7039_v48 = vmov 31   ;;  %v7040_v3 = vld [vmem:[#allocation12_spill] sm:$0xff] }
 0x38c   : > { %v2225_v59 = vadd.f32 %v2223_v41, %v2215_v39  ;;  %v2226_v38 = vadd.f32 %v2224_v62, %v2216_v35  ;;  %v7042_v62 = vld [vmem:[#allocation2_spill] sm:$0xff] }
 0x38d   : > { %v2254_v39 = vmul.f32 %v2252_v51, %v7042_v62  ;;  %v7043_v35 = vld [vmem:[#allocation10_spill] sm:$0xff] }
 0x38e   : > { %v2235_v49 = vadd.f32 %v7036_v24, %v2225_v59  ;;  %v2236_v6 = vadd.f32 %v7037_v47, %v2226_v38  ;;  %v2255_v59 = vmul.f32 %v2252_v51, %v7043_v35  ;;  %v7044_v38 = vld [vmem:[#allocation20_spill] sm:$0xff]  ;;  %v7046_v24 = vmov 32  }
 0x38f   : > { %v7047_v51 = vld [vmem:[#allocation8_spill] sm:$0xff] }
 0x390   : > { %v5799_v4 = vpop.permute.xlu1 %2242  ;;  %v5801_v52 = vadd.f32 %v2235_v49, %v1873_v25  ;;  %v5803_v21 = vadd.f32 %v2236_v6, %v1874_v36  ;;  %v7045_v25 = vld [vmem:[#allocation6_spill] sm:$0xff]  ;;  %v2270_v2 = vmul.f32 %v2268_v7, %v7047_v51 }
 0x391   : > { %3642 = vset.pattern.permute.xlu2 %v7038_v28 }
 0x392   : > { %3643 = vset.pattern.permute.xlu1 %v7039_v48  ;;  %2491 = vperm.xlu2 %3642, %v5735_v11   ;;  %v2292_v20 = vpop.permute.xlu2 %2291 }
 0x393   : > { %v2294_v46 = vmul.f32 %v2292_v20, %v7040_v3  ;;  %v2295_v33 = vmul.f32 %v2292_v20, %v7041_v30  ;;  %2499 = vperm.xlu1 %3643, %v5735_v11   ;;  %v7048_v30 = vld [vmem:[#allocation23_spill] sm:$0xff] }
 0x394   : > { %v2271_v3 = vmul.f32 %v2268_v7, %v7048_v30  ;;  %v7052_v7 = vmov 35  }
 0x399   : > { %v2260_v41 = vpop.permute.xlu1 %2259 }
 0x39a   : > { %v2262_v63 = vmul.f32 %v2260_v41, %v7044_v38  ;;  %v2263_v36 = vmul.f32 %v2260_v41, %v7045_v25  ;;  %3644 = vset.pattern.permute.xlu2 %v7046_v24  ;;  %v7049_v38 = vld [vmem:[#allocation56_spill] sm:$0xff] }
 0x39b   : > { %3646 = vset.pattern.permute.xlu1 %v6836_v60  ;;  %2507 = vperm.xlu2 %3644, %v5735_v11   ;;  %v2308_v49 = vpop.permute.xlu2 %2307  ;;  %v2278_v60 = vmul.f32 %v7049_v38, %v5449_v61  ;;  %v2279_v35 = vmul.f32 %v7049_v38, %v5451_v13 }
 0x39c   : > { %v2264_v47 = vadd.f32 %v2262_v63, %v2254_v39  ;;  %v2265_v6 = vadd.f32 %v2263_v36, %v2255_v59  ;;  %v2310_v20 = vmul.f32 %v2308_v49, %v5487_v45  ;;  %v2311_v48 = vmul.f32 %v2308_v49, %v5490_v10  ;;  %2523 = vperm.xlu1 %3646, %v5735_v11   ;;  %v3406_v59 = vld [vmem:[%s6280_s9 + $0x4] sm:$0xf]  ;;  %v7050_v49 = vld [vmem:[#allocation3_spill] sm:$0xff]  ;;  %v7051_v45 = vld [vmem:[#allocation16_spill] sm:$0xff] }
 0x39e   : > { %v2272_v41 = vadd.f32 %v2270_v2, %v2264_v47  ;;  %v2273_v25 = vadd.f32 %v2271_v3, %v2265_v6 }
 0x3a0   : > { %v2280_v63 = vadd.f32 %v2278_v60, %v2272_v41  ;;  %v2281_v36 = vadd.f32 %v2279_v35, %v2273_v25  ;;  %v7053_v25 = vld [vmem:[#allocation39_spill] sm:$0xff] }
 0x3a2   : > { %v2284_v39 = vpop.permute.xlu1 %2283 }
 0x3a3   : > { %v2286_v10 = vmul.f32 %v2284_v39, %v7050_v49  ;;  %v2287_v51 = vmul.f32 %v2284_v39, %v7051_v45  ;;  %3647 = vset.pattern.permute.xlu2 %v7052_v7 }
 0x3a4   : > { %3648 = vset.pattern.permute.xlu1 %v6799_v9  ;;  %2531 = vperm.xlu2 %3647, %v5735_v11   ;;  %v2332_v2 = vpop.permute.xlu2 %2331 }
 0x3a5   : > { %v2288_v3 = vadd.f32 %v2286_v10, %v2280_v63  ;;  %v2289_v38 = vadd.f32 %v2287_v51, %v2281_v36  ;;  %2544 = vperm.xlu1 %3648, %v3406_v59   ;;  %v7054_v59 = vld [vmem:[#allocation18_spill] sm:$0xff]  ;;  %v7055_v63 = vld [vmem:[#allocation4_spill] sm:$0xff] }
 0x3a6   : > { %v2319_v36 = vmul.f32 %v7055_v63, %v5511_v58  ;;  %v7062_v58 = vld [vmem:[#allocation26_spill] sm:$0xff] }
 0x3a7   : > { %v2296_v47 = vadd.f32 %v2294_v46, %v2288_v3  ;;  %v2297_v6 = vadd.f32 %v2295_v33, %v2289_v38 }
 0x3ab   : > { %v2300_v13 = vpop.permute.xlu1 %2299 }
 0x3ac   : > { %v2302_v60 = vmul.f32 %v2300_v13, %v5480_v12  ;;  %v2303_v35 = vmul.f32 %v2300_v13, %v5483_v31  ;;  %3649 = vset.pattern.permute.xlu2 %v6799_v9  ;;  %v2318_v13 = vmul.f32 %v7055_v63, %v7054_v59  ;;  %v7056_v31 = vld [vmem:[#allocation61_spill] sm:$0xff] }
 0x3ad   : > { %3651 = vset.pattern.permute.xlu1 %v6849_v42  ;;  %2553 = vperm.xlu2 %3649, %v7053_v25   ;;  %v2348_v41 = vpop.permute.xlu2 %2347 }
 0x3ae   : > { %v2304_v39 = vadd.f32 %v2302_v60, %v2296_v47  ;;  %v2305_v11 = vadd.f32 %v2303_v35, %v2297_v6  ;;  %v2350_v10 = vmul.f32 %v2348_v41, %v5553_v5  ;;  %v2351_v51 = vmul.f32 %v2348_v41, %v5556_v53  ;;  %2569 = vperm.xlu1 %3651, %v7053_v25   ;;  %v7057_v6 = vld [vmem:[#allocation62_spill] sm:$0xff]  ;;  %v7059_v41 = vld [vmem:[#allocation63_spill] sm:$0xff]  ;;  %v7060_v5 = vld [vmem:[#allocation64_spill] sm:$0xff] }
 0x3af   : > { %v7058_v35 = vmov 3   ;;  %v2334_v53 = vmul.f32 %v2332_v2, %v7059_v41 }
 0x3b0   : > { %v2312_v46 = vadd.f32 %v2310_v20, %v2304_v39  ;;  %v2313_v33 = vadd.f32 %v2311_v48, %v2305_v11  ;;  %v2335_v20 = vmul.f32 %v2332_v2, %v7060_v5  ;;  %v7061_v48 = vmov 4  }
 0x3b2   : > { %v2320_v38 = vadd.f32 %v2318_v13, %v2312_v46  ;;  %v2321_v9 = vadd.f32 %v2319_v36, %v2313_v33  ;;  %v7063_v33 = vld [vmem:[#allocation22_spill] sm:$0xff] }
 0x3b3   : > { %v5859_v36 = vld [vmem:[%s6279_s8 + $0x8] sm:$0xf] }
 0x3b4   : > { %v2324_v3 = vpop.permute.xlu1 %2323 }
 0x3b5   : > { %v2326_v47 = vmul.f32 %v2324_v3, %v7056_v31  ;;  %v2327_v60 = vmul.f32 %v2324_v3, %v7057_v6  ;;  %3652 = vset.pattern.permute.xlu2 %v7058_v35  ;;  %v7073_v6 = vld [vmem:[#allocation29_spill] sm:$0xff] }
 0x3b6   : > { %3653 = vset.pattern.permute.xlu1 %v7061_v48  ;;  %2577 = vperm.xlu2 %3652, %v7053_v25   ;;  %v2372_v39 = vpop.permute.xlu2 %2371  ;;  %v7064_v48 = vld [vmem:[#allocation67_spill] sm:$0xff]  ;;  %v7065_v25 = vld [vmem:[#allocation68_spill] sm:$0xff] }
 0x3b7   : > { %v2328_v11 = vadd.f32 %v2326_v47, %v2320_v38  ;;  %v2329_v63 = vadd.f32 %v2327_v60, %v2321_v9  ;;  %v2374_v46 = vmul.f32 %v2372_v39, %v7062_v58  ;;  %v2375_v13 = vmul.f32 %v2372_v39, %v7063_v33  ;;  %2585 = vperm.xlu1 %3653, %v5859_v36  }
 0x3b8   : > { %v7066_v38 = vmov 5  }
 0x3b9   : > { %v2336_v3 = vadd.f32 %v2334_v53, %v2328_v11  ;;  %v2337_v2 = vadd.f32 %v2335_v20, %v2329_v63  ;;  %v7067_v53 = vld [vmem:[#allocation17_spill] sm:$0xff]  ;;  %v7068_v11 = vld [vmem:[#allocation74_spill] sm:$0xff] }
 0x3ba   : > { %v2358_v20 = vmul.f32 %v7067_v53, %v5567_v55 }
 0x3bd   : > { %v2340_v35 = vpop.permute.xlu1 %2339 }
 0x3be   : > { %v2342_v5 = vmul.f32 %v2340_v35, %v7064_v48  ;;  %v2343_v41 = vmul.f32 %v2340_v35, %v7065_v25  ;;  %3654 = vset.pattern.permute.xlu2 %v7066_v38  ;;  %v2359_v35 = vmul.f32 %v7067_v53, %v7068_v11  ;;  %v7069_v48 = vld [vmem:[#allocation77_spill] sm:$0xff] }
 0x3bf   : > { %3656 = vset.pattern.permute.xlu1 %v6780_v43  ;;  %2593 = vperm.xlu2 %3654, %v5859_v36   ;;  %v2388_v9 = vpop.permute.xlu2 %2387 }
 0x3c0   : > { %v2344_v47 = vadd.f32 %v2342_v5, %v2336_v3  ;;  %v2345_v60 = vadd.f32 %v2343_v41, %v2337_v2  ;;  %v2390_v39 = vmul.f32 %v2388_v9, %v5622_v29  ;;  %v2391_v33 = vmul.f32 %v2388_v9, %v5619_v34  ;;  %2609 = vperm.xlu1 %3656, %v5859_v36   ;;  %v7070_v41 = vld [vmem:[#allocation78_spill] sm:$0xff] }
 0x3c1   : > { %v7071_v2 = vmov 8   ;;  %v7072_v9 = vmov 9  }
 0x3c2   : > { %v2352_v63 = vadd.f32 %v2350_v10, %v2344_v47  ;;  %v2353_v38 = vadd.f32 %v2351_v51, %v2345_v60  ;;  %v7074_v10 = vld [vmem:[#allocation13_spill] sm:$0xff] }
 0x3c4   : > { %v2360_v43 = vadd.f32 %v2358_v20, %v2352_v63  ;;  %v2361_v58 = vadd.f32 %v2359_v35, %v2353_v38  ;;  %v7075_v20 = vld [vmem:[#allocation11_spill] sm:$0xff] }
 0x3c5   : > { %v7076_v35 = vld [vmem:[#allocation7_spill] sm:$0xff] }
 0x3c6   : > { %v2364_v25 = vpop.permute.xlu1 %2363 }
 0x3c7   : > { %v2366_v5 = vmul.f32 %v2364_v25, %v7069_v48  ;;  %v2367_v3 = vmul.f32 %v2364_v25, %v7070_v41  ;;  %3657 = vset.pattern.permute.xlu2 %v7071_v2  ;;  %v7077_v2 = vmov 10  }
 0x3c8   : > { %3658 = vset.pattern.permute.xlu1 %v7072_v9  ;;  %2617 = vperm.xlu2 %3657, %v5859_v36   ;;  %v2412_v34 = vpop.permute.xlu2 %2411 }
 0x3c9   : > { %v2368_v29 = vadd.f32 %v2366_v5, %v2360_v43  ;;  %v2369_v55 = vadd.f32 %v2367_v3, %v2361_v58  ;;  %v2414_v53 = vmul.f32 %v2412_v34, %v7073_v6  ;;  %v2415_v51 = vmul.f32 %v2412_v34, %v7074_v10  ;;  %2625 = vperm.xlu1 %3658, %v5859_v36   ;;  %v7079_v10 = vld [vmem:[#allocation88_spill] sm:$0xff] }
 0x3cb   : > { %v2376_v38 = vadd.f32 %v2374_v46, %v2368_v29  ;;  %v2377_v47 = vadd.f32 %v2375_v13, %v2369_v55  ;;  %v7078_v55 = vld [vmem:[#allocation60_spill] sm:$0xff] }
 0x3cc   : > { %v2398_v29 = vmul.f32 %v7078_v55, %v5636_v8  ;;  %v2399_v46 = vmul.f32 %v7078_v55, %v5633_v56 }
 0x3cf   : > { %v2380_v60 = vpop.permute.xlu1 %2379 }
 0x3d0   : > { %v2382_v25 = vmul.f32 %v2380_v60, %v7075_v20  ;;  %v2383_v63 = vmul.f32 %v2380_v60, %v7076_v35  ;;  %3659 = vset.pattern.permute.xlu2 %v7077_v2 }
 0x3d1   : > { %3661 = vset.pattern.permute.xlu1 %v6783_v16  ;;  %2633 = vperm.xlu2 %3659, %v5859_v36   ;;  %v2428_v43 = vpop.permute.xlu2 %2427 }
 0x3d2   : > { %v2384_v58 = vadd.f32 %v2382_v25, %v2376_v38  ;;  %v2385_v5 = vadd.f32 %v2383_v63, %v2377_v47  ;;  %v2430_v34 = vmul.f32 %v2428_v43, %v5661_v40  ;;  %v2431_v3 = vmul.f32 %v2428_v43, %v5664_v1  ;;  %2649 = vperm.xlu1 %3661, %v5859_v36   ;;  %v7080_v47 = vld [vmem:[#allocation87_spill] sm:$0xff] }
 0x3d3   : > { %v7081_v63 = vmov 13   ;;  %v7082_v43 = vmov 14  }
 0x3d4   : > { %v2392_v13 = vadd.f32 %v2390_v39, %v2384_v58  ;;  %v2393_v60 = vadd.f32 %v2391_v33, %v2385_v5  ;;  %v7083_v5 = vld [vmem:[#allocation89_spill] sm:$0xff] }
 0x3d6   : > { %v2400_v16 = vadd.f32 %v2398_v29, %v2392_v13  ;;  %v2401_v9 = vadd.f32 %v2399_v46, %v2393_v60  ;;  %v7084_v29 = vld [vmem:[#allocation90_spill] sm:$0xff] }
 0x3d8   : > { %v2404_v2 = vpop.permute.xlu1 %2403 }
 0x3d9   : > { %v2406_v38 = vmul.f32 %v2404_v2, %v7079_v10  ;;  %v2407_v25 = vmul.f32 %v2404_v2, %v7080_v47  ;;  %3662 = vset.pattern.permute.xlu2 %v7081_v63 }
 0x3da   : > { %3663 = vset.pattern.permute.xlu1 %v7082_v43  ;;  %2657 = vperm.xlu2 %3662, %v5859_v36   ;;  %v2452_v1 = vpop.permute.xlu2 %2451  ;;  %v7087_v43 = vmov 18  }
 0x3db   : > { %v2408_v40 = vadd.f32 %v2406_v38, %v2400_v16  ;;  %v2409_v6 = vadd.f32 %v2407_v25, %v2401_v9  ;;  %2665 = vperm.xlu1 %3663, %v5859_v36  }
 0x3dd   : > { %v2416_v39 = vadd.f32 %v2414_v53, %v2408_v40  ;;  %v2417_v33 = vadd.f32 %v2415_v51, %v2409_v6  ;;  %v7085_v40 = vld [vmem:[#allocation69_spill] sm:$0xff]  ;;  %v7086_v53 = vld [vmem:[#allocation70_spill] sm:$0xff] }
 0x3e1   : > { %v2420_v58 = vpop.permute.xlu1 %2419 }
 0x3e2   : > { %v2422_v55 = vmul.f32 %v2420_v58, %v7083_v5  ;;  %v2423_v46 = vmul.f32 %v2420_v58, %v7084_v29  ;;  %3664 = vset.pattern.permute.xlu2 %v7007_v0 }
 0x3e3   : > { %3666 = vset.pattern.permute.xlu1 %v6883_v15  ;;  %2673 = vperm.xlu2 %3664, %v5859_v36   ;;  %v2468_v2 = vpop.permute.xlu2 %2467  ;;  %v2454_v15 = vmul.f32 %v2452_v1, %v5690_v22 }
 0x3e4   : > { %v2424_v13 = vadd.f32 %v2422_v55, %v2416_v39  ;;  %v2425_v60 = vadd.f32 %v2423_v46, %v2417_v33  ;;  %2689 = vperm.xlu1 %3666, %v5859_v36   ;;  %v2455_v39 = vmul.f32 %v2452_v1, %v5692_v19  ;;  %v7088_v55 = vld [vmem:[#allocation27_spill] sm:$0xff] }
 0x3e6   : > { %v2432_v16 = vadd.f32 %v2430_v34, %v2424_v13  ;;  %v2433_v9 = vadd.f32 %v2431_v3, %v2425_v60  ;;  %v7089_v13 = vld [vmem:[#allocation38_spill] sm:$0xff] }
 0x3e8   : > { %v2440_v6 = vadd.f32 %v7085_v40, %v2432_v16  ;;  %v2441_v51 = vadd.f32 %v7086_v53, %v2433_v9 }
 0x3ea   : > { %v2444_v38 = vpop.permute.xlu1 %2443 }
 0x3eb   : > { %v2446_v25 = vmul.f32 %v2444_v38, %v5684_v26  ;;  %v2447_v58 = vmul.f32 %v2444_v38, %v5686_v44  ;;  %3667 = vset.pattern.permute.xlu2 %v7087_v43  ;;  %v7090_v38 = vmov 20   ;;  %v7094_v43 = vld [vmem:[#allocation80_spill] sm:$0xff] }
 0x3ec   : > { %3668 = vset.pattern.permute.xlu1 %v6896_v37  ;;  %2697 = vperm.xlu2 %3667, %v5859_v36   ;;  %v2492_v34 = vpop.permute.xlu2 %2491  ;;  %v2470_v37 = vmul.f32 %v2468_v2, %v5714_v54  ;;  %v7097_v54 = vmov 23  }
 0x3ed   : > { %v2448_v3 = vadd.f32 %v2446_v25, %v2440_v6  ;;  %v2449_v33 = vadd.f32 %v2447_v58, %v2441_v51  ;;  %v2494_v46 = vmul.f32 %v2492_v34, %v7088_v55  ;;  %v2495_v60 = vmul.f32 %v2492_v34, %v7089_v13  ;;  %2705 = vperm.xlu1 %3668, %v5859_v36   ;;  %v7095_v13 = vld [vmem:[#allocation93_spill] sm:$0xff]  ;;  %v7096_v55 = vld [vmem:[#allocation94_spill] sm:$0xff] }
 0x3ee   : > { %v2471_v6 = vmul.f32 %v2468_v2, %v5716_v17  ;;  %v7091_v51 = vmov 22  }
 0x3ef   : > { %v2456_v16 = vadd.f32 %v2454_v15, %v2448_v3  ;;  %v2457_v9 = vadd.f32 %v2455_v39, %v2449_v33  ;;  %v7092_v15 = vld [vmem:[#allocation97_spill] sm:$0xff] }
 0x3f3   : > { %v2460_v40 = vpop.permute.xlu1 %2459 }
 0x3f4   : > { %v2462_v53 = vmul.f32 %v2460_v40, %v5704_v23  ;;  %v2463_v1 = vmul.f32 %v2460_v40, %v5706_v18  ;;  %3669 = vset.pattern.permute.xlu2 %v7090_v38  ;;  %v7093_v38 = vld [vmem:[#allocation79_spill] sm:$0xff] }
 0x3f5   : > { %3671 = vset.pattern.permute.xlu1 %v7091_v51  ;;  %2713 = vperm.xlu2 %3669, %v5859_v36   ;;  %v2508_v25 = vpop.permute.xlu2 %2507 }
 0x3f6   : > { %v2464_v58 = vadd.f32 %v2462_v53, %v2456_v16  ;;  %v2465_v34 = vadd.f32 %v2463_v1, %v2457_v9  ;;  %v2510_v39 = vmul.f32 %v2508_v25, %v7092_v15  ;;  %v2511_v3 = vmul.f32 %v2508_v25, %v5751_v14  ;;  %2729 = vperm.xlu1 %3671, %v5859_v36   ;;  %v7100_v25 = vld [vmem:[#allocation37_spill] sm:$0xff] }
 0x3f7   : > { %v7098_v16 = vmov 24   ;;  %v7103_v14 = vmov 25  }
 0x3f8   : > { %v2472_v33 = vadd.f32 %v2470_v37, %v2464_v58  ;;  %v2473_v40 = vadd.f32 %v2471_v6, %v2465_v34  ;;  %v7099_v37 = vld [vmem:[#allocation36_spill] sm:$0xff] }
 0x3fa   : > { %v2480_v0 = vadd.f32 %v7093_v38, %v2472_v33  ;;  %v2481_v63 = vadd.f32 %v7094_v43, %v2473_v40  ;;  %v7101_v33 = vld [vmem:[#allocation95_spill] sm:$0xff] }
 0x3fc   : > { %v2484_v2 = vpop.permute.xlu1 %2483 }
 0x3fd   : > { %v2486_v51 = vmul.f32 %v2484_v2, %v7095_v13  ;;  %v2487_v17 = vmul.f32 %v2484_v2, %v7096_v55  ;;  %3672 = vset.pattern.permute.xlu2 %v7097_v54  ;;  %v7102_v2 = vld [vmem:[#allocation96_spill] sm:$0xff] }
 0x3fe   : > { %3673 = vset.pattern.permute.xlu1 %v7098_v16  ;;  %2737 = vperm.xlu2 %3672, %v5859_v36   ;;  %v2532_v9 = vpop.permute.xlu2 %2531 }
 0x3ff   : > { %v2488_v53 = vadd.f32 %v2486_v51, %v2480_v0  ;;  %v2489_v1 = vadd.f32 %v2487_v17, %v2481_v63  ;;  %v2534_v6 = vmul.f32 %v2532_v9, %v7099_v37  ;;  %v2535_v38 = vmul.f32 %v2532_v9, %v7100_v25  ;;  %2745 = vperm.xlu1 %3673, %v5859_v36  }
 0x401   : > { %v2496_v43 = vadd.f32 %v2494_v46, %v2488_v53  ;;  %v2497_v58 = vadd.f32 %v2495_v60, %v2489_v1  ;;  %v3408_v46 = vld [vmem:[%s6280_s9 + $0x8] sm:$0xf]  ;;  %v7104_v60 = vld [vmem:[#allocation83_spill] sm:$0xff]  ;;  %v7105_v1 = vld [vmem:[#allocation84_spill] sm:$0xff] }
 0x402   : > { %2846 = vperm.xlu0 %3685, %v3408_v46  }
 0x405   : > { %v2500_v34 = vpop.permute.xlu1 %2499 }
 0x406   : > { %v2502_v40 = vmul.f32 %v2500_v34, %v7101_v33  ;;  %v2503_v54 = vmul.f32 %v2500_v34, %v7102_v2  ;;  %3674 = vset.pattern.permute.xlu2 %v7103_v14 }
 0x407   : > { %3676 = vset.pattern.permute.xlu1 %v7033_v32  ;;  %2753 = vperm.xlu2 %3674, %v5859_v36   ;;  %v2554_v63 = vpop.permute.xlu2 %2553 }
 0x408   : > { %v2504_v0 = vadd.f32 %v2502_v40, %v2496_v43  ;;  %v2505_v17 = vadd.f32 %v2503_v54, %v2497_v58  ;;  %2769 = vperm.xlu1 %3676, %v5859_v36   ;;  %v7106_v54 = vmov 28   ;;  %v2245_v58 = vadd.f32 %v5799_v4, %v5801_v52 }
 0x409   : > { %v2246_v40 = vadd.f32 %v5799_v4, %v5803_v21  ;;  %v2562_v4 = vpop.permute.xlu0 %2561  ;;  %v7107_v52 = vmov 33  }
 0x40a   : > { %v2512_v51 = vadd.f32 %v2510_v39, %v2504_v0  ;;  %v2513_v9 = vadd.f32 %v2511_v3, %v2505_v17 }
 0x40c   : > { %v2520_v53 = vadd.f32 %v7104_v60, %v2512_v51  ;;  %v2521_v34 = vadd.f32 %v7105_v1, %v2513_v9 }
 0x40e   : > { %v2524_v16 = vpop.permute.xlu1 %2523 }
 0x40f   : > { %v2526_v32 = vmul.f32 %v2524_v16, %v5782_v57  ;;  %v2527_v43 = vmul.f32 %v2524_v16, %v5785_v27  ;;  %3677 = vset.pattern.permute.xlu2 %v7106_v54 }
 0x410   : > { %3678 = vset.pattern.permute.xlu1 %v7034_v50  ;;  %2777 = vperm.xlu2 %3677, %v5859_v36   ;;  %v2578_v0 = vpop.permute.xlu2 %2577 }
 0x411   : > { %v2528_v39 = vadd.f32 %v2526_v32, %v2520_v53  ;;  %v2529_v3 = vadd.f32 %v2527_v43, %v2521_v34  ;;  %2785 = vperm.xlu1 %3678, %v5859_v36   ;;  %v7109_v34 = vmov 34   ;;  %v7110_v43 = vld [vmem:[#allocation20_spill] sm:$0xff] }
 0x413   : > { %v2536_v17 = vadd.f32 %v2534_v6, %v2528_v39  ;;  %v2537_v51 = vadd.f32 %v2535_v38, %v2529_v3  ;;  %v2556_v6 = vmul.f32 %v2554_v63, %v7042_v62  ;;  %v7108_v38 = vld [vmem:[#allocation10_spill] sm:$0xff]  ;;  %v2564_v39 = vmul.f32 %v2562_v4, %v7110_v43 }
 0x414   : > { %v2557_v53 = vmul.f32 %v2554_v63, %v7108_v38  ;;  %v7111_v3 = vld [vmem:[#allocation6_spill] sm:$0xff]  ;;  %v2580_v38 = vmul.f32 %v2578_v0, %v5449_v61 }
 0x415   : > { %v2538_v16 = vadd.f32 %v2536_v17, %v2245_v58  ;;  %v2539_v9 = vadd.f32 %v2537_v51, %v2246_v40  ;;  %v2565_v58 = vmul.f32 %v2562_v4, %v7111_v3  ;;  %v7112_v40 = vld [vmem:[#allocation8_spill] sm:$0xff]  ;;  %v7114_v4 = vmov 1  }
 0x417   : > { %v2545_v46 = vpop.permute.xlu1 %2544 }
 0x418   : > { %v5959_v60 = vadd.f32 %v2545_v46, %v2538_v16  ;;  %v5961_v1 = vadd.f32 %v2545_v46, %v2539_v9  ;;  %3679 = vset.pattern.permute.xlu2 %v7038_v28  ;;  %v2566_v16 = vadd.f32 %v2564_v39, %v2556_v6  ;;  %v2567_v9 = vadd.f32 %v2565_v58, %v2557_v53  ;;  %v7115_v39 = vld [vmem:[#allocation12_spill] sm:$0xff]  ;;  %v7116_v58 = vld [vmem:[#allocation19_spill] sm:$0xff] }
 0x419   : > { %3681 = vset.pattern.permute.xlu1 %v7046_v24  ;;  %2793 = vperm.xlu2 %3679, %v5859_v36   ;;  %v2594_v32 = vpop.permute.xlu2 %2593 }
 0x41a   : > { %2809 = vperm.xlu1 %3681, %v5859_v36   ;;  %v2596_v3 = vmul.f32 %v2594_v32, %v7115_v39  ;;  %v2597_v61 = vmul.f32 %v2594_v32, %v7116_v58 }
 0x420   : > { %v2570_v21 = vpop.permute.xlu1 %2569 }
 0x421   : > { %3682 = vset.pattern.permute.xlu2 %v7107_v52  ;;  %v2572_v17 = vmul.f32 %v2570_v21, %v7112_v40  ;;  %v2573_v51 = vmul.f32 %v2570_v21, %v7048_v30  ;;  %v2602_v40 = vpop.permute.xlu0 %2601 }
 0x422   : > { %3683 = vset.pattern.permute.xlu1 %v7109_v34  ;;  %2817 = vperm.xlu2 %3682, %v5859_v36   ;;  %v2618_v46 = vpop.permute.xlu2 %2617  ;;  %v7113_v34 = vld [vmem:[#allocation28_spill] sm:$0xff] }
 0x423   : > { %2825 = vperm.xlu1 %3683, %v5859_v36   ;;  %v2574_v62 = vadd.f32 %v2572_v17, %v2566_v16  ;;  %v2575_v24 = vadd.f32 %v2573_v51, %v2567_v9  ;;  %v2581_v50 = vmul.f32 %v2578_v0, %v7113_v34  ;;  %v7118_v16 = vld [vmem:[#allocation58_spill] sm:$0xff]  ;;  %v2620_v32 = vmul.f32 %v2618_v46, %v7054_v59  ;;  %v7124_v59 = vld [vmem:[#allocation67_spill] sm:$0xff] }
 0x425   : > { %v2582_v30 = vadd.f32 %v2580_v38, %v2574_v62  ;;  %v2583_v21 = vadd.f32 %v2581_v50, %v2575_v24  ;;  %v7119_v50 = vld [vmem:[#allocation59_spill] sm:$0xff] }
 0x429   : > { %v2586_v63 = vpop.permute.xlu1 %2585 }
 0x42a   : > { %v2588_v28 = vmul.f32 %v2586_v63, %v7050_v49  ;;  %v2589_v43 = vmul.f32 %v2586_v63, %v7051_v45  ;;  %3684 = vset.pattern.permute.xlu2 %v7052_v7  ;;  %v2604_v45 = vmul.f32 %v2602_v40, %v5480_v12 }
 0x42b   : > { %2833 = vperm.xlu2 %3684, %v5859_v36   ;;  %3686 = vset.pattern.permute.xlu1 %v7114_v4  ;;  %v2634_v0 = vpop.permute.xlu2 %2633  ;;  %v7117_v36 = vld [vmem:[#allocation57_spill] sm:$0xff] }
 0x42c   : > { %v2590_v6 = vadd.f32 %v2588_v28, %v2582_v30  ;;  %v2591_v53 = vadd.f32 %v2589_v43, %v2583_v21  ;;  %v2605_v51 = vmul.f32 %v2602_v40, %v7117_v36  ;;  %v7120_v43 = vld [vmem:[#allocation33_spill] sm:$0xff] }
 0x42d   : > { %v2621_v4 = vmul.f32 %v2618_v46, %v7120_v43  ;;  %v7125_v46 = vld [vmem:[#allocation68_spill] sm:$0xff] }
 0x42e   : > { %v2598_v34 = vadd.f32 %v2596_v3, %v2590_v6  ;;  %v2599_v49 = vadd.f32 %v2597_v61, %v2591_v53  ;;  %v7121_v53 = vld [vmem:[#allocation62_spill] sm:$0xff]  ;;  %v7122_v61 = vld [vmem:[#allocation63_spill] sm:$0xff] }
 0x42f   : > { %v2636_v40 = vmul.f32 %v2634_v0, %v7122_v61  ;;  %v7129_v61 = vld [vmem:[#allocation26_spill] sm:$0xff] }
 0x430   : > { %v2606_v24 = vadd.f32 %v2604_v45, %v2598_v34  ;;  %v2607_v62 = vadd.f32 %v2605_v51, %v2599_v49  ;;  %v7123_v34 = vld [vmem:[#allocation64_spill] sm:$0xff] }
 0x431   : > { %v2637_v49 = vmul.f32 %v2634_v0, %v7123_v34  ;;  %v7130_v34 = vld [vmem:[#allocation22_spill] sm:$0xff] }
 0x432   : > { %v2610_v17 = vpop.permute.xlu1 %2609 }
 0x433   : > { %3687 = vset.pattern.permute.xlu2 %v6849_v42  ;;  %v2612_v9 = vmul.f32 %v2610_v17, %v7118_v16  ;;  %v2613_v28 = vmul.f32 %v2610_v17, %v7119_v50  ;;  %v2642_v17 = vpop.permute.xlu0 %2641 }
 0x434   : > { %v2658_v30 = vpop.permute.xlu2 %2657  ;;  %v2644_v51 = vmul.f32 %v2642_v17, %v7124_v59  ;;  %v2645_v16 = vmul.f32 %v2642_v17, %v7125_v46 }
 0x435   : > { %v2614_v63 = vadd.f32 %v2612_v9, %v2606_v24  ;;  %v2615_v38 = vadd.f32 %v2613_v28, %v2607_v62 }
 0x437   : > { %v2622_v6 = vadd.f32 %v2620_v32, %v2614_v63  ;;  %v2623_v42 = vadd.f32 %v2621_v4, %v2615_v38  ;;  %v7127_v63 = vld [vmem:[#allocation72_spill] sm:$0xff]  ;;  %v7128_v32 = vld [vmem:[#allocation73_spill] sm:$0xff]  ;;  %v2661_v4 = vmul.f32 %v2658_v30, %v7068_v11 }
 0x438   : > { %v2660_v43 = vmul.f32 %v2658_v30, %v7128_v32 }
 0x43b   : > { %v2626_v21 = vpop.permute.xlu1 %2625 }
 0x43c   : > { %v2628_v12 = vmul.f32 %v2626_v21, %v7056_v31  ;;  %v2629_v39 = vmul.f32 %v2626_v21, %v7121_v53  ;;  %v7126_v31 = vld [vmem:[#allocation71_spill] sm:$0xff] }
 0x43d   : > { %v2674_v50 = vpop.permute.xlu2 %2673 }
 0x43e   : > { %v2630_v3 = vadd.f32 %v2628_v12, %v2622_v6  ;;  %v2631_v58 = vadd.f32 %v2629_v39, %v2623_v42 }
 0x440   : > { %v2638_v45 = vadd.f32 %v2636_v40, %v2630_v3  ;;  %v2639_v36 = vadd.f32 %v2637_v49, %v2631_v58  ;;  %v2682_v3 = vpop.permute.xlu0 %2681  ;;  %v2676_v40 = vmul.f32 %v2674_v50, %v7129_v61  ;;  %v2677_v49 = vmul.f32 %v2674_v50, %v7130_v34 }
 0x441   : > { %v2685_v11 = vmul.f32 %v2682_v3, %v7076_v35 }
 0x442   : > { %v2646_v28 = vadd.f32 %v2644_v51, %v2638_v45  ;;  %v2647_v24 = vadd.f32 %v2645_v16, %v2639_v36  ;;  %v2684_v36 = vmul.f32 %v2682_v3, %v7075_v20 }
 0x444   : > { %v2650_v9 = vpop.permute.xlu1 %2649 }
 0x445   : > { %v2652_v62 = vmul.f32 %v2650_v9, %v7126_v31  ;;  %v2653_v38 = vmul.f32 %v2650_v9, %v7127_v63 }
 0x446   : > { %v2698_v58 = vpop.permute.xlu2 %2697 }
 0x447   : > { %v2654_v0 = vadd.f32 %v2652_v62, %v2646_v28  ;;  %v2655_v21 = vadd.f32 %v2653_v38, %v2647_v24  ;;  %v2700_v24 = vmul.f32 %v2698_v58, %v5636_v8  ;;  %v2701_v31 = vmul.f32 %v2698_v58, %v5633_v56 }
 0x449   : > { %v2662_v6 = vadd.f32 %v2660_v43, %v2654_v0  ;;  %v2663_v42 = vadd.f32 %v2661_v4, %v2655_v21  ;;  %v2722_v4 = vpop.permute.xlu0 %2721  ;;  %v7133_v0 = vld [vmem:[#allocation29_spill] sm:$0xff] }
 0x44a   : > { %v2724_v56 = vmul.f32 %v2722_v4, %v7083_v5 }
 0x44d   : > { %v2666_v12 = vpop.permute.xlu1 %2665 }
 0x44e   : > { %v2668_v53 = vmul.f32 %v2666_v12, %v7069_v48  ;;  %v2669_v39 = vmul.f32 %v2666_v12, %v7070_v41  ;;  %v7131_v48 = vld [vmem:[#allocation86_spill] sm:$0xff]  ;;  %v7132_v41 = vld [vmem:[#allocation85_spill] sm:$0xff] }
 0x44f   : > { %v2714_v50 = vpop.permute.xlu2 %2713 }
 0x450   : > { %v2670_v17 = vadd.f32 %v2668_v53, %v2662_v6  ;;  %v2671_v45 = vadd.f32 %v2669_v39, %v2663_v42  ;;  %v2716_v21 = vmul.f32 %v2714_v50, %v7133_v0  ;;  %v7134_v6 = vld [vmem:[#allocation13_spill] sm:$0xff]  ;;  %v2725_v39 = vmul.f32 %v2722_v4, %v7084_v29 }
 0x451   : > { %v2717_v42 = vmul.f32 %v2714_v50, %v7134_v6  ;;  %v2762_v50 = vpop.permute.xlu0 %2761  ;;  %v7141_v6 = vld [vmem:[#allocation75_spill] sm:$0xff] }
 0x452   : > { %v2678_v30 = vadd.f32 %v2676_v40, %v2670_v17  ;;  %v2679_v59 = vadd.f32 %v2677_v49, %v2671_v45  ;;  %v7137_v45 = vld [vmem:[#allocation65_spill] sm:$0xff] }
 0x454   : > { %v2686_v51 = vadd.f32 %v2684_v36, %v2678_v30  ;;  %v2687_v46 = vadd.f32 %v2685_v11, %v2679_v59  ;;  %v7138_v11 = vld [vmem:[#allocation66_spill] sm:$0xff] }
 0x456   : > { %v2690_v16 = vpop.permute.xlu1 %2689 }
 0x457   : > { %v2692_v9 = vmul.f32 %v2690_v16, %v7131_v48  ;;  %v2693_v28 = vmul.f32 %v2690_v16, %v7132_v41 }
 0x458   : > { %v2738_v8 = vpop.permute.xlu2 %2737 }
 0x459   : > { %v2694_v62 = vadd.f32 %v2692_v9, %v2686_v51  ;;  %v2695_v63 = vadd.f32 %v2693_v28, %v2687_v46  ;;  %v2740_v36 = vmul.f32 %v2738_v8, %v7137_v45  ;;  %v2741_v30 = vmul.f32 %v2738_v8, %v7138_v11 }
 0x45b   : > { %v2702_v38 = vadd.f32 %v2700_v24, %v2694_v62  ;;  %v2703_v20 = vadd.f32 %v2701_v31, %v2695_v63 }
 0x45f   : > { %v2706_v32 = vpop.permute.xlu1 %2705 }
 0x460   : > { %v2708_v35 = vmul.f32 %v2706_v32, %v7079_v10  ;;  %v2709_v43 = vmul.f32 %v2706_v32, %v7080_v47  ;;  %v7135_v10 = vld [vmem:[#allocation91_spill] sm:$0xff]  ;;  %v7136_v47 = vld [vmem:[#allocation92_spill] sm:$0xff]  ;;  %v2765_v32 = vmul.f32 %v2762_v50, %v5706_v18 }
 0x461   : > { %v2754_v46 = vpop.permute.xlu2 %2753 }
 0x462   : > { %v2710_v12 = vadd.f32 %v2708_v35, %v2702_v38  ;;  %v2711_v53 = vadd.f32 %v2709_v43, %v2703_v20  ;;  %v2756_v24 = vmul.f32 %v2754_v46, %v5690_v22  ;;  %v2757_v31 = vmul.f32 %v2754_v46, %v5692_v19  ;;  %v7142_v22 = vld [vmem:[#allocation76_spill] sm:$0xff] }
 0x463   : > { %v2764_v20 = vmul.f32 %v2762_v50, %v5704_v23 }
 0x464   : > { %v2718_v3 = vadd.f32 %v2716_v21, %v2710_v12  ;;  %v2719_v58 = vadd.f32 %v2717_v42, %v2711_v53 }
 0x466   : > { %v2726_v61 = vadd.f32 %v2724_v56, %v2718_v3  ;;  %v2727_v40 = vadd.f32 %v2725_v39, %v2719_v58  ;;  %v2802_v58 = vpop.permute.xlu0 %2801 }
 0x467   : > { %v2805_v45 = vmul.f32 %v2802_v58, %v7102_v2 }
 0x468   : > { %v2730_v34 = vpop.permute.xlu1 %2729 }
 0x469   : > { %v2732_v49 = vmul.f32 %v2730_v34, %v7135_v10  ;;  %v2733_v17 = vmul.f32 %v2730_v34, %v7136_v47  ;;  %v7144_v34 = vld [vmem:[#allocation38_spill] sm:$0xff] }
 0x46a   : > { %v2778_v62 = vpop.permute.xlu2 %2777 }
 0x46b   : > { %v2734_v59 = vadd.f32 %v2732_v49, %v2726_v61  ;;  %v2735_v51 = vadd.f32 %v2733_v17, %v2727_v40  ;;  %v2780_v42 = vmul.f32 %v2778_v62, %v7141_v6  ;;  %v2781_v12 = vmul.f32 %v2778_v62, %v7142_v22  ;;  %v7143_v61 = vld [vmem:[#allocation27_spill] sm:$0xff] }
 0x46c   : > { %v2804_v17 = vmul.f32 %v2802_v58, %v7101_v33  ;;  %v7152_v6 = vmov 13   ;;  %v7154_v22 = vmov 6  }
 0x46d   : > { %v2742_v16 = vadd.f32 %v2740_v36, %v2734_v59  ;;  %v2743_v5 = vadd.f32 %v2741_v30, %v2735_v51 }
 0x471   : > { %v2746_v48 = vpop.permute.xlu1 %2745 }
 0x472   : > { %v2748_v29 = vmul.f32 %v2746_v48, %v5684_v26  ;;  %v2749_v9 = vmul.f32 %v2746_v48, %v5686_v44  ;;  %v7139_v26 = vld [vmem:[#allocation21_spill] sm:$0xff] }
 0x473   : > { %v7140_v44 = vld [vmem:[#allocation9_spill] sm:$0xff]  ;;  %v2794_v39 = vpop.permute.xlu2 %2793 }
 0x474   : > { %v2750_v41 = vadd.f32 %v2748_v29, %v2742_v16  ;;  %v2751_v28 = vadd.f32 %v2749_v9, %v2743_v5  ;;  %v2796_v40 = vmul.f32 %v2794_v39, %v7143_v61  ;;  %v2797_v10 = vmul.f32 %v2794_v39, %v7144_v34  ;;  %v7146_v5 = vld [vmem:[#allocation81_spill] sm:$0xff]  ;;  %v7147_v29 = vld [vmem:[#allocation82_spill] sm:$0xff] }
 0x475   : > { %v7160_v39 = vmov 11   ;;  %v7163_v61 = vmov 17   ;;  %v7166_v34 = vmov 20  }
 0x476   : > { %v2758_v63 = vadd.f32 %v2756_v24, %v2750_v41  ;;  %v2759_v38 = vadd.f32 %v2757_v31, %v2751_v28 }
 0x478   : > { %v2766_v43 = vadd.f32 %v2764_v20, %v2758_v63  ;;  %v2767_v4 = vadd.f32 %v2765_v32, %v2759_v38 }
 0x47a   : > { %v2770_v35 = vpop.permute.xlu1 %2769 }
 0x47b   : > { %v2772_v0 = vmul.f32 %v2770_v35, %v7139_v26  ;;  %v2773_v21 = vmul.f32 %v2770_v35, %v7140_v44 }
 0x47c   : > { %v2818_v51 = vpop.permute.xlu2 %2817 }
 0x47d   : > { %v2774_v19 = vadd.f32 %v2772_v0, %v2766_v43  ;;  %v2775_v53 = vadd.f32 %v2773_v21, %v2767_v4  ;;  %v2820_v48 = vmul.f32 %v2818_v51, %v7146_v5  ;;  %v2821_v9 = vmul.f32 %v2818_v51, %v7147_v29  ;;  %v2847_v43 = vpop.permute.xlu0 %2846 }
 0x47e   : > { %v7172_v29 = vmov 27  }
 0x47f   : > { %v2782_v8 = vadd.f32 %v2780_v42, %v2774_v19  ;;  %v2783_v56 = vadd.f32 %v2781_v12, %v2775_v53  ;;  %v7153_v42 = vmov 7   ;;  %v7155_v12 = vmov 18  }
 0x480   : > { %v7156_v19 = vmov 10   ;;  %v7157_v53 = vmov 9  }
 0x483   : > { %v2786_v3 = vpop.permute.xlu1 %2785 }
 0x484   : > { %v2788_v23 = vmul.f32 %v2786_v3, %v7095_v13  ;;  %v2789_v18 = vmul.f32 %v2786_v3, %v7096_v55  ;;  %v7145_v55 = vld [vmem:[#allocation98_spill] sm:$0xff] }
 0x485   : > { %v2834_v31 = vpop.permute.xlu2 %2833 }
 0x486   : > { %v2790_v49 = vadd.f32 %v2788_v23, %v2782_v8  ;;  %v2791_v47 = vadd.f32 %v2789_v18, %v2783_v56  ;;  %v2836_v63 = vmul.f32 %v2834_v31, %v7099_v37  ;;  %v7148_v37 = vmov 3  }
 0x487   : > { %v7158_v8 = vmov 23   ;;  %v7159_v56 = vmov 12   ;;  %v7161_v23 = vmov 15   ;;  %v7162_v18 = vmov 14  }
 0x488   : > { %v2798_v36 = vadd.f32 %v2796_v40, %v2790_v49  ;;  %v2799_v11 = vadd.f32 %v2797_v10, %v2791_v47  ;;  %v7164_v40 = vmov 16   ;;  %v7167_v49 = vmov 19  }
 0x48a   : > { %v2806_v30 = vadd.f32 %v2804_v17, %v2798_v36  ;;  %v2807_v59 = vadd.f32 %v2805_v45, %v2799_v11  ;;  %v7169_v11 = vmov 22  }
 0x48c   : > { %v2810_v46 = vpop.permute.xlu1 %2809 }
 0x48d   : > { %v2812_v13 = vmul.f32 %v2810_v46, %v7092_v15  ;;  %v2813_v16 = vmul.f32 %v2810_v46, %v7145_v55  ;;  %v2837_v15 = vmul.f32 %v2834_v31, %v7100_v25  ;;  %v7149_v25 = vmov 8  }
 0x48e   : > { %v7174_v31 = vmov 30  }
 0x48f   : > { %v2814_v41 = vadd.f32 %v2812_v13, %v2806_v30  ;;  %v2815_v28 = vadd.f32 %v2813_v16, %v2807_v59  ;;  %v7170_v30 = vmov 21   ;;  %v7171_v16 = vmov 24  }
 0x491   : > { %v2822_v24 = vadd.f32 %v2820_v48, %v2814_v41  ;;  %v2823_v33 = vadd.f32 %v2821_v9, %v2815_v28  ;;  %v7173_v41 = vmov 26  }
 0x495   : > { %v2826_v2 = vpop.permute.xlu1 %2825 }
 0x496   : > { %v2828_v50 = vmul.f32 %v2826_v2, %v5782_v57  ;;  %v2829_v62 = vmul.f32 %v2826_v2, %v5785_v27  ;;  %v6080_v27 = vld [vmem:[%s6281_s10] sm:$0xf]  ;;  %v7175_v2 = vmov 29  }
 0x498   : > { %v2830_v38 = vadd.f32 %v2828_v50, %v2822_v24  ;;  %v2831_v20 = vadd.f32 %v2829_v62, %v2823_v33 }
 0x49a   : > { %v2838_v32 = vadd.f32 %v2836_v63, %v2830_v38  ;;  %v2839_v35 = vadd.f32 %v2837_v15, %v2831_v20  ;;  %v7176_v38 = vmov 32  }
 0x49c   : > { %v2840_v4 = vadd.f32 %v2838_v32, %v5959_v60  ;;  %v2841_v26 = vadd.f32 %v2839_v35, %v5961_v1  ;;  %v7150_v60 = vmov 5   ;;  %v7151_v1 = vmov 4  }
 0x49d   : > { %v7177_v35 = vmov 31  }
 0x49e   : > { %v2849_v0 = vadd.f32 %v2847_v43, %v2840_v4  ;;  %v2850_v44 = vadd.f32 %v2847_v43, %v2841_v26  ;;  %v7178_v43 = vld [vmem:[#allocation34_spill] sm:$0xff]  ;;  %v7179_v26 = vld [vmem:[#allocation35_spill] sm:$0xff] }
 0x4a0   : > { %v6049_v21 = vmax.f32 %v2849_v0, 0.0  ;;  %v6051_v57 = vmax.f32 %v2850_v44, 0.0 }
 0x4a2   : > { %2855 = vrot.lane.b32.xlu2 %v6051_v57, %s3738_s29  ;;  %2869 = vrot.lane.b32.xlu0 %v6049_v21, %s3741_s13 }
 0x4a3   : > { %2853 = vrot.lane.b32.xlu1 %v6049_v21, %s3738_s29 }
 0x4aa   : > { %2863 = vrot.lane.b32.xlu2 %v6051_v57, %s3740_s30  ;;  %2879 = vrot.lane.b32.xlu0 %v6051_v57, %s3742_s14 }
 0x4ab   : > { %2861 = vrot.lane.b32.xlu1 %v6049_v21, %s3740_s30 }
 0x4b2   : > { %2877 = vrot.lane.b32.xlu2 %v6049_v21, %s3742_s14  ;;  %2893 = vrot.lane.b32.xlu0 %v6049_v21, %s3746_s16 }
 0x4b3   : > { %2871 = vrot.lane.b32.xlu1 %v6051_v57, %s3741_s13 }
 0x4ba   : > { %2887 = vrot.lane.b32.xlu2 %v6051_v57, %s3744_s15  ;;  %2903 = vrot.lane.b32.xlu0 %v6051_v57, %s3748_s17 }
 0x4bb   : > { %2885 = vrot.lane.b32.xlu1 %v6049_v21, %s3744_s15 }
 0x4c2   : > { %2901 = vrot.lane.b32.xlu2 %v6049_v21, %s3748_s17  ;;  %2920 = vperm.xlu0 %3685, %v6080_v27   ;;  %s467_s17 = scalar_lea.vmem %s6283_s12, %s3863_s25 }
 0x4c3   : > { %2895 = vrot.lane.b32.xlu1 %v6051_v57, %s3746_s16 }
 0x4ca   : > { %2911 = vrot.lane.b32.xlu2 %v6051_v57, %s3749_s23  ;;  %3688 = vset.pattern.permute.xlu0 %v7148_v37 }
 0x4cb   : > { %2909 = vrot.lane.b32.xlu1 %v6049_v21, %s3749_s23  ;;  %2950 = vperm.xlu0 %3688, %v6080_v27  }
 0x4d2   : > { %2940 = vperm.xlu2 %3687, %v6080_v27  }
 0x4d3   : > { %2930 = vperm.xlu1 %3686, %v6080_v27   ;;  %3693 = vset.pattern.permute.xlu0 %v7149_v25 }
 0x4d4   : > { %3000 = vperm.xlu0 %3693, %v6080_v27  }
 0x4da   : > { %3690 = vset.pattern.permute.xlu2 %v7150_v60 }
 0x4db   : > { %3689 = vset.pattern.permute.xlu1 %v7151_v1  ;;  %2970 = vperm.xlu2 %3690, %v6080_v27  }
 0x4dc   : > { %2960 = vperm.xlu1 %3689, %v6080_v27   ;;  %3698 = vset.pattern.permute.xlu0 %v7152_v6 }
 0x4dd   : > { %3050 = vperm.xlu0 %3698, %v6080_v27  }
 0x4e3   : > { %3692 = vset.pattern.permute.xlu2 %v7153_v42 }
 0x4e4   : > { %3691 = vset.pattern.permute.xlu1 %v7154_v22  ;;  %2990 = vperm.xlu2 %3692, %v6080_v27  }
 0x4e5   : > { %2980 = vperm.xlu1 %3691, %v6080_v27   ;;  %3703 = vset.pattern.permute.xlu0 %v7155_v12 }
 0x4e6   : > { %3100 = vperm.xlu0 %3703, %v6080_v27  }
 0x4ec   : > { %3695 = vset.pattern.permute.xlu2 %v7156_v19 }
 0x4ed   : > { %3694 = vset.pattern.permute.xlu1 %v7157_v53  ;;  %3020 = vperm.xlu2 %3695, %v6080_v27  }
 0x4ee   : > { %3010 = vperm.xlu1 %3694, %v6080_v27   ;;  %3708 = vset.pattern.permute.xlu0 %v7158_v8 }
 0x4ef   : > { %3150 = vperm.xlu0 %3708, %v6080_v27  }
 0x4f5   : > { %3697 = vset.pattern.permute.xlu2 %v7159_v56 }
 0x4f6   : > { %3696 = vset.pattern.permute.xlu1 %v7160_v39  ;;  %3040 = vperm.xlu2 %3697, %v6080_v27  }
 0x4f7   : > { %3030 = vperm.xlu1 %3696, %v6080_v27   ;;  %3713 = vset.pattern.permute.xlu0 %v7106_v54  ;;  %v7165_v54 = vmov 0  }
 0x4f8   : > { %3200 = vperm.xlu0 %3713, %v6080_v27  }
 0x4fc   : > { %v2856_v3 = vpop.permute.xlu2 %2855 }
 0x4fe   : > { %3700 = vset.pattern.permute.xlu2 %v7161_v23  ;;  %v7180_v23 = vmov 34  }
 0x4ff   : > { %3699 = vset.pattern.permute.xlu1 %v7162_v18  ;;  %3070 = vperm.xlu2 %3700, %v6080_v27   ;;  %v7181_v18 = vld [vmem:[#allocation42_spill] sm:$0xff] }
 0x500   : > { %3060 = vperm.xlu1 %3699, %v6080_v27   ;;  %3718 = vset.pattern.permute.xlu0 %v7107_v52 }
 0x501   : > { %3250 = vperm.xlu0 %3718, %v6080_v27  }
 0x504   : > { %v2864_v58 = vpop.permute.xlu2 %2863 }
 0x507   : > { %3702 = vset.pattern.permute.xlu2 %v7163_v61  ;;  %v7182_v61 = vld [vmem:[#allocation43_spill] sm:$0xff] }
 0x508   : > { %3701 = vset.pattern.permute.xlu1 %v7164_v40  ;;  %3090 = vperm.xlu2 %3702, %v6080_v27  }
 0x509   : > { %3080 = vperm.xlu1 %3701, %v6080_v27   ;;  %3722 = vset.pattern.permute.xlu0 %v7165_v54 }
 0x50c   : > { %v6133_v10 = vpop.permute.xlu2 %2877 }
 0x510   : > { %3705 = vset.pattern.permute.xlu2 %v7166_v34 }
 0x511   : > { %3704 = vset.pattern.permute.xlu1 %v7167_v49  ;;  %3120 = vperm.xlu2 %3705, %v6080_v27  }
 0x512   : > { %3110 = vperm.xlu1 %3704, %v6080_v27  }
 0x514   : > { %v6142_v36 = vpop.permute.xlu0 %2869  ;;  %v2888_v59 = vpop.permute.xlu2 %2887 }
 0x515   : > { %v2854_v52 = vpop.permute.xlu1 %2853 }
 0x516   : > { %v2857_v17 = vsel %vm482_vm0, %v2854_v52, %v2856_v3  ;;  %v2858_v45 = vsel %vm482_vm0, %v2856_v3, %v2854_v52 }
 0x517   : > { %v2859_v4 = vmul.f32 %v2858_v45, %v7178_v43  ;;  %v2860_v0 = vmul.f32 %v2857_v17, %v7179_v26 }
 0x519   : > { %3707 = vset.pattern.permute.xlu2 %v7169_v11  ;;  %v2923_v25 = vperm.slane %v2859_v4, 0  ;;  %v2924_v60 = vperm.slane %v2860_v0, 0  ;;  %v2933_v1 = vperm.slane %v2859_v4, 1  ;;  %v2934_v6 = vperm.slane %v2860_v0, 1 }
 0x51a   : > { %3706 = vset.pattern.permute.xlu1 %v7170_v30  ;;  %3140 = vperm.xlu2 %3707, %v6080_v27   ;;  %v2943_v8 = vperm.slane %v2859_v4, 2  ;;  %v2944_v56 = vperm.slane %v2860_v0, 2  ;;  %v2953_v17 = vperm.slane %v2859_v4, 3  ;;  %v2954_v45 = vperm.slane %v2860_v0, 3 }
 0x51b   : > { %3130 = vperm.xlu1 %3706, %v6080_v27  }
 0x51c   : > { %v6152_v55 = vpop.permute.xlu0 %2879  ;;  %v6158_v5 = vpop.permute.xlu2 %2901 }
 0x51d   : > { %v2862_v51 = vpop.permute.xlu1 %2861 }
 0x51e   : > { %v2865_v46 = vsel %vm502_vm2, %v2862_v51, %v2864_v58  ;;  %v2866_v13 = vsel %vm502_vm2, %v2864_v58, %v2862_v51 }
 0x51f   : > { %v2867_v58 = vmul.f32 %v2866_v13, %v7181_v18  ;;  %v2868_v40 = vmul.f32 %v2865_v46, %v7182_v61 }
 0x522   : > { %3710 = vset.pattern.permute.xlu2 %v7103_v14 }
 0x523   : > { %3709 = vset.pattern.permute.xlu1 %v7171_v16  ;;  %3170 = vperm.xlu2 %3710, %v6080_v27   ;;  %v2963_v16 = vperm.slane %v2867_v58, 0 }
 0x524   : > { %3160 = vperm.xlu1 %3709, %v6080_v27   ;;  %v6163_v9 = vpop.permute.xlu0 %2893  ;;  %v2912_v33 = vpop.permute.xlu2 %2911 }
 0x525   : > { %v6160_v48 = vpop.permute.xlu1 %2871 }
 0x526   : > { %v2873_v43 = vsel %vm523_vm1, %v6142_v36, %v6160_v48  ;;  %v2874_v4 = vsel %vm523_vm1, %v6160_v48, %v6142_v36 }
 0x52b   : > { %3712 = vset.pattern.permute.xlu2 %v7172_v29  ;;  %v2964_v29 = vperm.slane %v2868_v40, 0 }
 0x52c   : > { %3711 = vset.pattern.permute.xlu1 %v7173_v41  ;;  %3190 = vperm.xlu2 %3712, %v6080_v27   ;;  %v6181_v62 = vpop.permute.xlu0 %2903  ;;  %v2941_v63 = vpop.permute.xlu2 %2940  ;;  %v2973_v41 = vperm.slane %v2867_v58, 1 }
 0x52d   : > { %3180 = vperm.xlu1 %3711, %v6080_v27   ;;  %v2886_v14 = vpop.permute.xlu1 %2885  ;;  %v2945_v34 = vmul.f32 %v2943_v8, %v2941_v63  ;;  %v2946_v49 = vmul.f32 %v2944_v56, %v2941_v63 }
 0x52e   : > { %v6170_v28 = vsel %vm565_vm4, %v2886_v14, %v2888_v59  ;;  %v6174_v24 = vsel %vm565_vm4, %v2888_v59, %v2886_v14  ;;  %v2974_v14 = vperm.slane %v2868_v40, 1 }
 0x534   : > { %3715 = vset.pattern.permute.xlu2 %v7174_v31  ;;  %v2921_v44 = vpop.permute.xlu0 %2920 }
 0x535   : > { %3714 = vset.pattern.permute.xlu1 %v7175_v2  ;;  %v6178_v50 = vpop.permute.xlu1 %2895  ;;  %3220 = vperm.xlu2 %3715, %v6080_v27   ;;  %v2971_v37 = vpop.permute.xlu2 %2970  ;;  %v2925_v22 = vmul.f32 %v2923_v25, %v2921_v44  ;;  %v2926_v12 = vmul.f32 %v2924_v60, %v2921_v44  ;;  %v7183_v44 = vld [vmem:[#allocation40_spill] sm:$0xff] }
 0x536   : > { %3210 = vperm.xlu1 %3714, %v6080_v27   ;;  %v2975_v63 = vmul.f32 %v2973_v41, %v2971_v37  ;;  %v2875_v25 = vmul.f32 %v2874_v4, %v7183_v44 }
 0x538   : > { %v3003_v56 = vperm.slane %v2875_v25, 0 }
 0x53d   : > { %v2910_v15 = vpop.permute.xlu1 %2909  ;;  %3717 = vset.pattern.permute.xlu2 %v7176_v38  ;;  %v2951_v52 = vpop.permute.xlu0 %2950 }
 0x53e   : > { %v6187_v20 = vsel %vm628_vm7, %v2910_v15, %v2912_v33  ;;  %v6191_v32 = vsel %vm628_vm7, %v2912_v33, %v2910_v15  ;;  %3716 = vset.pattern.permute.xlu1 %v7177_v35  ;;  %3240 = vperm.xlu2 %3717, %v6080_v27   ;;  %v2956_v59 = vmul.f32 %v2954_v45, %v2951_v52  ;;  %v2991_v51 = vpop.permute.xlu2 %2990  ;;  %v3013_v45 = vperm.slane %v2875_v25, 1 }
 0x53f   : > { %3230 = vperm.xlu1 %3716, %v6080_v27   ;;  %v2976_v15 = vmul.f32 %v2974_v14, %v2971_v37  ;;  %v7184_v37 = vld [vmem:[#allocation41_spill] sm:$0xff] }
 0x540   : > { %v2876_v60 = vmul.f32 %v2873_v43, %v7184_v37 }
 0x545   : > { %v2931_v42 = vpop.permute.xlu1 %2930 }
 0x546   : > { %v2935_v19 = vmul.f32 %v2933_v1, %v2931_v42  ;;  %v2936_v53 = vmul.f32 %v2934_v6, %v2931_v42  ;;  %3720 = vset.pattern.permute.xlu2 %v7052_v7  ;;  %v2955_v7 = vmul.f32 %v2953_v17, %v2951_v52  ;;  %v2983_v1 = vperm.slane %v2867_v58, 2  ;;  %v3001_v8 = vpop.permute.xlu0 %3000 }
 0x547   : > { %3719 = vset.pattern.permute.xlu1 %v7180_v23  ;;  %3270 = vperm.xlu2 %3720, %v6080_v27   ;;  %v2984_v6 = vperm.slane %v2868_v40, 2  ;;  %v3005_v18 = vmul.f32 %v3003_v56, %v3001_v8 }
 0x548   : > { %v2937_v39 = vadd.f32 %v2935_v19, %v2925_v22  ;;  %v2938_v3 = vadd.f32 %v2936_v53, %v2926_v12  ;;  %3260 = vperm.xlu1 %3719, %v6080_v27   ;;  %v3279_v27 = vld [vmem:[%s6282_s11] sm:$0xf]  ;;  %v2993_v22 = vperm.slane %v2867_v58, 3  ;;  %v2994_v12 = vperm.slane %v2868_v40, 3 }
 0x549   : > { %v3023_v58 = vperm.slane %v2875_v25, 2  ;;  %v3024_v40 = vperm.slane %v2876_v60, 2 }
 0x54a   : > { %v2947_v11 = vadd.f32 %v2945_v34, %v2937_v39  ;;  %v2948_v30 = vadd.f32 %v2946_v49, %v2938_v3  ;;  %v3004_v39 = vperm.slane %v2876_v60, 0  ;;  %v2995_v3 = vmul.f32 %v2993_v22, %v2991_v51 }
 0x54b   : > { %v2996_v36 = vmul.f32 %v2994_v12, %v2991_v51  ;;  %v2881_v51 = vsel %vm544_vm3, %v6133_v10, %v6152_v55 }
 0x54c   : > { %v2957_v13 = vadd.f32 %v2955_v7, %v2947_v11  ;;  %v2958_v31 = vadd.f32 %v2956_v59, %v2948_v30  ;;  %v3006_v61 = vmul.f32 %v3004_v39, %v3001_v8  ;;  %v3014_v11 = vperm.slane %v2876_v60, 1 }
 0x54e   : > { %v2961_v33 = vpop.permute.xlu1 %2960 }
 0x54f   : > { %v2965_v46 = vmul.f32 %v2963_v16, %v2961_v33  ;;  %v2966_v2 = vmul.f32 %v2964_v29, %v2961_v33  ;;  %v2882_v29 = vsel %vm544_vm3, %v6152_v55, %v6133_v10  ;;  %v3051_v10 = vpop.permute.xlu0 %3050 }
 0x550   : > { %3721 = vset.pattern.permute.xlu1 %v7165_v54  ;;  %v3021_v54 = vpop.permute.xlu2 %3020 }
 0x551   : > { %v2967_v38 = vadd.f32 %v2965_v46, %v2957_v13  ;;  %v2968_v35 = vadd.f32 %v2966_v2, %v2958_v31  ;;  %3282 = vperm.xlu1 %3721, %v3279_v27   ;;  %v3025_v41 = vmul.f32 %v3023_v58, %v3021_v54  ;;  %v3026_v14 = vmul.f32 %v3024_v40, %v3021_v54  ;;  %v7185_v2 = vld [vmem:[#allocation44_spill] sm:$0xff] }
 0x552   : > { %v2883_v27 = vmul.f32 %v2882_v29, %v7185_v2  ;;  %v3083_v58 = vperm.slane %v6049_v21, 0  ;;  %v3104_v29 = vperm.slane %v6051_v57, 2 }
 0x553   : > { %v2977_v26 = vadd.f32 %v2975_v63, %v2967_v38  ;;  %v2978_v0 = vadd.f32 %v2976_v15, %v2968_v35  ;;  %v7186_v63 = vld [vmem:[#allocation45_spill] sm:$0xff]  ;;  %v3033_v38 = vperm.slane %v2875_v25, 3  ;;  %v3034_v35 = vperm.slane %v2876_v60, 3 }
 0x554   : > { %v2884_v15 = vmul.f32 %v2881_v51, %v7186_v63  ;;  %v3043_v4 = vperm.slane %v2883_v27, 0  ;;  %v3053_v37 = vperm.slane %v2883_v27, 1  ;;  %v3063_v60 = vperm.slane %v2883_v27, 2 }
 0x556   : > { %v3055_v12 = vmul.f32 %v3053_v37, %v3051_v10  ;;  %v3064_v39 = vperm.slane %v2884_v15, 2  ;;  %v3114_v37 = vperm.slane %v6051_v57, 3 }
 0x557   : > { %v2981_v42 = vpop.permute.xlu1 %2980 }
 0x558   : > { %v2985_v19 = vmul.f32 %v2983_v1, %v2981_v42  ;;  %v2986_v53 = vmul.f32 %v2984_v6, %v2981_v42  ;;  %v3041_v7 = vpop.permute.xlu2 %3040  ;;  %v3054_v1 = vperm.slane %v2884_v15, 1 }
 0x559   : > { %v3045_v6 = vmul.f32 %v3043_v4, %v3041_v7  ;;  %v7188_v4 = vld [vmem:[#allocation47_spill] sm:$0xff] }
 0x55a   : > { %v2987_v48 = vadd.f32 %v2985_v19, %v2977_v26  ;;  %v2988_v23 = vadd.f32 %v2986_v53, %v2978_v0  ;;  %v3044_v26 = vperm.slane %v2884_v15, 0  ;;  %v3056_v19 = vmul.f32 %v3054_v1, %v3051_v10 }
 0x55b   : > { %v3113_v1 = vperm.slane %v6049_v21, 3 }
 0x55c   : > { %v2997_v34 = vadd.f32 %v2995_v3, %v2987_v48  ;;  %v2998_v49 = vadd.f32 %v2996_v36, %v2988_v23  ;;  %v3046_v54 = vmul.f32 %v3044_v26, %v3041_v7  ;;  %v3073_v36 = vperm.slane %v2883_v27, 3 }
 0x55d   : > { %v3074_v48 = vperm.slane %v2884_v15, 3  ;;  %v3094_v7 = vperm.slane %v6051_v57, 1  ;;  %v2892_v26 = vmul.f32 %v6174_v24, %v7188_v4 }
 0x55e   : > { %v3007_v52 = vadd.f32 %v3005_v18, %v2997_v34  ;;  %v3008_v17 = vadd.f32 %v3006_v61, %v2998_v49 }
 0x55f   : > { %v3134_v24 = vperm.slane %v2892_v26, 1 }
 0x560   : > { %v3011_v30 = vpop.permute.xlu1 %3010  ;;  %v3071_v55 = vpop.permute.xlu2 %3070 }
 0x561   : > { %v3015_v59 = vmul.f32 %v3013_v45, %v3011_v30  ;;  %v3016_v16 = vmul.f32 %v3014_v11, %v3011_v30  ;;  %v3075_v61 = vmul.f32 %v3073_v36, %v3071_v55  ;;  %v3076_v34 = vmul.f32 %v3074_v48, %v3071_v55 }
 0x562   : > { %v3084_v30 = vperm.slane %v6051_v57, 0  ;;  %v2898_v57 = vsel %vm586_vm5, %v6178_v50, %v6163_v9 }
 0x563   : > { %v3017_v33 = vadd.f32 %v3015_v59, %v3007_v52  ;;  %v3018_v13 = vadd.f32 %v3016_v16, %v3008_v17  ;;  %v3093_v59 = vperm.slane %v6049_v21, 1 }
 0x565   : > { %v3027_v31 = vadd.f32 %v3025_v41, %v3017_v33  ;;  %v3028_v46 = vadd.f32 %v3026_v14, %v3018_v13  ;;  %v3101_v41 = vpop.permute.xlu0 %3100  ;;  %v3103_v14 = vperm.slane %v6049_v21, 2  ;;  %v2897_v21 = vsel %vm586_vm5, %v6163_v9, %v6178_v50 }
 0x566   : > { %v3106_v63 = vmul.f32 %v3104_v29, %v3101_v41 }
 0x567   : > { %v3105_v27 = vmul.f32 %v3103_v14, %v3101_v41 }
 0x568   : > { %v3091_v49 = vpop.permute.xlu2 %3090 }
 0x569   : > { %v3031_v43 = vpop.permute.xlu1 %3030  ;;  %v3095_v33 = vmul.f32 %v3093_v59, %v3091_v49  ;;  %v3096_v13 = vmul.f32 %v3094_v7, %v3091_v49 }
 0x56a   : > { %v3035_v0 = vmul.f32 %v3033_v38, %v3031_v43  ;;  %v3036_v44 = vmul.f32 %v3034_v35, %v3031_v43  ;;  %v7187_v35 = vld [vmem:[#allocation46_spill] sm:$0xff] }
 0x56b   : > { %v2891_v43 = vmul.f32 %v6170_v28, %v7187_v35  ;;  %v2906_v35 = vsel %vm607_vm6, %v6181_v62, %v6158_v5 }
 0x56c   : > { %v3037_v42 = vadd.f32 %v3035_v0, %v3027_v31  ;;  %v3038_v22 = vadd.f32 %v3036_v44, %v3028_v46 }
 0x56d   : > { %v3123_v55 = vperm.slane %v2891_v43, 0 }
 0x56e   : > { %v3047_v53 = vadd.f32 %v3045_v6, %v3037_v42  ;;  %v3048_v8 = vadd.f32 %v3046_v54, %v3038_v22  ;;  %v3124_v6 = vperm.slane %v2892_v26, 0 }
 0x570   : > { %v3057_v56 = vadd.f32 %v3055_v12, %v3047_v53  ;;  %v3058_v25 = vadd.f32 %v3056_v19, %v3048_v8  ;;  %v3121_v2 = vpop.permute.xlu2 %3120 }
 0x571   : > { %v3125_v22 = vmul.f32 %v3123_v55, %v3121_v2  ;;  %v3126_v12 = vmul.f32 %v3124_v6, %v3121_v2 }
 0x572   : > { %v3061_v3 = vpop.permute.xlu1 %3060 }
 0x573   : > { %v3065_v23 = vmul.f32 %v3063_v60, %v3061_v3  ;;  %v3066_v18 = vmul.f32 %v3064_v39, %v3061_v3  ;;  %v3143_v60 = vperm.slane %v2891_v43, 2  ;;  %v3144_v39 = vperm.slane %v2892_v26, 2 }
 0x575   : > { %v3067_v52 = vadd.f32 %v3065_v23, %v3057_v56  ;;  %v3068_v17 = vadd.f32 %v3066_v18, %v3058_v25  ;;  %v3133_v25 = vperm.slane %v2891_v43, 1  ;;  %v3151_v23 = vpop.permute.xlu0 %3150  ;;  %v3153_v18 = vperm.slane %v2891_v43, 3 }
 0x577   : > { %v3077_v45 = vadd.f32 %v3075_v61, %v3067_v52  ;;  %v3078_v11 = vadd.f32 %v3076_v34, %v3068_v17  ;;  %v3154_v61 = vperm.slane %v2892_v26, 3  ;;  %v7191_v26 = vld [vmem:[#allocation51_spill] sm:$0xff] }
 0x578   : > { %v3141_v8 = vpop.permute.xlu2 %3140 }
 0x579   : > { %v3145_v34 = vmul.f32 %v3143_v60, %v3141_v8  ;;  %v3146_v49 = vmul.f32 %v3144_v39, %v3141_v8  ;;  %v3156_v7 = vmul.f32 %v3154_v61, %v3151_v23 }
 0x57b   : > { %v3081_v40 = vpop.permute.xlu1 %3080 }
 0x57c   : > { %v3085_v16 = vmul.f32 %v3083_v58, %v3081_v40  ;;  %v3086_v51 = vmul.f32 %v3084_v30, %v3081_v40  ;;  %v7190_v30 = vld [vmem:[#allocation49_spill] sm:$0xff]  ;;  %v3155_v40 = vmul.f32 %v3153_v18, %v3151_v23 }
 0x57d   : > { %v2900_v58 = vmul.f32 %v2898_v57, %v7190_v30  ;;  %v3201_v8 = vpop.permute.xlu0 %3200 }
 0x57e   : > { %v3087_v31 = vadd.f32 %v3085_v16, %v3077_v45  ;;  %v3088_v46 = vadd.f32 %v3086_v51, %v3078_v11  ;;  %v7189_v45 = vld [vmem:[#allocation48_spill] sm:$0xff] }
 0x57f   : > { %v2899_v11 = vmul.f32 %v2897_v21, %v7189_v45  ;;  %v3164_v41 = vperm.slane %v2900_v58, 0  ;;  %v3184_v55 = vperm.slane %v2900_v58, 2 }
 0x580   : > { %v3097_v15 = vadd.f32 %v3095_v33, %v3087_v31  ;;  %v3098_v38 = vadd.f32 %v3096_v13, %v3088_v46  ;;  %v3171_v51 = vpop.permute.xlu2 %3170  ;;  %v3174_v13 = vperm.slane %v2900_v58, 1 }
 0x581   : > { %v3163_v50 = vperm.slane %v2899_v11, 0  ;;  %v3173_v33 = vperm.slane %v2899_v11, 1 }
 0x582   : > { %v3108_v0 = vadd.f32 %v3106_v63, %v3098_v38  ;;  %v3107_v44 = vadd.f32 %v3105_v27, %v3097_v15  ;;  %v3176_v27 = vmul.f32 %v3174_v13, %v3171_v51  ;;  %v2905_v38 = vsel %vm607_vm6, %v6158_v5, %v6181_v62 }
 0x583   : > { %v3175_v2 = vmul.f32 %v3173_v33, %v3171_v51 }
 0x584   : > { %v3111_v10 = vpop.permute.xlu1 %3110 }
 0x585   : > { %v3115_v54 = vmul.f32 %v3113_v1, %v3111_v10  ;;  %v3116_v42 = vmul.f32 %v3114_v37, %v3111_v10  ;;  %v3183_v10 = vperm.slane %v2899_v11, 2  ;;  %v3251_v13 = vpop.permute.xlu0 %3250 }
 0x587   : > { %v3117_v19 = vadd.f32 %v3115_v54, %v3107_v44  ;;  %v3118_v53 = vadd.f32 %v3116_v42, %v3108_v0  ;;  %v2907_v0 = vmul.f32 %v2905_v38, %v7191_v26  ;;  %v7192_v44 = vld [vmem:[#allocation52_spill] sm:$0xff]  ;;  %v3193_v54 = vperm.slane %v2899_v11, 3 }
 0x588   : > { %v2908_v37 = vmul.f32 %v2906_v35, %v7192_v44  ;;  %v3191_v1 = vpop.permute.xlu2 %3190  ;;  %v3194_v42 = vperm.slane %v2900_v58, 3  ;;  %v7193_v58 = vld [vmem:[#allocation53_spill] sm:$0xff] }
 0x589   : > { %v3128_v28 = vadd.f32 %v3126_v12, %v3118_v53  ;;  %v3127_v56 = vadd.f32 %v3125_v22, %v3117_v19  ;;  %v3203_v19 = vperm.slane %v2907_v0, 0  ;;  %v3213_v57 = vperm.slane %v2907_v0, 1 }
 0x58a   : > { %v3204_v53 = vperm.slane %v2908_v37, 0  ;;  %v3196_v47 = vmul.f32 %v3194_v42, %v3191_v1  ;;  %v3223_v23 = vperm.slane %v2907_v0, 2  ;;  %v3224_v18 = vperm.slane %v2908_v37, 2 }
 0x58b   : > { %v3233_v51 = vperm.slane %v2907_v0, 3 }
 0x58d   : > { %v3131_v3 = vpop.permute.xlu1 %3130 }
 0x58e   : > { %v3135_v36 = vmul.f32 %v3133_v25, %v3131_v3  ;;  %v3136_v48 = vmul.f32 %v3134_v24, %v3131_v3  ;;  %v3206_v25 = vmul.f32 %v3204_v53, %v3201_v8 }
 0x590   : > { %v3137_v52 = vadd.f32 %v3135_v36, %v3127_v56  ;;  %v3138_v17 = vadd.f32 %v3136_v48, %v3128_v28  ;;  %v3195_v28 = vmul.f32 %v3193_v54, %v3191_v1  ;;  %v3205_v56 = vmul.f32 %v3203_v19, %v3201_v8  ;;  %v3221_v21 = vpop.permute.xlu2 %3220 }
 0x591   : > { %v3214_v36 = vperm.slane %v2908_v37, 1 }
 0x592   : > { %v3147_v59 = vadd.f32 %v3145_v34, %v3137_v52  ;;  %v3148_v16 = vadd.f32 %v3146_v49, %v3138_v17  ;;  %v3225_v49 = vmul.f32 %v3223_v23, %v3221_v21  ;;  %v3226_v52 = vmul.f32 %v3224_v18, %v3221_v21 }
 0x594   : > { %v3158_v29 = vadd.f32 %v3156_v7, %v3148_v16  ;;  %v3157_v9 = vadd.f32 %v3155_v40, %v3147_v59  ;;  %v2915_v40 = vmul.f32 %v6187_v20, %v7193_v58  ;;  %v7194_v7 = vld [vmem:[#allocation54_spill] sm:$0xff] }
 0x595   : > { %v2916_v59 = vmul.f32 %v6191_v32, %v7194_v7 }
 0x596   : > { %v3161_v14 = vpop.permute.xlu1 %3160  ;;  %v3263_v26 = vperm.slane %v2915_v40, 2  ;;  %v3273_v1 = vperm.slane %v2915_v40, 3 }
 0x597   : > { %v3165_v31 = vmul.f32 %v3163_v50, %v3161_v14  ;;  %v3166_v46 = vmul.f32 %v3164_v41, %v3161_v14  ;;  %v3243_v50 = vperm.slane %v2915_v40, 0  ;;  %v3244_v41 = vperm.slane %v2916_v59, 0 }
 0x598   : > { %v3241_v16 = vpop.permute.xlu2 %3240  ;;  %v3264_v0 = vperm.slane %v2916_v59, 2 }
 0x599   : > { %v3167_v63 = vadd.f32 %v3165_v31, %v3157_v9  ;;  %v3168_v15 = vadd.f32 %v3166_v46, %v3158_v29  ;;  %v3234_v29 = vperm.slane %v2908_v37, 3  ;;  %v3253_v31 = vperm.slane %v2915_v40, 1 }
 0x59a   : > { %v3254_v46 = vperm.slane %v2916_v59, 1 }
 0x59b   : > { %v3178_v43 = vadd.f32 %v3176_v27, %v3168_v15  ;;  %v3177_v4 = vadd.f32 %v3175_v2, %v3167_v63  ;;  %v3245_v2 = vmul.f32 %v3243_v50, %v3241_v16  ;;  %v3246_v27 = vmul.f32 %v3244_v41, %v3241_v16 }
 0x59c   : > { %v3255_v38 = vmul.f32 %v3253_v31, %v3251_v13  ;;  %v3256_v20 = vmul.f32 %v3254_v46, %v3251_v13 }
 0x59f   : > { %v3181_v6 = vpop.permute.xlu1 %3180 }
 0x5a0   : > { %v3185_v22 = vmul.f32 %v3183_v10, %v3181_v6  ;;  %v3186_v12 = vmul.f32 %v3184_v55, %v3181_v6  ;;  %v3274_v10 = vperm.slane %v2916_v59, 3 }
 0x5a1   : > { %v3271_v44 = vpop.permute.xlu2 %3270 }
 0x5a2   : > { %v3187_v5 = vadd.f32 %v3185_v22, %v3177_v4  ;;  %v3188_v62 = vadd.f32 %v3186_v12, %v3178_v43  ;;  %v3275_v54 = vmul.f32 %v3273_v1, %v3271_v44  ;;  %v3276_v42 = vmul.f32 %v3274_v10, %v3271_v44 }
 0x5a4   : > { %v3197_v24 = vadd.f32 %v3195_v28, %v3187_v5  ;;  %v3198_v60 = vadd.f32 %v3196_v47, %v3188_v62 }
 0x5a6   : > { %v3208_v39 = vadd.f32 %v3206_v25, %v3198_v60  ;;  %v3207_v3 = vadd.f32 %v3205_v56, %v3197_v24 }
 0x5a8   : > { %v3211_v48 = vpop.permute.xlu1 %3210 }
 0x5a9   : > { %v3215_v61 = vmul.f32 %v3213_v57, %v3211_v48  ;;  %v3216_v34 = vmul.f32 %v3214_v36, %v3211_v48 }
 0x5ab   : > { %v3217_v17 = vadd.f32 %v3215_v61, %v3207_v3  ;;  %v3218_v45 = vadd.f32 %v3216_v34, %v3208_v39 }
 0x5ad   : > { %v3228_v11 = vadd.f32 %v3226_v52, %v3218_v45  ;;  %v3227_v30 = vadd.f32 %v3225_v49, %v3217_v17 }
 0x5b1   : > { %v3231_v9 = vpop.permute.xlu1 %3230 }
 0x5b2   : > { %v3235_v14 = vmul.f32 %v3233_v51, %v3231_v9  ;;  %v3236_v33 = vmul.f32 %v3234_v29, %v3231_v9 }
 0x5b4   : > { %v3237_v63 = vadd.f32 %v3235_v14, %v3227_v30  ;;  %v3238_v15 = vadd.f32 %v3236_v33, %v3228_v11 }
 0x5b6   : > { %v3247_v35 = vadd.f32 %v3245_v2, %v3237_v63  ;;  %v3248_v43 = vadd.f32 %v3246_v27, %v3238_v15 }
 0x5b8   : > { %v3258_v32 = vadd.f32 %v3256_v20, %v3248_v43  ;;  %v3257_v4 = vadd.f32 %v3255_v38, %v3247_v35 }
 0x5ba   : > { %v3261_v37 = vpop.permute.xlu1 %3260 }
 0x5bb   : > { %v3265_v55 = vmul.f32 %v3263_v26, %v3261_v37  ;;  %v3266_v6 = vmul.f32 %v3264_v0, %v3261_v37 }
 0x5bd   : > { %v3267_v22 = vadd.f32 %v3265_v55, %v3257_v4  ;;  %v3268_v12 = vadd.f32 %v3266_v6, %v3258_v32 }
 0x5bf   : > { %v3278_v19 = vadd.f32 %v3276_v42, %v3268_v12  ;;  %v3277_v53 = vadd.f32 %v3275_v54, %v3267_v22 }
 0x5c3   : > { %v3283_v8 = vpop.permute.xlu1 %3282 }
 0x5c4   : > { %v3286_v28 = vadd.f32 %v3283_v8, %v3278_v19  ;;  %v3285_v47 = vadd.f32 %v3283_v8, %v3277_v53 }
 0x5c6   : > { %v3289_v5 = vrot.slane %v3286_v28, 4 }
 0x5c8   : > { %v3291_v62 = vsel %vm3290_vm8, %v3285_v47, %v3289_v5 }
 0x5c9   : > { %3293 = vst [vmem:[%s467_s17] sm:$0xff] %v3291_v62 }
 0x5ca PF: > { %s22_s21 = sadd.s32 1, %s3731_s21  }
 0x5cb   : > { %p19_p4 = scmp.ge.s32.totalorder %s22_s21, 4  }
 0x5cd   :  { %21 = sbr.rel (!%p19_p4) target bundleno = 1 (0x1), region = 118 }

</bundles_post_ra>
